<compile_context>
chip_gen: v7x
topology: tpu7x:2x2x1
jax: 0.10.0
libtpu: 0.0.40
codegen_flags: <defaults>
</compile_context>

<pallas_src>
import functools

import jax
import jax.numpy as jnp
from jax.experimental import pallas as pl
from jax.experimental.pallas import tpu as pltpu

EPS = 1e-5                      # nn.InstanceNorm3d default eps
LEAK = 0.01                     # leaky-relu negative slope
VMEM_LIMIT = 48 * 1024 * 1024   # > 32MiB scoped default, < v7x 64MiB physical


def _spatial_tile(S, cap=2048):
    """Lane tile for flattened-spatial kernels: the full S, or a multiple of 128."""
    return S if S <= cap else cap


# ----------------------------------------------------------------------------
# Kernel 1: InstanceNorm statistics of cat(x1, x2) (layer 0 only -- the other
# layers get their stats for free from the conv epilogues).  Accumulates
# per-(instance, channel) sum / sum^2 over spatial tiles and emits the folded
# affine:  normalized = x * scale + shift.
# ----------------------------------------------------------------------------
def _inst_stats_kernel(x1_ref, x2_ref, g_ref, b_ref, scale_ref, shift_ref,
                       s_acc, ss_acc, *, S, ts, eps):
    j = pl.program_id(1)

    @pl.when(j == 0)
    def _init():
        s_acc[...] = jnp.zeros_like(s_acc)
        ss_acc[...] = jnp.zeros_like(ss_acc)

    # Mask the ragged tail tile (if S % ts != 0) so garbage lanes don't pollute sums.
    col = jax.lax.broadcasted_iota(jnp.int32, (1, ts), 1) + j * ts
    valid = col < S
    x1 = jnp.where(valid, x1_ref[0], 0.0)                    # (C1, ts)
    x2 = jnp.where(valid, x2_ref[0], 0.0)                    # (C2, ts)
    s_acc[...] += jnp.concatenate(
        [jnp.sum(x1, axis=1, keepdims=True),
         jnp.sum(x2, axis=1, keepdims=True)], axis=0)        # (C, 1)
    ss_acc[...] += jnp.concatenate(
        [jnp.sum(x1 * x1, axis=1, keepdims=True),
         jnp.sum(x2 * x2, axis=1, keepdims=True)], axis=0)

    @pl.when(j == pl.num_programs(1) - 1)
    def _finalize():
        inv_n = 1.0 / float(S)
        mean = s_acc[...] * inv_n
        var = ss_acc[...] * inv_n - mean * mean               # biased var
        scale = g_ref[...] * jax.lax.rsqrt(var + eps)         # (C, 1)
        scale_ref[0] = scale
        shift_ref[0] = b_ref[...] - mean * scale


def inst_stats_concat(x1, x2, gamma, beta, eps=EPS):
    """x1: (N, C1, S), x2: (N, C2, S) -> (scale, shift), each (N, C1+C2, 1) f32."""
    N, C1, S = x1.shape
    C2 = x2.shape[1]
    C = C1 + C2
    ts = _spatial_tile(S)
    g = gamma.reshape(C, 1).astype(jnp.float32)
    b = beta.reshape(C, 1).astype(jnp.float32)
    kernel = functools.partial(_inst_stats_kernel, S=S, ts=ts, eps=eps)
    return pl.pallas_call(
        kernel,
        out_shape=(jax.ShapeDtypeStruct((N, C, 1), jnp.float32),
                   jax.ShapeDtypeStruct((N, C, 1), jnp.float32)),
        grid=(N, pl.cdiv(S, ts)),
        in_specs=[
            pl.BlockSpec((1, C1, ts), lambda n, j: (n, 0, j)),
            pl.BlockSpec((1, C2, ts), lambda n, j: (n, 0, j)),
            pl.BlockSpec((C, 1), lambda n, j: (0, 0)),
            pl.BlockSpec((C, 1), lambda n, j: (0, 0)),
        ],
        out_specs=(pl.BlockSpec((1, C, 1), lambda n, j: (n, 0, 0)),
                   pl.BlockSpec((1, C, 1), lambda n, j: (n, 0, 0))),
        scratch_shapes=[pltpu.VMEM((C, 1), jnp.float32),
                        pltpu.VMEM((C, 1), jnp.float32)],
        compiler_params=pltpu.CompilerParams(
            dimension_semantics=("parallel", "arbitrary"),
            vmem_limit_bytes=VMEM_LIMIT),
    )(x1, x2, g, b)


def fold_stats(psum, pssq, gamma, beta, S, eps=EPS):
    """Per-plane partial sums (N, D, C, 1) -> folded InstanceNorm (scale, shift) (N, C, 1)."""
    s = jnp.sum(psum, axis=1)                                 # tiny XLA reduce over D
    ss = jnp.sum(pssq, axis=1)
    mean = s / S
    var = ss / S - mean * mean                                # biased var
    scale = gamma.reshape(1, -1, 1).astype(jnp.float32) * jax.lax.rsqrt(var + eps)
    shift = beta.reshape(1, -1, 1).astype(jnp.float32) - mean * scale
    return scale, shift


# ----------------------------------------------------------------------------
# Kernel 2: implicit-GEMM 3x3x3 "same" conv.  Grid = (N, D): each step loads the
# three depth-neighbour planes (three BlockSpecs), applies the fused
# InstanceNorm(+affine)+LeakyReLU prologue, accumulates all 27 taps in-register
# (in-plane taps = lane shifts of a once-padded tile), adds bias (+ residual),
# and optionally emits per-plane sum / sum^2 of its own output (stats for the
# following InstanceNorm come for free).
# ----------------------------------------------------------------------------
def _fused_conv3x3_kernel(*refs, W, D, cin_splits, has_res, emit_stats, leak):
    n_in = len(cin_splits)
    Cin = sum(cin_splits)
    idx = 0
    x_refs = refs[idx: idx + 3 * n_in]            # ordered [kd=0 splits..., kd=1 ..., kd=2 ...]
    idx += 3 * n_in
    w_ref = refs[idx]; idx += 1                   # (27, Cout, Cin)
    scale_ref = refs[idx]; idx += 1               # (1, Cin, 1)
    shift_ref = refs[idx]; idx += 1
    b_ref = refs[idx]; idx += 1                   # (Cout, 1)
    res_ref = None
    if has_res:
        res_ref = refs[idx]; idx += 1
    o_ref = refs[idx]; idx += 1                   # (1, Cout, HW)
    sum_ref = ssq_ref = None
    if emit_stats:
        sum_ref, ssq_ref = refs[idx], refs[idx + 1]
        idx += 2

    d = pl.program_id(1)
    Cout, HW = o_ref.shape[1], o_ref.shape[2]
    P = W + 1
    wpos = jax.lax.broadcasted_iota(jnp.int32, (1, HW), 1) % W   # column-within-row
    scale = scale_ref[0]
    shift = shift_ref[0]

    acc = jnp.zeros((Cout, HW), jnp.float32)
    for kd in range(3):
        # Fused InstanceNorm + LeakyReLU prologue on each channel split of the
        # depth-neighbour plane d + kd - 1, concatenated in-register (never in HBM).
        parts = []
        off = 0
        for i, ci in enumerate(cin_splits):
            xi = x_refs[kd * n_in + i][0]                        # (ci, HW)
            if n_in == 1:
                sci, shi = scale, shift
            else:
                sci, shi = scale[off:off + ci], shift[off:off + ci]
            xni = xi * sci + shi
            xni = jnp.where(xni >= 0, xni, leak * xni)
            parts.append(xni)
            off += ci
        xn = parts[0] if n_in == 1 else jnp.concatenate(parts, axis=0)   # (Cin, HW)
        if kd != 1:
            dz = d + (kd - 1)
            valid_f = jnp.logical_and(dz >= 0, dz < D).astype(xn.dtype)
            xn = xn * valid_f                      # OOB depth tap == zero padding

        # Zero-pad the flattened H*W axis once; each (kh, kw) tap is a static slice.
        zpad = jnp.zeros((Cin, P), xn.dtype)
        xn_p = jnp.concatenate([zpad, xn, zpad], axis=1)         # (Cin, HW + 2P)
        for kh in range(3):
            for kw in range(3):
                dh, dw = kh - 1, kw - 1
                s = dh * W + dw                    # shift on the flattened H*W axis
                xs = xn_p[:, P + s: P + s + HW]    # zero-filled shifted tap
                if dw == 1:                        # right neighbour: last column invalid
                    xs = jnp.where(wpos == W - 1, 0.0, xs)
                elif dw == -1:                     # left neighbour: first column invalid
                    xs = jnp.where(wpos == 0, 0.0, xs)
                acc = acc + jnp.dot(w_ref[kd * 9 + kh * 3 + kw], xs,   # (Cout,Cin)@(Cin,HW)
                                    preferred_element_type=jnp.float32)

    y = acc + b_ref[...]                           # + bias
    if has_res:
        y = y + res_ref[0]                         # + residual skip
    o_ref[0] = y.astype(o_ref.dtype)
    if emit_stats:                                 # free stats for the next InstanceNorm
        sum_ref[0, 0] = jnp.sum(y, axis=1, keepdims=True)        # (Cout, 1)
        ssq_ref[0, 0] = jnp.sum(y * y, axis=1, keepdims=True)


def conv3x3_fused(xs, w_taps, bias, scale, shift, *, D, W, residual=None,
                  emit_stats=False, leak=LEAK):
    """xs: list of (N, Cin_i, D*H*W) channel splits (concatenated in-kernel).
    w_taps: (27, Cout, Cin). Returns y (N, Cout, D*H*W) [, per-plane sum, sum^2]."""
    N, _, S = xs[0].shape
    cin_splits = tuple(int(x.shape[1]) for x in xs)
    Cin = sum(cin_splits)
    HW = S // D
    assert HW * D == S
    Cout = w_taps.shape[1]
    if D > 1 and (HW % 128) != 0:
        # TODO(synk): add an (N, D, C, H*W)-layout fallback (one transpose in/out) for H*W not a multiple of 128.
        raise NotImplementedError(f"conv3x3_fused needs H*W % 128 == 0 (or D == 1); got H*W={HW}")
    b = bias.reshape(Cout, 1).astype(jnp.float32)

    def x_map(kd):
        def f(n, d):
            dz = d + (kd - 1)
            # clamp; the OOB tap's contribution is zeroed in-kernel
            return (n, 0, jnp.maximum(jnp.minimum(dz, D - 1), 0))
        return f

    in_specs = []
    args = []
    for kd in range(3):
        for i, x in enumerate(xs):
            in_specs.append(pl.BlockSpec((1, cin_splits[i], HW), x_map(kd)))
            args.append(x)
    in_specs += [
        pl.BlockSpec((27, Cout, Cin), lambda n, d: (0, 0, 0)),
        pl.BlockSpec((1, Cin, 1), lambda n, d: (n, 0, 0)),
        pl.BlockSpec((1, Cin, 1), lambda n, d: (n, 0, 0)),
        pl.BlockSpec((Cout, 1), lambda n, d: (0, 0)),
    ]
    args += [w_taps, scale, shift, b]
    if residual is not None:
        in_specs.append(pl.BlockSpec((1, Cout, HW), lambda n, d: (n, 0, d)))
        args.append(residual)

    out_shapes = [jax.ShapeDtypeStruct((N, Cout, S), jnp.float32)]
    out_specs = [pl.BlockSpec((1, Cout, HW), lambda n, d: (n, 0, d))]
    if emit_stats:
        out_shapes += [jax.ShapeDtypeStruct((N, D, Cout, 1), jnp.float32)] * 2
        out_specs += [pl.BlockSpec((1, 1, Cout, 1), lambda n, d: (n, d, 0, 0))] * 2

    kernel = functools.partial(
        _fused_conv3x3_kernel, W=W, D=D, cin_splits=cin_splits,
        has_res=residual is not None, emit_stats=emit_stats, leak=leak)

    out = pl.pallas_call(
        kernel,
        out_shape=tuple(out_shapes),
        grid=(N, D),
        in_specs=in_specs,
        out_specs=tuple(out_specs),
        compiler_params=pltpu.CompilerParams(
            dimension_semantics=("parallel", "parallel"),
            vmem_limit_bytes=VMEM_LIMIT),
    )(*args)
    if emit_stats:
        return out[0], out[1], out[2]
    return out[0]


# ----------------------------------------------------------------------------
# Kernel 3: final head -- InstanceNorm+LeakyReLU prologue, 1x1x1 conv (pure
# matmul) + bias, and channel softmax, all fused in one kernel.
# ----------------------------------------------------------------------------
def _norm_lrelu_1x1_softmax_kernel(x_ref, scale_ref, shift_ref, w_ref, b_ref, o_ref,
                                   *, leak):
    x = x_ref[0]                                       # (Cin, ts)
    xn = x * scale_ref[0] + shift_ref[0]
    xn = jnp.where(xn >= 0, xn, leak * xn)
    logits = jnp.dot(w_ref[...], xn,                   # (K, Cin) @ (Cin, ts)
                     preferred_element_type=jnp.float32) + b_ref[...]
    m = jnp.max(logits, axis=0, keepdims=True)
    e = jnp.exp(logits - m)
    o_ref[0] = (e / jnp.sum(e, axis=0, keepdims=True)).astype(o_ref.dtype)


def head_1x1_softmax(x, w, bias, scale, shift, leak=LEAK):
    """x: (N, Cin, S); w: (K, Cin); returns per-voxel channel softmax (N, K, S)."""
    N, Cin, S = x.shape
    K = w.shape[0]
    ts = _spatial_tile(S)
    b = bias.reshape(K, 1).astype(jnp.float32)
    kernel = functools.partial(_norm_lrelu_1x1_softmax_kernel, leak=leak)
    return pl.pallas_call(
        kernel,
        out_shape=jax.ShapeDtypeStruct((N, K, S), jnp.float32),
        grid=(N, pl.cdiv(S, ts)),
        in_specs=[
            pl.BlockSpec((1, Cin, ts), lambda n, j: (n, 0, j)),
            pl.BlockSpec((1, Cin, 1), lambda n, j: (n, 0, 0)),
            pl.BlockSpec((1, Cin, 1), lambda n, j: (n, 0, 0)),
            pl.BlockSpec((K, Cin), lambda n, j: (0, 0)),
            pl.BlockSpec((K, 1), lambda n, j: (0, 0)),
        ],
        out_specs=pl.BlockSpec((1, K, ts), lambda n, j: (n, 0, j)),
        compiler_params=pltpu.CompilerParams(
            dimension_semantics=("parallel", "parallel"),
            vmem_limit_bytes=VMEM_LIMIT),
    )(x, scale, shift, w, b)


# ----------------------------------------------------------------------------
# Weight layout helper + synthetic parameters (PyTorch Conv3d layouts).
# ----------------------------------------------------------------------------
def conv3d_weight_to_taps(w):
    """PyTorch Conv3d weight (Cout, Cin, 3, 3, 3) -> (27, Cout, Cin); taps[kd*9+kh*3+kw] = w[:, :, kd, kh, kw]."""
    cout, cin, kd, kh, kw = w.shape
    return jnp.transpose(w, (2, 3, 4, 0, 1)).reshape(kd * kh * kw, cout, cin)


def init_params(key, input_channels, output_channels):
    C = input_channels
    Ch = C // 2
    ks = jax.random.split(key, 16)
    p = {}
    # InstanceNorm affine (randomized slightly so the affine path is exercised).
    dims = [C, Ch, Ch, Ch]
    for i in range(4):
        p[f"in{i}_g"] = 1.0 + 0.1 * jax.random.normal(ks[2 * i], (dims[i],), jnp.float32)
        p[f"in{i}_b"] = 0.1 * jax.random.normal(ks[2 * i + 1], (dims[i],), jnp.float32)
    # Conv weights kept in the native PyTorch Conv3d layout (Cout, Cin, kd, kh, kw).
    p["w0"] = 0.1 * jax.random.normal(ks[8], (Ch, C, 3, 3, 3), jnp.float32)
    p["b0"] = 0.01 * jax.random.normal(ks[9], (Ch,), jnp.float32)
    p["w1"] = 0.1 * jax.random.normal(ks[10], (Ch, Ch, 3, 3, 3), jnp.float32)
    p["b1"] = 0.01 * jax.random.normal(ks[11], (Ch,), jnp.float32)
    p["w2"] = 0.1 * jax.random.normal(ks[12], (Ch, Ch, 3, 3, 3), jnp.float32)
    p["b2"] = 0.01 * jax.random.normal(ks[13], (Ch,), jnp.float32)
    p["w3"] = 0.1 * jax.random.normal(ks[14], (output_channels, Ch, 1, 1, 1), jnp.float32)
    p["b3"] = 0.01 * jax.random.normal(ks[15], (output_channels,), jnp.float32)
    return p


# ----------------------------------------------------------------------------
# Full forward pass (res=True, activation='softmax').  InstanceNorm uses
# per-instance batch statistics (PyTorch train-mode behaviour, biased var).
# ----------------------------------------------------------------------------
@jax.jit
def out_conv_forward(x1, x2, params):
    # x1, x2: (N, C/2, D, H, W) -- NCDHW, exactly like the PyTorch module.
    N, C1, D, H, W = x1.shape
    C2 = x2.shape[1]
    C = C1 + C2
    S = D * H * W
    Ch = C // 2
    K = params["b3"].shape[0]

    w0 = conv3d_weight_to_taps(params["w0"])
    w1 = conv3d_weight_to_taps(params["w1"])
    w2 = conv3d_weight_to_taps(params["w2"])
    w3 = params["w3"].reshape(K, Ch)                      # 1x1x1 conv == plain matmul

    x1f = x1.reshape(N, C1, S)                            # free reshape (no transpose)
    x2f = x2.reshape(N, C2, S)

    # Layer 0: stats of cat(x1, x2) without an HBM concat; conv0 fused with the
    # norm+lrelu prologue, bias epilogue, and the next layer's stats epilogue.
    sc, sh = inst_stats_concat(x1f, x2f, params["in0_g"], params["in0_b"])
    h0, ps, pss = conv3x3_fused([x1f, x2f], w0, params["b0"], sc, sh,
                                D=D, W=W, emit_stats=True)                          # conv0
    skip = h0
    sc, sh = fold_stats(ps, pss, params["in1_g"], params["in1_b"], S)
    h1, ps, pss = conv3x3_fused([h0], w1, params["b1"], sc, sh,
                                D=D, W=W, emit_stats=True)                          # conv1
    sc, sh = fold_stats(ps, pss, params["in2_g"], params["in2_b"], S)
    h2, ps, pss = conv3x3_fused([h1], w2, params["b2"], sc, sh,
                                D=D, W=W, residual=skip, emit_stats=True)           # conv2 + skip
    sc, sh = fold_stats(ps, pss, params["in3_g"], params["in3_b"], S)
    probs = head_1x1_softmax(h2, w3, params["b3"], sc, sh)                          # conv3 + softmax
    return probs.reshape(N, K, D, H, W)


# ----------------------------------------------------------------------------
# Pure-JAX reference (for correctness validation of the fused kernels).
# ----------------------------------------------------------------------------
def _instnorm_lrelu_ref(x, g, b):
    mean = jnp.mean(x, axis=(2, 3, 4), keepdims=True)
    var = jnp.var(x, axis=(2, 3, 4), keepdims=True)
    y = (x - mean) / jnp.sqrt(var + EPS)
    y = y * g.reshape(1, -1, 1, 1, 1) + b.reshape(1, -1, 1, 1, 1)
    return jnp.where(y >= 0, y, LEAK * y)


def _conv3d_ref(x, w, b):
    y = jax.lax.conv_general_dilated(
        x, w, window_strides=(1, 1, 1), padding="SAME",
        dimension_numbers=("NCDHW", "OIDHW", "NCDHW"),
        precision=jax.lax.Precision.HIGHEST)
    return y + b.reshape(1, -1, 1, 1, 1)


@jax.jit
def out_conv_reference(x1, x2, p):
    x = jnp.concatenate([x1, x2], axis=1)
    x = _instnorm_lrelu_ref(x, p["in0_g"], p["in0_b"])
    x = _conv3d_ref(x, p["w0"], p["b0"])
    skip = x
    x = _instnorm_lrelu_ref(x, p["in1_g"], p["in1_b"])
    x = _conv3d_ref(x, p["w1"], p["b1"])
    x = _instnorm_lrelu_ref(x, p["in2_g"], p["in2_b"])
    x = _conv3d_ref(x, p["w2"], p["b2"])
    x = x + skip
    x = _instnorm_lrelu_ref(x, p["in3_g"], p["in3_b"])
    x = _conv3d_ref(x, p["w3"], p["b3"])
    return jax.nn.softmax(x, axis=1)


if __name__ == "__main__":
    key = jax.random.PRNGKey(0)
    k1, k2, kp = jax.random.split(key, 3)

    N, input_channels, output_channels = 2, 4, 3
    D = H = W = 16
    # x1, x2 each carry half of input_channels (concatenated on dim 1 in forward).
    x1 = jax.random.normal(k1, (N, input_channels // 2, D, H, W), jnp.float32)
    x2 = jax.random.normal(k2, (N, input_channels // 2, D, H, W), jnp.float32)
    params = init_params(kp, input_channels, output_channels)

    out = jax.block_until_ready(out_conv_forward(x1, x2, params))

    assert out.shape == (N, output_channels, D, H, W)
    assert bool(jnp.all(jnp.isfinite(out)))
    # per-voxel channel probabilities sum to 1
    sums = jnp.sum(out, axis=1)
    assert bool(jnp.all(jnp.abs(sums - 1.0) < 1e-4))
    # match the pure-JAX / XLA reference of the PyTorch forward
    ref = jax.block_until_ready(out_conv_reference(x1, x2, params))
    max_err = float(jnp.max(jnp.abs(out - ref)))
    assert max_err < 3e-4, max_err

    print("KERNEL_OK")
</pallas_src>

<mosaic_0001>
module attributes {stable_mosaic.version = 11 : i64} {
  func.func @_inst_stats_kernel(%arg0: i32, %arg1: i32, %arg2: memref<1x2x2048xf32, #tpu.memory_space<vmem>>, %arg3: memref<1x2x2048xf32, #tpu.memory_space<vmem>>, %arg4: memref<4x1xf32, #tpu.memory_space<vmem>>, %arg5: memref<4x1xf32, #tpu.memory_space<vmem>>, %arg6: memref<1x4x1xf32, #tpu.memory_space<vmem>>, %arg7: memref<1x4x1xf32, #tpu.memory_space<vmem>>, %arg8: memref<4x1xf32, #tpu.memory_space<vmem>>, %arg9: memref<4x1xf32, #tpu.memory_space<vmem>>) attributes {dimension_semantics = [#tpu.dimension_semantics<parallel>, #tpu.dimension_semantics<arbitrary>], iteration_bounds = array<i64: 2, 2>, scalar_prefetch = 0 : i64, scratch_operands = 2 : i64, tpu.core_type = #tpu.core_type<tc>, window_params = [{transform_indices = @transform_0, window_bounds = array<i64: 1, 2, 2048>}, {transform_indices = @transform_1, window_bounds = array<i64: 1, 2, 2048>}, {pipeline_mode = #tpu.pipeline_mode<synchronous>, transform_indices = @transform_2, window_bounds = array<i64: 4, 1>}, {pipeline_mode = #tpu.pipeline_mode<synchronous>, transform_indices = @transform_3, window_bounds = array<i64: 4, 1>}, {transform_indices = @transform_4, window_bounds = array<i64: 1, 4, 1>}, {transform_indices = @transform_5, window_bounds = array<i64: 1, 4, 1>}]} {
    %c0_i32 = arith.constant 0 : i32
    %0 = arith.cmpi eq, %arg1, %c0_i32 : i32
    %1 = arith.extui %0 : i1 to i32
    %c0_i32_0 = arith.constant 0 : i32
    %2 = arith.cmpi ne, %1, %c0_i32_0 : i32
    scf.if %2 {
      %cst_20 = arith.constant 0.000000e+00 : f32
      %42 = vector.broadcast %cst_20 : f32 to vector<4x1xf32>
      %c0_21 = arith.constant 0 : index
      %c0_22 = arith.constant 0 : index
      %43 = vector.load %arg8[%c0_21, %c0_22] : memref<4x1xf32, #tpu.memory_space<vmem>>, vector<4x1xf32>
      tpu.vector_store %arg8[%c0_21, %c0_22], %42 {strides = array<i32>} : memref<4x1xf32, #tpu.memory_space<vmem>>, vector<4x1xf32>,
      %cst_23 = arith.constant 0.000000e+00 : f32
      %44 = vector.broadcast %cst_23 : f32 to vector<4x1xf32>
      %c0_24 = arith.constant 0 : index
      %c0_25 = arith.constant 0 : index
      %45 = vector.load %arg9[%c0_24, %c0_25] : memref<4x1xf32, #tpu.memory_space<vmem>>, vector<4x1xf32>
      tpu.vector_store %arg9[%c0_24, %c0_25], %44 {strides = array<i32>} : memref<4x1xf32, #tpu.memory_space<vmem>>, vector<4x1xf32>,
    } else {
    }
    %3 = tpu.iota {dimensions = array<i32: 1>} : vector<1x2048xi32>
    %c2048_i32 = arith.constant 2048 : i32
    %4 = arith.muli %arg1, %c2048_i32 : i32
    %5 = vector.broadcast %4 : i32 to vector<1x2048xi32>
    %6 = arith.addi %3, %5 : vector<1x2048xi32>
    %c4096_i32 = arith.constant 4096 : i32
    %7 = vector.broadcast %c4096_i32 : i32 to vector<1x2048xi32>
    %8 = arith.cmpi slt, %6, %7 : vector<1x2048xi32>
    %c0 = arith.constant 0 : index
    %c0_1 = arith.constant 0 : index
    %c0_2 = arith.constant 0 : index
    %9 = vector.load %arg2[%c0, %c0_1, %c0_2] : memref<1x2x2048xf32, #tpu.memory_space<vmem>>, vector<1x2x2048xf32>
    %10 = vector.shape_cast %9 : vector<1x2x2048xf32> to vector<2x2048xf32>
    %cst = arith.constant 0.000000e+00 : f32
    %11 = vector.shape_cast %8 : vector<1x2048xi1> to vector<1x2048xi1>
    %12 = vector.broadcast %11 : vector<1x2048xi1> to vector<2x2048xi1>
    %13 = vector.broadcast %cst : f32 to vector<2x2048xf32>
    %14 = arith.select %12, %10, %13 : vector<2x2048xi1>, vector<2x2048xf32>
    %c0_3 = arith.constant 0 : index
    %c0_4 = arith.constant 0 : index
    %c0_5 = arith.constant 0 : index
    %15 = vector.load %arg3[%c0_3, %c0_4, %c0_5] : memref<1x2x2048xf32, #tpu.memory_space<vmem>>, vector<1x2x2048xf32>
    %16 = vector.shape_cast %15 : vector<1x2x2048xf32> to vector<2x2048xf32>
    %cst_6 = arith.constant 0.000000e+00 : f32
    %17 = vector.shape_cast %8 : vector<1x2048xi1> to vector<1x2048xi1>
    %18 = vector.broadcast %17 : vector<1x2048xi1> to vector<2x2048xi1>
    %19 = vector.broadcast %cst_6 : f32 to vector<2x2048xf32>
    %20 = arith.select %18, %16, %19 : vector<2x2048xi1>, vector<2x2048xf32>
    %c0_7 = arith.constant 0 : index
    %c0_8 = arith.constant 0 : index
    %21 = vector.load %arg8[%c0_7, %c0_8] : memref<4x1xf32, #tpu.memory_space<vmem>>, vector<4x1xf32>
    %cst_9 = arith.constant dense<0.000000e+00> : vector<2xf32>
    %22 = vector.multi_reduction <add>, %14, %cst_9 [1] : vector<2x2048xf32> to vector<2xf32>
    %23 = vector.shape_cast %22 : vector<2xf32> to vector<2x1xf32>
    %cst_10 = arith.constant dense<0.000000e+00> : vector<2xf32>
    %24 = vector.multi_reduction <add>, %20, %cst_10 [1] : vector<2x2048xf32> to vector<2xf32>
    %25 = vector.shape_cast %24 : vector<2xf32> to vector<2x1xf32>
    %26 = tpu.concatenate %23, %25 in 0 : vector<2x1xf32>, vector<2x1xf32> -> vector<4x1xf32>
    %27 = arith.addf %21, %26 : vector<4x1xf32>
    %c0_11 = arith.constant 0 : index
    %c0_12 = arith.constant 0 : index
    %28 = vector.load %arg8[%c0_11, %c0_12] : memref<4x1xf32, #tpu.memory_space<vmem>>, vector<4x1xf32>
    tpu.vector_store %arg8[%c0_11, %c0_12], %27 {strides = array<i32>} : memref<4x1xf32, #tpu.memory_space<vmem>>, vector<4x1xf32>,
    %c0_13 = arith.constant 0 : index
    %c0_14 = arith.constant 0 : index
    %29 = vector.load %arg9[%c0_13, %c0_14] : memref<4x1xf32, #tpu.memory_space<vmem>>, vector<4x1xf32>
    %30 = arith.mulf %14, %14 : vector<2x2048xf32>
    %cst_15 = arith.constant dense<0.000000e+00> : vector<2xf32>
    %31 = vector.multi_reduction <add>, %30, %cst_15 [1] : vector<2x2048xf32> to vector<2xf32>
    %32 = vector.shape_cast %31 : vector<2xf32> to vector<2x1xf32>
    %33 = arith.mulf %20, %20 : vector<2x2048xf32>
    %cst_16 = arith.constant dense<0.000000e+00> : vector<2xf32>
    %34 = vector.multi_reduction <add>, %33, %cst_16 [1] : vector<2x2048xf32> to vector<2xf32>
    %35 = vector.shape_cast %34 : vector<2xf32> to vector<2x1xf32>
    %36 = tpu.concatenate %32, %35 in 0 : vector<2x1xf32>, vector<2x1xf32> -> vector<4x1xf32>
    %37 = arith.addf %29, %36 : vector<4x1xf32>
    %c0_17 = arith.constant 0 : index
    %c0_18 = arith.constant 0 : index
    %38 = vector.load %arg9[%c0_17, %c0_18] : memref<4x1xf32, #tpu.memory_space<vmem>>, vector<4x1xf32>
    tpu.vector_store %arg9[%c0_17, %c0_18], %37 {strides = array<i32>} : memref<4x1xf32, #tpu.memory_space<vmem>>, vector<4x1xf32>,
    %c1_i32 = arith.constant 1 : i32
    %39 = arith.cmpi eq, %arg1, %c1_i32 : i32
    %40 = arith.extui %39 : i1 to i32
    %c0_i32_19 = arith.constant 0 : i32
    %41 = arith.cmpi ne, %40, %c0_i32_19 : i32
    scf.if %41 {
      %c0_20 = arith.constant 0 : index
      %c0_21 = arith.constant 0 : index
      %42 = vector.load %arg8[%c0_20, %c0_21] : memref<4x1xf32, #tpu.memory_space<vmem>>, vector<4x1xf32>
      %cst_22 = arith.constant 2.44140625E-4 : f32
      %43 = vector.broadcast %cst_22 : f32 to vector<4x1xf32>
      %44 = arith.mulf %42, %43 : vector<4x1xf32>
      %c0_23 = arith.constant 0 : index
      %c0_24 = arith.constant 0 : index
      %45 = vector.load %arg9[%c0_23, %c0_24] : memref<4x1xf32, #tpu.memory_space<vmem>>, vector<4x1xf32>
      %cst_25 = arith.constant 2.44140625E-4 : f32
      %46 = vector.broadcast %cst_25 : f32 to vector<4x1xf32>
      %47 = arith.mulf %45, %46 : vector<4x1xf32>
      %48 = arith.mulf %44, %44 : vector<4x1xf32>
      %49 = arith.subf %47, %48 : vector<4x1xf32>
      %c0_26 = arith.constant 0 : index
      %c0_27 = arith.constant 0 : index
      %50 = vector.load %arg4[%c0_26, %c0_27] : memref<4x1xf32, #tpu.memory_space<vmem>>, vector<4x1xf32>
      %cst_28 = arith.constant 9.99999974E-6 : f32
      %51 = vector.broadcast %cst_28 : f32 to vector<4x1xf32>
      %52 = arith.addf %49, %51 : vector<4x1xf32>
      %53 = math.rsqrt %52 : vector<4x1xf32>
      %54 = arith.mulf %50, %53 : vector<4x1xf32>
      %c0_29 = arith.constant 0 : index
      %c0_30 = arith.constant 0 : index
      %c0_31 = arith.constant 0 : index
      %55 = vector.load %arg6[%c0_29, %c0_30, %c0_31] : memref<1x4x1xf32, #tpu.memory_space<vmem>>, vector<1x4x1xf32>
      %56 = vector.shape_cast %55 : vector<1x4x1xf32> to vector<4x1xf32>
      %57 = vector.shape_cast %54 : vector<4x1xf32> to vector<1x4x1xf32>
      tpu.vector_store %arg6[%c0_29, %c0_30, %c0_31], %57 {strides = array<i32>} : memref<1x4x1xf32, #tpu.memory_space<vmem>>, vector<1x4x1xf32>,
      %c0_32 = arith.constant 0 : index
      %c0_33 = arith.constant 0 : index
      %58 = vector.load %arg5[%c0_32, %c0_33] : memref<4x1xf32, #tpu.memory_space<vmem>>, vector<4x1xf32>
      %59 = arith.mulf %44, %54 : vector<4x1xf32>
      %60 = arith.subf %58, %59 : vector<4x1xf32>
      %c0_34 = arith.constant 0 : index
      %c0_35 = arith.constant 0 : index
      %c0_36 = arith.constant 0 : index
      %61 = vector.load %arg7[%c0_34, %c0_35, %c0_36] : memref<1x4x1xf32, #tpu.memory_space<vmem>>, vector<1x4x1xf32>
      %62 = vector.shape_cast %61 : vector<1x4x1xf32> to vector<4x1xf32>
      %63 = vector.shape_cast %60 : vector<4x1xf32> to vector<1x4x1xf32>
      tpu.vector_store %arg7[%c0_34, %c0_35, %c0_36], %63 {strides = array<i32>} : memref<1x4x1xf32, #tpu.memory_space<vmem>>, vector<1x4x1xf32>,
    } else {
    }
    return
  }
  func.func @transform_0(%arg0: i32, %arg1: i32) -> (i32, i32, i32) {
    %c0_i32 = arith.constant 0 : i32
    %c0_i32_0 = arith.constant 0 : i32
    return %arg0, %c0_i32, %arg1 : i32, i32, i32
  }
  func.func @transform_1(%arg0: i32, %arg1: i32) -> (i32, i32, i32) {
    %c0_i32 = arith.constant 0 : i32
    %c0_i32_0 = arith.constant 0 : i32
    return %arg0, %c0_i32, %arg1 : i32, i32, i32
  }
  func.func @transform_2(%arg0: i32, %arg1: i32) -> (i32, i32) {
    %c0_i32 = arith.constant 0 : i32
    %c0_i32_0 = arith.constant 0 : i32
    %c0_i32_1 = arith.constant 0 : i32
    return %c0_i32, %c0_i32_0 : i32, i32
  }
  func.func @transform_3(%arg0: i32, %arg1: i32) -> (i32, i32) {
    %c0_i32 = arith.constant 0 : i32
    %c0_i32_0 = arith.constant 0 : i32
    %c0_i32_1 = arith.constant 0 : i32
    return %c0_i32, %c0_i32_0 : i32, i32
  }
  func.func @transform_4(%arg0: i32, %arg1: i32) -> (i32, i32, i32) {
    %c0_i32 = arith.constant 0 : i32
    %c0_i32_0 = arith.constant 0 : i32
    %c0_i32_1 = arith.constant 0 : i32
    return %arg0, %c0_i32, %c0_i32_0 : i32, i32, i32
  }
  func.func @transform_5(%arg0: i32, %arg1: i32) -> (i32, i32, i32) {
    %c0_i32 = arith.constant 0 : i32
    %c0_i32_0 = arith.constant 0 : i32
    %c0_i32_1 = arith.constant 0 : i32
    return %arg0, %c0_i32, %c0_i32_0 : i32, i32, i32
  }
}

module attributes {stable_mosaic.version = 11 : i64} {
  func.func @_fused_conv3x3_kernel(%arg0: i32, %arg1: i32, %arg2: memref<1x2x256xf32, #tpu.memory_space<vmem>>, %arg3: memref<1x2x256xf32, #tpu.memory_space<vmem>>, %arg4: memref<1x2x256xf32, #tpu.memory_space<vmem>>, %arg5: memref<1x2x256xf32, #tpu.memory_space<vmem>>, %arg6: memref<1x2x256xf32, #tpu.memory_space<vmem>>, %arg7: memref<1x2x256xf32, #tpu.memory_space<vmem>>, %arg8: memref<27x2x4xf32, #tpu.memory_space<vmem>>, %arg9: memref<1x4x1xf32, #tpu.memory_space<vmem>>, %arg10: memref<1x4x1xf32, #tpu.memory_space<vmem>>, %arg11: memref<2x1xf32, #tpu.memory_space<vmem>>, %arg12: memref<1x2x256xf32, #tpu.memory_space<vmem>>, %arg13: memref<1x1x2x1xf32, #tpu.memory_space<vmem>>, %arg14: memref<1x1x2x1xf32, #tpu.memory_space<vmem>>) attributes {dimension_semantics = [#tpu.dimension_semantics<parallel>, #tpu.dimension_semantics<parallel>], iteration_bounds = array<i64: 2, 16>, scalar_prefetch = 0 : i64, scratch_operands = 0 : i64, tpu.core_type = #tpu.core_type<tc>, window_params = [{transform_indices = @transform_0, window_bounds = array<i64: 1, 2, 256>}, {transform_indices = @transform_1, window_bounds = array<i64: 1, 2, 256>}, {transform_indices = @transform_2, window_bounds = array<i64: 1, 2, 256>}, {transform_indices = @transform_3, window_bounds = array<i64: 1, 2, 256>}, {transform_indices = @transform_4, window_bounds = array<i64: 1, 2, 256>}, {transform_indices = @transform_5, window_bounds = array<i64: 1, 2, 256>}, {pipeline_mode = #tpu.pipeline_mode<synchronous>, transform_indices = @transform_6, window_bounds = array<i64: 27, 2, 4>}, {transform_indices = @transform_7, window_bounds = array<i64: 1, 4, 1>}, {transform_indices = @transform_8, window_bounds = array<i64: 1, 4, 1>}, {pipeline_mode = #tpu.pipeline_mode<synchronous>, transform_indices = @transform_9, window_bounds = array<i64: 2, 1>}, {transform_indices = @transform_10, window_bounds = array<i64: 1, 2, 256>}, {transform_indices = @transform_11, window_bounds = array<i64: 1, 1, 2, 1>}, {transform_indices = @transform_12, window_bounds = array<i64: 1, 1, 2, 1>}]} {
    %0 = tpu.iota {dimensions = array<i32: 1>} : vector<1x256xi32>
    %c16_i32 = arith.constant 16 : i32
    %c0_i32 = arith.constant 0 : i32
    %1 = arith.cmpi eq, %c16_i32, %c0_i32 : i32
    %c1_i32 = arith.constant 1 : i32
    %2 = arith.select %1, %c1_i32, %c16_i32 : i32
    %3 = vector.broadcast %2 : i32 to vector<1x256xi32>
    %4 = arith.remsi %0, %3 : vector<1x256xi32>
    %c0_i32_0 = arith.constant 0 : i32
    %5 = vector.broadcast %c0_i32_0 : i32 to vector<1x256xi32>
    %6 = arith.cmpi ne, %4, %5 : vector<1x256xi32>
    %c0_i32_1 = arith.constant 0 : i32
    %7 = vector.broadcast %c0_i32_1 : i32 to vector<1x256xi32>
    %8 = arith.cmpi slt, %4, %7 : vector<1x256xi32>
    %c0_i32_2 = arith.constant 0 : i32
    %9 = arith.cmpi slt, %2, %c0_i32_2 : i32
    %10 = vector.broadcast %9 : i1 to vector<1x256xi1>
    %11 = vector.broadcast %10 : vector<1x256xi1> to vector<1x256xi1>
    %12 = arith.xori %8, %11 : vector<1x256xi1>
    %13 = arith.andi %12, %6 : vector<1x256xi1>
    %14 = vector.broadcast %2 : i32 to vector<1x256xi32>
    %15 = arith.addi %4, %14 : vector<1x256xi32>
    %16 = arith.select %13, %15, %4 : vector<1x256xi1>, vector<1x256xi32>
    %c0 = arith.constant 0 : index
    %c0_3 = arith.constant 0 : index
    %c0_4 = arith.constant 0 : index
    %17 = vector.load %arg9[%c0, %c0_3, %c0_4] : memref<1x4x1xf32, #tpu.memory_space<vmem>>, vector<1x4x1xf32>
    %18 = vector.shape_cast %17 : vector<1x4x1xf32> to vector<4x1xf32>
    %c0_5 = arith.constant 0 : index
    %c0_6 = arith.constant 0 : index
    %c0_7 = arith.constant 0 : index
    %19 = vector.load %arg10[%c0_5, %c0_6, %c0_7] : memref<1x4x1xf32, #tpu.memory_space<vmem>>, vector<1x4x1xf32>
    %20 = vector.shape_cast %19 : vector<1x4x1xf32> to vector<4x1xf32>
    %cst = arith.constant 0.000000e+00 : f32
    %21 = vector.broadcast %cst : f32 to vector<2x256xf32>
    %c0_8 = arith.constant 0 : index
    %c0_9 = arith.constant 0 : index
    %c0_10 = arith.constant 0 : index
    %22 = vector.load %arg2[%c0_8, %c0_9, %c0_10] : memref<1x2x256xf32, #tpu.memory_space<vmem>>, vector<1x2x256xf32>
    %23 = vector.shape_cast %22 : vector<1x2x256xf32> to vector<2x256xf32>
    %24 = vector.extract_strided_slice %18 {offsets = [0, 0], sizes = [2, 1], strides = [1, 1]} : vector<4x1xf32> to vector<2x1xf32>
    %25 = vector.extract_strided_slice %20 {offsets = [0, 0], sizes = [2, 1], strides = [1, 1]} : vector<4x1xf32> to vector<2x1xf32>
    %26 = vector.broadcast %24 : vector<2x1xf32> to vector<2x256xf32>
    %27 = arith.mulf %23, %26 : vector<2x256xf32>
    %28 = vector.broadcast %25 : vector<2x1xf32> to vector<2x256xf32>
    %29 = arith.addf %27, %28 : vector<2x256xf32>
    %cst_11 = arith.constant 0.000000e+00 : f32
    %30 = vector.broadcast %cst_11 : f32 to vector<2x256xf32>
    %31 = arith.cmpf oge, %29, %30 : vector<2x256xf32>
    %cst_12 = arith.constant 0.00999999977 : f32
    %32 = vector.broadcast %cst_12 : f32 to vector<2x256xf32>
    %33 = arith.mulf %32, %29 : vector<2x256xf32>
    %34 = arith.select %31, %29, %33 : vector<2x256xi1>, vector<2x256xf32>
    %c0_13 = arith.constant 0 : index
    %c0_14 = arith.constant 0 : index
    %c0_15 = arith.constant 0 : index
    %35 = vector.load %arg3[%c0_13, %c0_14, %c0_15] : memref<1x2x256xf32, #tpu.memory_space<vmem>>, vector<1x2x256xf32>
    %36 = vector.shape_cast %35 : vector<1x2x256xf32> to vector<2x256xf32>
    %37 = vector.extract_strided_slice %18 {offsets = [2, 0], sizes = [2, 1], strides = [1, 1]} : vector<4x1xf32> to vector<2x1xf32>
    %38 = vector.extract_strided_slice %20 {offsets = [2, 0], sizes = [2, 1], strides = [1, 1]} : vector<4x1xf32> to vector<2x1xf32>
    %39 = vector.broadcast %37 : vector<2x1xf32> to vector<2x256xf32>
    %40 = arith.mulf %36, %39 : vector<2x256xf32>
    %41 = vector.broadcast %38 : vector<2x1xf32> to vector<2x256xf32>
    %42 = arith.addf %40, %41 : vector<2x256xf32>
    %cst_16 = arith.constant 0.000000e+00 : f32
    %43 = vector.broadcast %cst_16 : f32 to vector<2x256xf32>
    %44 = arith.cmpf oge, %42, %43 : vector<2x256xf32>
    %cst_17 = arith.constant 0.00999999977 : f32
    %45 = vector.broadcast %cst_17 : f32 to vector<2x256xf32>
    %46 = arith.mulf %45, %42 : vector<2x256xf32>
    %47 = arith.select %44, %42, %46 : vector<2x256xi1>, vector<2x256xf32>
    %48 = tpu.concatenate %34, %47 in 0 : vector<2x256xf32>, vector<2x256xf32> -> vector<4x256xf32>
    %c-1_i32 = arith.constant -1 : i32
    %49 = arith.addi %arg1, %c-1_i32 : i32
    %c0_i32_18 = arith.constant 0 : i32
    %50 = arith.cmpi sge, %49, %c0_i32_18 : i32
    %c16_i32_19 = arith.constant 16 : i32
    %51 = arith.cmpi slt, %49, %c16_i32_19 : i32
    %52 = arith.andi %50, %51 : i1
    %53 = arith.extui %52 : i1 to i32
    %54 = arith.sitofp %53 : i32 to f32
    %55 = vector.broadcast %54 : f32 to vector<4x256xf32>
    %56 = arith.mulf %48, %55 : vector<4x256xf32>
    %cst_20 = arith.constant 0.000000e+00 : f32
    %57 = vector.broadcast %cst_20 : f32 to vector<4x17xf32>
    %58 = tpu.concatenate %57, %56, %57 in 1 : vector<4x17xf32>, vector<4x256xf32>, vector<4x17xf32> -> vector<4x290xf32>
    %59 = vector.extract_strided_slice %58 {offsets = [0, 0], sizes = [4, 256], strides = [1, 1]} : vector<4x290xf32> to vector<4x256xf32>
    %c0_i32_21 = arith.constant 0 : i32
    %60 = vector.broadcast %c0_i32_21 : i32 to vector<1x256xi32>
    %61 = arith.cmpi eq, %16, %60 : vector<1x256xi32>
    %cst_22 = arith.constant 0.000000e+00 : f32
    %62 = vector.shape_cast %61 : vector<1x256xi1> to vector<1x256xi1>
    %63 = vector.broadcast %62 : vector<1x256xi1> to vector<4x256xi1>
    %64 = vector.broadcast %cst_22 : f32 to vector<4x256xf32>
    %65 = arith.select %63, %64, %59 : vector<4x256xi1>, vector<4x256xf32>
    %c0_23 = arith.constant 0 : index
    %c0_24 = arith.constant 0 : index
    %c0_25 = arith.constant 0 : index
    %66 = vector.load %arg8[%c0_23, %c0_24, %c0_25] : memref<27x2x4xf32, #tpu.memory_space<vmem>>, vector<1x2x4xf32>
    %67 = vector.shape_cast %66 : vector<1x2x4xf32> to vector<2x4xf32>
    %cst_26 = arith.constant dense<0.000000e+00> : vector<2x256xf32>
    %68 = tpu.matmul %67, %65, %cst_26 {dimension_numbers = #tpu.dot_dimension_numbers<[1], [0], [0], [1], [0, 0, 1, 1], [], []>} : vector<2x4xf32>, vector<4x256xf32>, vector<2x256xf32> -> vector<2x256xf32>
    %69 = arith.addf %21, %68 : vector<2x256xf32>
    %70 = vector.extract_strided_slice %58 {offsets = [0, 1], sizes = [4, 256], strides = [1, 1]} : vector<4x290xf32> to vector<4x256xf32>
    %c1 = arith.constant 1 : index
    %c0_27 = arith.constant 0 : index
    %c0_28 = arith.constant 0 : index
    %71 = vector.load %arg8[%c1, %c0_27, %c0_28] : memref<27x2x4xf32, #tpu.memory_space<vmem>>, vector<1x2x4xf32>
    %72 = vector.shape_cast %71 : vector<1x2x4xf32> to vector<2x4xf32>
    %cst_29 = arith.constant dense<0.000000e+00> : vector<2x256xf32>
    %73 = tpu.matmul %72, %70, %cst_29 {dimension_numbers = #tpu.dot_dimension_numbers<[1], [0], [0], [1], [0, 0, 1, 1], [], []>} : vector<2x4xf32>, vector<4x256xf32>, vector<2x256xf32> -> vector<2x256xf32>
    %74 = arith.addf %69, %73 : vector<2x256xf32>
    %75 = vector.extract_strided_slice %58 {offsets = [0, 2], sizes = [4, 256], strides = [1, 1]} : vector<4x290xf32> to vector<4x256xf32>
    %c15_i32 = arith.constant 15 : i32
    %76 = vector.broadcast %c15_i32 : i32 to vector<1x256xi32>
    %77 = arith.cmpi eq, %16, %76 : vector<1x256xi32>
    %cst_30 = arith.constant 0.000000e+00 : f32
    %78 = vector.shape_cast %77 : vector<1x256xi1> to vector<1x256xi1>
    %79 = vector.broadcast %78 : vector<1x256xi1> to vector<4x256xi1>
    %80 = vector.broadcast %cst_30 : f32 to vector<4x256xf32>
    %81 = arith.select %79, %80, %75 : vector<4x256xi1>, vector<4x256xf32>
    %c2 = arith.constant 2 : index
    %c0_31 = arith.constant 0 : index
    %c0_32 = arith.constant 0 : index
    %82 = vector.load %arg8[%c2, %c0_31, %c0_32] : memref<27x2x4xf32, #tpu.memory_space<vmem>>, vector<1x2x4xf32>
    %83 = vector.shape_cast %82 : vector<1x2x4xf32> to vector<2x4xf32>
    %cst_33 = arith.constant dense<0.000000e+00> : vector<2x256xf32>
    %84 = tpu.matmul %83, %81, %cst_33 {dimension_numbers = #tpu.dot_dimension_numbers<[1], [0], [0], [1], [0, 0, 1, 1], [], []>} : vector<2x4xf32>, vector<4x256xf32>, vector<2x256xf32> -> vector<2x256xf32>
    %85 = arith.addf %74, %84 : vector<2x256xf32>
    %86 = vector.extract_strided_slice %58 {offsets = [0, 16], sizes = [4, 256], strides = [1, 1]} : vector<4x290xf32> to vector<4x256xf32>
    %c0_i32_34 = arith.constant 0 : i32
    %87 = vector.broadcast %c0_i32_34 : i32 to vector<1x256xi32>
    %88 = arith.cmpi eq, %16, %87 : vector<1x256xi32>
    %cst_35 = arith.constant 0.000000e+00 : f32
    %89 = vector.shape_cast %88 : vector<1x256xi1> to vector<1x256xi1>
    %90 = vector.broadcast %89 : vector<1x256xi1> to vector<4x256xi1>
    %91 = vector.broadcast %cst_35 : f32 to vector<4x256xf32>
    %92 = arith.select %90, %91, %86 : vector<4x256xi1>, vector<4x256xf32>
    %c3 = arith.constant 3 : index
    %c0_36 = arith.constant 0 : index
    %c0_37 = arith.constant 0 : index
    %93 = vector.load %arg8[%c3, %c0_36, %c0_37] : memref<27x2x4xf32, #tpu.memory_space<vmem>>, vector<1x2x4xf32>
    %94 = vector.shape_cast %93 : vector<1x2x4xf32> to vector<2x4xf32>
    %cst_38 = arith.constant dense<0.000000e+00> : vector<2x256xf32>
    %95 = tpu.matmul %94, %92, %cst_38 {dimension_numbers = #tpu.dot_dimension_numbers<[1], [0], [0], [1], [0, 0, 1, 1], [], []>} : vector<2x4xf32>, vector<4x256xf32>, vector<2x256xf32> -> vector<2x256xf32>
    %96 = arith.addf %85, %95 : vector<2x256xf32>
    %97 = vector.extract_strided_slice %58 {offsets = [0, 17], sizes = [4, 256], strides = [1, 1]} : vector<4x290xf32> to vector<4x256xf32>
    %c4 = arith.constant 4 : index
    %c0_39 = arith.constant 0 : index
    %c0_40 = arith.constant 0 : index
    %98 = vector.load %arg8[%c4, %c0_39, %c0_40] : memref<27x2x4xf32, #tpu.memory_space<vmem>>, vector<1x2x4xf32>
    %99 = vector.shape_cast %98 : vector<1x2x4xf32> to vector<2x4xf32>
    %cst_41 = arith.constant dense<0.000000e+00> : vector<2x256xf32>
    %100 = tpu.matmul %99, %97, %cst_41 {dimension_numbers = #tpu.dot_dimension_numbers<[1], [0], [0], [1], [0, 0, 1, 1], [], []>} : vector<2x4xf32>, vector<4x256xf32>, vector<2x256xf32> -> vector<2x256xf32>
    %101 = arith.addf %96, %100 : vector<2x256xf32>
    %102 = vector.extract_strided_slice %58 {offsets = [0, 18], sizes = [4, 256], strides = [1, 1]} : vector<4x290xf32> to vector<4x256xf32>
    %c15_i32_42 = arith.constant 15 : i32
    %103 = vector.broadcast %c15_i32_42 : i32 to vector<1x256xi32>
    %104 = arith.cmpi eq, %16, %103 : vector<1x256xi32>
    %cst_43 = arith.constant 0.000000e+00 : f32
    %105 = vector.shape_cast %104 : vector<1x256xi1> to vector<1x256xi1>
    %106 = vector.broadcast %105 : vector<1x256xi1> to vector<4x256xi1>
    %107 = vector.broadcast %cst_43 : f32 to vector<4x256xf32>
    %108 = arith.select %106, %107, %102 : vector<4x256xi1>, vector<4x256xf32>
    %c5 = arith.constant 5 : index
    %c0_44 = arith.constant 0 : index
    %c0_45 = arith.constant 0 : index
    %109 = vector.load %arg8[%c5, %c0_44, %c0_45] : memref<27x2x4xf32, #tpu.memory_space<vmem>>, vector<1x2x4xf32>
    %110 = vector.shape_cast %109 : vector<1x2x4xf32> to vector<2x4xf32>
    %cst_46 = arith.constant dense<0.000000e+00> : vector<2x256xf32>
    %111 = tpu.matmul %110, %108, %cst_46 {dimension_numbers = #tpu.dot_dimension_numbers<[1], [0], [0], [1], [0, 0, 1, 1], [], []>} : vector<2x4xf32>, vector<4x256xf32>, vector<2x256xf32> -> vector<2x256xf32>
    %112 = arith.addf %101, %111 : vector<2x256xf32>
    %113 = vector.extract_strided_slice %58 {offsets = [0, 32], sizes = [4, 256], strides = [1, 1]} : vector<4x290xf32> to vector<4x256xf32>
    %c0_i32_47 = arith.constant 0 : i32
    %114 = vector.broadcast %c0_i32_47 : i32 to vector<1x256xi32>
    %115 = arith.cmpi eq, %16, %114 : vector<1x256xi32>
    %cst_48 = arith.constant 0.000000e+00 : f32
    %116 = vector.shape_cast %115 : vector<1x256xi1> to vector<1x256xi1>
    %117 = vector.broadcast %116 : vector<1x256xi1> to vector<4x256xi1>
    %118 = vector.broadcast %cst_48 : f32 to vector<4x256xf32>
    %119 = arith.select %117, %118, %113 : vector<4x256xi1>, vector<4x256xf32>
    %c6 = arith.constant 6 : index
    %c0_49 = arith.constant 0 : index
    %c0_50 = arith.constant 0 : index
    %120 = vector.load %arg8[%c6, %c0_49, %c0_50] : memref<27x2x4xf32, #tpu.memory_space<vmem>>, vector<1x2x4xf32>
    %121 = vector.shape_cast %120 : vector<1x2x4xf32> to vector<2x4xf32>
    %cst_51 = arith.constant dense<0.000000e+00> : vector<2x256xf32>
    %122 = tpu.matmul %121, %119, %cst_51 {dimension_numbers = #tpu.dot_dimension_numbers<[1], [0], [0], [1], [0, 0, 1, 1], [], []>} : vector<2x4xf32>, vector<4x256xf32>, vector<2x256xf32> -> vector<2x256xf32>
    %123 = arith.addf %112, %122 : vector<2x256xf32>
    %124 = vector.extract_strided_slice %58 {offsets = [0, 33], sizes = [4, 256], strides = [1, 1]} : vector<4x290xf32> to vector<4x256xf32>
    %c7 = arith.constant 7 : index
    %c0_52 = arith.constant 0 : index
    %c0_53 = arith.constant 0 : index
    %125 = vector.load %arg8[%c7, %c0_52, %c0_53] : memref<27x2x4xf32, #tpu.memory_space<vmem>>, vector<1x2x4xf32>
    %126 = vector.shape_cast %125 : vector<1x2x4xf32> to vector<2x4xf32>
    %cst_54 = arith.constant dense<0.000000e+00> : vector<2x256xf32>
    %127 = tpu.matmul %126, %124, %cst_54 {dimension_numbers = #tpu.dot_dimension_numbers<[1], [0], [0], [1], [0, 0, 1, 1], [], []>} : vector<2x4xf32>, vector<4x256xf32>, vector<2x256xf32> -> vector<2x256xf32>
    %128 = arith.addf %123, %127 : vector<2x256xf32>
    %129 = vector.extract_strided_slice %58 {offsets = [0, 34], sizes = [4, 256], strides = [1, 1]} : vector<4x290xf32> to vector<4x256xf32>
    %c15_i32_55 = arith.constant 15 : i32
    %130 = vector.broadcast %c15_i32_55 : i32 to vector<1x256xi32>
    %131 = arith.cmpi eq, %16, %130 : vector<1x256xi32>
    %cst_56 = arith.constant 0.000000e+00 : f32
    %132 = vector.shape_cast %131 : vector<1x256xi1> to vector<1x256xi1>
    %133 = vector.broadcast %132 : vector<1x256xi1> to vector<4x256xi1>
    %134 = vector.broadcast %cst_56 : f32 to vector<4x256xf32>
    %135 = arith.select %133, %134, %129 : vector<4x256xi1>, vector<4x256xf32>
    %c8 = arith.constant 8 : index
    %c0_57 = arith.constant 0 : index
    %c0_58 = arith.constant 0 : index
    %136 = vector.load %arg8[%c8, %c0_57, %c0_58] : memref<27x2x4xf32, #tpu.memory_space<vmem>>, vector<1x2x4xf32>
    %137 = vector.shape_cast %136 : vector<1x2x4xf32> to vector<2x4xf32>
    %cst_59 = arith.constant dense<0.000000e+00> : vector<2x256xf32>
    %138 = tpu.matmul %137, %135, %cst_59 {dimension_numbers = #tpu.dot_dimension_numbers<[1], [0], [0], [1], [0, 0, 1, 1], [], []>} : vector<2x4xf32>, vector<4x256xf32>, vector<2x256xf32> -> vector<2x256xf32>
    %139 = arith.addf %128, %138 : vector<2x256xf32>
    %c0_60 = arith.constant 0 : index
    %c0_61 = arith.constant 0 : index
    %c0_62 = arith.constant 0 : index
    %140 = vector.load %arg4[%c0_60, %c0_61, %c0_62] : memref<1x2x256xf32, #tpu.memory_space<vmem>>, vector<1x2x256xf32>
    %141 = vector.shape_cast %140 : vector<1x2x256xf32> to vector<2x256xf32>
    %142 = vector.extract_strided_slice %18 {offsets = [0, 0], sizes = [2, 1], strides = [1, 1]} : vector<4x1xf32> to vector<2x1xf32>
    %143 = vector.extract_strided_slice %20 {offsets = [0, 0], sizes = [2, 1], strides = [1, 1]} : vector<4x1xf32> to vector<2x1xf32>
    %144 = vector.broadcast %142 : vector<2x1xf32> to vector<2x256xf32>
    %145 = arith.mulf %141, %144 : vector<2x256xf32>
    %146 = vector.broadcast %143 : vector<2x1xf32> to vector<2x256xf32>
    %147 = arith.addf %145, %146 : vector<2x256xf32>
    %cst_63 = arith.constant 0.000000e+00 : f32
    %148 = vector.broadcast %cst_63 : f32 to vector<2x256xf32>
    %149 = arith.cmpf oge, %147, %148 : vector<2x256xf32>
    %cst_64 = arith.constant 0.00999999977 : f32
    %150 = vector.broadcast %cst_64 : f32 to vector<2x256xf32>
    %151 = arith.mulf %150, %147 : vector<2x256xf32>
    %152 = arith.select %149, %147, %151 : vector<2x256xi1>, vector<2x256xf32>
    %c0_65 = arith.constant 0 : index
    %c0_66 = arith.constant 0 : index
    %c0_67 = arith.constant 0 : index
    %153 = vector.load %arg5[%c0_65, %c0_66, %c0_67] : memref<1x2x256xf32, #tpu.memory_space<vmem>>, vector<1x2x256xf32>
    %154 = vector.shape_cast %153 : vector<1x2x256xf32> to vector<2x256xf32>
    %155 = vector.extract_strided_slice %18 {offsets = [2, 0], sizes = [2, 1], strides = [1, 1]} : vector<4x1xf32> to vector<2x1xf32>
    %156 = vector.extract_strided_slice %20 {offsets = [2, 0], sizes = [2, 1], strides = [1, 1]} : vector<4x1xf32> to vector<2x1xf32>
    %157 = vector.broadcast %155 : vector<2x1xf32> to vector<2x256xf32>
    %158 = arith.mulf %154, %157 : vector<2x256xf32>
    %159 = vector.broadcast %156 : vector<2x1xf32> to vector<2x256xf32>
    %160 = arith.addf %158, %159 : vector<2x256xf32>
    %cst_68 = arith.constant 0.000000e+00 : f32
    %161 = vector.broadcast %cst_68 : f32 to vector<2x256xf32>
    %162 = arith.cmpf oge, %160, %161 : vector<2x256xf32>
    %cst_69 = arith.constant 0.00999999977 : f32
    %163 = vector.broadcast %cst_69 : f32 to vector<2x256xf32>
    %164 = arith.mulf %163, %160 : vector<2x256xf32>
    %165 = arith.select %162, %160, %164 : vector<2x256xi1>, vector<2x256xf32>
    %166 = tpu.concatenate %152, %165 in 0 : vector<2x256xf32>, vector<2x256xf32> -> vector<4x256xf32>
    %cst_70 = arith.constant 0.000000e+00 : f32
    %167 = vector.broadcast %cst_70 : f32 to vector<4x17xf32>
    %168 = tpu.concatenate %167, %166, %167 in 1 : vector<4x17xf32>, vector<4x256xf32>, vector<4x17xf32> -> vector<4x290xf32>
    %169 = vector.extract_strided_slice %168 {offsets = [0, 0], sizes = [4, 256], strides = [1, 1]} : vector<4x290xf32> to vector<4x256xf32>
    %c0_i32_71 = arith.constant 0 : i32
    %170 = vector.broadcast %c0_i32_71 : i32 to vector<1x256xi32>
    %171 = arith.cmpi eq, %16, %170 : vector<1x256xi32>
    %cst_72 = arith.constant 0.000000e+00 : f32
    %172 = vector.shape_cast %171 : vector<1x256xi1> to vector<1x256xi1>
    %173 = vector.broadcast %172 : vector<1x256xi1> to vector<4x256xi1>
    %174 = vector.broadcast %cst_72 : f32 to vector<4x256xf32>
    %175 = arith.select %173, %174, %169 : vector<4x256xi1>, vector<4x256xf32>
    %c9 = arith.constant 9 : index
    %c0_73 = arith.constant 0 : index
    %c0_74 = arith.constant 0 : index
    %176 = vector.load %arg8[%c9, %c0_73, %c0_74] : memref<27x2x4xf32, #tpu.memory_space<vmem>>, vector<1x2x4xf32>
    %177 = vector.shape_cast %176 : vector<1x2x4xf32> to vector<2x4xf32>
    %cst_75 = arith.constant dense<0.000000e+00> : vector<2x256xf32>
    %178 = tpu.matmul %177, %175, %cst_75 {dimension_numbers = #tpu.dot_dimension_numbers<[1], [0], [0], [1], [0, 0, 1, 1], [], []>} : vector<2x4xf32>, vector<4x256xf32>, vector<2x256xf32> -> vector<2x256xf32>
    %179 = arith.addf %139, %178 : vector<2x256xf32>
    %180 = vector.extract_strided_slice %168 {offsets = [0, 1], sizes = [4, 256], strides = [1, 1]} : vector<4x290xf32> to vector<4x256xf32>
    %c10 = arith.constant 10 : index
    %c0_76 = arith.constant 0 : index
    %c0_77 = arith.constant 0 : index
    %181 = vector.load %arg8[%c10, %c0_76, %c0_77] : memref<27x2x4xf32, #tpu.memory_space<vmem>>, vector<1x2x4xf32>
    %182 = vector.shape_cast %181 : vector<1x2x4xf32> to vector<2x4xf32>
    %cst_78 = arith.constant dense<0.000000e+00> : vector<2x256xf32>
    %183 = tpu.matmul %182, %180, %cst_78 {dimension_numbers = #tpu.dot_dimension_numbers<[1], [0], [0], [1], [0, 0, 1, 1], [], []>} : vector<2x4xf32>, vector<4x256xf32>, vector<2x256xf32> -> vector<2x256xf32>
    %184 = arith.addf %179, %183 : vector<2x256xf32>
    %185 = vector.extract_strided_slice %168 {offsets = [0, 2], sizes = [4, 256], strides = [1, 1]} : vector<4x290xf32> to vector<4x256xf32>
    %c15_i32_79 = arith.constant 15 : i32
    %186 = vector.broadcast %c15_i32_79 : i32 to vector<1x256xi32>
    %187 = arith.cmpi eq, %16, %186 : vector<1x256xi32>
    %cst_80 = arith.constant 0.000000e+00 : f32
    %188 = vector.shape_cast %187 : vector<1x256xi1> to vector<1x256xi1>
    %189 = vector.broadcast %188 : vector<1x256xi1> to vector<4x256xi1>
    %190 = vector.broadcast %cst_80 : f32 to vector<4x256xf32>
    %191 = arith.select %189, %190, %185 : vector<4x256xi1>, vector<4x256xf32>
    %c11 = arith.constant 11 : index
    %c0_81 = arith.constant 0 : index
    %c0_82 = arith.constant 0 : index
    %192 = vector.load %arg8[%c11, %c0_81, %c0_82] : memref<27x2x4xf32, #tpu.memory_space<vmem>>, vector<1x2x4xf32>
    %193 = vector.shape_cast %192 : vector<1x2x4xf32> to vector<2x4xf32>
    %cst_83 = arith.constant dense<0.000000e+00> : vector<2x256xf32>
    %194 = tpu.matmul %193, %191, %cst_83 {dimension_numbers = #tpu.dot_dimension_numbers<[1], [0], [0], [1], [0, 0, 1, 1], [], []>} : vector<2x4xf32>, vector<4x256xf32>, vector<2x256xf32> -> vector<2x256xf32>
    %195 = arith.addf %184, %194 : vector<2x256xf32>
    %196 = vector.extract_strided_slice %168 {offsets = [0, 16], sizes = [4, 256], strides = [1, 1]} : vector<4x290xf32> to vector<4x256xf32>
    %c0_i32_84 = arith.constant 0 : i32
    %197 = vector.broadcast %c0_i32_84 : i32 to vector<1x256xi32>
    %198 = arith.cmpi eq, %16, %197 : vector<1x256xi32>
    %cst_85 = arith.constant 0.000000e+00 : f32
    %199 = vector.shape_cast %198 : vector<1x256xi1> to vector<1x256xi1>
    %200 = vector.broadcast %199 : vector<1x256xi1> to vector<4x256xi1>
    %201 = vector.broadcast %cst_85 : f32 to vector<4x256xf32>
    %202 = arith.select %200, %201, %196 : vector<4x256xi1>, vector<4x256xf32>
    %c12 = arith.constant 12 : index
    %c0_86 = arith.constant 0 : index
    %c0_87 = arith.constant 0 : index
    %203 = vector.load %arg8[%c12, %c0_86, %c0_87] : memref<27x2x4xf32, #tpu.memory_space<vmem>>, vector<1x2x4xf32>
    %204 = vector.shape_cast %203 : vector<1x2x4xf32> to vector<2x4xf32>
    %cst_88 = arith.constant dense<0.000000e+00> : vector<2x256xf32>
    %205 = tpu.matmul %204, %202, %cst_88 {dimension_numbers = #tpu.dot_dimension_numbers<[1], [0], [0], [1], [0, 0, 1, 1], [], []>} : vector<2x4xf32>, vector<4x256xf32>, vector<2x256xf32> -> vector<2x256xf32>
    %206 = arith.addf %195, %205 : vector<2x256xf32>
    %207 = vector.extract_strided_slice %168 {offsets = [0, 17], sizes = [4, 256], strides = [1, 1]} : vector<4x290xf32> to vector<4x256xf32>
    %c13 = arith.constant 13 : index
    %c0_89 = arith.constant 0 : index
    %c0_90 = arith.constant 0 : index
    %208 = vector.load %arg8[%c13, %c0_89, %c0_90] : memref<27x2x4xf32, #tpu.memory_space<vmem>>, vector<1x2x4xf32>
    %209 = vector.shape_cast %208 : vector<1x2x4xf32> to vector<2x4xf32>
    %cst_91 = arith.constant dense<0.000000e+00> : vector<2x256xf32>
    %210 = tpu.matmul %209, %207, %cst_91 {dimension_numbers = #tpu.dot_dimension_numbers<[1], [0], [0], [1], [0, 0, 1, 1], [], []>} : vector<2x4xf32>, vector<4x256xf32>, vector<2x256xf32> -> vector<2x256xf32>
    %211 = arith.addf %206, %210 : vector<2x256xf32>
    %212 = vector.extract_strided_slice %168 {offsets = [0, 18], sizes = [4, 256], strides = [1, 1]} : vector<4x290xf32> to vector<4x256xf32>
    %c15_i32_92 = arith.constant 15 : i32
    %213 = vector.broadcast %c15_i32_92 : i32 to vector<1x256xi32>
    %214 = arith.cmpi eq, %16, %213 : vector<1x256xi32>
    %cst_93 = arith.constant 0.000000e+00 : f32
    %215 = vector.shape_cast %214 : vector<1x256xi1> to vector<1x256xi1>
    %216 = vector.broadcast %215 : vector<1x256xi1> to vector<4x256xi1>
    %217 = vector.broadcast %cst_93 : f32 to vector<4x256xf32>
    %218 = arith.select %216, %217, %212 : vector<4x256xi1>, vector<4x256xf32>
    %c14 = arith.constant 14 : index
    %c0_94 = arith.constant 0 : index
    %c0_95 = arith.constant 0 : index
    %219 = vector.load %arg8[%c14, %c0_94, %c0_95] : memref<27x2x4xf32, #tpu.memory_space<vmem>>, vector<1x2x4xf32>
    %220 = vector.shape_cast %219 : vector<1x2x4xf32> to vector<2x4xf32>
    %cst_96 = arith.constant dense<0.000000e+00> : vector<2x256xf32>
    %221 = tpu.matmul %220, %218, %cst_96 {dimension_numbers = #tpu.dot_dimension_numbers<[1], [0], [0], [1], [0, 0, 1, 1], [], []>} : vector<2x4xf32>, vector<4x256xf32>, vector<2x256xf32> -> vector<2x256xf32>
    %222 = arith.addf %211, %221 : vector<2x256xf32>
    %223 = vector.extract_strided_slice %168 {offsets = [0, 32], sizes = [4, 256], strides = [1, 1]} : vector<4x290xf32> to vector<4x256xf32>
    %c0_i32_97 = arith.constant 0 : i32
    %224 = vector.broadcast %c0_i32_97 : i32 to vector<1x256xi32>
    %225 = arith.cmpi eq, %16, %224 : vector<1x256xi32>
    %cst_98 = arith.constant 0.000000e+00 : f32
    %226 = vector.shape_cast %225 : vector<1x256xi1> to vector<1x256xi1>
    %227 = vector.broadcast %226 : vector<1x256xi1> to vector<4x256xi1>
    %228 = vector.broadcast %cst_98 : f32 to vector<4x256xf32>
    %229 = arith.select %227, %228, %223 : vector<4x256xi1>, vector<4x256xf32>
    %c15 = arith.constant 15 : index
    %c0_99 = arith.constant 0 : index
    %c0_100 = arith.constant 0 : index
    %230 = vector.load %arg8[%c15, %c0_99, %c0_100] : memref<27x2x4xf32, #tpu.memory_space<vmem>>, vector<1x2x4xf32>
    %231 = vector.shape_cast %230 : vector<1x2x4xf32> to vector<2x4xf32>
    %cst_101 = arith.constant dense<0.000000e+00> : vector<2x256xf32>
    %232 = tpu.matmul %231, %229, %cst_101 {dimension_numbers = #tpu.dot_dimension_numbers<[1], [0], [0], [1], [0, 0, 1, 1], [], []>} : vector<2x4xf32>, vector<4x256xf32>, vector<2x256xf32> -> vector<2x256xf32>
    %233 = arith.addf %222, %232 : vector<2x256xf32>
    %234 = vector.extract_strided_slice %168 {offsets = [0, 33], sizes = [4, 256], strides = [1, 1]} : vector<4x290xf32> to vector<4x256xf32>
    %c16 = arith.constant 16 : index
    %c0_102 = arith.constant 0 : index
    %c0_103 = arith.constant 0 : index
    %235 = vector.load %arg8[%c16, %c0_102, %c0_103] : memref<27x2x4xf32, #tpu.memory_space<vmem>>, vector<1x2x4xf32>
    %236 = vector.shape_cast %235 : vector<1x2x4xf32> to vector<2x4xf32>
    %cst_104 = arith.constant dense<0.000000e+00> : vector<2x256xf32>
    %237 = tpu.matmul %236, %234, %cst_104 {dimension_numbers = #tpu.dot_dimension_numbers<[1], [0], [0], [1], [0, 0, 1, 1], [], []>} : vector<2x4xf32>, vector<4x256xf32>, vector<2x256xf32> -> vector<2x256xf32>
    %238 = arith.addf %233, %237 : vector<2x256xf32>
    %239 = vector.extract_strided_slice %168 {offsets = [0, 34], sizes = [4, 256], strides = [1, 1]} : vector<4x290xf32> to vector<4x256xf32>
    %c15_i32_105 = arith.constant 15 : i32
    %240 = vector.broadcast %c15_i32_105 : i32 to vector<1x256xi32>
    %241 = arith.cmpi eq, %16, %240 : vector<1x256xi32>
    %cst_106 = arith.constant 0.000000e+00 : f32
    %242 = vector.shape_cast %241 : vector<1x256xi1> to vector<1x256xi1>
    %243 = vector.broadcast %242 : vector<1x256xi1> to vector<4x256xi1>
    %244 = vector.broadcast %cst_106 : f32 to vector<4x256xf32>
    %245 = arith.select %243, %244, %239 : vector<4x256xi1>, vector<4x256xf32>
    %c17 = arith.constant 17 : index
    %c0_107 = arith.constant 0 : index
    %c0_108 = arith.constant 0 : index
    %246 = vector.load %arg8[%c17, %c0_107, %c0_108] : memref<27x2x4xf32, #tpu.memory_space<vmem>>, vector<1x2x4xf32>
    %247 = vector.shape_cast %246 : vector<1x2x4xf32> to vector<2x4xf32>
    %cst_109 = arith.constant dense<0.000000e+00> : vector<2x256xf32>
    %248 = tpu.matmul %247, %245, %cst_109 {dimension_numbers = #tpu.dot_dimension_numbers<[1], [0], [0], [1], [0, 0, 1, 1], [], []>} : vector<2x4xf32>, vector<4x256xf32>, vector<2x256xf32> -> vector<2x256xf32>
    %249 = arith.addf %238, %248 : vector<2x256xf32>
    %c0_110 = arith.constant 0 : index
    %c0_111 = arith.constant 0 : index
    %c0_112 = arith.constant 0 : index
    %250 = vector.load %arg6[%c0_110, %c0_111, %c0_112] : memref<1x2x256xf32, #tpu.memory_space<vmem>>, vector<1x2x256xf32>
    %251 = vector.shape_cast %250 : vector<1x2x256xf32> to vector<2x256xf32>
    %252 = vector.extract_strided_slice %18 {offsets = [0, 0], sizes = [2, 1], strides = [1, 1]} : vector<4x1xf32> to vector<2x1xf32>
    %253 = vector.extract_strided_slice %20 {offsets = [0, 0], sizes = [2, 1], strides = [1, 1]} : vector<4x1xf32> to vector<2x1xf32>
    %254 = vector.broadcast %252 : vector<2x1xf32> to vector<2x256xf32>
    %255 = arith.mulf %251, %254 : vector<2x256xf32>
    %256 = vector.broadcast %253 : vector<2x1xf32> to vector<2x256xf32>
    %257 = arith.addf %255, %256 : vector<2x256xf32>
    %cst_113 = arith.constant 0.000000e+00 : f32
    %258 = vector.broadcast %cst_113 : f32 to vector<2x256xf32>
    %259 = arith.cmpf oge, %257, %258 : vector<2x256xf32>
    %cst_114 = arith.constant 0.00999999977 : f32
    %260 = vector.broadcast %cst_114 : f32 to vector<2x256xf32>
    %261 = arith.mulf %260, %257 : vector<2x256xf32>
    %262 = arith.select %259, %257, %261 : vector<2x256xi1>, vector<2x256xf32>
    %c0_115 = arith.constant 0 : index
    %c0_116 = arith.constant 0 : index
    %c0_117 = arith.constant 0 : index
    %263 = vector.load %arg7[%c0_115, %c0_116, %c0_117] : memref<1x2x256xf32, #tpu.memory_space<vmem>>, vector<1x2x256xf32>
    %264 = vector.shape_cast %263 : vector<1x2x256xf32> to vector<2x256xf32>
    %265 = vector.extract_strided_slice %18 {offsets = [2, 0], sizes = [2, 1], strides = [1, 1]} : vector<4x1xf32> to vector<2x1xf32>
    %266 = vector.extract_strided_slice %20 {offsets = [2, 0], sizes = [2, 1], strides = [1, 1]} : vector<4x1xf32> to vector<2x1xf32>
    %267 = vector.broadcast %265 : vector<2x1xf32> to vector<2x256xf32>
    %268 = arith.mulf %264, %267 : vector<2x256xf32>
    %269 = vector.broadcast %266 : vector<2x1xf32> to vector<2x256xf32>
    %270 = arith.addf %268, %269 : vector<2x256xf32>
    %cst_118 = arith.constant 0.000000e+00 : f32
    %271 = vector.broadcast %cst_118 : f32 to vector<2x256xf32>
    %272 = arith.cmpf oge, %270, %271 : vector<2x256xf32>
    %cst_119 = arith.constant 0.00999999977 : f32
    %273 = vector.broadcast %cst_119 : f32 to vector<2x256xf32>
    %274 = arith.mulf %273, %270 : vector<2x256xf32>
    %275 = arith.select %272, %270, %274 : vector<2x256xi1>, vector<2x256xf32>
    %276 = tpu.concatenate %262, %275 in 0 : vector<2x256xf32>, vector<2x256xf32> -> vector<4x256xf32>
    %c1_i32_120 = arith.constant 1 : i32
    %277 = arith.addi %arg1, %c1_i32_120 : i32
    %c0_i32_121 = arith.constant 0 : i32
    %278 = arith.cmpi sge, %277, %c0_i32_121 : i32
    %c16_i32_122 = arith.constant 16 : i32
    %279 = arith.cmpi slt, %277, %c16_i32_122 : i32
    %280 = arith.andi %278, %279 : i1
    %281 = arith.extui %280 : i1 to i32
    %282 = arith.sitofp %281 : i32 to f32
    %283 = vector.broadcast %282 : f32 to vector<4x256xf32>
    %284 = arith.mulf %276, %283 : vector<4x256xf32>
    %cst_123 = arith.constant 0.000000e+00 : f32
    %285 = vector.broadcast %cst_123 : f32 to vector<4x17xf32>
    %286 = tpu.concatenate %285, %284, %285 in 1 : vector<4x17xf32>, vector<4x256xf32>, vector<4x17xf32> -> vector<4x290xf32>
    %287 = vector.extract_strided_slice %286 {offsets = [0, 0], sizes = [4, 256], strides = [1, 1]} : vector<4x290xf32> to vector<4x256xf32>
    %c0_i32_124 = arith.constant 0 : i32
    %288 = vector.broadcast %c0_i32_124 : i32 to vector<1x256xi32>
    %289 = arith.cmpi eq, %16, %288 : vector<1x256xi32>
    %cst_125 = arith.constant 0.000000e+00 : f32
    %290 = vector.shape_cast %289 : vector<1x256xi1> to vector<1x256xi1>
    %291 = vector.broadcast %290 : vector<1x256xi1> to vector<4x256xi1>
    %292 = vector.broadcast %cst_125 : f32 to vector<4x256xf32>
    %293 = arith.select %291, %292, %287 : vector<4x256xi1>, vector<4x256xf32>
    %c18 = arith.constant 18 : index
    %c0_126 = arith.constant 0 : index
    %c0_127 = arith.constant 0 : index
    %294 = vector.load %arg8[%c18, %c0_126, %c0_127] : memref<27x2x4xf32, #tpu.memory_space<vmem>>, vector<1x2x4xf32>
    %295 = vector.shape_cast %294 : vector<1x2x4xf32> to vector<2x4xf32>
    %cst_128 = arith.constant dense<0.000000e+00> : vector<2x256xf32>
    %296 = tpu.matmul %295, %293, %cst_128 {dimension_numbers = #tpu.dot_dimension_numbers<[1], [0], [0], [1], [0, 0, 1, 1], [], []>} : vector<2x4xf32>, vector<4x256xf32>, vector<2x256xf32> -> vector<2x256xf32>
    %297 = arith.addf %249, %296 : vector<2x256xf32>
    %298 = vector.extract_strided_slice %286 {offsets = [0, 1], sizes = [4, 256], strides = [1, 1]} : vector<4x290xf32> to vector<4x256xf32>
    %c19 = arith.constant 19 : index
    %c0_129 = arith.constant 0 : index
    %c0_130 = arith.constant 0 : index
    %299 = vector.load %arg8[%c19, %c0_129, %c0_130] : memref<27x2x4xf32, #tpu.memory_space<vmem>>, vector<1x2x4xf32>
    %300 = vector.shape_cast %299 : vector<1x2x4xf32> to vector<2x4xf32>
    %cst_131 = arith.constant dense<0.000000e+00> : vector<2x256xf32>
    %301 = tpu.matmul %300, %298, %cst_131 {dimension_numbers = #tpu.dot_dimension_numbers<[1], [0], [0], [1], [0, 0, 1, 1], [], []>} : vector<2x4xf32>, vector<4x256xf32>, vector<2x256xf32> -> vector<2x256xf32>
    %302 = arith.addf %297, %301 : vector<2x256xf32>
    %303 = vector.extract_strided_slice %286 {offsets = [0, 2], sizes = [4, 256], strides = [1, 1]} : vector<4x290xf32> to vector<4x256xf32>
    %c15_i32_132 = arith.constant 15 : i32
    %304 = vector.broadcast %c15_i32_132 : i32 to vector<1x256xi32>
    %305 = arith.cmpi eq, %16, %304 : vector<1x256xi32>
    %cst_133 = arith.constant 0.000000e+00 : f32
    %306 = vector.shape_cast %305 : vector<1x256xi1> to vector<1x256xi1>
    %307 = vector.broadcast %306 : vector<1x256xi1> to vector<4x256xi1>
    %308 = vector.broadcast %cst_133 : f32 to vector<4x256xf32>
    %309 = arith.select %307, %308, %303 : vector<4x256xi1>, vector<4x256xf32>
    %c20 = arith.constant 20 : index
    %c0_134 = arith.constant 0 : index
    %c0_135 = arith.constant 0 : index
    %310 = vector.load %arg8[%c20, %c0_134, %c0_135] : memref<27x2x4xf32, #tpu.memory_space<vmem>>, vector<1x2x4xf32>
    %311 = vector.shape_cast %310 : vector<1x2x4xf32> to vector<2x4xf32>
    %cst_136 = arith.constant dense<0.000000e+00> : vector<2x256xf32>
    %312 = tpu.matmul %311, %309, %cst_136 {dimension_numbers = #tpu.dot_dimension_numbers<[1], [0], [0], [1], [0, 0, 1, 1], [], []>} : vector<2x4xf32>, vector<4x256xf32>, vector<2x256xf32> -> vector<2x256xf32>
    %313 = arith.addf %302, %312 : vector<2x256xf32>
    %314 = vector.extract_strided_slice %286 {offsets = [0, 16], sizes = [4, 256], strides = [1, 1]} : vector<4x290xf32> to vector<4x256xf32>
    %c0_i32_137 = arith.constant 0 : i32
    %315 = vector.broadcast %c0_i32_137 : i32 to vector<1x256xi32>
    %316 = arith.cmpi eq, %16, %315 : vector<1x256xi32>
    %cst_138 = arith.constant 0.000000e+00 : f32
    %317 = vector.shape_cast %316 : vector<1x256xi1> to vector<1x256xi1>
    %318 = vector.broadcast %317 : vector<1x256xi1> to vector<4x256xi1>
    %319 = vector.broadcast %cst_138 : f32 to vector<4x256xf32>
    %320 = arith.select %318, %319, %314 : vector<4x256xi1>, vector<4x256xf32>
    %c21 = arith.constant 21 : index
    %c0_139 = arith.constant 0 : index
    %c0_140 = arith.constant 0 : index
    %321 = vector.load %arg8[%c21, %c0_139, %c0_140] : memref<27x2x4xf32, #tpu.memory_space<vmem>>, vector<1x2x4xf32>
    %322 = vector.shape_cast %321 : vector<1x2x4xf32> to vector<2x4xf32>
    %cst_141 = arith.constant dense<0.000000e+00> : vector<2x256xf32>
    %323 = tpu.matmul %322, %320, %cst_141 {dimension_numbers = #tpu.dot_dimension_numbers<[1], [0], [0], [1], [0, 0, 1, 1], [], []>} : vector<2x4xf32>, vector<4x256xf32>, vector<2x256xf32> -> vector<2x256xf32>
    %324 = arith.addf %313, %323 : vector<2x256xf32>
    %325 = vector.extract_strided_slice %286 {offsets = [0, 17], sizes = [4, 256], strides = [1, 1]} : vector<4x290xf32> to vector<4x256xf32>
    %c22 = arith.constant 22 : index
    %c0_142 = arith.constant 0 : index
    %c0_143 = arith.constant 0 : index
    %326 = vector.load %arg8[%c22, %c0_142, %c0_143] : memref<27x2x4xf32, #tpu.memory_space<vmem>>, vector<1x2x4xf32>
    %327 = vector.shape_cast %326 : vector<1x2x4xf32> to vector<2x4xf32>
    %cst_144 = arith.constant dense<0.000000e+00> : vector<2x256xf32>
    %328 = tpu.matmul %327, %325, %cst_144 {dimension_numbers = #tpu.dot_dimension_numbers<[1], [0], [0], [1], [0, 0, 1, 1], [], []>} : vector<2x4xf32>, vector<4x256xf32>, vector<2x256xf32> -> vector<2x256xf32>
    %329 = arith.addf %324, %328 : vector<2x256xf32>
    %330 = vector.extract_strided_slice %286 {offsets = [0, 18], sizes = [4, 256], strides = [1, 1]} : vector<4x290xf32> to vector<4x256xf32>
    %c15_i32_145 = arith.constant 15 : i32
    %331 = vector.broadcast %c15_i32_145 : i32 to vector<1x256xi32>
    %332 = arith.cmpi eq, %16, %331 : vector<1x256xi32>
    %cst_146 = arith.constant 0.000000e+00 : f32
    %333 = vector.shape_cast %332 : vector<1x256xi1> to vector<1x256xi1>
    %334 = vector.broadcast %333 : vector<1x256xi1> to vector<4x256xi1>
    %335 = vector.broadcast %cst_146 : f32 to vector<4x256xf32>
    %336 = arith.select %334, %335, %330 : vector<4x256xi1>, vector<4x256xf32>
    %c23 = arith.constant 23 : index
    %c0_147 = arith.constant 0 : index
    %c0_148 = arith.constant 0 : index
    %337 = vector.load %arg8[%c23, %c0_147, %c0_148] : memref<27x2x4xf32, #tpu.memory_space<vmem>>, vector<1x2x4xf32>
    %338 = vector.shape_cast %337 : vector<1x2x4xf32> to vector<2x4xf32>
    %cst_149 = arith.constant dense<0.000000e+00> : vector<2x256xf32>
    %339 = tpu.matmul %338, %336, %cst_149 {dimension_numbers = #tpu.dot_dimension_numbers<[1], [0], [0], [1], [0, 0, 1, 1], [], []>} : vector<2x4xf32>, vector<4x256xf32>, vector<2x256xf32> -> vector<2x256xf32>
    %340 = arith.addf %329, %339 : vector<2x256xf32>
    %341 = vector.extract_strided_slice %286 {offsets = [0, 32], sizes = [4, 256], strides = [1, 1]} : vector<4x290xf32> to vector<4x256xf32>
    %c0_i32_150 = arith.constant 0 : i32
    %342 = vector.broadcast %c0_i32_150 : i32 to vector<1x256xi32>
    %343 = arith.cmpi eq, %16, %342 : vector<1x256xi32>
    %cst_151 = arith.constant 0.000000e+00 : f32
    %344 = vector.shape_cast %343 : vector<1x256xi1> to vector<1x256xi1>
    %345 = vector.broadcast %344 : vector<1x256xi1> to vector<4x256xi1>
    %346 = vector.broadcast %cst_151 : f32 to vector<4x256xf32>
    %347 = arith.select %345, %346, %341 : vector<4x256xi1>, vector<4x256xf32>
    %c24 = arith.constant 24 : index
    %c0_152 = arith.constant 0 : index
    %c0_153 = arith.constant 0 : index
    %348 = vector.load %arg8[%c24, %c0_152, %c0_153] : memref<27x2x4xf32, #tpu.memory_space<vmem>>, vector<1x2x4xf32>
    %349 = vector.shape_cast %348 : vector<1x2x4xf32> to vector<2x4xf32>
    %cst_154 = arith.constant dense<0.000000e+00> : vector<2x256xf32>
    %350 = tpu.matmul %349, %347, %cst_154 {dimension_numbers = #tpu.dot_dimension_numbers<[1], [0], [0], [1], [0, 0, 1, 1], [], []>} : vector<2x4xf32>, vector<4x256xf32>, vector<2x256xf32> -> vector<2x256xf32>
    %351 = arith.addf %340, %350 : vector<2x256xf32>
    %352 = vector.extract_strided_slice %286 {offsets = [0, 33], sizes = [4, 256], strides = [1, 1]} : vector<4x290xf32> to vector<4x256xf32>
    %c25 = arith.constant 25 : index
    %c0_155 = arith.constant 0 : index
    %c0_156 = arith.constant 0 : index
    %353 = vector.load %arg8[%c25, %c0_155, %c0_156] : memref<27x2x4xf32, #tpu.memory_space<vmem>>, vector<1x2x4xf32>
    %354 = vector.shape_cast %353 : vector<1x2x4xf32> to vector<2x4xf32>
    %cst_157 = arith.constant dense<0.000000e+00> : vector<2x256xf32>
    %355 = tpu.matmul %354, %352, %cst_157 {dimension_numbers = #tpu.dot_dimension_numbers<[1], [0], [0], [1], [0, 0, 1, 1], [], []>} : vector<2x4xf32>, vector<4x256xf32>, vector<2x256xf32> -> vector<2x256xf32>
    %356 = arith.addf %351, %355 : vector<2x256xf32>
    %357 = vector.extract_strided_slice %286 {offsets = [0, 34], sizes = [4, 256], strides = [1, 1]} : vector<4x290xf32> to vector<4x256xf32>
    %c15_i32_158 = arith.constant 15 : i32
    %358 = vector.broadcast %c15_i32_158 : i32 to vector<1x256xi32>
    %359 = arith.cmpi eq, %16, %358 : vector<1x256xi32>
    %cst_159 = arith.constant 0.000000e+00 : f32
    %360 = vector.shape_cast %359 : vector<1x256xi1> to vector<1x256xi1>
    %361 = vector.broadcast %360 : vector<1x256xi1> to vector<4x256xi1>
    %362 = vector.broadcast %cst_159 : f32 to vector<4x256xf32>
    %363 = arith.select %361, %362, %357 : vector<4x256xi1>, vector<4x256xf32>
    %c26 = arith.constant 26 : index
    %c0_160 = arith.constant 0 : index
    %c0_161 = arith.constant 0 : index
    %364 = vector.load %arg8[%c26, %c0_160, %c0_161] : memref<27x2x4xf32, #tpu.memory_space<vmem>>, vector<1x2x4xf32>
    %365 = vector.shape_cast %364 : vector<1x2x4xf32> to vector<2x4xf32>
    %cst_162 = arith.constant dense<0.000000e+00> : vector<2x256xf32>
    %366 = tpu.matmul %365, %363, %cst_162 {dimension_numbers = #tpu.dot_dimension_numbers<[1], [0], [0], [1], [0, 0, 1, 1], [], []>} : vector<2x4xf32>, vector<4x256xf32>, vector<2x256xf32> -> vector<2x256xf32>
    %367 = arith.addf %356, %366 : vector<2x256xf32>
    %c0_163 = arith.constant 0 : index
    %c0_164 = arith.constant 0 : index
    %368 = vector.load %arg11[%c0_163, %c0_164] : memref<2x1xf32, #tpu.memory_space<vmem>>, vector<2x1xf32>
    %369 = vector.broadcast %368 : vector<2x1xf32> to vector<2x256xf32>
    %370 = arith.addf %367, %369 : vector<2x256xf32>
    %c0_165 = arith.constant 0 : index
    %c0_166 = arith.constant 0 : index
    %c0_167 = arith.constant 0 : index
    %371 = vector.load %arg12[%c0_165, %c0_166, %c0_167] : memref<1x2x256xf32, #tpu.memory_space<vmem>>, vector<1x2x256xf32>
    %372 = vector.shape_cast %371 : vector<1x2x256xf32> to vector<2x256xf32>
    %373 = vector.shape_cast %370 : vector<2x256xf32> to vector<1x2x256xf32>
    tpu.vector_store %arg12[%c0_165, %c0_166, %c0_167], %373 {strides = array<i32>} : memref<1x2x256xf32, #tpu.memory_space<vmem>>, vector<1x2x256xf32>,
    %cst_168 = arith.constant dense<0.000000e+00> : vector<2xf32>
    %374 = vector.multi_reduction <add>, %370, %cst_168 [1] : vector<2x256xf32> to vector<2xf32>
    %375 = vector.shape_cast %374 : vector<2xf32> to vector<2x1xf32>
    %c0_169 = arith.constant 0 : index
    %c0_170 = arith.constant 0 : index
    %c0_171 = arith.constant 0 : index
    %c0_172 = arith.constant 0 : index
    %376 = vector.load %arg13[%c0_169, %c0_170, %c0_171, %c0_172] : memref<1x1x2x1xf32, #tpu.memory_space<vmem>>, vector<1x1x2x1xf32>
    %377 = vector.shape_cast %376 : vector<1x1x2x1xf32> to vector<2x1xf32>
    %378 = vector.shape_cast %375 : vector<2x1xf32> to vector<1x1x2x1xf32>
    tpu.vector_store %arg13[%c0_169, %c0_170, %c0_171, %c0_172], %378 {strides = array<i32>} : memref<1x1x2x1xf32, #tpu.memory_space<vmem>>, vector<1x1x2x1xf32>,
    %379 = arith.mulf %370, %370 : vector<2x256xf32>
    %cst_173 = arith.constant dense<0.000000e+00> : vector<2xf32>
    %380 = vector.multi_reduction <add>, %379, %cst_173 [1] : vector<2x256xf32> to vector<2xf32>
    %381 = vector.shape_cast %380 : vector<2xf32> to vector<2x1xf32>
    %c0_174 = arith.constant 0 : index
    %c0_175 = arith.constant 0 : index
    %c0_176 = arith.constant 0 : index
    %c0_177 = arith.constant 0 : index
    %382 = vector.load %arg14[%c0_174, %c0_175, %c0_176, %c0_177] : memref<1x1x2x1xf32, #tpu.memory_space<vmem>>, vector<1x1x2x1xf32>
    %383 = vector.shape_cast %382 : vector<1x1x2x1xf32> to vector<2x1xf32>
    %384 = vector.shape_cast %381 : vector<2x1xf32> to vector<1x1x2x1xf32>
    tpu.vector_store %arg14[%c0_174, %c0_175, %c0_176, %c0_177], %384 {strides = array<i32>} : memref<1x1x2x1xf32, #tpu.memory_space<vmem>>, vector<1x1x2x1xf32>,
    return
  }
  func.func @transform_0(%arg0: i32, %arg1: i32) -> (i32, i32, i32) {
    %c-1_i32 = arith.constant -1 : i32
    %0 = arith.addi %arg1, %c-1_i32 : i32
    %c15_i32 = arith.constant 15 : i32
    %1 = arith.minsi %0, %c15_i32 : i32
    %c0_i32 = arith.constant 0 : i32
    %2 = arith.maxsi %1, %c0_i32 : i32
    %c0_i32_0 = arith.constant 0 : i32
    %c0_i32_1 = arith.constant 0 : i32
    return %arg0, %c0_i32_0, %2 : i32, i32, i32
  }
  func.func @transform_1(%arg0: i32, %arg1: i32) -> (i32, i32, i32) {
    %c-1_i32 = arith.constant -1 : i32
    %0 = arith.addi %arg1, %c-1_i32 : i32
    %c15_i32 = arith.constant 15 : i32
    %1 = arith.minsi %0, %c15_i32 : i32
    %c0_i32 = arith.constant 0 : i32
    %2 = arith.maxsi %1, %c0_i32 : i32
    %c0_i32_0 = arith.constant 0 : i32
    %c0_i32_1 = arith.constant 0 : i32
    return %arg0, %c0_i32_0, %2 : i32, i32, i32
  }
  func.func @transform_2(%arg0: i32, %arg1: i32) -> (i32, i32, i32) {
    %c0_i32 = arith.constant 0 : i32
    %0 = arith.addi %arg1, %c0_i32 : i32
    %c15_i32 = arith.constant 15 : i32
    %1 = arith.minsi %0, %c15_i32 : i32
    %c0_i32_0 = arith.constant 0 : i32
    %2 = arith.maxsi %1, %c0_i32_0 : i32
    %c0_i32_1 = arith.constant 0 : i32
    %c0_i32_2 = arith.constant 0 : i32
    return %arg0, %c0_i32_1, %2 : i32, i32, i32
  }
  func.func @transform_3(%arg0: i32, %arg1: i32) -> (i32, i32, i32) {
    %c0_i32 = arith.constant 0 : i32
    %0 = arith.addi %arg1, %c0_i32 : i32
    %c15_i32 = arith.constant 15 : i32
    %1 = arith.minsi %0, %c15_i32 : i32
    %c0_i32_0 = arith.constant 0 : i32
    %2 = arith.maxsi %1, %c0_i32_0 : i32
    %c0_i32_1 = arith.constant 0 : i32
    %c0_i32_2 = arith.constant 0 : i32
    return %arg0, %c0_i32_1, %2 : i32, i32, i32
  }
  func.func @transform_4(%arg0: i32, %arg1: i32) -> (i32, i32, i32) {
    %c1_i32 = arith.constant 1 : i32
    %0 = arith.addi %arg1, %c1_i32 : i32
    %c15_i32 = arith.constant 15 : i32
    %1 = arith.minsi %0, %c15_i32 : i32
    %c0_i32 = arith.constant 0 : i32
    %2 = arith.maxsi %1, %c0_i32 : i32
    %c0_i32_0 = arith.constant 0 : i32
    %c0_i32_1 = arith.constant 0 : i32
    return %arg0, %c0_i32_0, %2 : i32, i32, i32
  }
  func.func @transform_5(%arg0: i32, %arg1: i32) -> (i32, i32, i32) {
    %c1_i32 = arith.constant 1 : i32
    %0 = arith.addi %arg1, %c1_i32 : i32
    %c15_i32 = arith.constant 15 : i32
    %1 = arith.minsi %0, %c15_i32 : i32
    %c0_i32 = arith.constant 0 : i32
    %2 = arith.maxsi %1, %c0_i32 : i32
    %c0_i32_0 = arith.constant 0 : i32
    %c0_i32_1 = arith.constant 0 : i32
    return %arg0, %c0_i32_0, %2 : i32, i32, i32
  }
  func.func @transform_6(%arg0: i32, %arg1: i32) -> (i32, i32, i32) {
    %c0_i32 = arith.constant 0 : i32
    %c0_i32_0 = arith.constant 0 : i32
    %c0_i32_1 = arith.constant 0 : i32
    %c0_i32_2 = arith.constant 0 : i32
    return %c0_i32, %c0_i32_0, %c0_i32_1 : i32, i32, i32
  }
  func.func @transform_7(%arg0: i32, %arg1: i32) -> (i32, i32, i32) {
    %c0_i32 = arith.constant 0 : i32
    %c0_i32_0 = arith.constant 0 : i32
    %c0_i32_1 = arith.constant 0 : i32
    return %arg0, %c0_i32, %c0_i32_0 : i32, i32, i32
  }
  func.func @transform_8(%arg0: i32, %arg1: i32) -> (i32, i32, i32) {
    %c0_i32 = arith.constant 0 : i32
    %c0_i32_0 = arith.constant 0 : i32
    %c0_i32_1 = arith.constant 0 : i32
    return %arg0, %c0_i32, %c0_i32_0 : i32, i32, i32
  }
  func.func @transform_9(%arg0: i32, %arg1: i32) -> (i32, i32) {
    %c0_i32 = arith.constant 0 : i32
    %c0_i32_0 = arith.constant 0 : i32
    %c0_i32_1 = arith.constant 0 : i32
    return %c0_i32, %c0_i32_0 : i32, i32
  }
  func.func @transform_10(%arg0: i32, %arg1: i32) -> (i32, i32, i32) {
    %c0_i32 = arith.constant 0 : i32
    %c0_i32_0 = arith.constant 0 : i32
    return %arg0, %c0_i32, %arg1 : i32, i32, i32
  }
  func.func @transform_11(%arg0: i32, %arg1: i32) -> (i32, i32, i32, i32) {
    %c0_i32 = arith.constant 0 : i32
    %c0_i32_0 = arith.constant 0 : i32
    %c0_i32_1 = arith.constant 0 : i32
    return %arg0, %arg1, %c0_i32, %c0_i32_0 : i32, i32, i32, i32
  }
  func.func @transform_12(%arg0: i32, %arg1: i32) -> (i32, i32, i32, i32) {
    %c0_i32 = arith.constant 0 : i32
    %c0_i32_0 = arith.constant 0 : i32
    %c0_i32_1 = arith.constant 0 : i32
    return %arg0, %arg1, %c0_i32, %c0_i32_0 : i32, i32, i32, i32
  }
}

module attributes {stable_mosaic.version = 11 : i64} {
  func.func @_norm_lrelu_1x1_softmax_kernel(%arg0: i32, %arg1: i32, %arg2: memref<1x2x2048xf32, #tpu.memory_space<vmem>>, %arg3: memref<1x2x1xf32, #tpu.memory_space<vmem>>, %arg4: memref<1x2x1xf32, #tpu.memory_space<vmem>>, %arg5: memref<3x2xf32, #tpu.memory_space<vmem>>, %arg6: memref<3x1xf32, #tpu.memory_space<vmem>>, %arg7: memref<1x3x2048xf32, #tpu.memory_space<vmem>>) attributes {dimension_semantics = [#tpu.dimension_semantics<parallel>, #tpu.dimension_semantics<parallel>], iteration_bounds = array<i64: 2, 2>, scalar_prefetch = 0 : i64, scratch_operands = 0 : i64, tpu.core_type = #tpu.core_type<tc>, window_params = [{transform_indices = @transform_0, window_bounds = array<i64: 1, 2, 2048>}, {transform_indices = @transform_1, window_bounds = array<i64: 1, 2, 1>}, {transform_indices = @transform_2, window_bounds = array<i64: 1, 2, 1>}, {pipeline_mode = #tpu.pipeline_mode<synchronous>, transform_indices = @transform_3, window_bounds = array<i64: 3, 2>}, {pipeline_mode = #tpu.pipeline_mode<synchronous>, transform_indices = @transform_4, window_bounds = array<i64: 3, 1>}, {transform_indices = @transform_5, window_bounds = array<i64: 1, 3, 2048>}]} {
    %c0 = arith.constant 0 : index
    %c0_0 = arith.constant 0 : index
    %c0_1 = arith.constant 0 : index
    %0 = vector.load %arg2[%c0, %c0_0, %c0_1] : memref<1x2x2048xf32, #tpu.memory_space<vmem>>, vector<1x2x2048xf32>
    %1 = vector.shape_cast %0 : vector<1x2x2048xf32> to vector<2x2048xf32>
    %c0_2 = arith.constant 0 : index
    %c0_3 = arith.constant 0 : index
    %c0_4 = arith.constant 0 : index
    %2 = vector.load %arg3[%c0_2, %c0_3, %c0_4] : memref<1x2x1xf32, #tpu.memory_space<vmem>>, vector<1x2x1xf32>
    %3 = vector.shape_cast %2 : vector<1x2x1xf32> to vector<2x1xf32>
    %4 = vector.broadcast %3 : vector<2x1xf32> to vector<2x2048xf32>
    %5 = arith.mulf %1, %4 : vector<2x2048xf32>
    %c0_5 = arith.constant 0 : index
    %c0_6 = arith.constant 0 : index
    %c0_7 = arith.constant 0 : index
    %6 = vector.load %arg4[%c0_5, %c0_6, %c0_7] : memref<1x2x1xf32, #tpu.memory_space<vmem>>, vector<1x2x1xf32>
    %7 = vector.shape_cast %6 : vector<1x2x1xf32> to vector<2x1xf32>
    %8 = vector.broadcast %7 : vector<2x1xf32> to vector<2x2048xf32>
    %9 = arith.addf %5, %8 : vector<2x2048xf32>
    %cst = arith.constant 0.000000e+00 : f32
    %10 = vector.broadcast %cst : f32 to vector<2x2048xf32>
    %11 = arith.cmpf oge, %9, %10 : vector<2x2048xf32>
    %cst_8 = arith.constant 0.00999999977 : f32
    %12 = vector.broadcast %cst_8 : f32 to vector<2x2048xf32>
    %13 = arith.mulf %12, %9 : vector<2x2048xf32>
    %14 = arith.select %11, %9, %13 : vector<2x2048xi1>, vector<2x2048xf32>
    %c0_9 = arith.constant 0 : index
    %c0_10 = arith.constant 0 : index
    %15 = vector.load %arg5[%c0_9, %c0_10] : memref<3x2xf32, #tpu.memory_space<vmem>>, vector<3x2xf32>
    %cst_11 = arith.constant dense<0.000000e+00> : vector<3x2048xf32>
    %16 = tpu.matmul %15, %14, %cst_11 {dimension_numbers = #tpu.dot_dimension_numbers<[1], [0], [0], [1], [0, 0, 1, 1], [], []>} : vector<3x2xf32>, vector<2x2048xf32>, vector<3x2048xf32> -> vector<3x2048xf32>
    %c0_12 = arith.constant 0 : index
    %c0_13 = arith.constant 0 : index
    %17 = vector.load %arg6[%c0_12, %c0_13] : memref<3x1xf32, #tpu.memory_space<vmem>>, vector<3x1xf32>
    %18 = vector.broadcast %17 : vector<3x1xf32> to vector<3x2048xf32>
    %19 = arith.addf %16, %18 : vector<3x2048xf32>
    %cst_14 = arith.constant dense<0xFF800000> : vector<2048xf32>
    %20 = vector.multi_reduction <maximumf>, %19, %cst_14 [0] : vector<3x2048xf32> to vector<2048xf32>
    %21 = vector.shape_cast %20 : vector<2048xf32> to vector<1x2048xf32>
    %22 = vector.broadcast %21 : vector<1x2048xf32> to vector<3x2048xf32>
    %23 = arith.subf %19, %22 : vector<3x2048xf32>
    %24 = math.exp %23 : vector<3x2048xf32>
    %cst_15 = arith.constant dense<0.000000e+00> : vector<2048xf32>
    %25 = vector.multi_reduction <add>, %24, %cst_15 [0] : vector<3x2048xf32> to vector<2048xf32>
    %26 = vector.shape_cast %25 : vector<2048xf32> to vector<1x2048xf32>
    %27 = vector.broadcast %26 : vector<1x2048xf32> to vector<3x2048xf32>
    %28 = arith.divf %24, %27 : vector<3x2048xf32>
    %c0_16 = arith.constant 0 : index
    %c0_17 = arith.constant 0 : index
    %c0_18 = arith.constant 0 : index
    %29 = vector.load %arg7[%c0_16, %c0_17, %c0_18] : memref<1x3x2048xf32, #tpu.memory_space<vmem>>, vector<1x3x2048xf32>
    %30 = vector.shape_cast %29 : vector<1x3x2048xf32> to vector<3x2048xf32>
    %31 = vector.shape_cast %28 : vector<3x2048xf32> to vector<1x3x2048xf32>
    tpu.vector_store %arg7[%c0_16, %c0_17, %c0_18], %31 {strides = array<i32>} : memref<1x3x2048xf32, #tpu.memory_space<vmem>>, vector<1x3x2048xf32>,
    return
  }
  func.func @transform_0(%arg0: i32, %arg1: i32) -> (i32, i32, i32) {
    %c0_i32 = arith.constant 0 : i32
    %c0_i32_0 = arith.constant 0 : i32
    return %arg0, %c0_i32, %arg1 : i32, i32, i32
  }
  func.func @transform_1(%arg0: i32, %arg1: i32) -> (i32, i32, i32) {
    %c0_i32 = arith.constant 0 : i32
    %c0_i32_0 = arith.constant 0 : i32
    %c0_i32_1 = arith.constant 0 : i32
    return %arg0, %c0_i32, %c0_i32_0 : i32, i32, i32
  }
  func.func @transform_2(%arg0: i32, %arg1: i32) -> (i32, i32, i32) {
    %c0_i32 = arith.constant 0 : i32
    %c0_i32_0 = arith.constant 0 : i32
    %c0_i32_1 = arith.constant 0 : i32
    return %arg0, %c0_i32, %c0_i32_0 : i32, i32, i32
  }
  func.func @transform_3(%arg0: i32, %arg1: i32) -> (i32, i32) {
    %c0_i32 = arith.constant 0 : i32
    %c0_i32_0 = arith.constant 0 : i32
    %c0_i32_1 = arith.constant 0 : i32
    return %c0_i32, %c0_i32_0 : i32, i32
  }
  func.func @transform_4(%arg0: i32, %arg1: i32) -> (i32, i32) {
    %c0_i32 = arith.constant 0 : i32
    %c0_i32_0 = arith.constant 0 : i32
    %c0_i32_1 = arith.constant 0 : i32
    return %c0_i32, %c0_i32_0 : i32, i32
  }
  func.func @transform_5(%arg0: i32, %arg1: i32) -> (i32, i32, i32) {
    %c0_i32 = arith.constant 0 : i32
    %c0_i32_0 = arith.constant 0 : i32
    return %arg0, %c0_i32, %arg1 : i32, i32, i32
  }
}

module attributes {stable_mosaic.version = 11 : i64} {
  func.func @_fused_conv3x3_kernel(%arg0: i32, %arg1: i32, %arg2: memref<1x2x256xf32, #tpu.memory_space<vmem>>, %arg3: memref<1x2x256xf32, #tpu.memory_space<vmem>>, %arg4: memref<1x2x256xf32, #tpu.memory_space<vmem>>, %arg5: memref<27x2x2xf32, #tpu.memory_space<vmem>>, %arg6: memref<1x2x1xf32, #tpu.memory_space<vmem>>, %arg7: memref<1x2x1xf32, #tpu.memory_space<vmem>>, %arg8: memref<2x1xf32, #tpu.memory_space<vmem>>, %arg9: memref<1x2x256xf32, #tpu.memory_space<vmem>>, %arg10: memref<1x1x2x1xf32, #tpu.memory_space<vmem>>, %arg11: memref<1x1x2x1xf32, #tpu.memory_space<vmem>>) attributes {dimension_semantics = [#tpu.dimension_semantics<parallel>, #tpu.dimension_semantics<parallel>], iteration_bounds = array<i64: 2, 16>, scalar_prefetch = 0 : i64, scratch_operands = 0 : i64, tpu.core_type = #tpu.core_type<tc>, window_params = [{transform_indices = @transform_0, window_bounds = array<i64: 1, 2, 256>}, {transform_indices = @transform_1, window_bounds = array<i64: 1, 2, 256>}, {transform_indices = @transform_2, window_bounds = array<i64: 1, 2, 256>}, {pipeline_mode = #tpu.pipeline_mode<synchronous>, transform_indices = @transform_3, window_bounds = array<i64: 27, 2, 2>}, {transform_indices = @transform_4, window_bounds = array<i64: 1, 2, 1>}, {transform_indices = @transform_5, window_bounds = array<i64: 1, 2, 1>}, {pipeline_mode = #tpu.pipeline_mode<synchronous>, transform_indices = @transform_6, window_bounds = array<i64: 2, 1>}, {transform_indices = @transform_7, window_bounds = array<i64: 1, 2, 256>}, {transform_indices = @transform_8, window_bounds = array<i64: 1, 1, 2, 1>}, {transform_indices = @transform_9, window_bounds = array<i64: 1, 1, 2, 1>}]} {
    %0 = tpu.iota {dimensions = array<i32: 1>} : vector<1x256xi32>
    %c16_i32 = arith.constant 16 : i32
    %c0_i32 = arith.constant 0 : i32
    %1 = arith.cmpi eq, %c16_i32, %c0_i32 : i32
    %c1_i32 = arith.constant 1 : i32
    %2 = arith.select %1, %c1_i32, %c16_i32 : i32
    %3 = vector.broadcast %2 : i32 to vector<1x256xi32>
    %4 = arith.remsi %0, %3 : vector<1x256xi32>
    %c0_i32_0 = arith.constant 0 : i32
    %5 = vector.broadcast %c0_i32_0 : i32 to vector<1x256xi32>
    %6 = arith.cmpi ne, %4, %5 : vector<1x256xi32>
    %c0_i32_1 = arith.constant 0 : i32
    %7 = vector.broadcast %c0_i32_1 : i32 to vector<1x256xi32>
    %8 = arith.cmpi slt, %4, %7 : vector<1x256xi32>
    %c0_i32_2 = arith.constant 0 : i32
    %9 = arith.cmpi slt, %2, %c0_i32_2 : i32
    %10 = vector.broadcast %9 : i1 to vector<1x256xi1>
    %11 = vector.broadcast %10 : vector<1x256xi1> to vector<1x256xi1>
    %12 = arith.xori %8, %11 : vector<1x256xi1>
    %13 = arith.andi %12, %6 : vector<1x256xi1>
    %14 = vector.broadcast %2 : i32 to vector<1x256xi32>
    %15 = arith.addi %4, %14 : vector<1x256xi32>
    %16 = arith.select %13, %15, %4 : vector<1x256xi1>, vector<1x256xi32>
    %c0 = arith.constant 0 : index
    %c0_3 = arith.constant 0 : index
    %c0_4 = arith.constant 0 : index
    %17 = vector.load %arg6[%c0, %c0_3, %c0_4] : memref<1x2x1xf32, #tpu.memory_space<vmem>>, vector<1x2x1xf32>
    %18 = vector.shape_cast %17 : vector<1x2x1xf32> to vector<2x1xf32>
    %c0_5 = arith.constant 0 : index
    %c0_6 = arith.constant 0 : index
    %c0_7 = arith.constant 0 : index
    %19 = vector.load %arg7[%c0_5, %c0_6, %c0_7] : memref<1x2x1xf32, #tpu.memory_space<vmem>>, vector<1x2x1xf32>
    %20 = vector.shape_cast %19 : vector<1x2x1xf32> to vector<2x1xf32>
    %cst = arith.constant 0.000000e+00 : f32
    %21 = vector.broadcast %cst : f32 to vector<2x256xf32>
    %c0_8 = arith.constant 0 : index
    %c0_9 = arith.constant 0 : index
    %c0_10 = arith.constant 0 : index
    %22 = vector.load %arg2[%c0_8, %c0_9, %c0_10] : memref<1x2x256xf32, #tpu.memory_space<vmem>>, vector<1x2x256xf32>
    %23 = vector.shape_cast %22 : vector<1x2x256xf32> to vector<2x256xf32>
    %24 = vector.broadcast %18 : vector<2x1xf32> to vector<2x256xf32>
    %25 = arith.mulf %23, %24 : vector<2x256xf32>
    %26 = vector.broadcast %20 : vector<2x1xf32> to vector<2x256xf32>
    %27 = arith.addf %25, %26 : vector<2x256xf32>
    %cst_11 = arith.constant 0.000000e+00 : f32
    %28 = vector.broadcast %cst_11 : f32 to vector<2x256xf32>
    %29 = arith.cmpf oge, %27, %28 : vector<2x256xf32>
    %cst_12 = arith.constant 0.00999999977 : f32
    %30 = vector.broadcast %cst_12 : f32 to vector<2x256xf32>
    %31 = arith.mulf %30, %27 : vector<2x256xf32>
    %32 = arith.select %29, %27, %31 : vector<2x256xi1>, vector<2x256xf32>
    %c-1_i32 = arith.constant -1 : i32
    %33 = arith.addi %arg1, %c-1_i32 : i32
    %c0_i32_13 = arith.constant 0 : i32
    %34 = arith.cmpi sge, %33, %c0_i32_13 : i32
    %c16_i32_14 = arith.constant 16 : i32
    %35 = arith.cmpi slt, %33, %c16_i32_14 : i32
    %36 = arith.andi %34, %35 : i1
    %37 = arith.extui %36 : i1 to i32
    %38 = arith.sitofp %37 : i32 to f32
    %39 = vector.broadcast %38 : f32 to vector<2x256xf32>
    %40 = arith.mulf %32, %39 : vector<2x256xf32>
    %cst_15 = arith.constant 0.000000e+00 : f32
    %41 = vector.broadcast %cst_15 : f32 to vector<2x17xf32>
    %42 = tpu.concatenate %41, %40, %41 in 1 : vector<2x17xf32>, vector<2x256xf32>, vector<2x17xf32> -> vector<2x290xf32>
    %43 = vector.extract_strided_slice %42 {offsets = [0, 0], sizes = [2, 256], strides = [1, 1]} : vector<2x290xf32> to vector<2x256xf32>
    %c0_i32_16 = arith.constant 0 : i32
    %44 = vector.broadcast %c0_i32_16 : i32 to vector<1x256xi32>
    %45 = arith.cmpi eq, %16, %44 : vector<1x256xi32>
    %cst_17 = arith.constant 0.000000e+00 : f32
    %46 = vector.shape_cast %45 : vector<1x256xi1> to vector<1x256xi1>
    %47 = vector.broadcast %46 : vector<1x256xi1> to vector<2x256xi1>
    %48 = vector.broadcast %cst_17 : f32 to vector<2x256xf32>
    %49 = arith.select %47, %48, %43 : vector<2x256xi1>, vector<2x256xf32>
    %c0_18 = arith.constant 0 : index
    %c0_19 = arith.constant 0 : index
    %c0_20 = arith.constant 0 : index
    %50 = vector.load %arg5[%c0_18, %c0_19, %c0_20] : memref<27x2x2xf32, #tpu.memory_space<vmem>>, vector<1x2x2xf32>
    %51 = vector.shape_cast %50 : vector<1x2x2xf32> to vector<2x2xf32>
    %cst_21 = arith.constant dense<0.000000e+00> : vector<2x256xf32>
    %52 = tpu.matmul %51, %49, %cst_21 {dimension_numbers = #tpu.dot_dimension_numbers<[1], [0], [0], [1], [0, 0, 1, 1], [], []>} : vector<2x2xf32>, vector<2x256xf32>, vector<2x256xf32> -> vector<2x256xf32>
    %53 = arith.addf %21, %52 : vector<2x256xf32>
    %54 = vector.extract_strided_slice %42 {offsets = [0, 1], sizes = [2, 256], strides = [1, 1]} : vector<2x290xf32> to vector<2x256xf32>
    %c1 = arith.constant 1 : index
    %c0_22 = arith.constant 0 : index
    %c0_23 = arith.constant 0 : index
    %55 = vector.load %arg5[%c1, %c0_22, %c0_23] : memref<27x2x2xf32, #tpu.memory_space<vmem>>, vector<1x2x2xf32>
    %56 = vector.shape_cast %55 : vector<1x2x2xf32> to vector<2x2xf32>
    %cst_24 = arith.constant dense<0.000000e+00> : vector<2x256xf32>
    %57 = tpu.matmul %56, %54, %cst_24 {dimension_numbers = #tpu.dot_dimension_numbers<[1], [0], [0], [1], [0, 0, 1, 1], [], []>} : vector<2x2xf32>, vector<2x256xf32>, vector<2x256xf32> -> vector<2x256xf32>
    %58 = arith.addf %53, %57 : vector<2x256xf32>
    %59 = vector.extract_strided_slice %42 {offsets = [0, 2], sizes = [2, 256], strides = [1, 1]} : vector<2x290xf32> to vector<2x256xf32>
    %c15_i32 = arith.constant 15 : i32
    %60 = vector.broadcast %c15_i32 : i32 to vector<1x256xi32>
    %61 = arith.cmpi eq, %16, %60 : vector<1x256xi32>
    %cst_25 = arith.constant 0.000000e+00 : f32
    %62 = vector.shape_cast %61 : vector<1x256xi1> to vector<1x256xi1>
    %63 = vector.broadcast %62 : vector<1x256xi1> to vector<2x256xi1>
    %64 = vector.broadcast %cst_25 : f32 to vector<2x256xf32>
    %65 = arith.select %63, %64, %59 : vector<2x256xi1>, vector<2x256xf32>
    %c2 = arith.constant 2 : index
    %c0_26 = arith.constant 0 : index
    %c0_27 = arith.constant 0 : index
    %66 = vector.load %arg5[%c2, %c0_26, %c0_27] : memref<27x2x2xf32, #tpu.memory_space<vmem>>, vector<1x2x2xf32>
    %67 = vector.shape_cast %66 : vector<1x2x2xf32> to vector<2x2xf32>
    %cst_28 = arith.constant dense<0.000000e+00> : vector<2x256xf32>
    %68 = tpu.matmul %67, %65, %cst_28 {dimension_numbers = #tpu.dot_dimension_numbers<[1], [0], [0], [1], [0, 0, 1, 1], [], []>} : vector<2x2xf32>, vector<2x256xf32>, vector<2x256xf32> -> vector<2x256xf32>
    %69 = arith.addf %58, %68 : vector<2x256xf32>
    %70 = vector.extract_strided_slice %42 {offsets = [0, 16], sizes = [2, 256], strides = [1, 1]} : vector<2x290xf32> to vector<2x256xf32>
    %c0_i32_29 = arith.constant 0 : i32
    %71 = vector.broadcast %c0_i32_29 : i32 to vector<1x256xi32>
    %72 = arith.cmpi eq, %16, %71 : vector<1x256xi32>
    %cst_30 = arith.constant 0.000000e+00 : f32
    %73 = vector.shape_cast %72 : vector<1x256xi1> to vector<1x256xi1>
    %74 = vector.broadcast %73 : vector<1x256xi1> to vector<2x256xi1>
    %75 = vector.broadcast %cst_30 : f32 to vector<2x256xf32>
    %76 = arith.select %74, %75, %70 : vector<2x256xi1>, vector<2x256xf32>
    %c3 = arith.constant 3 : index
    %c0_31 = arith.constant 0 : index
    %c0_32 = arith.constant 0 : index
    %77 = vector.load %arg5[%c3, %c0_31, %c0_32] : memref<27x2x2xf32, #tpu.memory_space<vmem>>, vector<1x2x2xf32>
    %78 = vector.shape_cast %77 : vector<1x2x2xf32> to vector<2x2xf32>
    %cst_33 = arith.constant dense<0.000000e+00> : vector<2x256xf32>
    %79 = tpu.matmul %78, %76, %cst_33 {dimension_numbers = #tpu.dot_dimension_numbers<[1], [0], [0], [1], [0, 0, 1, 1], [], []>} : vector<2x2xf32>, vector<2x256xf32>, vector<2x256xf32> -> vector<2x256xf32>
    %80 = arith.addf %69, %79 : vector<2x256xf32>
    %81 = vector.extract_strided_slice %42 {offsets = [0, 17], sizes = [2, 256], strides = [1, 1]} : vector<2x290xf32> to vector<2x256xf32>
    %c4 = arith.constant 4 : index
    %c0_34 = arith.constant 0 : index
    %c0_35 = arith.constant 0 : index
    %82 = vector.load %arg5[%c4, %c0_34, %c0_35] : memref<27x2x2xf32, #tpu.memory_space<vmem>>, vector<1x2x2xf32>
    %83 = vector.shape_cast %82 : vector<1x2x2xf32> to vector<2x2xf32>
    %cst_36 = arith.constant dense<0.000000e+00> : vector<2x256xf32>
    %84 = tpu.matmul %83, %81, %cst_36 {dimension_numbers = #tpu.dot_dimension_numbers<[1], [0], [0], [1], [0, 0, 1, 1], [], []>} : vector<2x2xf32>, vector<2x256xf32>, vector<2x256xf32> -> vector<2x256xf32>
    %85 = arith.addf %80, %84 : vector<2x256xf32>
    %86 = vector.extract_strided_slice %42 {offsets = [0, 18], sizes = [2, 256], strides = [1, 1]} : vector<2x290xf32> to vector<2x256xf32>
    %c15_i32_37 = arith.constant 15 : i32
    %87 = vector.broadcast %c15_i32_37 : i32 to vector<1x256xi32>
    %88 = arith.cmpi eq, %16, %87 : vector<1x256xi32>
    %cst_38 = arith.constant 0.000000e+00 : f32
    %89 = vector.shape_cast %88 : vector<1x256xi1> to vector<1x256xi1>
    %90 = vector.broadcast %89 : vector<1x256xi1> to vector<2x256xi1>
    %91 = vector.broadcast %cst_38 : f32 to vector<2x256xf32>
    %92 = arith.select %90, %91, %86 : vector<2x256xi1>, vector<2x256xf32>
    %c5 = arith.constant 5 : index
    %c0_39 = arith.constant 0 : index
    %c0_40 = arith.constant 0 : index
    %93 = vector.load %arg5[%c5, %c0_39, %c0_40] : memref<27x2x2xf32, #tpu.memory_space<vmem>>, vector<1x2x2xf32>
    %94 = vector.shape_cast %93 : vector<1x2x2xf32> to vector<2x2xf32>
    %cst_41 = arith.constant dense<0.000000e+00> : vector<2x256xf32>
    %95 = tpu.matmul %94, %92, %cst_41 {dimension_numbers = #tpu.dot_dimension_numbers<[1], [0], [0], [1], [0, 0, 1, 1], [], []>} : vector<2x2xf32>, vector<2x256xf32>, vector<2x256xf32> -> vector<2x256xf32>
    %96 = arith.addf %85, %95 : vector<2x256xf32>
    %97 = vector.extract_strided_slice %42 {offsets = [0, 32], sizes = [2, 256], strides = [1, 1]} : vector<2x290xf32> to vector<2x256xf32>
    %c0_i32_42 = arith.constant 0 : i32
    %98 = vector.broadcast %c0_i32_42 : i32 to vector<1x256xi32>
    %99 = arith.cmpi eq, %16, %98 : vector<1x256xi32>
    %cst_43 = arith.constant 0.000000e+00 : f32
    %100 = vector.shape_cast %99 : vector<1x256xi1> to vector<1x256xi1>
    %101 = vector.broadcast %100 : vector<1x256xi1> to vector<2x256xi1>
    %102 = vector.broadcast %cst_43 : f32 to vector<2x256xf32>
    %103 = arith.select %101, %102, %97 : vector<2x256xi1>, vector<2x256xf32>
    %c6 = arith.constant 6 : index
    %c0_44 = arith.constant 0 : index
    %c0_45 = arith.constant 0 : index
    %104 = vector.load %arg5[%c6, %c0_44, %c0_45] : memref<27x2x2xf32, #tpu.memory_space<vmem>>, vector<1x2x2xf32>
    %105 = vector.shape_cast %104 : vector<1x2x2xf32> to vector<2x2xf32>
    %cst_46 = arith.constant dense<0.000000e+00> : vector<2x256xf32>
    %106 = tpu.matmul %105, %103, %cst_46 {dimension_numbers = #tpu.dot_dimension_numbers<[1], [0], [0], [1], [0, 0, 1, 1], [], []>} : vector<2x2xf32>, vector<2x256xf32>, vector<2x256xf32> -> vector<2x256xf32>
    %107 = arith.addf %96, %106 : vector<2x256xf32>
    %108 = vector.extract_strided_slice %42 {offsets = [0, 33], sizes = [2, 256], strides = [1, 1]} : vector<2x290xf32> to vector<2x256xf32>
    %c7 = arith.constant 7 : index
    %c0_47 = arith.constant 0 : index
    %c0_48 = arith.constant 0 : index
    %109 = vector.load %arg5[%c7, %c0_47, %c0_48] : memref<27x2x2xf32, #tpu.memory_space<vmem>>, vector<1x2x2xf32>
    %110 = vector.shape_cast %109 : vector<1x2x2xf32> to vector<2x2xf32>
    %cst_49 = arith.constant dense<0.000000e+00> : vector<2x256xf32>
    %111 = tpu.matmul %110, %108, %cst_49 {dimension_numbers = #tpu.dot_dimension_numbers<[1], [0], [0], [1], [0, 0, 1, 1], [], []>} : vector<2x2xf32>, vector<2x256xf32>, vector<2x256xf32> -> vector<2x256xf32>
    %112 = arith.addf %107, %111 : vector<2x256xf32>
    %113 = vector.extract_strided_slice %42 {offsets = [0, 34], sizes = [2, 256], strides = [1, 1]} : vector<2x290xf32> to vector<2x256xf32>
    %c15_i32_50 = arith.constant 15 : i32
    %114 = vector.broadcast %c15_i32_50 : i32 to vector<1x256xi32>
    %115 = arith.cmpi eq, %16, %114 : vector<1x256xi32>
    %cst_51 = arith.constant 0.000000e+00 : f32
    %116 = vector.shape_cast %115 : vector<1x256xi1> to vector<1x256xi1>
    %117 = vector.broadcast %116 : vector<1x256xi1> to vector<2x256xi1>
    %118 = vector.broadcast %cst_51 : f32 to vector<2x256xf32>
    %119 = arith.select %117, %118, %113 : vector<2x256xi1>, vector<2x256xf32>
    %c8 = arith.constant 8 : index
    %c0_52 = arith.constant 0 : index
    %c0_53 = arith.constant 0 : index
    %120 = vector.load %arg5[%c8, %c0_52, %c0_53] : memref<27x2x2xf32, #tpu.memory_space<vmem>>, vector<1x2x2xf32>
    %121 = vector.shape_cast %120 : vector<1x2x2xf32> to vector<2x2xf32>
    %cst_54 = arith.constant dense<0.000000e+00> : vector<2x256xf32>
    %122 = tpu.matmul %121, %119, %cst_54 {dimension_numbers = #tpu.dot_dimension_numbers<[1], [0], [0], [1], [0, 0, 1, 1], [], []>} : vector<2x2xf32>, vector<2x256xf32>, vector<2x256xf32> -> vector<2x256xf32>
    %123 = arith.addf %112, %122 : vector<2x256xf32>
    %c0_55 = arith.constant 0 : index
    %c0_56 = arith.constant 0 : index
    %c0_57 = arith.constant 0 : index
    %124 = vector.load %arg3[%c0_55, %c0_56, %c0_57] : memref<1x2x256xf32, #tpu.memory_space<vmem>>, vector<1x2x256xf32>
    %125 = vector.shape_cast %124 : vector<1x2x256xf32> to vector<2x256xf32>
    %126 = vector.broadcast %18 : vector<2x1xf32> to vector<2x256xf32>
    %127 = arith.mulf %125, %126 : vector<2x256xf32>
    %128 = vector.broadcast %20 : vector<2x1xf32> to vector<2x256xf32>
    %129 = arith.addf %127, %128 : vector<2x256xf32>
    %cst_58 = arith.constant 0.000000e+00 : f32
    %130 = vector.broadcast %cst_58 : f32 to vector<2x256xf32>
    %131 = arith.cmpf oge, %129, %130 : vector<2x256xf32>
    %cst_59 = arith.constant 0.00999999977 : f32
    %132 = vector.broadcast %cst_59 : f32 to vector<2x256xf32>
    %133 = arith.mulf %132, %129 : vector<2x256xf32>
    %134 = arith.select %131, %129, %133 : vector<2x256xi1>, vector<2x256xf32>
    %cst_60 = arith.constant 0.000000e+00 : f32
    %135 = vector.broadcast %cst_60 : f32 to vector<2x17xf32>
    %136 = tpu.concatenate %135, %134, %135 in 1 : vector<2x17xf32>, vector<2x256xf32>, vector<2x17xf32> -> vector<2x290xf32>
    %137 = vector.extract_strided_slice %136 {offsets = [0, 0], sizes = [2, 256], strides = [1, 1]} : vector<2x290xf32> to vector<2x256xf32>
    %c0_i32_61 = arith.constant 0 : i32
    %138 = vector.broadcast %c0_i32_61 : i32 to vector<1x256xi32>
    %139 = arith.cmpi eq, %16, %138 : vector<1x256xi32>
    %cst_62 = arith.constant 0.000000e+00 : f32
    %140 = vector.shape_cast %139 : vector<1x256xi1> to vector<1x256xi1>
    %141 = vector.broadcast %140 : vector<1x256xi1> to vector<2x256xi1>
    %142 = vector.broadcast %cst_62 : f32 to vector<2x256xf32>
    %143 = arith.select %141, %142, %137 : vector<2x256xi1>, vector<2x256xf32>
    %c9 = arith.constant 9 : index
    %c0_63 = arith.constant 0 : index
    %c0_64 = arith.constant 0 : index
    %144 = vector.load %arg5[%c9, %c0_63, %c0_64] : memref<27x2x2xf32, #tpu.memory_space<vmem>>, vector<1x2x2xf32>
    %145 = vector.shape_cast %144 : vector<1x2x2xf32> to vector<2x2xf32>
    %cst_65 = arith.constant dense<0.000000e+00> : vector<2x256xf32>
    %146 = tpu.matmul %145, %143, %cst_65 {dimension_numbers = #tpu.dot_dimension_numbers<[1], [0], [0], [1], [0, 0, 1, 1], [], []>} : vector<2x2xf32>, vector<2x256xf32>, vector<2x256xf32> -> vector<2x256xf32>
    %147 = arith.addf %123, %146 : vector<2x256xf32>
    %148 = vector.extract_strided_slice %136 {offsets = [0, 1], sizes = [2, 256], strides = [1, 1]} : vector<2x290xf32> to vector<2x256xf32>
    %c10 = arith.constant 10 : index
    %c0_66 = arith.constant 0 : index
    %c0_67 = arith.constant 0 : index
    %149 = vector.load %arg5[%c10, %c0_66, %c0_67] : memref<27x2x2xf32, #tpu.memory_space<vmem>>, vector<1x2x2xf32>
    %150 = vector.shape_cast %149 : vector<1x2x2xf32> to vector<2x2xf32>
    %cst_68 = arith.constant dense<0.000000e+00> : vector<2x256xf32>
    %151 = tpu.matmul %150, %148, %cst_68 {dimension_numbers = #tpu.dot_dimension_numbers<[1], [0], [0], [1], [0, 0, 1, 1], [], []>} : vector<2x2xf32>, vector<2x256xf32>, vector<2x256xf32> -> vector<2x256xf32>
    %152 = arith.addf %147, %151 : vector<2x256xf32>
    %153 = vector.extract_strided_slice %136 {offsets = [0, 2], sizes = [2, 256], strides = [1, 1]} : vector<2x290xf32> to vector<2x256xf32>
    %c15_i32_69 = arith.constant 15 : i32
    %154 = vector.broadcast %c15_i32_69 : i32 to vector<1x256xi32>
    %155 = arith.cmpi eq, %16, %154 : vector<1x256xi32>
    %cst_70 = arith.constant 0.000000e+00 : f32
    %156 = vector.shape_cast %155 : vector<1x256xi1> to vector<1x256xi1>
    %157 = vector.broadcast %156 : vector<1x256xi1> to vector<2x256xi1>
    %158 = vector.broadcast %cst_70 : f32 to vector<2x256xf32>
    %159 = arith.select %157, %158, %153 : vector<2x256xi1>, vector<2x256xf32>
    %c11 = arith.constant 11 : index
    %c0_71 = arith.constant 0 : index
    %c0_72 = arith.constant 0 : index
    %160 = vector.load %arg5[%c11, %c0_71, %c0_72] : memref<27x2x2xf32, #tpu.memory_space<vmem>>, vector<1x2x2xf32>
    %161 = vector.shape_cast %160 : vector<1x2x2xf32> to vector<2x2xf32>
    %cst_73 = arith.constant dense<0.000000e+00> : vector<2x256xf32>
    %162 = tpu.matmul %161, %159, %cst_73 {dimension_numbers = #tpu.dot_dimension_numbers<[1], [0], [0], [1], [0, 0, 1, 1], [], []>} : vector<2x2xf32>, vector<2x256xf32>, vector<2x256xf32> -> vector<2x256xf32>
    %163 = arith.addf %152, %162 : vector<2x256xf32>
    %164 = vector.extract_strided_slice %136 {offsets = [0, 16], sizes = [2, 256], strides = [1, 1]} : vector<2x290xf32> to vector<2x256xf32>
    %c0_i32_74 = arith.constant 0 : i32
    %165 = vector.broadcast %c0_i32_74 : i32 to vector<1x256xi32>
    %166 = arith.cmpi eq, %16, %165 : vector<1x256xi32>
    %cst_75 = arith.constant 0.000000e+00 : f32
    %167 = vector.shape_cast %166 : vector<1x256xi1> to vector<1x256xi1>
    %168 = vector.broadcast %167 : vector<1x256xi1> to vector<2x256xi1>
    %169 = vector.broadcast %cst_75 : f32 to vector<2x256xf32>
    %170 = arith.select %168, %169, %164 : vector<2x256xi1>, vector<2x256xf32>
    %c12 = arith.constant 12 : index
    %c0_76 = arith.constant 0 : index
    %c0_77 = arith.constant 0 : index
    %171 = vector.load %arg5[%c12, %c0_76, %c0_77] : memref<27x2x2xf32, #tpu.memory_space<vmem>>, vector<1x2x2xf32>
    %172 = vector.shape_cast %171 : vector<1x2x2xf32> to vector<2x2xf32>
    %cst_78 = arith.constant dense<0.000000e+00> : vector<2x256xf32>
    %173 = tpu.matmul %172, %170, %cst_78 {dimension_numbers = #tpu.dot_dimension_numbers<[1], [0], [0], [1], [0, 0, 1, 1], [], []>} : vector<2x2xf32>, vector<2x256xf32>, vector<2x256xf32> -> vector<2x256xf32>
    %174 = arith.addf %163, %173 : vector<2x256xf32>
    %175 = vector.extract_strided_slice %136 {offsets = [0, 17], sizes = [2, 256], strides = [1, 1]} : vector<2x290xf32> to vector<2x256xf32>
    %c13 = arith.constant 13 : index
    %c0_79 = arith.constant 0 : index
    %c0_80 = arith.constant 0 : index
    %176 = vector.load %arg5[%c13, %c0_79, %c0_80] : memref<27x2x2xf32, #tpu.memory_space<vmem>>, vector<1x2x2xf32>
    %177 = vector.shape_cast %176 : vector<1x2x2xf32> to vector<2x2xf32>
    %cst_81 = arith.constant dense<0.000000e+00> : vector<2x256xf32>
    %178 = tpu.matmul %177, %175, %cst_81 {dimension_numbers = #tpu.dot_dimension_numbers<[1], [0], [0], [1], [0, 0, 1, 1], [], []>} : vector<2x2xf32>, vector<2x256xf32>, vector<2x256xf32> -> vector<2x256xf32>
    %179 = arith.addf %174, %178 : vector<2x256xf32>
    %180 = vector.extract_strided_slice %136 {offsets = [0, 18], sizes = [2, 256], strides = [1, 1]} : vector<2x290xf32> to vector<2x256xf32>
    %c15_i32_82 = arith.constant 15 : i32
    %181 = vector.broadcast %c15_i32_82 : i32 to vector<1x256xi32>
    %182 = arith.cmpi eq, %16, %181 : vector<1x256xi32>
    %cst_83 = arith.constant 0.000000e+00 : f32
    %183 = vector.shape_cast %182 : vector<1x256xi1> to vector<1x256xi1>
    %184 = vector.broadcast %183 : vector<1x256xi1> to vector<2x256xi1>
    %185 = vector.broadcast %cst_83 : f32 to vector<2x256xf32>
    %186 = arith.select %184, %185, %180 : vector<2x256xi1>, vector<2x256xf32>
    %c14 = arith.constant 14 : index
    %c0_84 = arith.constant 0 : index
    %c0_85 = arith.constant 0 : index
    %187 = vector.load %arg5[%c14, %c0_84, %c0_85] : memref<27x2x2xf32, #tpu.memory_space<vmem>>, vector<1x2x2xf32>
    %188 = vector.shape_cast %187 : vector<1x2x2xf32> to vector<2x2xf32>
    %cst_86 = arith.constant dense<0.000000e+00> : vector<2x256xf32>
    %189 = tpu.matmul %188, %186, %cst_86 {dimension_numbers = #tpu.dot_dimension_numbers<[1], [0], [0], [1], [0, 0, 1, 1], [], []>} : vector<2x2xf32>, vector<2x256xf32>, vector<2x256xf32> -> vector<2x256xf32>
    %190 = arith.addf %179, %189 : vector<2x256xf32>
    %191 = vector.extract_strided_slice %136 {offsets = [0, 32], sizes = [2, 256], strides = [1, 1]} : vector<2x290xf32> to vector<2x256xf32>
    %c0_i32_87 = arith.constant 0 : i32
    %192 = vector.broadcast %c0_i32_87 : i32 to vector<1x256xi32>
    %193 = arith.cmpi eq, %16, %192 : vector<1x256xi32>
    %cst_88 = arith.constant 0.000000e+00 : f32
    %194 = vector.shape_cast %193 : vector<1x256xi1> to vector<1x256xi1>
    %195 = vector.broadcast %194 : vector<1x256xi1> to vector<2x256xi1>
    %196 = vector.broadcast %cst_88 : f32 to vector<2x256xf32>
    %197 = arith.select %195, %196, %191 : vector<2x256xi1>, vector<2x256xf32>
    %c15 = arith.constant 15 : index
    %c0_89 = arith.constant 0 : index
    %c0_90 = arith.constant 0 : index
    %198 = vector.load %arg5[%c15, %c0_89, %c0_90] : memref<27x2x2xf32, #tpu.memory_space<vmem>>, vector<1x2x2xf32>
    %199 = vector.shape_cast %198 : vector<1x2x2xf32> to vector<2x2xf32>
    %cst_91 = arith.constant dense<0.000000e+00> : vector<2x256xf32>
    %200 = tpu.matmul %199, %197, %cst_91 {dimension_numbers = #tpu.dot_dimension_numbers<[1], [0], [0], [1], [0, 0, 1, 1], [], []>} : vector<2x2xf32>, vector<2x256xf32>, vector<2x256xf32> -> vector<2x256xf32>
    %201 = arith.addf %190, %200 : vector<2x256xf32>
    %202 = vector.extract_strided_slice %136 {offsets = [0, 33], sizes = [2, 256], strides = [1, 1]} : vector<2x290xf32> to vector<2x256xf32>
    %c16 = arith.constant 16 : index
    %c0_92 = arith.constant 0 : index
    %c0_93 = arith.constant 0 : index
    %203 = vector.load %arg5[%c16, %c0_92, %c0_93] : memref<27x2x2xf32, #tpu.memory_space<vmem>>, vector<1x2x2xf32>
    %204 = vector.shape_cast %203 : vector<1x2x2xf32> to vector<2x2xf32>
    %cst_94 = arith.constant dense<0.000000e+00> : vector<2x256xf32>
    %205 = tpu.matmul %204, %202, %cst_94 {dimension_numbers = #tpu.dot_dimension_numbers<[1], [0], [0], [1], [0, 0, 1, 1], [], []>} : vector<2x2xf32>, vector<2x256xf32>, vector<2x256xf32> -> vector<2x256xf32>
    %206 = arith.addf %201, %205 : vector<2x256xf32>
    %207 = vector.extract_strided_slice %136 {offsets = [0, 34], sizes = [2, 256], strides = [1, 1]} : vector<2x290xf32> to vector<2x256xf32>
    %c15_i32_95 = arith.constant 15 : i32
    %208 = vector.broadcast %c15_i32_95 : i32 to vector<1x256xi32>
    %209 = arith.cmpi eq, %16, %208 : vector<1x256xi32>
    %cst_96 = arith.constant 0.000000e+00 : f32
    %210 = vector.shape_cast %209 : vector<1x256xi1> to vector<1x256xi1>
    %211 = vector.broadcast %210 : vector<1x256xi1> to vector<2x256xi1>
    %212 = vector.broadcast %cst_96 : f32 to vector<2x256xf32>
    %213 = arith.select %211, %212, %207 : vector<2x256xi1>, vector<2x256xf32>
    %c17 = arith.constant 17 : index
    %c0_97 = arith.constant 0 : index
    %c0_98 = arith.constant 0 : index
    %214 = vector.load %arg5[%c17, %c0_97, %c0_98] : memref<27x2x2xf32, #tpu.memory_space<vmem>>, vector<1x2x2xf32>
    %215 = vector.shape_cast %214 : vector<1x2x2xf32> to vector<2x2xf32>
    %cst_99 = arith.constant dense<0.000000e+00> : vector<2x256xf32>
    %216 = tpu.matmul %215, %213, %cst_99 {dimension_numbers = #tpu.dot_dimension_numbers<[1], [0], [0], [1], [0, 0, 1, 1], [], []>} : vector<2x2xf32>, vector<2x256xf32>, vector<2x256xf32> -> vector<2x256xf32>
    %217 = arith.addf %206, %216 : vector<2x256xf32>
    %c0_100 = arith.constant 0 : index
    %c0_101 = arith.constant 0 : index
    %c0_102 = arith.constant 0 : index
    %218 = vector.load %arg4[%c0_100, %c0_101, %c0_102] : memref<1x2x256xf32, #tpu.memory_space<vmem>>, vector<1x2x256xf32>
    %219 = vector.shape_cast %218 : vector<1x2x256xf32> to vector<2x256xf32>
    %220 = vector.broadcast %18 : vector<2x1xf32> to vector<2x256xf32>
    %221 = arith.mulf %219, %220 : vector<2x256xf32>
    %222 = vector.broadcast %20 : vector<2x1xf32> to vector<2x256xf32>
    %223 = arith.addf %221, %222 : vector<2x256xf32>
    %cst_103 = arith.constant 0.000000e+00 : f32
    %224 = vector.broadcast %cst_103 : f32 to vector<2x256xf32>
    %225 = arith.cmpf oge, %223, %224 : vector<2x256xf32>
    %cst_104 = arith.constant 0.00999999977 : f32
    %226 = vector.broadcast %cst_104 : f32 to vector<2x256xf32>
    %227 = arith.mulf %226, %223 : vector<2x256xf32>
    %228 = arith.select %225, %223, %227 : vector<2x256xi1>, vector<2x256xf32>
    %c1_i32_105 = arith.constant 1 : i32
    %229 = arith.addi %arg1, %c1_i32_105 : i32
    %c0_i32_106 = arith.constant 0 : i32
    %230 = arith.cmpi sge, %229, %c0_i32_106 : i32
    %c16_i32_107 = arith.constant 16 : i32
    %231 = arith.cmpi slt, %229, %c16_i32_107 : i32
    %232 = arith.andi %230, %231 : i1
    %233 = arith.extui %232 : i1 to i32
    %234 = arith.sitofp %233 : i32 to f32
    %235 = vector.broadcast %234 : f32 to vector<2x256xf32>
    %236 = arith.mulf %228, %235 : vector<2x256xf32>
    %cst_108 = arith.constant 0.000000e+00 : f32
    %237 = vector.broadcast %cst_108 : f32 to vector<2x17xf32>
    %238 = tpu.concatenate %237, %236, %237 in 1 : vector<2x17xf32>, vector<2x256xf32>, vector<2x17xf32> -> vector<2x290xf32>
    %239 = vector.extract_strided_slice %238 {offsets = [0, 0], sizes = [2, 256], strides = [1, 1]} : vector<2x290xf32> to vector<2x256xf32>
    %c0_i32_109 = arith.constant 0 : i32
    %240 = vector.broadcast %c0_i32_109 : i32 to vector<1x256xi32>
    %241 = arith.cmpi eq, %16, %240 : vector<1x256xi32>
    %cst_110 = arith.constant 0.000000e+00 : f32
    %242 = vector.shape_cast %241 : vector<1x256xi1> to vector<1x256xi1>
    %243 = vector.broadcast %242 : vector<1x256xi1> to vector<2x256xi1>
    %244 = vector.broadcast %cst_110 : f32 to vector<2x256xf32>
    %245 = arith.select %243, %244, %239 : vector<2x256xi1>, vector<2x256xf32>
    %c18 = arith.constant 18 : index
    %c0_111 = arith.constant 0 : index
    %c0_112 = arith.constant 0 : index
    %246 = vector.load %arg5[%c18, %c0_111, %c0_112] : memref<27x2x2xf32, #tpu.memory_space<vmem>>, vector<1x2x2xf32>
    %247 = vector.shape_cast %246 : vector<1x2x2xf32> to vector<2x2xf32>
    %cst_113 = arith.constant dense<0.000000e+00> : vector<2x256xf32>
    %248 = tpu.matmul %247, %245, %cst_113 {dimension_numbers = #tpu.dot_dimension_numbers<[1], [0], [0], [1], [0, 0, 1, 1], [], []>} : vector<2x2xf32>, vector<2x256xf32>, vector<2x256xf32> -> vector<2x256xf32>
    %249 = arith.addf %217, %248 : vector<2x256xf32>
    %250 = vector.extract_strided_slice %238 {offsets = [0, 1], sizes = [2, 256], strides = [1, 1]} : vector<2x290xf32> to vector<2x256xf32>
    %c19 = arith.constant 19 : index
    %c0_114 = arith.constant 0 : index
    %c0_115 = arith.constant 0 : index
    %251 = vector.load %arg5[%c19, %c0_114, %c0_115] : memref<27x2x2xf32, #tpu.memory_space<vmem>>, vector<1x2x2xf32>
    %252 = vector.shape_cast %251 : vector<1x2x2xf32> to vector<2x2xf32>
    %cst_116 = arith.constant dense<0.000000e+00> : vector<2x256xf32>
    %253 = tpu.matmul %252, %250, %cst_116 {dimension_numbers = #tpu.dot_dimension_numbers<[1], [0], [0], [1], [0, 0, 1, 1], [], []>} : vector<2x2xf32>, vector<2x256xf32>, vector<2x256xf32> -> vector<2x256xf32>
    %254 = arith.addf %249, %253 : vector<2x256xf32>
    %255 = vector.extract_strided_slice %238 {offsets = [0, 2], sizes = [2, 256], strides = [1, 1]} : vector<2x290xf32> to vector<2x256xf32>
    %c15_i32_117 = arith.constant 15 : i32
    %256 = vector.broadcast %c15_i32_117 : i32 to vector<1x256xi32>
    %257 = arith.cmpi eq, %16, %256 : vector<1x256xi32>
    %cst_118 = arith.constant 0.000000e+00 : f32
    %258 = vector.shape_cast %257 : vector<1x256xi1> to vector<1x256xi1>
    %259 = vector.broadcast %258 : vector<1x256xi1> to vector<2x256xi1>
    %260 = vector.broadcast %cst_118 : f32 to vector<2x256xf32>
    %261 = arith.select %259, %260, %255 : vector<2x256xi1>, vector<2x256xf32>
    %c20 = arith.constant 20 : index
    %c0_119 = arith.constant 0 : index
    %c0_120 = arith.constant 0 : index
    %262 = vector.load %arg5[%c20, %c0_119, %c0_120] : memref<27x2x2xf32, #tpu.memory_space<vmem>>, vector<1x2x2xf32>
    %263 = vector.shape_cast %262 : vector<1x2x2xf32> to vector<2x2xf32>
    %cst_121 = arith.constant dense<0.000000e+00> : vector<2x256xf32>
    %264 = tpu.matmul %263, %261, %cst_121 {dimension_numbers = #tpu.dot_dimension_numbers<[1], [0], [0], [1], [0, 0, 1, 1], [], []>} : vector<2x2xf32>, vector<2x256xf32>, vector<2x256xf32> -> vector<2x256xf32>
    %265 = arith.addf %254, %264 : vector<2x256xf32>
    %266 = vector.extract_strided_slice %238 {offsets = [0, 16], sizes = [2, 256], strides = [1, 1]} : vector<2x290xf32> to vector<2x256xf32>
    %c0_i32_122 = arith.constant 0 : i32
    %267 = vector.broadcast %c0_i32_122 : i32 to vector<1x256xi32>
    %268 = arith.cmpi eq, %16, %267 : vector<1x256xi32>
    %cst_123 = arith.constant 0.000000e+00 : f32
    %269 = vector.shape_cast %268 : vector<1x256xi1> to vector<1x256xi1>
    %270 = vector.broadcast %269 : vector<1x256xi1> to vector<2x256xi1>
    %271 = vector.broadcast %cst_123 : f32 to vector<2x256xf32>
    %272 = arith.select %270, %271, %266 : vector<2x256xi1>, vector<2x256xf32>
    %c21 = arith.constant 21 : index
    %c0_124 = arith.constant 0 : index
    %c0_125 = arith.constant 0 : index
    %273 = vector.load %arg5[%c21, %c0_124, %c0_125] : memref<27x2x2xf32, #tpu.memory_space<vmem>>, vector<1x2x2xf32>
    %274 = vector.shape_cast %273 : vector<1x2x2xf32> to vector<2x2xf32>
    %cst_126 = arith.constant dense<0.000000e+00> : vector<2x256xf32>
    %275 = tpu.matmul %274, %272, %cst_126 {dimension_numbers = #tpu.dot_dimension_numbers<[1], [0], [0], [1], [0, 0, 1, 1], [], []>} : vector<2x2xf32>, vector<2x256xf32>, vector<2x256xf32> -> vector<2x256xf32>
    %276 = arith.addf %265, %275 : vector<2x256xf32>
    %277 = vector.extract_strided_slice %238 {offsets = [0, 17], sizes = [2, 256], strides = [1, 1]} : vector<2x290xf32> to vector<2x256xf32>
    %c22 = arith.constant 22 : index
    %c0_127 = arith.constant 0 : index
    %c0_128 = arith.constant 0 : index
    %278 = vector.load %arg5[%c22, %c0_127, %c0_128] : memref<27x2x2xf32, #tpu.memory_space<vmem>>, vector<1x2x2xf32>
    %279 = vector.shape_cast %278 : vector<1x2x2xf32> to vector<2x2xf32>
    %cst_129 = arith.constant dense<0.000000e+00> : vector<2x256xf32>
    %280 = tpu.matmul %279, %277, %cst_129 {dimension_numbers = #tpu.dot_dimension_numbers<[1], [0], [0], [1], [0, 0, 1, 1], [], []>} : vector<2x2xf32>, vector<2x256xf32>, vector<2x256xf32> -> vector<2x256xf32>
    %281 = arith.addf %276, %280 : vector<2x256xf32>
    %282 = vector.extract_strided_slice %238 {offsets = [0, 18], sizes = [2, 256], strides = [1, 1]} : vector<2x290xf32> to vector<2x256xf32>
    %c15_i32_130 = arith.constant 15 : i32
    %283 = vector.broadcast %c15_i32_130 : i32 to vector<1x256xi32>
    %284 = arith.cmpi eq, %16, %283 : vector<1x256xi32>
    %cst_131 = arith.constant 0.000000e+00 : f32
    %285 = vector.shape_cast %284 : vector<1x256xi1> to vector<1x256xi1>
    %286 = vector.broadcast %285 : vector<1x256xi1> to vector<2x256xi1>
    %287 = vector.broadcast %cst_131 : f32 to vector<2x256xf32>
    %288 = arith.select %286, %287, %282 : vector<2x256xi1>, vector<2x256xf32>
    %c23 = arith.constant 23 : index
    %c0_132 = arith.constant 0 : index
    %c0_133 = arith.constant 0 : index
    %289 = vector.load %arg5[%c23, %c0_132, %c0_133] : memref<27x2x2xf32, #tpu.memory_space<vmem>>, vector<1x2x2xf32>
    %290 = vector.shape_cast %289 : vector<1x2x2xf32> to vector<2x2xf32>
    %cst_134 = arith.constant dense<0.000000e+00> : vector<2x256xf32>
    %291 = tpu.matmul %290, %288, %cst_134 {dimension_numbers = #tpu.dot_dimension_numbers<[1], [0], [0], [1], [0, 0, 1, 1], [], []>} : vector<2x2xf32>, vector<2x256xf32>, vector<2x256xf32> -> vector<2x256xf32>
    %292 = arith.addf %281, %291 : vector<2x256xf32>
    %293 = vector.extract_strided_slice %238 {offsets = [0, 32], sizes = [2, 256], strides = [1, 1]} : vector<2x290xf32> to vector<2x256xf32>
    %c0_i32_135 = arith.constant 0 : i32
    %294 = vector.broadcast %c0_i32_135 : i32 to vector<1x256xi32>
    %295 = arith.cmpi eq, %16, %294 : vector<1x256xi32>
    %cst_136 = arith.constant 0.000000e+00 : f32
    %296 = vector.shape_cast %295 : vector<1x256xi1> to vector<1x256xi1>
    %297 = vector.broadcast %296 : vector<1x256xi1> to vector<2x256xi1>
    %298 = vector.broadcast %cst_136 : f32 to vector<2x256xf32>
    %299 = arith.select %297, %298, %293 : vector<2x256xi1>, vector<2x256xf32>
    %c24 = arith.constant 24 : index
    %c0_137 = arith.constant 0 : index
    %c0_138 = arith.constant 0 : index
    %300 = vector.load %arg5[%c24, %c0_137, %c0_138] : memref<27x2x2xf32, #tpu.memory_space<vmem>>, vector<1x2x2xf32>
    %301 = vector.shape_cast %300 : vector<1x2x2xf32> to vector<2x2xf32>
    %cst_139 = arith.constant dense<0.000000e+00> : vector<2x256xf32>
    %302 = tpu.matmul %301, %299, %cst_139 {dimension_numbers = #tpu.dot_dimension_numbers<[1], [0], [0], [1], [0, 0, 1, 1], [], []>} : vector<2x2xf32>, vector<2x256xf32>, vector<2x256xf32> -> vector<2x256xf32>
    %303 = arith.addf %292, %302 : vector<2x256xf32>
    %304 = vector.extract_strided_slice %238 {offsets = [0, 33], sizes = [2, 256], strides = [1, 1]} : vector<2x290xf32> to vector<2x256xf32>
    %c25 = arith.constant 25 : index
    %c0_140 = arith.constant 0 : index
    %c0_141 = arith.constant 0 : index
    %305 = vector.load %arg5[%c25, %c0_140, %c0_141] : memref<27x2x2xf32, #tpu.memory_space<vmem>>, vector<1x2x2xf32>
    %306 = vector.shape_cast %305 : vector<1x2x2xf32> to vector<2x2xf32>
    %cst_142 = arith.constant dense<0.000000e+00> : vector<2x256xf32>
    %307 = tpu.matmul %306, %304, %cst_142 {dimension_numbers = #tpu.dot_dimension_numbers<[1], [0], [0], [1], [0, 0, 1, 1], [], []>} : vector<2x2xf32>, vector<2x256xf32>, vector<2x256xf32> -> vector<2x256xf32>
    %308 = arith.addf %303, %307 : vector<2x256xf32>
    %309 = vector.extract_strided_slice %238 {offsets = [0, 34], sizes = [2, 256], strides = [1, 1]} : vector<2x290xf32> to vector<2x256xf32>
    %c15_i32_143 = arith.constant 15 : i32
    %310 = vector.broadcast %c15_i32_143 : i32 to vector<1x256xi32>
    %311 = arith.cmpi eq, %16, %310 : vector<1x256xi32>
    %cst_144 = arith.constant 0.000000e+00 : f32
    %312 = vector.shape_cast %311 : vector<1x256xi1> to vector<1x256xi1>
    %313 = vector.broadcast %312 : vector<1x256xi1> to vector<2x256xi1>
    %314 = vector.broadcast %cst_144 : f32 to vector<2x256xf32>
    %315 = arith.select %313, %314, %309 : vector<2x256xi1>, vector<2x256xf32>
    %c26 = arith.constant 26 : index
    %c0_145 = arith.constant 0 : index
    %c0_146 = arith.constant 0 : index
    %316 = vector.load %arg5[%c26, %c0_145, %c0_146] : memref<27x2x2xf32, #tpu.memory_space<vmem>>, vector<1x2x2xf32>
    %317 = vector.shape_cast %316 : vector<1x2x2xf32> to vector<2x2xf32>
    %cst_147 = arith.constant dense<0.000000e+00> : vector<2x256xf32>
    %318 = tpu.matmul %317, %315, %cst_147 {dimension_numbers = #tpu.dot_dimension_numbers<[1], [0], [0], [1], [0, 0, 1, 1], [], []>} : vector<2x2xf32>, vector<2x256xf32>, vector<2x256xf32> -> vector<2x256xf32>
    %319 = arith.addf %308, %318 : vector<2x256xf32>
    %c0_148 = arith.constant 0 : index
    %c0_149 = arith.constant 0 : index
    %320 = vector.load %arg8[%c0_148, %c0_149] : memref<2x1xf32, #tpu.memory_space<vmem>>, vector<2x1xf32>
    %321 = vector.broadcast %320 : vector<2x1xf32> to vector<2x256xf32>
    %322 = arith.addf %319, %321 : vector<2x256xf32>
    %c0_150 = arith.constant 0 : index
    %c0_151 = arith.constant 0 : index
    %c0_152 = arith.constant 0 : index
    %323 = vector.load %arg9[%c0_150, %c0_151, %c0_152] : memref<1x2x256xf32, #tpu.memory_space<vmem>>, vector<1x2x256xf32>
    %324 = vector.shape_cast %323 : vector<1x2x256xf32> to vector<2x256xf32>
    %325 = vector.shape_cast %322 : vector<2x256xf32> to vector<1x2x256xf32>
    tpu.vector_store %arg9[%c0_150, %c0_151, %c0_152], %325 {strides = array<i32>} : memref<1x2x256xf32, #tpu.memory_space<vmem>>, vector<1x2x256xf32>,
    %cst_153 = arith.constant dense<0.000000e+00> : vector<2xf32>
    %326 = vector.multi_reduction <add>, %322, %cst_153 [1] : vector<2x256xf32> to vector<2xf32>
    %327 = vector.shape_cast %326 : vector<2xf32> to vector<2x1xf32>
    %c0_154 = arith.constant 0 : index
    %c0_155 = arith.constant 0 : index
    %c0_156 = arith.constant 0 : index
    %c0_157 = arith.constant 0 : index
    %328 = vector.load %arg10[%c0_154, %c0_155, %c0_156, %c0_157] : memref<1x1x2x1xf32, #tpu.memory_space<vmem>>, vector<1x1x2x1xf32>
    %329 = vector.shape_cast %328 : vector<1x1x2x1xf32> to vector<2x1xf32>
    %330 = vector.shape_cast %327 : vector<2x1xf32> to vector<1x1x2x1xf32>
    tpu.vector_store %arg10[%c0_154, %c0_155, %c0_156, %c0_157], %330 {strides = array<i32>} : memref<1x1x2x1xf32, #tpu.memory_space<vmem>>, vector<1x1x2x1xf32>,
    %331 = arith.mulf %322, %322 : vector<2x256xf32>
    %cst_158 = arith.constant dense<0.000000e+00> : vector<2xf32>
    %332 = vector.multi_reduction <add>, %331, %cst_158 [1] : vector<2x256xf32> to vector<2xf32>
    %333 = vector.shape_cast %332 : vector<2xf32> to vector<2x1xf32>
    %c0_159 = arith.constant 0 : index
    %c0_160 = arith.constant 0 : index
    %c0_161 = arith.constant 0 : index
    %c0_162 = arith.constant 0 : index
    %334 = vector.load %arg11[%c0_159, %c0_160, %c0_161, %c0_162] : memref<1x1x2x1xf32, #tpu.memory_space<vmem>>, vector<1x1x2x1xf32>
    %335 = vector.shape_cast %334 : vector<1x1x2x1xf32> to vector<2x1xf32>
    %336 = vector.shape_cast %333 : vector<2x1xf32> to vector<1x1x2x1xf32>
    tpu.vector_store %arg11[%c0_159, %c0_160, %c0_161, %c0_162], %336 {strides = array<i32>} : memref<1x1x2x1xf32, #tpu.memory_space<vmem>>, vector<1x1x2x1xf32>,
    return
  }
  func.func @transform_0(%arg0: i32, %arg1: i32) -> (i32, i32, i32) {
    %c-1_i32 = arith.constant -1 : i32
    %0 = arith.addi %arg1, %c-1_i32 : i32
    %c15_i32 = arith.constant 15 : i32
    %1 = arith.minsi %0, %c15_i32 : i32
    %c0_i32 = arith.constant 0 : i32
    %2 = arith.maxsi %1, %c0_i32 : i32
    %c0_i32_0 = arith.constant 0 : i32
    %c0_i32_1 = arith.constant 0 : i32
    return %arg0, %c0_i32_0, %2 : i32, i32, i32
  }
  func.func @transform_1(%arg0: i32, %arg1: i32) -> (i32, i32, i32) {
    %c0_i32 = arith.constant 0 : i32
    %0 = arith.addi %arg1, %c0_i32 : i32
    %c15_i32 = arith.constant 15 : i32
    %1 = arith.minsi %0, %c15_i32 : i32
    %c0_i32_0 = arith.constant 0 : i32
    %2 = arith.maxsi %1, %c0_i32_0 : i32
    %c0_i32_1 = arith.constant 0 : i32
    %c0_i32_2 = arith.constant 0 : i32
    return %arg0, %c0_i32_1, %2 : i32, i32, i32
  }
  func.func @transform_2(%arg0: i32, %arg1: i32) -> (i32, i32, i32) {
    %c1_i32 = arith.constant 1 : i32
    %0 = arith.addi %arg1, %c1_i32 : i32
    %c15_i32 = arith.constant 15 : i32
    %1 = arith.minsi %0, %c15_i32 : i32
    %c0_i32 = arith.constant 0 : i32
    %2 = arith.maxsi %1, %c0_i32 : i32
    %c0_i32_0 = arith.constant 0 : i32
    %c0_i32_1 = arith.constant 0 : i32
    return %arg0, %c0_i32_0, %2 : i32, i32, i32
  }
  func.func @transform_3(%arg0: i32, %arg1: i32) -> (i32, i32, i32) {
    %c0_i32 = arith.constant 0 : i32
    %c0_i32_0 = arith.constant 0 : i32
    %c0_i32_1 = arith.constant 0 : i32
    %c0_i32_2 = arith.constant 0 : i32
    return %c0_i32, %c0_i32_0, %c0_i32_1 : i32, i32, i32
  }
  func.func @transform_4(%arg0: i32, %arg1: i32) -> (i32, i32, i32) {
    %c0_i32 = arith.constant 0 : i32
    %c0_i32_0 = arith.constant 0 : i32
    %c0_i32_1 = arith.constant 0 : i32
    return %arg0, %c0_i32, %c0_i32_0 : i32, i32, i32
  }
  func.func @transform_5(%arg0: i32, %arg1: i32) -> (i32, i32, i32) {
    %c0_i32 = arith.constant 0 : i32
    %c0_i32_0 = arith.constant 0 : i32
    %c0_i32_1 = arith.constant 0 : i32
    return %arg0, %c0_i32, %c0_i32_0 : i32, i32, i32
  }
  func.func @transform_6(%arg0: i32, %arg1: i32) -> (i32, i32) {
    %c0_i32 = arith.constant 0 : i32
    %c0_i32_0 = arith.constant 0 : i32
    %c0_i32_1 = arith.constant 0 : i32
    return %c0_i32, %c0_i32_0 : i32, i32
  }
  func.func @transform_7(%arg0: i32, %arg1: i32) -> (i32, i32, i32) {
    %c0_i32 = arith.constant 0 : i32
    %c0_i32_0 = arith.constant 0 : i32
    return %arg0, %c0_i32, %arg1 : i32, i32, i32
  }
  func.func @transform_8(%arg0: i32, %arg1: i32) -> (i32, i32, i32, i32) {
    %c0_i32 = arith.constant 0 : i32
    %c0_i32_0 = arith.constant 0 : i32
    %c0_i32_1 = arith.constant 0 : i32
    return %arg0, %arg1, %c0_i32, %c0_i32_0 : i32, i32, i32, i32
  }
  func.func @transform_9(%arg0: i32, %arg1: i32) -> (i32, i32, i32, i32) {
    %c0_i32 = arith.constant 0 : i32
    %c0_i32_0 = arith.constant 0 : i32
    %c0_i32_1 = arith.constant 0 : i32
    return %arg0, %arg1, %c0_i32, %c0_i32_0 : i32, i32, i32, i32
  }
}

module attributes {stable_mosaic.version = 11 : i64} {
  func.func @_fused_conv3x3_kernel(%arg0: i32, %arg1: i32, %arg2: memref<1x2x256xf32, #tpu.memory_space<vmem>>, %arg3: memref<1x2x256xf32, #tpu.memory_space<vmem>>, %arg4: memref<1x2x256xf32, #tpu.memory_space<vmem>>, %arg5: memref<27x2x2xf32, #tpu.memory_space<vmem>>, %arg6: memref<1x2x1xf32, #tpu.memory_space<vmem>>, %arg7: memref<1x2x1xf32, #tpu.memory_space<vmem>>, %arg8: memref<2x1xf32, #tpu.memory_space<vmem>>, %arg9: memref<1x2x256xf32, #tpu.memory_space<vmem>>, %arg10: memref<1x2x256xf32, #tpu.memory_space<vmem>>, %arg11: memref<1x1x2x1xf32, #tpu.memory_space<vmem>>, %arg12: memref<1x1x2x1xf32, #tpu.memory_space<vmem>>) attributes {dimension_semantics = [#tpu.dimension_semantics<parallel>, #tpu.dimension_semantics<parallel>], iteration_bounds = array<i64: 2, 16>, scalar_prefetch = 0 : i64, scratch_operands = 0 : i64, tpu.core_type = #tpu.core_type<tc>, window_params = [{transform_indices = @transform_0, window_bounds = array<i64: 1, 2, 256>}, {transform_indices = @transform_1, window_bounds = array<i64: 1, 2, 256>}, {transform_indices = @transform_2, window_bounds = array<i64: 1, 2, 256>}, {pipeline_mode = #tpu.pipeline_mode<synchronous>, transform_indices = @transform_3, window_bounds = array<i64: 27, 2, 2>}, {transform_indices = @transform_4, window_bounds = array<i64: 1, 2, 1>}, {transform_indices = @transform_5, window_bounds = array<i64: 1, 2, 1>}, {pipeline_mode = #tpu.pipeline_mode<synchronous>, transform_indices = @transform_6, window_bounds = array<i64: 2, 1>}, {transform_indices = @transform_7, window_bounds = array<i64: 1, 2, 256>}, {transform_indices = @transform_8, window_bounds = array<i64: 1, 2, 256>}, {transform_indices = @transform_9, window_bounds = array<i64: 1, 1, 2, 1>}, {transform_indices = @transform_10, window_bounds = array<i64: 1, 1, 2, 1>}]} {
    %0 = tpu.iota {dimensions = array<i32: 1>} : vector<1x256xi32>
    %c16_i32 = arith.constant 16 : i32
    %c0_i32 = arith.constant 0 : i32
    %1 = arith.cmpi eq, %c16_i32, %c0_i32 : i32
    %c1_i32 = arith.constant 1 : i32
    %2 = arith.select %1, %c1_i32, %c16_i32 : i32
    %3 = vector.broadcast %2 : i32 to vector<1x256xi32>
    %4 = arith.remsi %0, %3 : vector<1x256xi32>
    %c0_i32_0 = arith.constant 0 : i32
    %5 = vector.broadcast %c0_i32_0 : i32 to vector<1x256xi32>
    %6 = arith.cmpi ne, %4, %5 : vector<1x256xi32>
    %c0_i32_1 = arith.constant 0 : i32
    %7 = vector.broadcast %c0_i32_1 : i32 to vector<1x256xi32>
    %8 = arith.cmpi slt, %4, %7 : vector<1x256xi32>
    %c0_i32_2 = arith.constant 0 : i32
    %9 = arith.cmpi slt, %2, %c0_i32_2 : i32
    %10 = vector.broadcast %9 : i1 to vector<1x256xi1>
    %11 = vector.broadcast %10 : vector<1x256xi1> to vector<1x256xi1>
    %12 = arith.xori %8, %11 : vector<1x256xi1>
    %13 = arith.andi %12, %6 : vector<1x256xi1>
    %14 = vector.broadcast %2 : i32 to vector<1x256xi32>
    %15 = arith.addi %4, %14 : vector<1x256xi32>
    %16 = arith.select %13, %15, %4 : vector<1x256xi1>, vector<1x256xi32>
    %c0 = arith.constant 0 : index
    %c0_3 = arith.constant 0 : index
    %c0_4 = arith.constant 0 : index
    %17 = vector.load %arg6[%c0, %c0_3, %c0_4] : memref<1x2x1xf32, #tpu.memory_space<vmem>>, vector<1x2x1xf32>
    %18 = vector.shape_cast %17 : vector<1x2x1xf32> to vector<2x1xf32>
    %c0_5 = arith.constant 0 : index
    %c0_6 = arith.constant 0 : index
    %c0_7 = arith.constant 0 : index
    %19 = vector.load %arg7[%c0_5, %c0_6, %c0_7] : memref<1x2x1xf32, #tpu.memory_space<vmem>>, vector<1x2x1xf32>
    %20 = vector.shape_cast %19 : vector<1x2x1xf32> to vector<2x1xf32>
    %cst = arith.constant 0.000000e+00 : f32
    %21 = vector.broadcast %cst : f32 to vector<2x256xf32>
    %c0_8 = arith.constant 0 : index
    %c0_9 = arith.constant 0 : index
    %c0_10 = arith.constant 0 : index
    %22 = vector.load %arg2[%c0_8, %c0_9, %c0_10] : memref<1x2x256xf32, #tpu.memory_space<vmem>>, vector<1x2x256xf32>
    %23 = vector.shape_cast %22 : vector<1x2x256xf32> to vector<2x256xf32>
    %24 = vector.broadcast %18 : vector<2x1xf32> to vector<2x256xf32>
    %25 = arith.mulf %23, %24 : vector<2x256xf32>
    %26 = vector.broadcast %20 : vector<2x1xf32> to vector<2x256xf32>
    %27 = arith.addf %25, %26 : vector<2x256xf32>
    %cst_11 = arith.constant 0.000000e+00 : f32
    %28 = vector.broadcast %cst_11 : f32 to vector<2x256xf32>
    %29 = arith.cmpf oge, %27, %28 : vector<2x256xf32>
    %cst_12 = arith.constant 0.00999999977 : f32
    %30 = vector.broadcast %cst_12 : f32 to vector<2x256xf32>
    %31 = arith.mulf %30, %27 : vector<2x256xf32>
    %32 = arith.select %29, %27, %31 : vector<2x256xi1>, vector<2x256xf32>
    %c-1_i32 = arith.constant -1 : i32
    %33 = arith.addi %arg1, %c-1_i32 : i32
    %c0_i32_13 = arith.constant 0 : i32
    %34 = arith.cmpi sge, %33, %c0_i32_13 : i32
    %c16_i32_14 = arith.constant 16 : i32
    %35 = arith.cmpi slt, %33, %c16_i32_14 : i32
    %36 = arith.andi %34, %35 : i1
    %37 = arith.extui %36 : i1 to i32
    %38 = arith.sitofp %37 : i32 to f32
    %39 = vector.broadcast %38 : f32 to vector<2x256xf32>
    %40 = arith.mulf %32, %39 : vector<2x256xf32>
    %cst_15 = arith.constant 0.000000e+00 : f32
    %41 = vector.broadcast %cst_15 : f32 to vector<2x17xf32>
    %42 = tpu.concatenate %41, %40, %41 in 1 : vector<2x17xf32>, vector<2x256xf32>, vector<2x17xf32> -> vector<2x290xf32>
    %43 = vector.extract_strided_slice %42 {offsets = [0, 0], sizes = [2, 256], strides = [1, 1]} : vector<2x290xf32> to vector<2x256xf32>
    %c0_i32_16 = arith.constant 0 : i32
    %44 = vector.broadcast %c0_i32_16 : i32 to vector<1x256xi32>
    %45 = arith.cmpi eq, %16, %44 : vector<1x256xi32>
    %cst_17 = arith.constant 0.000000e+00 : f32
    %46 = vector.shape_cast %45 : vector<1x256xi1> to vector<1x256xi1>
    %47 = vector.broadcast %46 : vector<1x256xi1> to vector<2x256xi1>
    %48 = vector.broadcast %cst_17 : f32 to vector<2x256xf32>
    %49 = arith.select %47, %48, %43 : vector<2x256xi1>, vector<2x256xf32>
    %c0_18 = arith.constant 0 : index
    %c0_19 = arith.constant 0 : index
    %c0_20 = arith.constant 0 : index
    %50 = vector.load %arg5[%c0_18, %c0_19, %c0_20] : memref<27x2x2xf32, #tpu.memory_space<vmem>>, vector<1x2x2xf32>
    %51 = vector.shape_cast %50 : vector<1x2x2xf32> to vector<2x2xf32>
    %cst_21 = arith.constant dense<0.000000e+00> : vector<2x256xf32>
    %52 = tpu.matmul %51, %49, %cst_21 {dimension_numbers = #tpu.dot_dimension_numbers<[1], [0], [0], [1], [0, 0, 1, 1], [], []>} : vector<2x2xf32>, vector<2x256xf32>, vector<2x256xf32> -> vector<2x256xf32>
    %53 = arith.addf %21, %52 : vector<2x256xf32>
    %54 = vector.extract_strided_slice %42 {offsets = [0, 1], sizes = [2, 256], strides = [1, 1]} : vector<2x290xf32> to vector<2x256xf32>
    %c1 = arith.constant 1 : index
    %c0_22 = arith.constant 0 : index
    %c0_23 = arith.constant 0 : index
    %55 = vector.load %arg5[%c1, %c0_22, %c0_23] : memref<27x2x2xf32, #tpu.memory_space<vmem>>, vector<1x2x2xf32>
    %56 = vector.shape_cast %55 : vector<1x2x2xf32> to vector<2x2xf32>
    %cst_24 = arith.constant dense<0.000000e+00> : vector<2x256xf32>
    %57 = tpu.matmul %56, %54, %cst_24 {dimension_numbers = #tpu.dot_dimension_numbers<[1], [0], [0], [1], [0, 0, 1, 1], [], []>} : vector<2x2xf32>, vector<2x256xf32>, vector<2x256xf32> -> vector<2x256xf32>
    %58 = arith.addf %53, %57 : vector<2x256xf32>
    %59 = vector.extract_strided_slice %42 {offsets = [0, 2], sizes = [2, 256], strides = [1, 1]} : vector<2x290xf32> to vector<2x256xf32>
    %c15_i32 = arith.constant 15 : i32
    %60 = vector.broadcast %c15_i32 : i32 to vector<1x256xi32>
    %61 = arith.cmpi eq, %16, %60 : vector<1x256xi32>
    %cst_25 = arith.constant 0.000000e+00 : f32
    %62 = vector.shape_cast %61 : vector<1x256xi1> to vector<1x256xi1>
    %63 = vector.broadcast %62 : vector<1x256xi1> to vector<2x256xi1>
    %64 = vector.broadcast %cst_25 : f32 to vector<2x256xf32>
    %65 = arith.select %63, %64, %59 : vector<2x256xi1>, vector<2x256xf32>
    %c2 = arith.constant 2 : index
    %c0_26 = arith.constant 0 : index
    %c0_27 = arith.constant 0 : index
    %66 = vector.load %arg5[%c2, %c0_26, %c0_27] : memref<27x2x2xf32, #tpu.memory_space<vmem>>, vector<1x2x2xf32>
    %67 = vector.shape_cast %66 : vector<1x2x2xf32> to vector<2x2xf32>
    %cst_28 = arith.constant dense<0.000000e+00> : vector<2x256xf32>
    %68 = tpu.matmul %67, %65, %cst_28 {dimension_numbers = #tpu.dot_dimension_numbers<[1], [0], [0], [1], [0, 0, 1, 1], [], []>} : vector<2x2xf32>, vector<2x256xf32>, vector<2x256xf32> -> vector<2x256xf32>
    %69 = arith.addf %58, %68 : vector<2x256xf32>
    %70 = vector.extract_strided_slice %42 {offsets = [0, 16], sizes = [2, 256], strides = [1, 1]} : vector<2x290xf32> to vector<2x256xf32>
    %c0_i32_29 = arith.constant 0 : i32
    %71 = vector.broadcast %c0_i32_29 : i32 to vector<1x256xi32>
    %72 = arith.cmpi eq, %16, %71 : vector<1x256xi32>
    %cst_30 = arith.constant 0.000000e+00 : f32
    %73 = vector.shape_cast %72 : vector<1x256xi1> to vector<1x256xi1>
    %74 = vector.broadcast %73 : vector<1x256xi1> to vector<2x256xi1>
    %75 = vector.broadcast %cst_30 : f32 to vector<2x256xf32>
    %76 = arith.select %74, %75, %70 : vector<2x256xi1>, vector<2x256xf32>
    %c3 = arith.constant 3 : index
    %c0_31 = arith.constant 0 : index
    %c0_32 = arith.constant 0 : index
    %77 = vector.load %arg5[%c3, %c0_31, %c0_32] : memref<27x2x2xf32, #tpu.memory_space<vmem>>, vector<1x2x2xf32>
    %78 = vector.shape_cast %77 : vector<1x2x2xf32> to vector<2x2xf32>
    %cst_33 = arith.constant dense<0.000000e+00> : vector<2x256xf32>
    %79 = tpu.matmul %78, %76, %cst_33 {dimension_numbers = #tpu.dot_dimension_numbers<[1], [0], [0], [1], [0, 0, 1, 1], [], []>} : vector<2x2xf32>, vector<2x256xf32>, vector<2x256xf32> -> vector<2x256xf32>
    %80 = arith.addf %69, %79 : vector<2x256xf32>
    %81 = vector.extract_strided_slice %42 {offsets = [0, 17], sizes = [2, 256], strides = [1, 1]} : vector<2x290xf32> to vector<2x256xf32>
    %c4 = arith.constant 4 : index
    %c0_34 = arith.constant 0 : index
    %c0_35 = arith.constant 0 : index
    %82 = vector.load %arg5[%c4, %c0_34, %c0_35] : memref<27x2x2xf32, #tpu.memory_space<vmem>>, vector<1x2x2xf32>
    %83 = vector.shape_cast %82 : vector<1x2x2xf32> to vector<2x2xf32>
    %cst_36 = arith.constant dense<0.000000e+00> : vector<2x256xf32>
    %84 = tpu.matmul %83, %81, %cst_36 {dimension_numbers = #tpu.dot_dimension_numbers<[1], [0], [0], [1], [0, 0, 1, 1], [], []>} : vector<2x2xf32>, vector<2x256xf32>, vector<2x256xf32> -> vector<2x256xf32>
    %85 = arith.addf %80, %84 : vector<2x256xf32>
    %86 = vector.extract_strided_slice %42 {offsets = [0, 18], sizes = [2, 256], strides = [1, 1]} : vector<2x290xf32> to vector<2x256xf32>
    %c15_i32_37 = arith.constant 15 : i32
    %87 = vector.broadcast %c15_i32_37 : i32 to vector<1x256xi32>
    %88 = arith.cmpi eq, %16, %87 : vector<1x256xi32>
    %cst_38 = arith.constant 0.000000e+00 : f32
    %89 = vector.shape_cast %88 : vector<1x256xi1> to vector<1x256xi1>
    %90 = vector.broadcast %89 : vector<1x256xi1> to vector<2x256xi1>
    %91 = vector.broadcast %cst_38 : f32 to vector<2x256xf32>
    %92 = arith.select %90, %91, %86 : vector<2x256xi1>, vector<2x256xf32>
    %c5 = arith.constant 5 : index
    %c0_39 = arith.constant 0 : index
    %c0_40 = arith.constant 0 : index
    %93 = vector.load %arg5[%c5, %c0_39, %c0_40] : memref<27x2x2xf32, #tpu.memory_space<vmem>>, vector<1x2x2xf32>
    %94 = vector.shape_cast %93 : vector<1x2x2xf32> to vector<2x2xf32>
    %cst_41 = arith.constant dense<0.000000e+00> : vector<2x256xf32>
    %95 = tpu.matmul %94, %92, %cst_41 {dimension_numbers = #tpu.dot_dimension_numbers<[1], [0], [0], [1], [0, 0, 1, 1], [], []>} : vector<2x2xf32>, vector<2x256xf32>, vector<2x256xf32> -> vector<2x256xf32>
    %96 = arith.addf %85, %95 : vector<2x256xf32>
    %97 = vector.extract_strided_slice %42 {offsets = [0, 32], sizes = [2, 256], strides = [1, 1]} : vector<2x290xf32> to vector<2x256xf32>
    %c0_i32_42 = arith.constant 0 : i32
    %98 = vector.broadcast %c0_i32_42 : i32 to vector<1x256xi32>
    %99 = arith.cmpi eq, %16, %98 : vector<1x256xi32>
    %cst_43 = arith.constant 0.000000e+00 : f32
    %100 = vector.shape_cast %99 : vector<1x256xi1> to vector<1x256xi1>
    %101 = vector.broadcast %100 : vector<1x256xi1> to vector<2x256xi1>
    %102 = vector.broadcast %cst_43 : f32 to vector<2x256xf32>
    %103 = arith.select %101, %102, %97 : vector<2x256xi1>, vector<2x256xf32>
    %c6 = arith.constant 6 : index
    %c0_44 = arith.constant 0 : index
    %c0_45 = arith.constant 0 : index
    %104 = vector.load %arg5[%c6, %c0_44, %c0_45] : memref<27x2x2xf32, #tpu.memory_space<vmem>>, vector<1x2x2xf32>
    %105 = vector.shape_cast %104 : vector<1x2x2xf32> to vector<2x2xf32>
    %cst_46 = arith.constant dense<0.000000e+00> : vector<2x256xf32>
    %106 = tpu.matmul %105, %103, %cst_46 {dimension_numbers = #tpu.dot_dimension_numbers<[1], [0], [0], [1], [0, 0, 1, 1], [], []>} : vector<2x2xf32>, vector<2x256xf32>, vector<2x256xf32> -> vector<2x256xf32>
    %107 = arith.addf %96, %106 : vector<2x256xf32>
    %108 = vector.extract_strided_slice %42 {offsets = [0, 33], sizes = [2, 256], strides = [1, 1]} : vector<2x290xf32> to vector<2x256xf32>
    %c7 = arith.constant 7 : index
    %c0_47 = arith.constant 0 : index
    %c0_48 = arith.constant 0 : index
    %109 = vector.load %arg5[%c7, %c0_47, %c0_48] : memref<27x2x2xf32, #tpu.memory_space<vmem>>, vector<1x2x2xf32>
    %110 = vector.shape_cast %109 : vector<1x2x2xf32> to vector<2x2xf32>
    %cst_49 = arith.constant dense<0.000000e+00> : vector<2x256xf32>
    %111 = tpu.matmul %110, %108, %cst_49 {dimension_numbers = #tpu.dot_dimension_numbers<[1], [0], [0], [1], [0, 0, 1, 1], [], []>} : vector<2x2xf32>, vector<2x256xf32>, vector<2x256xf32> -> vector<2x256xf32>
    %112 = arith.addf %107, %111 : vector<2x256xf32>
    %113 = vector.extract_strided_slice %42 {offsets = [0, 34], sizes = [2, 256], strides = [1, 1]} : vector<2x290xf32> to vector<2x256xf32>
    %c15_i32_50 = arith.constant 15 : i32
    %114 = vector.broadcast %c15_i32_50 : i32 to vector<1x256xi32>
    %115 = arith.cmpi eq, %16, %114 : vector<1x256xi32>
    %cst_51 = arith.constant 0.000000e+00 : f32
    %116 = vector.shape_cast %115 : vector<1x256xi1> to vector<1x256xi1>
    %117 = vector.broadcast %116 : vector<1x256xi1> to vector<2x256xi1>
    %118 = vector.broadcast %cst_51 : f32 to vector<2x256xf32>
    %119 = arith.select %117, %118, %113 : vector<2x256xi1>, vector<2x256xf32>
    %c8 = arith.constant 8 : index
    %c0_52 = arith.constant 0 : index
    %c0_53 = arith.constant 0 : index
    %120 = vector.load %arg5[%c8, %c0_52, %c0_53] : memref<27x2x2xf32, #tpu.memory_space<vmem>>, vector<1x2x2xf32>
    %121 = vector.shape_cast %120 : vector<1x2x2xf32> to vector<2x2xf32>
    %cst_54 = arith.constant dense<0.000000e+00> : vector<2x256xf32>
    %122 = tpu.matmul %121, %119, %cst_54 {dimension_numbers = #tpu.dot_dimension_numbers<[1], [0], [0], [1], [0, 0, 1, 1], [], []>} : vector<2x2xf32>, vector<2x256xf32>, vector<2x256xf32> -> vector<2x256xf32>
    %123 = arith.addf %112, %122 : vector<2x256xf32>
    %c0_55 = arith.constant 0 : index
    %c0_56 = arith.constant 0 : index
    %c0_57 = arith.constant 0 : index
    %124 = vector.load %arg3[%c0_55, %c0_56, %c0_57] : memref<1x2x256xf32, #tpu.memory_space<vmem>>, vector<1x2x256xf32>
    %125 = vector.shape_cast %124 : vector<1x2x256xf32> to vector<2x256xf32>
    %126 = vector.broadcast %18 : vector<2x1xf32> to vector<2x256xf32>
    %127 = arith.mulf %125, %126 : vector<2x256xf32>
    %128 = vector.broadcast %20 : vector<2x1xf32> to vector<2x256xf32>
    %129 = arith.addf %127, %128 : vector<2x256xf32>
    %cst_58 = arith.constant 0.000000e+00 : f32
    %130 = vector.broadcast %cst_58 : f32 to vector<2x256xf32>
    %131 = arith.cmpf oge, %129, %130 : vector<2x256xf32>
    %cst_59 = arith.constant 0.00999999977 : f32
    %132 = vector.broadcast %cst_59 : f32 to vector<2x256xf32>
    %133 = arith.mulf %132, %129 : vector<2x256xf32>
    %134 = arith.select %131, %129, %133 : vector<2x256xi1>, vector<2x256xf32>
    %cst_60 = arith.constant 0.000000e+00 : f32
    %135 = vector.broadcast %cst_60 : f32 to vector<2x17xf32>
    %136 = tpu.concatenate %135, %134, %135 in 1 : vector<2x17xf32>, vector<2x256xf32>, vector<2x17xf32> -> vector<2x290xf32>
    %137 = vector.extract_strided_slice %136 {offsets = [0, 0], sizes = [2, 256], strides = [1, 1]} : vector<2x290xf32> to vector<2x256xf32>
    %c0_i32_61 = arith.constant 0 : i32
    %138 = vector.broadcast %c0_i32_61 : i32 to vector<1x256xi32>
    %139 = arith.cmpi eq, %16, %138 : vector<1x256xi32>
    %cst_62 = arith.constant 0.000000e+00 : f32
    %140 = vector.shape_cast %139 : vector<1x256xi1> to vector<1x256xi1>
    %141 = vector.broadcast %140 : vector<1x256xi1> to vector<2x256xi1>
    %142 = vector.broadcast %cst_62 : f32 to vector<2x256xf32>
    %143 = arith.select %141, %142, %137 : vector<2x256xi1>, vector<2x256xf32>
    %c9 = arith.constant 9 : index
    %c0_63 = arith.constant 0 : index
    %c0_64 = arith.constant 0 : index
    %144 = vector.load %arg5[%c9, %c0_63, %c0_64] : memref<27x2x2xf32, #tpu.memory_space<vmem>>, vector<1x2x2xf32>
    %145 = vector.shape_cast %144 : vector<1x2x2xf32> to vector<2x2xf32>
    %cst_65 = arith.constant dense<0.000000e+00> : vector<2x256xf32>
    %146 = tpu.matmul %145, %143, %cst_65 {dimension_numbers = #tpu.dot_dimension_numbers<[1], [0], [0], [1], [0, 0, 1, 1], [], []>} : vector<2x2xf32>, vector<2x256xf32>, vector<2x256xf32> -> vector<2x256xf32>
    %147 = arith.addf %123, %146 : vector<2x256xf32>
    %148 = vector.extract_strided_slice %136 {offsets = [0, 1], sizes = [2, 256], strides = [1, 1]} : vector<2x290xf32> to vector<2x256xf32>
    %c10 = arith.constant 10 : index
    %c0_66 = arith.constant 0 : index
    %c0_67 = arith.constant 0 : index
    %149 = vector.load %arg5[%c10, %c0_66, %c0_67] : memref<27x2x2xf32, #tpu.memory_space<vmem>>, vector<1x2x2xf32>
    %150 = vector.shape_cast %149 : vector<1x2x2xf32> to vector<2x2xf32>
    %cst_68 = arith.constant dense<0.000000e+00> : vector<2x256xf32>
    %151 = tpu.matmul %150, %148, %cst_68 {dimension_numbers = #tpu.dot_dimension_numbers<[1], [0], [0], [1], [0, 0, 1, 1], [], []>} : vector<2x2xf32>, vector<2x256xf32>, vector<2x256xf32> -> vector<2x256xf32>
    %152 = arith.addf %147, %151 : vector<2x256xf32>
    %153 = vector.extract_strided_slice %136 {offsets = [0, 2], sizes = [2, 256], strides = [1, 1]} : vector<2x290xf32> to vector<2x256xf32>
    %c15_i32_69 = arith.constant 15 : i32
    %154 = vector.broadcast %c15_i32_69 : i32 to vector<1x256xi32>
    %155 = arith.cmpi eq, %16, %154 : vector<1x256xi32>
    %cst_70 = arith.constant 0.000000e+00 : f32
    %156 = vector.shape_cast %155 : vector<1x256xi1> to vector<1x256xi1>
    %157 = vector.broadcast %156 : vector<1x256xi1> to vector<2x256xi1>
    %158 = vector.broadcast %cst_70 : f32 to vector<2x256xf32>
    %159 = arith.select %157, %158, %153 : vector<2x256xi1>, vector<2x256xf32>
    %c11 = arith.constant 11 : index
    %c0_71 = arith.constant 0 : index
    %c0_72 = arith.constant 0 : index
    %160 = vector.load %arg5[%c11, %c0_71, %c0_72] : memref<27x2x2xf32, #tpu.memory_space<vmem>>, vector<1x2x2xf32>
    %161 = vector.shape_cast %160 : vector<1x2x2xf32> to vector<2x2xf32>
    %cst_73 = arith.constant dense<0.000000e+00> : vector<2x256xf32>
    %162 = tpu.matmul %161, %159, %cst_73 {dimension_numbers = #tpu.dot_dimension_numbers<[1], [0], [0], [1], [0, 0, 1, 1], [], []>} : vector<2x2xf32>, vector<2x256xf32>, vector<2x256xf32> -> vector<2x256xf32>
    %163 = arith.addf %152, %162 : vector<2x256xf32>
    %164 = vector.extract_strided_slice %136 {offsets = [0, 16], sizes = [2, 256], strides = [1, 1]} : vector<2x290xf32> to vector<2x256xf32>
    %c0_i32_74 = arith.constant 0 : i32
    %165 = vector.broadcast %c0_i32_74 : i32 to vector<1x256xi32>
    %166 = arith.cmpi eq, %16, %165 : vector<1x256xi32>
    %cst_75 = arith.constant 0.000000e+00 : f32
    %167 = vector.shape_cast %166 : vector<1x256xi1> to vector<1x256xi1>
    %168 = vector.broadcast %167 : vector<1x256xi1> to vector<2x256xi1>
    %169 = vector.broadcast %cst_75 : f32 to vector<2x256xf32>
    %170 = arith.select %168, %169, %164 : vector<2x256xi1>, vector<2x256xf32>
    %c12 = arith.constant 12 : index
    %c0_76 = arith.constant 0 : index
    %c0_77 = arith.constant 0 : index
    %171 = vector.load %arg5[%c12, %c0_76, %c0_77] : memref<27x2x2xf32, #tpu.memory_space<vmem>>, vector<1x2x2xf32>
    %172 = vector.shape_cast %171 : vector<1x2x2xf32> to vector<2x2xf32>
    %cst_78 = arith.constant dense<0.000000e+00> : vector<2x256xf32>
    %173 = tpu.matmul %172, %170, %cst_78 {dimension_numbers = #tpu.dot_dimension_numbers<[1], [0], [0], [1], [0, 0, 1, 1], [], []>} : vector<2x2xf32>, vector<2x256xf32>, vector<2x256xf32> -> vector<2x256xf32>
    %174 = arith.addf %163, %173 : vector<2x256xf32>
    %175 = vector.extract_strided_slice %136 {offsets = [0, 17], sizes = [2, 256], strides = [1, 1]} : vector<2x290xf32> to vector<2x256xf32>
    %c13 = arith.constant 13 : index
    %c0_79 = arith.constant 0 : index
    %c0_80 = arith.constant 0 : index
    %176 = vector.load %arg5[%c13, %c0_79, %c0_80] : memref<27x2x2xf32, #tpu.memory_space<vmem>>, vector<1x2x2xf32>
    %177 = vector.shape_cast %176 : vector<1x2x2xf32> to vector<2x2xf32>
    %cst_81 = arith.constant dense<0.000000e+00> : vector<2x256xf32>
    %178 = tpu.matmul %177, %175, %cst_81 {dimension_numbers = #tpu.dot_dimension_numbers<[1], [0], [0], [1], [0, 0, 1, 1], [], []>} : vector<2x2xf32>, vector<2x256xf32>, vector<2x256xf32> -> vector<2x256xf32>
    %179 = arith.addf %174, %178 : vector<2x256xf32>
    %180 = vector.extract_strided_slice %136 {offsets = [0, 18], sizes = [2, 256], strides = [1, 1]} : vector<2x290xf32> to vector<2x256xf32>
    %c15_i32_82 = arith.constant 15 : i32
    %181 = vector.broadcast %c15_i32_82 : i32 to vector<1x256xi32>
    %182 = arith.cmpi eq, %16, %181 : vector<1x256xi32>
    %cst_83 = arith.constant 0.000000e+00 : f32
    %183 = vector.shape_cast %182 : vector<1x256xi1> to vector<1x256xi1>
    %184 = vector.broadcast %183 : vector<1x256xi1> to vector<2x256xi1>
    %185 = vector.broadcast %cst_83 : f32 to vector<2x256xf32>
    %186 = arith.select %184, %185, %180 : vector<2x256xi1>, vector<2x256xf32>
    %c14 = arith.constant 14 : index
    %c0_84 = arith.constant 0 : index
    %c0_85 = arith.constant 0 : index
    %187 = vector.load %arg5[%c14, %c0_84, %c0_85] : memref<27x2x2xf32, #tpu.memory_space<vmem>>, vector<1x2x2xf32>
    %188 = vector.shape_cast %187 : vector<1x2x2xf32> to vector<2x2xf32>
    %cst_86 = arith.constant dense<0.000000e+00> : vector<2x256xf32>
    %189 = tpu.matmul %188, %186, %cst_86 {dimension_numbers = #tpu.dot_dimension_numbers<[1], [0], [0], [1], [0, 0, 1, 1], [], []>} : vector<2x2xf32>, vector<2x256xf32>, vector<2x256xf32> -> vector<2x256xf32>
    %190 = arith.addf %179, %189 : vector<2x256xf32>
    %191 = vector.extract_strided_slice %136 {offsets = [0, 32], sizes = [2, 256], strides = [1, 1]} : vector<2x290xf32> to vector<2x256xf32>
    %c0_i32_87 = arith.constant 0 : i32
    %192 = vector.broadcast %c0_i32_87 : i32 to vector<1x256xi32>
    %193 = arith.cmpi eq, %16, %192 : vector<1x256xi32>
    %cst_88 = arith.constant 0.000000e+00 : f32
    %194 = vector.shape_cast %193 : vector<1x256xi1> to vector<1x256xi1>
    %195 = vector.broadcast %194 : vector<1x256xi1> to vector<2x256xi1>
    %196 = vector.broadcast %cst_88 : f32 to vector<2x256xf32>
    %197 = arith.select %195, %196, %191 : vector<2x256xi1>, vector<2x256xf32>
    %c15 = arith.constant 15 : index
    %c0_89 = arith.constant 0 : index
    %c0_90 = arith.constant 0 : index
    %198 = vector.load %arg5[%c15, %c0_89, %c0_90] : memref<27x2x2xf32, #tpu.memory_space<vmem>>, vector<1x2x2xf32>
    %199 = vector.shape_cast %198 : vector<1x2x2xf32> to vector<2x2xf32>
    %cst_91 = arith.constant dense<0.000000e+00> : vector<2x256xf32>
    %200 = tpu.matmul %199, %197, %cst_91 {dimension_numbers = #tpu.dot_dimension_numbers<[1], [0], [0], [1], [0, 0, 1, 1], [], []>} : vector<2x2xf32>, vector<2x256xf32>, vector<2x256xf32> -> vector<2x256xf32>
    %201 = arith.addf %190, %200 : vector<2x256xf32>
    %202 = vector.extract_strided_slice %136 {offsets = [0, 33], sizes = [2, 256], strides = [1, 1]} : vector<2x290xf32> to vector<2x256xf32>
    %c16 = arith.constant 16 : index
    %c0_92 = arith.constant 0 : index
    %c0_93 = arith.constant 0 : index
    %203 = vector.load %arg5[%c16, %c0_92, %c0_93] : memref<27x2x2xf32, #tpu.memory_space<vmem>>, vector<1x2x2xf32>
    %204 = vector.shape_cast %203 : vector<1x2x2xf32> to vector<2x2xf32>
    %cst_94 = arith.constant dense<0.000000e+00> : vector<2x256xf32>
    %205 = tpu.matmul %204, %202, %cst_94 {dimension_numbers = #tpu.dot_dimension_numbers<[1], [0], [0], [1], [0, 0, 1, 1], [], []>} : vector<2x2xf32>, vector<2x256xf32>, vector<2x256xf32> -> vector<2x256xf32>
    %206 = arith.addf %201, %205 : vector<2x256xf32>
    %207 = vector.extract_strided_slice %136 {offsets = [0, 34], sizes = [2, 256], strides = [1, 1]} : vector<2x290xf32> to vector<2x256xf32>
    %c15_i32_95 = arith.constant 15 : i32
    %208 = vector.broadcast %c15_i32_95 : i32 to vector<1x256xi32>
    %209 = arith.cmpi eq, %16, %208 : vector<1x256xi32>
    %cst_96 = arith.constant 0.000000e+00 : f32
    %210 = vector.shape_cast %209 : vector<1x256xi1> to vector<1x256xi1>
    %211 = vector.broadcast %210 : vector<1x256xi1> to vector<2x256xi1>
    %212 = vector.broadcast %cst_96 : f32 to vector<2x256xf32>
    %213 = arith.select %211, %212, %207 : vector<2x256xi1>, vector<2x256xf32>
    %c17 = arith.constant 17 : index
    %c0_97 = arith.constant 0 : index
    %c0_98 = arith.constant 0 : index
    %214 = vector.load %arg5[%c17, %c0_97, %c0_98] : memref<27x2x2xf32, #tpu.memory_space<vmem>>, vector<1x2x2xf32>
    %215 = vector.shape_cast %214 : vector<1x2x2xf32> to vector<2x2xf32>
    %cst_99 = arith.constant dense<0.000000e+00> : vector<2x256xf32>
    %216 = tpu.matmul %215, %213, %cst_99 {dimension_numbers = #tpu.dot_dimension_numbers<[1], [0], [0], [1], [0, 0, 1, 1], [], []>} : vector<2x2xf32>, vector<2x256xf32>, vector<2x256xf32> -> vector<2x256xf32>
    %217 = arith.addf %206, %216 : vector<2x256xf32>
    %c0_100 = arith.constant 0 : index
    %c0_101 = arith.constant 0 : index
    %c0_102 = arith.constant 0 : index
    %218 = vector.load %arg4[%c0_100, %c0_101, %c0_102] : memref<1x2x256xf32, #tpu.memory_space<vmem>>, vector<1x2x256xf32>
    %219 = vector.shape_cast %218 : vector<1x2x256xf32> to vector<2x256xf32>
    %220 = vector.broadcast %18 : vector<2x1xf32> to vector<2x256xf32>
    %221 = arith.mulf %219, %220 : vector<2x256xf32>
    %222 = vector.broadcast %20 : vector<2x1xf32> to vector<2x256xf32>
    %223 = arith.addf %221, %222 : vector<2x256xf32>
    %cst_103 = arith.constant 0.000000e+00 : f32
    %224 = vector.broadcast %cst_103 : f32 to vector<2x256xf32>
    %225 = arith.cmpf oge, %223, %224 : vector<2x256xf32>
    %cst_104 = arith.constant 0.00999999977 : f32
    %226 = vector.broadcast %cst_104 : f32 to vector<2x256xf32>
    %227 = arith.mulf %226, %223 : vector<2x256xf32>
    %228 = arith.select %225, %223, %227 : vector<2x256xi1>, vector<2x256xf32>
    %c1_i32_105 = arith.constant 1 : i32
    %229 = arith.addi %arg1, %c1_i32_105 : i32
    %c0_i32_106 = arith.constant 0 : i32
    %230 = arith.cmpi sge, %229, %c0_i32_106 : i32
    %c16_i32_107 = arith.constant 16 : i32
    %231 = arith.cmpi slt, %229, %c16_i32_107 : i32
    %232 = arith.andi %230, %231 : i1
    %233 = arith.extui %232 : i1 to i32
    %234 = arith.sitofp %233 : i32 to f32
    %235 = vector.broadcast %234 : f32 to vector<2x256xf32>
    %236 = arith.mulf %228, %235 : vector<2x256xf32>
    %cst_108 = arith.constant 0.000000e+00 : f32
    %237 = vector.broadcast %cst_108 : f32 to vector<2x17xf32>
    %238 = tpu.concatenate %237, %236, %237 in 1 : vector<2x17xf32>, vector<2x256xf32>, vector<2x17xf32> -> vector<2x290xf32>
    %239 = vector.extract_strided_slice %238 {offsets = [0, 0], sizes = [2, 256], strides = [1, 1]} : vector<2x290xf32> to vector<2x256xf32>
    %c0_i32_109 = arith.constant 0 : i32
    %240 = vector.broadcast %c0_i32_109 : i32 to vector<1x256xi32>
    %241 = arith.cmpi eq, %16, %240 : vector<1x256xi32>
    %cst_110 = arith.constant 0.000000e+00 : f32
    %242 = vector.shape_cast %241 : vector<1x256xi1> to vector<1x256xi1>
    %243 = vector.broadcast %242 : vector<1x256xi1> to vector<2x256xi1>
    %244 = vector.broadcast %cst_110 : f32 to vector<2x256xf32>
    %245 = arith.select %243, %244, %239 : vector<2x256xi1>, vector<2x256xf32>
    %c18 = arith.constant 18 : index
    %c0_111 = arith.constant 0 : index
    %c0_112 = arith.constant 0 : index
    %246 = vector.load %arg5[%c18, %c0_111, %c0_112] : memref<27x2x2xf32, #tpu.memory_space<vmem>>, vector<1x2x2xf32>
    %247 = vector.shape_cast %246 : vector<1x2x2xf32> to vector<2x2xf32>
    %cst_113 = arith.constant dense<0.000000e+00> : vector<2x256xf32>
    %248 = tpu.matmul %247, %245, %cst_113 {dimension_numbers = #tpu.dot_dimension_numbers<[1], [0], [0], [1], [0, 0, 1, 1], [], []>} : vector<2x2xf32>, vector<2x256xf32>, vector<2x256xf32> -> vector<2x256xf32>
    %249 = arith.addf %217, %248 : vector<2x256xf32>
    %250 = vector.extract_strided_slice %238 {offsets = [0, 1], sizes = [2, 256], strides = [1, 1]} : vector<2x290xf32> to vector<2x256xf32>
    %c19 = arith.constant 19 : index
    %c0_114 = arith.constant 0 : index
    %c0_115 = arith.constant 0 : index
    %251 = vector.load %arg5[%c19, %c0_114, %c0_115] : memref<27x2x2xf32, #tpu.memory_space<vmem>>, vector<1x2x2xf32>
    %252 = vector.shape_cast %251 : vector<1x2x2xf32> to vector<2x2xf32>
    %cst_116 = arith.constant dense<0.000000e+00> : vector<2x256xf32>
    %253 = tpu.matmul %252, %250, %cst_116 {dimension_numbers = #tpu.dot_dimension_numbers<[1], [0], [0], [1], [0, 0, 1, 1], [], []>} : vector<2x2xf32>, vector<2x256xf32>, vector<2x256xf32> -> vector<2x256xf32>
    %254 = arith.addf %249, %253 : vector<2x256xf32>
    %255 = vector.extract_strided_slice %238 {offsets = [0, 2], sizes = [2, 256], strides = [1, 1]} : vector<2x290xf32> to vector<2x256xf32>
    %c15_i32_117 = arith.constant 15 : i32
    %256 = vector.broadcast %c15_i32_117 : i32 to vector<1x256xi32>
    %257 = arith.cmpi eq, %16, %256 : vector<1x256xi32>
    %cst_118 = arith.constant 0.000000e+00 : f32
    %258 = vector.shape_cast %257 : vector<1x256xi1> to vector<1x256xi1>
    %259 = vector.broadcast %258 : vector<1x256xi1> to vector<2x256xi1>
    %260 = vector.broadcast %cst_118 : f32 to vector<2x256xf32>
    %261 = arith.select %259, %260, %255 : vector<2x256xi1>, vector<2x256xf32>
    %c20 = arith.constant 20 : index
    %c0_119 = arith.constant 0 : index
    %c0_120 = arith.constant 0 : index
    %262 = vector.load %arg5[%c20, %c0_119, %c0_120] : memref<27x2x2xf32, #tpu.memory_space<vmem>>, vector<1x2x2xf32>
    %263 = vector.shape_cast %262 : vector<1x2x2xf32> to vector<2x2xf32>
    %cst_121 = arith.constant dense<0.000000e+00> : vector<2x256xf32>
    %264 = tpu.matmul %263, %261, %cst_121 {dimension_numbers = #tpu.dot_dimension_numbers<[1], [0], [0], [1], [0, 0, 1, 1], [], []>} : vector<2x2xf32>, vector<2x256xf32>, vector<2x256xf32> -> vector<2x256xf32>
    %265 = arith.addf %254, %264 : vector<2x256xf32>
    %266 = vector.extract_strided_slice %238 {offsets = [0, 16], sizes = [2, 256], strides = [1, 1]} : vector<2x290xf32> to vector<2x256xf32>
    %c0_i32_122 = arith.constant 0 : i32
    %267 = vector.broadcast %c0_i32_122 : i32 to vector<1x256xi32>
    %268 = arith.cmpi eq, %16, %267 : vector<1x256xi32>
    %cst_123 = arith.constant 0.000000e+00 : f32
    %269 = vector.shape_cast %268 : vector<1x256xi1> to vector<1x256xi1>
    %270 = vector.broadcast %269 : vector<1x256xi1> to vector<2x256xi1>
    %271 = vector.broadcast %cst_123 : f32 to vector<2x256xf32>
    %272 = arith.select %270, %271, %266 : vector<2x256xi1>, vector<2x256xf32>
    %c21 = arith.constant 21 : index
    %c0_124 = arith.constant 0 : index
    %c0_125 = arith.constant 0 : index
    %273 = vector.load %arg5[%c21, %c0_124, %c0_125] : memref<27x2x2xf32, #tpu.memory_space<vmem>>, vector<1x2x2xf32>
    %274 = vector.shape_cast %273 : vector<1x2x2xf32> to vector<2x2xf32>
    %cst_126 = arith.constant dense<0.000000e+00> : vector<2x256xf32>
    %275 = tpu.matmul %274, %272, %cst_126 {dimension_numbers = #tpu.dot_dimension_numbers<[1], [0], [0], [1], [0, 0, 1, 1], [], []>} : vector<2x2xf32>, vector<2x256xf32>, vector<2x256xf32> -> vector<2x256xf32>
    %276 = arith.addf %265, %275 : vector<2x256xf32>
    %277 = vector.extract_strided_slice %238 {offsets = [0, 17], sizes = [2, 256], strides = [1, 1]} : vector<2x290xf32> to vector<2x256xf32>
    %c22 = arith.constant 22 : index
    %c0_127 = arith.constant 0 : index
    %c0_128 = arith.constant 0 : index
    %278 = vector.load %arg5[%c22, %c0_127, %c0_128] : memref<27x2x2xf32, #tpu.memory_space<vmem>>, vector<1x2x2xf32>
    %279 = vector.shape_cast %278 : vector<1x2x2xf32> to vector<2x2xf32>
    %cst_129 = arith.constant dense<0.000000e+00> : vector<2x256xf32>
    %280 = tpu.matmul %279, %277, %cst_129 {dimension_numbers = #tpu.dot_dimension_numbers<[1], [0], [0], [1], [0, 0, 1, 1], [], []>} : vector<2x2xf32>, vector<2x256xf32>, vector<2x256xf32> -> vector<2x256xf32>
    %281 = arith.addf %276, %280 : vector<2x256xf32>
    %282 = vector.extract_strided_slice %238 {offsets = [0, 18], sizes = [2, 256], strides = [1, 1]} : vector<2x290xf32> to vector<2x256xf32>
    %c15_i32_130 = arith.constant 15 : i32
    %283 = vector.broadcast %c15_i32_130 : i32 to vector<1x256xi32>
    %284 = arith.cmpi eq, %16, %283 : vector<1x256xi32>
    %cst_131 = arith.constant 0.000000e+00 : f32
    %285 = vector.shape_cast %284 : vector<1x256xi1> to vector<1x256xi1>
    %286 = vector.broadcast %285 : vector<1x256xi1> to vector<2x256xi1>
    %287 = vector.broadcast %cst_131 : f32 to vector<2x256xf32>
    %288 = arith.select %286, %287, %282 : vector<2x256xi1>, vector<2x256xf32>
    %c23 = arith.constant 23 : index
    %c0_132 = arith.constant 0 : index
    %c0_133 = arith.constant 0 : index
    %289 = vector.load %arg5[%c23, %c0_132, %c0_133] : memref<27x2x2xf32, #tpu.memory_space<vmem>>, vector<1x2x2xf32>
    %290 = vector.shape_cast %289 : vector<1x2x2xf32> to vector<2x2xf32>
    %cst_134 = arith.constant dense<0.000000e+00> : vector<2x256xf32>
    %291 = tpu.matmul %290, %288, %cst_134 {dimension_numbers = #tpu.dot_dimension_numbers<[1], [0], [0], [1], [0, 0, 1, 1], [], []>} : vector<2x2xf32>, vector<2x256xf32>, vector<2x256xf32> -> vector<2x256xf32>
    %292 = arith.addf %281, %291 : vector<2x256xf32>
    %293 = vector.extract_strided_slice %238 {offsets = [0, 32], sizes = [2, 256], strides = [1, 1]} : vector<2x290xf32> to vector<2x256xf32>
    %c0_i32_135 = arith.constant 0 : i32
    %294 = vector.broadcast %c0_i32_135 : i32 to vector<1x256xi32>
    %295 = arith.cmpi eq, %16, %294 : vector<1x256xi32>
    %cst_136 = arith.constant 0.000000e+00 : f32
    %296 = vector.shape_cast %295 : vector<1x256xi1> to vector<1x256xi1>
    %297 = vector.broadcast %296 : vector<1x256xi1> to vector<2x256xi1>
    %298 = vector.broadcast %cst_136 : f32 to vector<2x256xf32>
    %299 = arith.select %297, %298, %293 : vector<2x256xi1>, vector<2x256xf32>
    %c24 = arith.constant 24 : index
    %c0_137 = arith.constant 0 : index
    %c0_138 = arith.constant 0 : index
    %300 = vector.load %arg5[%c24, %c0_137, %c0_138] : memref<27x2x2xf32, #tpu.memory_space<vmem>>, vector<1x2x2xf32>
    %301 = vector.shape_cast %300 : vector<1x2x2xf32> to vector<2x2xf32>
    %cst_139 = arith.constant dense<0.000000e+00> : vector<2x256xf32>
    %302 = tpu.matmul %301, %299, %cst_139 {dimension_numbers = #tpu.dot_dimension_numbers<[1], [0], [0], [1], [0, 0, 1, 1], [], []>} : vector<2x2xf32>, vector<2x256xf32>, vector<2x256xf32> -> vector<2x256xf32>
    %303 = arith.addf %292, %302 : vector<2x256xf32>
    %304 = vector.extract_strided_slice %238 {offsets = [0, 33], sizes = [2, 256], strides = [1, 1]} : vector<2x290xf32> to vector<2x256xf32>
    %c25 = arith.constant 25 : index
    %c0_140 = arith.constant 0 : index
    %c0_141 = arith.constant 0 : index
    %305 = vector.load %arg5[%c25, %c0_140, %c0_141] : memref<27x2x2xf32, #tpu.memory_space<vmem>>, vector<1x2x2xf32>
    %306 = vector.shape_cast %305 : vector<1x2x2xf32> to vector<2x2xf32>
    %cst_142 = arith.constant dense<0.000000e+00> : vector<2x256xf32>
    %307 = tpu.matmul %306, %304, %cst_142 {dimension_numbers = #tpu.dot_dimension_numbers<[1], [0], [0], [1], [0, 0, 1, 1], [], []>} : vector<2x2xf32>, vector<2x256xf32>, vector<2x256xf32> -> vector<2x256xf32>
    %308 = arith.addf %303, %307 : vector<2x256xf32>
    %309 = vector.extract_strided_slice %238 {offsets = [0, 34], sizes = [2, 256], strides = [1, 1]} : vector<2x290xf32> to vector<2x256xf32>
    %c15_i32_143 = arith.constant 15 : i32
    %310 = vector.broadcast %c15_i32_143 : i32 to vector<1x256xi32>
    %311 = arith.cmpi eq, %16, %310 : vector<1x256xi32>
    %cst_144 = arith.constant 0.000000e+00 : f32
    %312 = vector.shape_cast %311 : vector<1x256xi1> to vector<1x256xi1>
    %313 = vector.broadcast %312 : vector<1x256xi1> to vector<2x256xi1>
    %314 = vector.broadcast %cst_144 : f32 to vector<2x256xf32>
    %315 = arith.select %313, %314, %309 : vector<2x256xi1>, vector<2x256xf32>
    %c26 = arith.constant 26 : index
    %c0_145 = arith.constant 0 : index
    %c0_146 = arith.constant 0 : index
    %316 = vector.load %arg5[%c26, %c0_145, %c0_146] : memref<27x2x2xf32, #tpu.memory_space<vmem>>, vector<1x2x2xf32>
    %317 = vector.shape_cast %316 : vector<1x2x2xf32> to vector<2x2xf32>
    %cst_147 = arith.constant dense<0.000000e+00> : vector<2x256xf32>
    %318 = tpu.matmul %317, %315, %cst_147 {dimension_numbers = #tpu.dot_dimension_numbers<[1], [0], [0], [1], [0, 0, 1, 1], [], []>} : vector<2x2xf32>, vector<2x256xf32>, vector<2x256xf32> -> vector<2x256xf32>
    %319 = arith.addf %308, %318 : vector<2x256xf32>
    %c0_148 = arith.constant 0 : index
    %c0_149 = arith.constant 0 : index
    %320 = vector.load %arg8[%c0_148, %c0_149] : memref<2x1xf32, #tpu.memory_space<vmem>>, vector<2x1xf32>
    %321 = vector.broadcast %320 : vector<2x1xf32> to vector<2x256xf32>
    %322 = arith.addf %319, %321 : vector<2x256xf32>
    %c0_150 = arith.constant 0 : index
    %c0_151 = arith.constant 0 : index
    %c0_152 = arith.constant 0 : index
    %323 = vector.load %arg9[%c0_150, %c0_151, %c0_152] : memref<1x2x256xf32, #tpu.memory_space<vmem>>, vector<1x2x256xf32>
    %324 = vector.shape_cast %323 : vector<1x2x256xf32> to vector<2x256xf32>
    %325 = arith.addf %322, %324 : vector<2x256xf32>
    %c0_153 = arith.constant 0 : index
    %c0_154 = arith.constant 0 : index
    %c0_155 = arith.constant 0 : index
    %326 = vector.load %arg10[%c0_153, %c0_154, %c0_155] : memref<1x2x256xf32, #tpu.memory_space<vmem>>, vector<1x2x256xf32>
    %327 = vector.shape_cast %326 : vector<1x2x256xf32> to vector<2x256xf32>
    %328 = vector.shape_cast %325 : vector<2x256xf32> to vector<1x2x256xf32>
    tpu.vector_store %arg10[%c0_153, %c0_154, %c0_155], %328 {strides = array<i32>} : memref<1x2x256xf32, #tpu.memory_space<vmem>>, vector<1x2x256xf32>,
    %cst_156 = arith.constant dense<0.000000e+00> : vector<2xf32>
    %329 = vector.multi_reduction <add>, %325, %cst_156 [1] : vector<2x256xf32> to vector<2xf32>
    %330 = vector.shape_cast %329 : vector<2xf32> to vector<2x1xf32>
    %c0_157 = arith.constant 0 : index
    %c0_158 = arith.constant 0 : index
    %c0_159 = arith.constant 0 : index
    %c0_160 = arith.constant 0 : index
    %331 = vector.load %arg11[%c0_157, %c0_158, %c0_159, %c0_160] : memref<1x1x2x1xf32, #tpu.memory_space<vmem>>, vector<1x1x2x1xf32>
    %332 = vector.shape_cast %331 : vector<1x1x2x1xf32> to vector<2x1xf32>
    %333 = vector.shape_cast %330 : vector<2x1xf32> to vector<1x1x2x1xf32>
    tpu.vector_store %arg11[%c0_157, %c0_158, %c0_159, %c0_160], %333 {strides = array<i32>} : memref<1x1x2x1xf32, #tpu.memory_space<vmem>>, vector<1x1x2x1xf32>,
    %334 = arith.mulf %325, %325 : vector<2x256xf32>
    %cst_161 = arith.constant dense<0.000000e+00> : vector<2xf32>
    %335 = vector.multi_reduction <add>, %334, %cst_161 [1] : vector<2x256xf32> to vector<2xf32>
    %336 = vector.shape_cast %335 : vector<2xf32> to vector<2x1xf32>
    %c0_162 = arith.constant 0 : index
    %c0_163 = arith.constant 0 : index
    %c0_164 = arith.constant 0 : index
    %c0_165 = arith.constant 0 : index
    %337 = vector.load %arg12[%c0_162, %c0_163, %c0_164, %c0_165] : memref<1x1x2x1xf32, #tpu.memory_space<vmem>>, vector<1x1x2x1xf32>
    %338 = vector.shape_cast %337 : vector<1x1x2x1xf32> to vector<2x1xf32>
    %339 = vector.shape_cast %336 : vector<2x1xf32> to vector<1x1x2x1xf32>
    tpu.vector_store %arg12[%c0_162, %c0_163, %c0_164, %c0_165], %339 {strides = array<i32>} : memref<1x1x2x1xf32, #tpu.memory_space<vmem>>, vector<1x1x2x1xf32>,
    return
  }
  func.func @transform_0(%arg0: i32, %arg1: i32) -> (i32, i32, i32) {
    %c-1_i32 = arith.constant -1 : i32
    %0 = arith.addi %arg1, %c-1_i32 : i32
    %c15_i32 = arith.constant 15 : i32
    %1 = arith.minsi %0, %c15_i32 : i32
    %c0_i32 = arith.constant 0 : i32
    %2 = arith.maxsi %1, %c0_i32 : i32
    %c0_i32_0 = arith.constant 0 : i32
    %c0_i32_1 = arith.constant 0 : i32
    return %arg0, %c0_i32_0, %2 : i32, i32, i32
  }
  func.func @transform_1(%arg0: i32, %arg1: i32) -> (i32, i32, i32) {
    %c0_i32 = arith.constant 0 : i32
    %0 = arith.addi %arg1, %c0_i32 : i32
    %c15_i32 = arith.constant 15 : i32
    %1 = arith.minsi %0, %c15_i32 : i32
    %c0_i32_0 = arith.constant 0 : i32
    %2 = arith.maxsi %1, %c0_i32_0 : i32
    %c0_i32_1 = arith.constant 0 : i32
    %c0_i32_2 = arith.constant 0 : i32
    return %arg0, %c0_i32_1, %2 : i32, i32, i32
  }
  func.func @transform_2(%arg0: i32, %arg1: i32) -> (i32, i32, i32) {
    %c1_i32 = arith.constant 1 : i32
    %0 = arith.addi %arg1, %c1_i32 : i32
    %c15_i32 = arith.constant 15 : i32
    %1 = arith.minsi %0, %c15_i32 : i32
    %c0_i32 = arith.constant 0 : i32
    %2 = arith.maxsi %1, %c0_i32 : i32
    %c0_i32_0 = arith.constant 0 : i32
    %c0_i32_1 = arith.constant 0 : i32
    return %arg0, %c0_i32_0, %2 : i32, i32, i32
  }
  func.func @transform_3(%arg0: i32, %arg1: i32) -> (i32, i32, i32) {
    %c0_i32 = arith.constant 0 : i32
    %c0_i32_0 = arith.constant 0 : i32
    %c0_i32_1 = arith.constant 0 : i32
    %c0_i32_2 = arith.constant 0 : i32
    return %c0_i32, %c0_i32_0, %c0_i32_1 : i32, i32, i32
  }
  func.func @transform_4(%arg0: i32, %arg1: i32) -> (i32, i32, i32) {
    %c0_i32 = arith.constant 0 : i32
    %c0_i32_0 = arith.constant 0 : i32
    %c0_i32_1 = arith.constant 0 : i32
    return %arg0, %c0_i32, %c0_i32_0 : i32, i32, i32
  }
  func.func @transform_5(%arg0: i32, %arg1: i32) -> (i32, i32, i32) {
    %c0_i32 = arith.constant 0 : i32
    %c0_i32_0 = arith.constant 0 : i32
    %c0_i32_1 = arith.constant 0 : i32
    return %arg0, %c0_i32, %c0_i32_0 : i32, i32, i32
  }
  func.func @transform_6(%arg0: i32, %arg1: i32) -> (i32, i32) {
    %c0_i32 = arith.constant 0 : i32
    %c0_i32_0 = arith.constant 0 : i32
    %c0_i32_1 = arith.constant 0 : i32
    return %c0_i32, %c0_i32_0 : i32, i32
  }
  func.func @transform_7(%arg0: i32, %arg1: i32) -> (i32, i32, i32) {
    %c0_i32 = arith.constant 0 : i32
    %c0_i32_0 = arith.constant 0 : i32
    return %arg0, %c0_i32, %arg1 : i32, i32, i32
  }
  func.func @transform_8(%arg0: i32, %arg1: i32) -> (i32, i32, i32) {
    %c0_i32 = arith.constant 0 : i32
    %c0_i32_0 = arith.constant 0 : i32
    return %arg0, %c0_i32, %arg1 : i32, i32, i32
  }
  func.func @transform_9(%arg0: i32, %arg1: i32) -> (i32, i32, i32, i32) {
    %c0_i32 = arith.constant 0 : i32
    %c0_i32_0 = arith.constant 0 : i32
    %c0_i32_1 = arith.constant 0 : i32
    return %arg0, %arg1, %c0_i32, %c0_i32_0 : i32, i32, i32, i32
  }
  func.func @transform_10(%arg0: i32, %arg1: i32) -> (i32, i32, i32, i32) {
    %c0_i32 = arith.constant 0 : i32
    %c0_i32_0 = arith.constant 0 : i32
    %c0_i32_1 = arith.constant 0 : i32
    return %arg0, %arg1, %c0_i32, %c0_i32_0 : i32, i32, i32, i32
  }
}

</mosaic_0001>

<bundles_post_ra>
// kernel: out_conv_forward.5
= control target key start
LH: loop header
LB: loop body
LE: loop exit
PB: predicated region body
PF: predicated region fallthrough
CT: control target
= control target key end

     0   :  { %s1064_s18 = smov 0   ;;  %s1066_s19 = smov 0   ;;  %s1489_s0 = inlined_call_operand.vmem [shape: f32[2,2,4096], index: 0, kind: input, shape index: {}]   ;;  %s1490_s1 = inlined_call_operand.vmem [shape: f32[2,2,4096], index: 1, kind: input, shape index: {}]   ;;  %s1491_s2 = inlined_call_operand.vmem [shape: f32[4,1], index: 2, kind: input, shape index: {}]   ;;  %s1492_s3 = inlined_call_operand.vmem [shape: f32[4,1], index: 3, kind: input, shape index: {}]   ;;  %s1493_s4 = inlined_call_operand.vmem [shape: f32[2,4,1], index: 4, kind: output, shape index: {0}]   ;;  %s1494_s5 = inlined_call_operand.vmem [shape: f32[2,4,1], index: 5, kind: output, shape index: {1}]  }
   0x1   :  { %s1068_s20 = smov 0   ;;  %s1070_s21 = smov 0  }
   0x2   :  { %s1072_s22 = smov 0  }
   0x3 LB: > { %s25_s23 = sadd.s32 1, %s1022_s20  ;;  %s28_s24 = sadd.s32 1, %s1026_s21  ;;  %s1030_s22 = sphi %s1072_s22, %s16_s22   ;;  %s1026_s21 = sphi %s1070_s21, %s1500_s21   ;;  %s1022_s20 = sphi %s1068_s20, %s1499_s20   ;;  %s1018_s19 = sphi %s1066_s19, %s1498_s19   ;;  %s1014_s18 = sphi %s1064_s18, %s1497_s18  }
   0x4   : > { %p26_p0 = scmp.ge.s32.totalorder %s25_s23, 2  ;;  %p926_p1 = scmp.ge.s32.totalorder %s1030_s22, 1 }
   0x5   : > { %p226_p2 = scmp.lt.s32.totalorder %s1030_s22, 5 }
   0x6   : > { %s1502_s23 = smov (%p26_p0, %s25_s23), 0  ;;  %s1504_s24 = smov (!%p26_p0, %s28_s24), %s1026_s21 }
   0x7   : > { %p227_p3 = pnand %p926_p1, %p226_p2  ;;  %p30_p4 = scmp.ge.s32.totalorder %s1504_s24, 2 }
   0x8   : > { %s927_s25 = sshll.u32 (!%p227_p3), %s1014_s18, 4  ;;  %p271_p5 = scmp.lt.s32.totalorder (!%p227_p3), %s1018_s19, 1 }
   0x9   : > { %s1506_s24 = smov (%p30_p4, %s1504_s24), 0  ;;  %230 = sbr.rel (%p227_p3) target bundleno = 286 (0x11e), region = 36 }
   0xa   : > { %p273_p6 = scmp.lt.s32.totalorder (!%p227_p3), %s927_s25, 31  ;;  %p935_p7 = scmp.ne.s32.totalorder (!%p227_p3), %s1014_s18, 0 }
  0x10   : > { %s1508_s19 = smov (!%p271_p5, %s1018_s19), 1  ;;  %s1510_s25 = smov (!%p273_p6, %s927_s25), 31 }
  0x11   : > { %s928_s26 = sshll.u32 %s1508_s19, 5  ;;  %s933_s27 = sshll.u32 %s1508_s19, 2  ;;  %vm302_vm0 = vcmask (!%p935_p7), 3072   ;;  %v1032_v0 = vmov (!%p935_p7), 0.0  }
  0x12   : > { %s276_s28 = sadd.s32 %s928_s26, %s1510_s25  ;;  %s1100_s6 = scalar_lea.vmem %s1493_s4, %s933_s27  ;;  %303 = vst.msk [vmem:[#allocation2] sm:$0xf] (!%p935_p7), %vm302_vm0, %v1032_v0  ;;  %304 = vst.msk [vmem:[#allocation3] sm:$0xf] (!%p935_p7), %vm302_vm0, %v1032_v0 }
  0x13   : > { %s929_s7 = sshll.u32 %s276_s28, 1  ;;  %s1105_s10 = scalar_lea.vmem %s1494_s5, %s933_s27 }
  0x14   : > { %s1110_s13 = scalar_lea.vmem %s1489_s0, %s929_s7  ;;  %s288_s16 = scalar_lea.vmem %s1490_s1, %s929_s7 }
  0x15   : > { %301 = sbr.rel (%p935_p7) target bundleno = 28 (0x1c), region = 40 }
  0x1c PF: > { %v305_v1 = vlaneseq  ;;  %v1033_v3 = vmov 1983009808   ;;  %s936_s17 = sshll.u32 %s1014_s18, 11  ;;  %v496_v9 = vld [vmem:[%s288_s16] sm:$0xff]  ;;  %v497_v10 = vld [vmem:[%s288_s16 + $0x8] sm:$0xff]  ;;  %v1117_v11 = vld [vmem:[%s288_s16 + $0x10] sm:$0xff] }
  0x1d   : > { %v398_v4 = vunpack.c.l.s4 %v1033_v3  ;;  %v323_v12 = vstv %s936_s17  ;;  %v1119_v13 = vld [vmem:[%s288_s16 + $0x18] sm:$0xff]  ;;  %v504_v14 = vcombine.high %v496_v9, %v496_v9  ;;  %v521_v15 = vcombine.high %v497_v10, %v497_v10  ;;  %v1124_v17 = vld [vmem:[%s1110_s13] sm:$0xff]  ;;  %v1127_v18 = vld [vmem:[%s1110_s13 + $0x8] sm:$0xff]  ;;  %p937_p8 = scmp.ne.s32.totalorder %s1014_s18, 1 }
  0x1e   : > { %v306_v2 = vand.u32 127, %v305_v1  ;;  %v401_v8 = vshrl.u32 %v305_v1, 7  ;;  %v538_v16 = vcombine.high %v1117_v11, %v1117_v11  ;;  %v555_v20 = vcombine.high %v1119_v13, %v1119_v13 }
  0x1f   : > { %v399_v7 = vunpack.c.0.s8 %v398_v4  ;;  %v396_v21 = vcombine.high %v1124_v17, %v1124_v17  ;;  %v413_v22 = vcombine.high %v1127_v18, %v1127_v18  ;;  %vm605_vm1 = vcmask 1041408  }
  0x20   : > { %v307_v5 = vadd.s32 128, %v306_v2  ;;  %v308_v6 = vadd.s32 256, %v306_v2  ;;  %v309_v19 = vadd.s32 384, %v306_v2  ;;  %v310_v23 = vadd.s32 512, %v306_v2 }
  0x21   : > { %v311_v24 = vadd.s32 640, %v306_v2  ;;  %v312_v25 = vadd.s32 768, %v306_v2  ;;  %v313_v26 = vadd.s32 896, %v306_v2  ;;  %v1135_v27 = vadd.s32 %v323_v12, %v306_v2 }
  0x22   : > { %v1137_v28 = vadd.s32 %v323_v12, %v307_v5  ;;  %v1139_v29 = vadd.s32 %v323_v12, %v308_v6  ;;  %v1141_v30 = vsub.s32 %v399_v7, %v401_v8  ;;  %v314_v31 = vadd.s32 1024, %v306_v2 }
  0x23   : > { %v315_v32 = vadd.s32 1152, %v306_v2  ;;  %v316_v33 = vadd.s32 1280, %v306_v2  ;;  %v317_v34 = vadd.s32 1408, %v306_v2  ;;  %v318_v35 = vadd.s32 1536, %v306_v2 }
  0x24   : > { %v1143_v36 = vadd.s32 %v323_v12, %v309_v19  ;;  %v511_v37 = vrot.slane %v496_v9, %v1141_v30  ;;  %v518_v38 = vrot.slane %v504_v14, %v1141_v30  ;;  %v319_v39 = vadd.s32 1664, %v306_v2 }
  0x25   : > { %v320_v40 = vadd.s32 1792, %v306_v2  ;;  %v321_v41 = vadd.s32 1920, %v306_v2  ;;  %v1147_v42 = vadd.s32 %v323_v12, %v310_v23  ;;  %vm340_vm2 = vcmp.lt.s32.totalorder %v1135_v27, 4096 }
  0x26   : > { %vm341_vm3 = vcmp.lt.s32.totalorder %v1137_v28, 4096  ;;  %vm342_vm4 = vcmp.lt.s32.totalorder %v1139_v29, 4096  ;;  %v519_v43 = vcombine.high %v511_v37, %v511_v37  ;;  %v1152_v44 = vadd.s32 %v323_v12, %v311_v24 }
  0x27   : > { %v1154_v45 = vadd.s32 %v323_v12, %v312_v25  ;;  %v520_v46 = vcombine.high %v518_v38, %v518_v38  ;;  %v528_v47 = vrot.slane %v497_v10, %v1141_v30  ;;  %v1157_v48 = vadd.s32 %v323_v12, %v313_v26 }
  0x28   : > { %v1159_v49 = vadd.s32 %v323_v12, %v314_v31  ;;  %v1161_v50 = vadd.s32 %v323_v12, %v315_v32  ;;  %vm343_vm5 = vcmp.lt.s32.totalorder %v1143_v36, 4096  ;;  %v1164_v51 = vadd.s32 %v323_v12, %v316_v33  ;;  %v358_v33 = vld [vmem:[%s1110_s13 + $0x10] sm:$0xff] }
  0x29   : > { %v1168_v52 = vsel %vm340_vm2, %v511_v37, 0.0  ;;  %v1172_v53 = vsel %vm341_vm3, %v519_v43, 0.0  ;;  %v1176_v54 = vsel %vm342_vm4, %v518_v38, 0.0  ;;  %v1178_v55 = vadd.s32 %v323_v12, %v317_v34 }
  0x2a   : > { %v1180_v56 = vadd.s32 %v323_v12, %v318_v35  ;;  %v1182_v57 = vadd.s32 %v323_v12, %v319_v39  ;;  %vm344_vm6 = vcmp.lt.s32.totalorder %v1147_v42, 4096  ;;  %v1185_v58 = vadd.s32 %v323_v12, %v320_v40 }
  0x2b   : > { %v535_v59 = vrot.slane %v521_v15, %v1141_v30  ;;  %v536_v60 = vcombine.high %v528_v47, %v528_v47  ;;  %v1190_v61 = vsel %vm343_vm5, %v520_v46, 0.0  ;;  %vm345_vm7 = vcmp.lt.s32.totalorder %v1152_v44, 4096 }
  0x2c   : > { %v639_v62 = vsel %vm605_vm1, %v1168_v52, 0.0  ;;  %v640_v63 = vsel %vm605_vm1, %v1172_v53, 0.0  ;;  %v642_v0 = vsel %vm605_vm1, %v1176_v54, 0.0  ;;  %v1199_v1 = vadd.s32 %v323_v12, %v321_v41 }
  0x2d   : > { %vm1495_vm8 = vcmp.lt.s32.totalorder %v1154_v45, 4096  ;;  %v1204_v2 = vsel %vm344_vm6, %v528_v47, 0.0  ;;  %v641_v3 = vadd.f32 %v640_v63, %v639_v62  ;;  %vm347_vm9 = vcmp.lt.s32.totalorder %v1157_v48, 4096 }
  0x2e   : > { %vm348_vm10 = vcmp.lt.s32.totalorder %v1159_v49, 4096  ;;  %v545_v4 = vrot.slane %v1117_v11, %v1141_v30  ;;  %v644_v5 = vsel %vm605_vm1, %v1190_v61, 0.0  ;;  %v537_v6 = vcombine.high %v535_v59, %v535_v59 }
  0x2f   : > { %v552_v7 = vrot.slane %v538_v16, %v1141_v30  ;;  %v1218_v8 = vsel %vm345_vm7, %v536_v60, 0.0  ;;  %v643_v9 = vadd.f32 %v642_v0, %v641_v3  ;;  %vm349_vm11 = vcmp.lt.s32.totalorder %v1161_v50, 4096 }
  0x30   : > { %v562_v10 = vrot.slane %v1119_v13, %v1141_v30  ;;  %v569_v12 = vrot.slane %v555_v20, %v1141_v30  ;;  %v646_v14 = vsel %vm605_vm1, %v1204_v2, 0.0  ;;  %vm350_vm12 = vcmp.lt.s32.totalorder %v1164_v51, 4096 }
  0x31   : > { %vm351_vm13 = vcmp.lt.s32.totalorder %v1178_v55, 4096  ;;  %v1233_v11 = vsel %vm1495_vm8, %v535_v59, 0.0  ;;  %v645_v15 = vadd.f32 %v644_v5, %v643_v9  ;;  %vm352_vm14 = vcmp.lt.s32.totalorder %v1180_v56, 4096 }
  0x32   : > { %vm353_vm15 = vcmp.lt.s32.totalorder %v1182_v57, 4096  ;;  %v553_v16 = vcombine.high %v545_v4, %v545_v4  ;;  %v648_v13 = vsel %vm605_vm1, %v1218_v8, 0.0  ;;  %vm354_vm0 = vcmp.lt.s32.totalorder %v1185_v58, 4096 }
  0x33   : > { %v554_v19 = vcombine.high %v552_v7, %v552_v7  ;;  %v1242_v20 = vsel %vm347_vm9, %v537_v6, 0.0  ;;  %v647_v23 = vadd.f32 %v646_v14, %v645_v15  ;;  %vm355_vm8 = vcmp.lt.s32.totalorder %v1199_v1, 4096 }
  0x34   : > { %v570_v24 = vcombine.high %v562_v10, %v562_v10  ;;  %v571_v25 = vcombine.high %v569_v12, %v569_v12  ;;  %v650_v26 = vsel %vm605_vm1, %v1233_v11, 0.0  ;;  %v1249_v31 = vsel %vm348_vm10, %v545_v4, 0.0 }
  0x35   : > { %v649_v32 = vadd.f32 %v648_v13, %v647_v23  ;;  %v403_v34 = vrot.slane %v1124_v17, %v1141_v30  ;;  %v410_v35 = vrot.slane %v396_v21, %v1141_v30  ;;  %v597_v37 = vsel %vm349_vm11, %v553_v16, 0.0  ;;  %v359_v21 = vld [vmem:[%s1110_s13 + $0x18] sm:$0xff] }
  0x36   : > { %v1262_v38 = vsel %vm350_vm12, %v552_v7, 0.0  ;;  %v652_v39 = vsel %vm605_vm1, %v1242_v20, 0.0  ;;  %v430_v40 = vcombine.high %v358_v33, %v358_v33  ;;  %v1268_v41 = vsel %vm351_vm13, %v554_v19, 0.0 }
  0x37   : > { %v1272_v43 = vsel %vm352_vm14, %v562_v10, 0.0  ;;  %v651_v17 = vadd.f32 %v650_v26, %v649_v32  ;;  %v411_v46 = vcombine.high %v403_v34, %v403_v34  ;;  %v1277_v47 = vsel %vm353_vm15, %v570_v24, 0.0 }
  0x38   : > { %v1281_v59 = vsel %vm354_vm0, %v569_v12, 0.0  ;;  %v654_v60 = vsel %vm605_vm1, %v1249_v31, 0.0  ;;  %v447_v62 = vcombine.high %v359_v21, %v359_v21  ;;  %v1287_v63 = vsel %vm355_vm8, %v571_v25, 0.0 }
  0x39   : > { %v653_v0 = vadd.f32 %v652_v39, %v651_v17  ;;  %v412_v3 = vcombine.high %v410_v35, %v410_v35  ;;  %v420_v4 = vrot.slane %v1127_v18, %v1141_v30  ;;  %v656_v5 = vsel %vm605_vm1, %v597_v37, 0.0 }
  0x3a   : > { %v658_v6 = vsel %vm605_vm1, %v1262_v38, 0.0  ;;  %v660_v7 = vsel %vm605_vm1, %v1268_v41, 0.0  ;;  %v662_v9 = vsel %vm605_vm1, %v1272_v43, 0.0  ;;  %v480_v12 = vsel %vm340_vm2, %v403_v34, 0.0 }
  0x3b   : > { %v655_v10 = vadd.f32 %v654_v60, %v653_v0  ;;  %v481_v14 = vsel %vm341_vm3, %v411_v46, 0.0  ;;  %v1304_v15 = vsel %vm342_vm4, %v410_v35, 0.0  ;;  %v664_v16 = vsel %vm605_vm1, %v1277_v47, 0.0 }
  0x3c   : > { %v666_v13 = vsel %vm605_vm1, %v1281_v59, 0.0  ;;  %v668_v19 = vsel %vm605_vm1, %v1287_v63, 0.0  ;;  %v729_v27 = vmul.f32 %v1168_v52, %v1168_v52  ;;  %v427_v28 = vrot.slane %v413_v22, %v1141_v30 }
  0x3d   : > { %v657_v23 = vadd.f32 %v656_v5, %v655_v10  ;;  %v428_v29 = vcombine.high %v420_v4, %v420_v4  ;;  %v483_v24 = vsel %vm343_vm5, %v412_v3, 0.0  ;;  %v730_v25 = vmul.f32 %v1172_v53, %v1172_v53 }
  0x3e   : > { %v606_v26 = vsel %vm605_vm1, %v480_v12, 0.0  ;;  %v607_v32 = vsel %vm605_vm1, %v481_v14, 0.0  ;;  %v609_v52 = vsel %vm605_vm1, %v1304_v15, 0.0  ;;  %v731_v35 = vmul.f32 %v1176_v54, %v1176_v54 }
  0x3f   : > { %v659_v34 = vadd.f32 %v658_v6, %v657_v23  ;;  %v484_v18 = vsel %vm344_vm6, %v420_v4, 0.0  ;;  %v608_v22 = vadd.f32 %v607_v32, %v606_v26  ;;  %v732_v36 = vmul.f32 %v1190_v61, %v1190_v61 }
  0x40   : > { %v733_v53 = vmul.f32 %v1204_v2, %v1204_v2  ;;  %v437_v39 = vrot.slane %v358_v33, %v1141_v30  ;;  %v611_v17 = vsel %vm605_vm1, %v483_v24, 0.0  ;;  %v429_v60 = vcombine.high %v427_v28, %v427_v28 }
  0x41   : > { %v661_v46 = vadd.f32 %v660_v7, %v659_v34  ;;  %v485_v0 = vsel %vm345_vm7, %v428_v29, 0.0  ;;  %v610_v54 = vadd.f32 %v609_v52, %v608_v22  ;;  %v734_v42 = vmul.f32 %v1218_v8, %v1218_v8 }
  0x42   : > { %v735_v3 = vmul.f32 %v1233_v11, %v1233_v11  ;;  %v444_v61 = vrot.slane %v430_v40, %v1141_v30  ;;  %v613_v2 = vsel %vm605_vm1, %v484_v18, 0.0  ;;  %v454_v33 = vrot.slane %v359_v21, %v1141_v30 }
  0x43   : > { %v663_v4 = vadd.f32 %v662_v9, %v661_v46  ;;  %vm1496_vm2 = vcmp.lt.s32.totalorder %v1154_v45, 4096  ;;  %v612_v6 = vadd.f32 %v611_v17, %v610_v54  ;;  %v1349_v44 = vmul.f32 %v1242_v20, %v1242_v20 }
  0x44   : > { %v486_v5 = vsel %vm1496_vm2, %v427_v28, 0.0  ;;  %v1353_v8 = vmul.f32 %v1249_v31, %v1249_v31  ;;  %v445_v11 = vcombine.high %v437_v39, %v437_v39  ;;  %v615_v40 = vsel %vm605_vm1, %v485_v0, 0.0 }
  0x45   : > { %v665_v7 = vadd.f32 %v664_v16, %v663_v4  ;;  %v1356_v10 = vmul.f32 %v597_v37, %v597_v37  ;;  %v487_v21 = vsel %vm347_vm9, %v429_v60, 0.0  ;;  %v614_v45 = vadd.f32 %v613_v2, %v612_v6 }
  0x46   : > { %v1362_v9 = vmul.f32 %v1262_v38, %v1262_v38  ;;  %v446_v20 = vcombine.high %v444_v61, %v444_v61  ;;  %v461_v23 = vrot.slane %v447_v62, %v1141_v30  ;;  %v617_v31 = vsel %vm605_vm1, %v486_v5, 0.0 }
  0x47   : > { %v667_v28 = vadd.f32 %v666_v13, %v665_v7  ;;  %v462_v29 = vcombine.high %v454_v33, %v454_v33  ;;  %v488_v16 = vsel %vm348_vm10, %v437_v39, 0.0  ;;  %v616_v37 = vadd.f32 %v615_v40, %v614_v45 }
  0x48   : > { %v1370_v48 = vsel %vm349_vm11, %v445_v11, 0.0  ;;  %v1374_v26 = vsel %vm350_vm12, %v444_v61, 0.0  ;;  %v619_v38 = vsel %vm605_vm1, %v487_v21, 0.0  ;;  %v745_v30 = vsel %vm605_vm1, %v729_v27, 0.0 }
  0x49   : > { %v669_v62 = vadd.f32 %v668_v19, %v667_v28  ;;  %v618_v32 = vadd.f32 %v617_v31, %v616_v37  ;;  %v746_v13 = vsel %vm605_vm1, %v730_v25, 0.0  ;;  %v748_v49 = vsel %vm605_vm1, %v731_v35, 0.0 }
  0x4a   : > { %v621_v52 = vsel %vm605_vm1, %v488_v16, 0.0  ;;  %v680_v34 = vmul.f32 %v480_v12, %v480_v12  ;;  %v681_v50 = vmul.f32 %v481_v14, %v481_v14  ;;  %v747_v22 = vadd.f32 %v746_v13, %v745_v30 }
  0x4b   : > { %670 = vadd.xlane.f32.xlu0 %v669_v62  ;;  %v463_v39 = vcombine.high %v461_v23, %v461_v23  ;;  %v620_v51 = vadd.f32 %v619_v38, %v618_v32  ;;  %v682_v17 = vmul.f32 %v1304_v15, %v1304_v15  ;;  %v750_v46 = vsel %vm605_vm1, %v732_v36, 0.0 }
  0x4c   : > { %v1386_v19 = vsel %vm351_vm13, %v446_v20, 0.0  ;;  %v623_v27 = vsel %vm605_vm1, %v1370_v48, 0.0  ;;  %v683_v25 = vmul.f32 %v483_v24, %v483_v24  ;;  %v749_v35 = vadd.f32 %v748_v49, %v747_v22 }
  0x4d   : > { %v1392_v12 = vsel %vm352_vm14, %v454_v33, 0.0  ;;  %v622_v14 = vadd.f32 %v621_v52, %v620_v51  ;;  %v625_v60 = vsel %vm605_vm1, %v1374_v26, 0.0  ;;  %v752_v15 = vsel %vm605_vm1, %v733_v53, 0.0 }
  0x4e   : > { %v684_v36 = vmul.f32 %v484_v18, %v484_v18  ;;  %v751_v54 = vadd.f32 %v750_v46, %v749_v35  ;;  %v696_v55 = vsel %vm605_vm1, %v680_v34, 0.0  ;;  %v697_v61 = vsel %vm605_vm1, %v681_v50, 0.0 }
  0x4f   : > { %v624_v2 = vadd.f32 %v623_v27, %v622_v14  ;;  %v754_v24 = vsel %vm605_vm1, %v734_v42, 0.0  ;;  %v698_v4 = vadd.f32 %v697_v61, %v696_v55  ;;  %v699_v56 = vsel %vm605_vm1, %v682_v17, 0.0 }
  0x50   : > { %v627_v33 = vsel %vm605_vm1, %v1386_v19, 0.0  ;;  %v685_v6 = vmul.f32 %v485_v0, %v485_v0  ;;  %v753_v11 = vadd.f32 %v752_v15, %v751_v54  ;;  %v701_v40 = vsel %vm605_vm1, %v683_v25, 0.0 }
  0x51   : > { %v493_v18 = vsel %vm353_vm15, %v462_v29, 0.0  ;;  %v626_v53 = vadd.f32 %v625_v60, %v624_v2  ;;  %v756_v7 = vsel %vm605_vm1, %v735_v3, 0.0  ;;  %v700_v45 = vadd.f32 %v699_v56, %v698_v4 }
  0x52   : > { %v629_v42 = vsel %vm605_vm1, %v1392_v12, 0.0  ;;  %v686_v20 = vmul.f32 %v486_v5, %v486_v5  ;;  %v755_v31 = vadd.f32 %v754_v24, %v753_v11  ;;  %v703_v28 = vsel %vm605_vm1, %v684_v36, 0.0 }
  0x53   : > { %v494_v0 = vsel %vm354_vm0, %v461_v23, 0.0  ;;  %v628_v37 = vadd.f32 %v627_v33, %v626_v53  ;;  %v758_v38 = vsel %vm605_vm1, %v1349_v44, 0.0  ;;  %v702_v57 = vadd.f32 %v701_v40, %v700_v45 }
  0x54   : > { %v631_v29 = vsel %vm605_vm1, %v493_v18, 0.0  ;;  %v687_v30 = vmul.f32 %v487_v21, %v487_v21  ;;  %v757_v3 = vadd.f32 %v756_v7, %v755_v31  ;;  %v705_v62 = vsel %vm605_vm1, %v685_v6, 0.0 }
  0x55   : > { %v495_v5 = vsel %vm355_vm8, %v463_v39, 0.0  ;;  %v630_v32 = vadd.f32 %v629_v42, %v628_v37  ;;  %v760_v13 = vsel %vm605_vm1, %v1353_v8, 0.0  ;;  %v704_v58 = vadd.f32 %v703_v28, %v702_v57 }
  0x56   : > { %v633_v23 = vsel %vm605_vm1, %v494_v0, 0.0  ;;  %v688_v49 = vmul.f32 %v488_v16, %v488_v16  ;;  %v759_v52 = vadd.f32 %v758_v38, %v757_v3  ;;  %v707_v44 = vsel %vm605_vm1, %v686_v20, 0.0 }
  0x57   : > { %v740_v21 = vmul.f32 %v1268_v41, %v1268_v41  ;;  %v632_v34 = vadd.f32 %v631_v29, %v630_v32  ;;  %v762_v50 = vsel %vm605_vm1, %v1356_v10, 0.0  ;;  %v706_v1 = vadd.f32 %v705_v62, %v704_v58  ;;  %v679_v58 = vld [vmem:[#allocation3] sm:$0xf] }
  0x58   : > { %v635_v22 = vsel %vm605_vm1, %v495_v5, 0.0  ;;  %v689_v8 = vmul.f32 %v1370_v48, %v1370_v48  ;;  %v761_v39 = vadd.f32 %v760_v13, %v759_v52  ;;  %v709_v51 = vsel %vm605_vm1, %v687_v30, 0.0  ;;  %v604_v30 = vld [vmem:[#allocation2] sm:$0xf] }
  0x59   : > { %v741_v16 = vmul.f32 %v1272_v43, %v1272_v43  ;;  %v634_v17 = vadd.f32 %v633_v23, %v632_v34  ;;  %v764_v41 = vsel %vm605_vm1, %v1362_v9, 0.0  ;;  %v708_v46 = vadd.f32 %v707_v44, %v706_v1 }
  0x5a   : > { %v690_v10 = vmul.f32 %v1374_v26, %v1374_v26  ;;  %v763_v27 = vadd.f32 %v762_v50, %v761_v39  ;;  %v711_v25 = vsel %vm605_vm1, %v688_v49, 0.0  ;;  %v742_v48 = vmul.f32 %v1277_v47, %v1277_v47  ;;  %v794_v39 = vld [vmem:[%s1491_s2] sm:$0xf] (!%p937_p8) }
  0x5b   : > { %v636_v35 = vadd.f32 %v635_v22, %v634_v17  ;;  %v766_v14 = vsel %vm605_vm1, %v740_v21, 0.0  ;;  %v710_v60 = vadd.f32 %v709_v51, %v708_v46  ;;  %v691_v43 = vmul.f32 %v1386_v19, %v1386_v19  ;;  %v799_v17 = vld [vmem:[%s1492_s3] sm:$0xf] (!%p937_p8) }
  0x5c   : > { %v765_v15 = vadd.f32 %v764_v41, %v763_v27  ;;  %v713_v9 = vsel %vm605_vm1, %v689_v8, 0.0  ;;  %v743_v36 = vmul.f32 %v1281_v59, %v1281_v59  ;;  %v768_v26 = vsel %vm605_vm1, %v741_v16, 0.0 }
  0x5d   : > { %637 = vadd.xlane.f32.xlu1 %v636_v35  ;;  %v712_v54 = vadd.f32 %v711_v25, %v710_v60  ;;  %v692_v47 = vmul.f32 %v1392_v12, %v1392_v12  ;;  %v715_v61 = vsel %vm605_vm1, %v690_v10, 0.0  ;;  %v744_v2 = vmul.f32 %v1287_v63, %v1287_v63 }
  0x5e   : > { %v767_v55 = vadd.f32 %v766_v14, %v765_v15  ;;  %v770_v19 = vsel %vm605_vm1, %v742_v48, 0.0  ;;  %v693_v4 = vmul.f32 %v493_v18, %v493_v18  ;;  %v717_v59 = vsel %vm605_vm1, %v691_v43, 0.0 }
  0x5f   : > { %v714_v24 = vadd.f32 %v713_v9, %v712_v54  ;;  %v772_v33 = vsel %vm605_vm1, %v743_v36, 0.0  ;;  %v694_v11 = vmul.f32 %v494_v0, %v494_v0  ;;  %v719_v12 = vsel %vm605_vm1, %v692_v47, 0.0 }
  0x60   : > { %v769_v56 = vadd.f32 %v768_v26, %v767_v55  ;;  %v774_v53 = vsel %vm605_vm1, %v744_v2, 0.0  ;;  %v695_v45 = vmul.f32 %v495_v5, %v495_v5  ;;  %v721_v63 = vsel %vm605_vm1, %v693_v4, 0.0 }
  0x61   : > { %v716_v6 = vadd.f32 %v715_v61, %v714_v24  ;;  %v723_v18 = vsel %vm605_vm1, %v694_v11, 0.0  ;;  %vm677_vm3 = vcmask 3072  }
  0x62   : > { %v771_v40 = vadd.f32 %v770_v19, %v769_v56  ;;  %v725_v37 = vsel %vm605_vm1, %v695_v45, 0.0 }
  0x63   : > { %v718_v7 = vadd.f32 %v717_v59, %v716_v6 }
  0x64   : > { %v773_v42 = vadd.f32 %v772_v33, %v771_v40 }
  0x65   : > { %v720_v20 = vadd.f32 %v719_v12, %v718_v7 }
  0x66   : > { %v775_v31 = vadd.f32 %v774_v53, %v773_v42 }
  0x67   : > { %v722_v28 = vadd.f32 %v721_v63, %v720_v20 }
  0x68   : > { %776 = vadd.xlane.f32.xlu0 %v775_v31 }
  0x69   : > { %v724_v38 = vadd.f32 %v723_v18, %v722_v28 }
  0x6b   : > { %v726_v0 = vadd.f32 %v725_v37, %v724_v38 }
  0x6d   : > { %727 = vadd.xlane.f32.xlu1 %v726_v0 }
  0xd8   : > { %v671_v57 = vpop.xlane.xlu0 %670 }
  0xd9   : > { %v673_v29 = vrot.slane %v671_v57, 6 }
  0xea   : > { %v638_v3 = vpop.xlane.xlu1 %637 }
  0xeb   : > { %v675_v62 = vsel %vm605_vm1, %v638_v3, %v673_v29 }
  0xec   : > { %v676_v5 = vadd.f32 %v675_v62, %v604_v30 }
  0xee   : > { %678 = vst.msk [vmem:[#allocation2] sm:$0xf] %vm677_vm3, %v676_v5 }
  0xf5   : > { %v777_v32 = vpop.xlane.xlu0 %776  ;;  %v788_v44 = vld [vmem:[#allocation2] sm:$0xf] (!%p937_p8) }
  0xf6   : > { %v779_v13 = vrot.slane %v777_v32, 6  ;;  %v789_v34 = vmul.f32 (!%p937_p8), 0.00024414063, %v788_v44 }
  0xf8   : > { %787 = sbr.rel (%p937_p8) target bundleno = 286 (0x11e), region = 44  ;;  %v792_v1 = vmul.f32 (!%p937_p8), %v789_v34, %v789_v34 }
  0xfa   : > { %v728_v23 = vpop.xlane.xlu1 %727 }
  0xfb   : > { %v781_v49 = vsel %vm605_vm1, %v728_v23, %v779_v13 }
  0xfc   : > { %v782_v52 = vadd.f32 %v781_v49, %v679_v58 }
  0xfe   : > { %783 = vst.msk [vmem:[#allocation3] sm:$0xf] %vm677_vm3, %v782_v52 }
 0x105   : > { %v790_v21 = vld [vmem:[#allocation3] sm:$0xf] }
 0x106   : > { %v791_v50 = vmul.f32 0.00024414063, %v790_v21 }
 0x108   : > { %v793_v22 = vsub.f32 %v791_v50, %v792_v1 }
 0x10a   : > { %v795_v8 = vadd.f32 1e-05, %v793_v22 }
 0x10c   : > { %990 = vrsqrt.f32 %v795_v8 }
 0x116   : > { %v991_v51 = vpop.eup %990 }
 0x117   : > { %v797_v16 = vmul.f32 %v991_v51, %v794_v39 }
 0x119   : > { %798 = vst.msk [vmem:[%s1100_s6] sm:$0xf] %vm677_vm3, %v797_v16  ;;  %v800_v41 = vmul.f32 %v797_v16, %v789_v34 }
 0x11b   : > { %v801_v46 = vsub.f32 %v799_v17, %v800_v41 }
 0x11d   : > { %802 = vst.msk [vmem:[%s1105_s10] sm:$0xf] %vm677_vm3, %v801_v46 }
 0x11e PF: > { %s16_s22 = sadd.s32 1, %s1030_s22   ;;  %s1497_s18 = smov %s1022_s20 }
 0x11f   : > { %p13_p9 = scmp.ge.s32.totalorder %s16_s22, 6   ;;  %s1498_s19 = smov %s1026_s21 }
 0x120   : > { %s1499_s20 = smov %s1502_s23  ;;  %s1500_s21 = smov %s1506_s24 }
 0x121   :  { %15 = sbr.rel (!%p13_p9) target bundleno = 3 (0x3), region = 89 }

// kernel: out_conv_forward.6
= control target key start
LH: loop header
LB: loop body
LE: loop exit
PB: predicated region body
PF: predicated region fallthrough
CT: control target
= control target key end

     0   :  { %s4502_s21 = smov 0   ;;  %s4504_s22 = smov 0   ;;  %s5198_s0 = inlined_call_operand.vmem [shape: f32[2,2,4096], index: 0, kind: input, shape index: {}, may-alias: {0,2,4}]   ;;  %s5199_s1 = inlined_call_operand.vmem [shape: f32[2,2,4096], index: 1, kind: input, shape index: {}, may-alias: {1,3,5}]   ;;  %s5200_s2 = inlined_call_operand.vmem [shape: f32[2,2,4096], index: 2, kind: input, shape index: {}, may-alias: {0,2,4}]   ;;  %s5201_s3 = inlined_call_operand.vmem [shape: f32[2,2,4096], index: 3, kind: input, shape index: {}, may-alias: {1,3,5}]   ;;  %s5202_s4 = inlined_call_operand.vmem [shape: f32[2,2,4096], index: 4, kind: input, shape index: {}, may-alias: {0,2,4}]   ;;  %s5203_s5 = inlined_call_operand.vmem [shape: f32[2,2,4096], index: 5, kind: input, shape index: {}, may-alias: {1,3,5}]   ;;  %s5204_s6 = inlined_call_operand.vmem [shape: f32[27,2,4], index: 6, kind: input, shape index: {}]   ;;  %s5205_s7 = inlined_call_operand.vmem [shape: f32[2,4,1], index: 7, kind: input, shape index: {}]   ;;  %s5206_s8 = inlined_call_operand.vmem [shape: f32[2,4,1], index: 8, kind: input, shape index: {}]   ;;  %s5207_s9 = inlined_call_operand.vmem [shape: f32[2,1], index: 9, kind: input, shape index: {}]   ;;  %s5208_s10 = inlined_call_operand.vmem [shape: f32[2,2,4096], index: 10, kind: output, shape index: {0}]   ;;  %s5209_s11 = inlined_call_operand.vmem [shape: f32[2,16,2,1], index: 11, kind: output, shape index: {1}]   ;;  %s5210_s12 = inlined_call_operand.vmem [shape: f32[2,16,2,1], index: 12, kind: output, shape index: {2}]  }
   0x1   :  { %5214 = sst [smem:[#allocation7_spill]] %s5200_s2  ;;  %s4506_s23 = smov 0  }
   0x2   :  { %5215 = sst [smem:[#allocation8_spill]] %s5205_s7  ;;  %s4508_s24 = smov 0  }
   0x3   :  { %5216 = sst [smem:[#allocation9_spill]] %s5206_s8  ;;  %s4510_s25 = smov 0  }
   0x4   :  { %5217 = sst [smem:[#allocation10_spill]] %s5210_s12 }
   0x5 LB: > { %5218 = sst [smem:[#allocation2_spill]] %s4413_s23  ;;  %s32_s26 = sadd.s32 1, %s4413_s23  ;;  %s4421_s25 = sphi %s4510_s25, %s23_s25   ;;  %s4417_s24 = sphi %s4508_s24, %s5241_s24   ;;  %s4413_s23 = sphi %s4506_s23, %s5240_s23   ;;  %s4409_s22 = sphi %s4504_s22, %s5239_s22   ;;  %s4405_s21 = sphi %s4502_s21, %s5238_s21  }
   0x6   : > { %5219 = sst [smem:[#allocation3_spill]] %s4417_s24  ;;  %s35_s27 = sadd.s32 1, %s4417_s24 }
   0x7   : > { %5220 = sst [smem:[#allocation4_spill]] %s4421_s25  ;;  %p33_p0 = scmp.ge.s32.totalorder %s32_s26, 16 }
   0x8   : > { %p4070_p1 = scmp.ge.s32.totalorder %s4421_s25, 1  ;;  %p607_p2 = scmp.lt.s32.totalorder %s4421_s25, 33 }
   0x9   : > { %s5243_s26 = smov (%p33_p0, %s32_s26), 0  ;;  %s5245_s27 = smov (!%p33_p0, %s35_s27), %s4417_s24 }
   0xa   : > { %5221 = sst [smem:[#allocation5_spill]] %s5243_s26  ;;  %p608_p3 = pnand %p4070_p1, %p607_p2 }
   0xb   : > { %p37_p4 = scmp.ge.s32.totalorder %s5245_s27, 2  ;;  %p760_p5 = scmp.lt.s32.totalorder (!%p608_p3), %s4409_s22, 1  ;;  %v4423_v0 = vmov (!%p608_p3), 0   ;;  %v904_v3 = vlaneseq (!%p608_p3)  ;;  %v4424_v4 = vmov (!%p608_p3), 269488144   ;;  %vm1008_vm0 = vcmask (!%p608_p3), 1041408  }
   0xc   : > { %611 = sbr.rel (%p608_p3) target bundleno = 908 (0x38c), region = 60  ;;  %4382 = vset.pattern.permute.xlu0 (!%p608_p3), %v4423_v0  ;;  %s5223_s7 = sld [smem:[#allocation8_spill]] (!%p608_p3)  ;;  %v939_v5 = vunpack.c.l.s4 (!%p608_p3), %v4424_v4  ;;  %v4425_v6 = vmov (!%p608_p3), 842150450   ;;  %v4426_v13 = vmov (!%p608_p3), 1983009808  }
   0xd   : > { %s5247_s27 = smov (%p37_p4, %s5245_s27), 0  ;;  %s5224_s8 = sld [smem:[#allocation9_spill]] (!%p608_p3)  ;;  %v965_v7 = vunpack.c.l.s4 (!%p608_p3), %v4425_v6  ;;  %v942_v9 = vshrl.u32 (!%p608_p3), %v904_v3, 7  ;;  %v987_v14 = vunpack.c.l.s4 (!%p608_p3), %v4426_v13  ;;  %vm1027_vm7 = vcmask (!%p608_p3), 138240  }
   0xe   : > { %5222 = sst [smem:[#allocation6_spill]] %s5247_s27  ;;  %s4544_s17 = sadd.s32 (!%p608_p3), 1, %s4405_s21  ;;  %v940_v8 = vunpack.c.0.s8 (!%p608_p3), %v939_v5  ;;  %vm1060_vm8 = vcmask (!%p608_p3), 1043456   ;;  %vm1424_vm9 = vcmask (!%p608_p3), 908288   ;;  %vm1056_vm10 = vcmask (!%p608_p3), 31744  }
   0xf   : > { %p794_p6 = scmp.lt.s32.totalorder (!%p608_p3), %s4405_s21, 15  ;;  %s4548_s18 = sadd.s32 (!%p608_p3), 4294967295, %s4405_s21  ;;  %v966_v10 = vunpack.c.0.s8 (!%p608_p3), %v965_v7  ;;  %v988_v24 = vunpack.c.0.s8 (!%p608_p3), %v987_v14  ;;  %vm1513_vm11 = vcmask (!%p608_p3), 900096   ;;  %vm1610_vm14 = vcmask (!%p608_p3), 785408  }
  0x10   : > { %p831_p7 = scmp.lt.s32.totalorder (!%p608_p3), %s4544_s17, 15  ;;  %p755_p8 = scmp.lt.s32.totalorder (!%p608_p3), %s4548_s18, 15  ;;  %v943_v11 = vsub.s32 (!%p608_p3), %v940_v8, %v942_v9 }
  0x11   : > { %p4087_p9 = scmp.gt.s32.totalorder (!%p608_p3), %s4405_s21, 0  ;;  %p4103_p10 = scmp.gt.s32.totalorder (!%p608_p3), %s4544_s17, 0  ;;  %v969_v12 = vsub.s32 (!%p608_p3), %v966_v10, %v942_v9  ;;  %v991_v38 = vsub.s32 (!%p608_p3), %v988_v24, %v942_v9 }
  0x12   : > { %p4071_p11 = scmp.gt.s32.totalorder (!%p608_p3), %s4548_s18, 0  ;;  %s5225_s2 = sld [smem:[#allocation7_spill]] (!%p608_p3) }
  0x13   : > { %s5249_s22 = smov (!%p760_p5, %s4409_s22), 1  ;;  %p1012_p1 = scmp.ge.s32.totalorder %s4548_s18, 0 }
  0x14   : > { %s4119_s28 = sshll.u32 %s5249_s22, 2  ;;  %s4562_s15 = sshll.u32 %s5249_s22, 5 }
  0x15   : > { %s873_s13 = scalar_lea.vmem %s5223_s7, %s4119_s28  ;;  %s877_s16 = scalar_lea.vmem %s5224_s8, %s4119_s28 }
  0x16   : > { %v931_v1 = vld [vmem:[%s873_s13] sm:$0xf]  ;;  %s4553_s19 = scalar_select %p794_p6, %s4405_s21, 15 }
  0x17   : > { %936 = vperm.xlu0 %4382, %v931_v1   ;;  %v932_v2 = vld [vmem:[%s877_s16] sm:$0xf]  ;;  %s832_s20 = scalar_select %p831_p7, %s4544_s17, 15 }
  0x18   : > { %s756_s28 = scalar_select %p755_p8, %s4548_s18, 15 }
  0x19   : > { %s4269_s29 = scalar_select %p4087_p9, %s4553_s19, 0 }
  0x1a   : > { %s5251_s20 = smov (!%p4103_p10, %s832_s20), 0  ;;  %s5253_s28 = smov (!%p4071_p11, %s756_s28), 0 }
  0x1b   : > { %949 = vperm.xlu0 %4382, %v932_v2   ;;  %s4092_s30 = sshll.u32 %s4269_s29, 1  ;;  %s4108_s13 = sshll.u32 %s5251_s20, 1 }
  0x1c   : > { %p801_p12 = scmp.lt.s32.totalorder %s4092_s30, 31  ;;  %s4076_s14 = sshll.u32 %s5253_s28, 1 }
  0x1d   : > { %p838_p13 = scmp.lt.s32.totalorder %s4108_s13, 31  ;;  %p762_p0 = scmp.lt.s32.totalorder %s4076_s14, 31 }
  0x1e   : > { %s5255_s30 = smov (!%p801_p12, %s4092_s30), 31  ;;  %p1013_p2 = scmp.lt.s32.totalorder %s4548_s18, 16 }
  0x1f   : > { %s5257_s13 = smov (!%p838_p13, %s4108_s13), 31  ;;  %s5259_s14 = smov (!%p762_p0, %s4076_s14), 31 }
  0x20   : > { %s804_s16 = sadd.s32 %s4562_s15, %s5255_s30  ;;  %s841_s20 = sadd.s32 %s4562_s15, %s5257_s13 }
  0x21   : > { %s765_s28 = sadd.s32 %s4562_s15, %s5259_s14  ;;  %s4094_s29 = sshll.u32 %s804_s16, 1 }
  0x22   : > { %s4110_s7 = sshll.u32 %s841_s20, 1  ;;  %s4078_s8 = sshll.u32 %s765_s28, 1 }
  0x23   : > { %s806_s24 = scalar_lea.vmem %s5225_s2, %s4094_s29  ;;  %s824_s14 = scalar_lea.vmem %s5201_s3, %s4094_s29 }
  0x24   : > { %s843_s25 = scalar_lea.vmem %s5202_s4, %s4110_s7  ;;  %s767_s12 = scalar_lea.vmem %s5198_s0, %s4078_s8  ;;  %v1889_v20 = vld [vmem:[%s806_s24] sm:$0xf] }
  0x25   : > { %s787_s2 = scalar_lea.vmem %s5199_s1, %s4078_s8  ;;  %p2814_p3 = scmp.ge.s32.totalorder %s4544_s17, 0  ;;  %v933_v16 = vld [vmem:[%s767_s12] sm:$0xf] }
  0x26   : > { %p2815_p4 = scmp.lt.s32.totalorder %s4544_s17, 16  ;;  %s863_s23 = scalar_lea.vmem %s5203_s5, %s4110_s7  ;;  %v963_v18 = vld [vmem:[%s787_s2] sm:$0xf] }
  0x27   : > { %p4594_p5 = pnand %p1013_p2, %p1012_p1  ;;  %v1895_v21 = vld [vmem:[%s824_s14] sm:$0xf]  ;;  %s4428_s17 = smov 111  }
  0x28   : > { %v2776_v22 = vld [vmem:[%s843_s25] sm:$0xf]  ;;  %p4602_p6 = pnand %p2815_p4, %p2814_p3  ;;  %s4427_s25 = smov 17  }
  0x29   : > { %v2782_v23 = vld [vmem:[%s863_s23] sm:$0xf]  ;;  %s4128_s7 = scalar_select %p4594_p5, 0, 1 }
  0x2a   : > { %s4200_s2 = scalar_select %p4602_p6, 0, 1 }
  0x2b   : > { %s4610_s12 = scvt.s32.f32 %s4128_s7  ;;  %s4429_s18 = smov 110  }
  0x2c   : > { %s4613_s24 = scvt.s32.f32 %s4200_s2  ;;  %s4430_s14 = smov 96  }
  0x2d   : > { %v1018_v50 = vstv %s4610_s12  ;;  %s4432_s16 = smov 95   ;;  %s4433_s20 = smov 127  }
  0x2e   : > { %v2820_v1 = vstv %s4613_s24  ;;  %s4434_s28 = smov 94   ;;  %s4435_s26 = smov 126  }
  0x2f   : > { %s4436_s27 = smov 112   ;;  %s4121_s23 = sshll.u32 %s4405_s21, 1 }
  0x30   : > { %p881_p7 = scmp.lt.s32.totalorder %s4121_s23, 31  ;;  %s4124_s21 = sshll.u32 %s5249_s22, 4 }
  0x32   : > { %s5261_s23 = smov (!%p881_p7, %s4121_s23), 31 }
  0x33   : > { %s884_s13 = sadd.s32 %s4562_s15, %s5261_s23  ;;  %s893_s15 = sadd.s32 %s4124_s21, %s4553_s19 }
  0x34   : > { %s4123_s8 = sshll.u32 %s884_s13, 1  ;;  %s4125_s24 = sshll.u32 %s893_s15, 1 }
  0x35   : > { %s886_s12 = scalar_lea.vmem %s5208_s10, %s4123_s8 }
  0x96   : > { %v937_v15 = vpop.permute.xlu0 %936 }
  0x97   : > { %v944_v17 = vrot.slane %v937_v15, %v943_v11  ;;  %v970_v19 = vrot.slane %v937_v15, %v969_v12 }
  0x99   : > { %v946_v25 = vmul.f32 %v944_v17, %v933_v16  ;;  %v972_v26 = vmul.f32 %v970_v19, %v963_v18  ;;  %v1890_v28 = vmul.f32 %v1889_v20, %v944_v17  ;;  %v1896_v29 = vmul.f32 %v1895_v21, %v970_v19 }
  0x9a   : > { %v950_v27 = vpop.permute.xlu0 %949  ;;  %v2777_v32 = vmul.f32 %v2776_v22, %v944_v17  ;;  %v2783_v33 = vmul.f32 %v2782_v23, %v970_v19  ;;  %v4431_v21 = vmov 0.0  }
  0x9b   : > { %v957_v30 = vrot.slane %v950_v27, %v943_v11  ;;  %v979_v31 = vrot.slane %v950_v27, %v969_v12  ;;  %2389 = vmatprep.mubr.f32.mxu0 %v4431_v21  ;;  %1129 = vmatprep.mubr.f32.mxu1 %v4431_v21 }
  0x9d   : > { %v959_v34 = vadd.f32 %v957_v30, %v946_v25  ;;  %v981_v35 = vadd.f32 %v979_v31, %v972_v26  ;;  %v1891_v36 = vadd.f32 %v1890_v28, %v957_v30  ;;  %v1897_v37 = vadd.f32 %v1896_v29, %v979_v31 }
  0x9e   : > { %v2778_v39 = vadd.f32 %v2777_v32, %v957_v30  ;;  %v2784_v40 = vadd.f32 %v2783_v33, %v979_v31 }
  0x9f   : > { %vm960_vm1 = vcmp.ge.f32.partialorder %v959_v34, 0.0  ;;  %v961_v41 = vmul.f32 0.01, %v959_v34  ;;  %vm982_vm2 = vcmp.ge.f32.partialorder %v981_v35, 0.0  ;;  %v983_v42 = vmul.f32 0.01, %v981_v35 }
  0xa0   : > { %v1899_v43 = vmul.f32 0.01, %v1897_v37  ;;  %vm2779_vm3 = vcmp.ge.f32.partialorder %v2778_v39, 0.0  ;;  %v2780_v44 = vmul.f32 0.01, %v2778_v39  ;;  %vm2785_vm4 = vcmp.ge.f32.partialorder %v2784_v40, 0.0 }
  0xa1   : > { %v984_v45 = vsel %vm982_vm2, %v981_v35, %v983_v42  ;;  %v2786_v46 = vmul.f32 0.01, %v2784_v40  ;;  %vm1892_vm5 = vcmp.ge.f32.partialorder %v1891_v36, 0.0  ;;  %v1893_v47 = vmul.f32 0.01, %v1891_v36 }
  0xa2   : > { %v997_v48 = vcombine.low %v984_v45, %v984_v45  ;;  %vm1898_vm6 = vcmp.ge.f32.partialorder %v1897_v37, 0.0  ;;  %v962_v49 = vsel %vm960_vm1, %v959_v34, %v961_v41  ;;  %v2781_v54 = vsel %vm2779_vm3, %v2778_v39, %v2780_v44 }
  0xa3   : > { %v2787_v51 = vsel %vm2785_vm4, %v2784_v40, %v2786_v46  ;;  %v1894_v52 = vsel %vm1892_vm5, %v1891_v36, %v1893_v47  ;;  %v1900_v53 = vsel %vm1898_vm6, %v1897_v37, %v1899_v43  ;;  %v992_v57 = vrot.slane %v962_v49, %v991_v38 }
  0xa4   : > { %v2800_v55 = vcombine.low %v2787_v51, %v2787_v51  ;;  %v1913_v56 = vcombine.low %v1900_v53, %v1900_v53  ;;  %v1004_v58 = vrot.slane %v997_v48, %v991_v38  ;;  %v1908_v59 = vrot.slane %v1894_v52, %v991_v38 }
  0xa5   : > { %v2795_v62 = vrot.slane %v2781_v54, %v991_v38  ;;  %v993_v8 = vcombine.high %v992_v57, %v992_v57  ;;  %v905_v39 = vand.u32 127, %v904_v3  ;;  %v4180_v3 = vld [vmem:[%s5204_s6 + $0x1a] sm:$0x3]  ;;  %vm1709_vm2 = vcmask 777216  }
  0xa6   : > { %v1920_v60 = vrot.slane %v1913_v56, %v991_v38  ;;  %v1009_v61 = vsel %vm1008_vm0, %v992_v57, %v1004_v58  ;;  %v2807_v63 = vrot.slane %v2800_v55, %v991_v38  ;;  %v1005_v6 = vcombine.high %v1004_v58, %v1004_v58 }
  0xa7   : > { %v1019_v0 = vmul.f32 %v1018_v50, %v1009_v61  ;;  %v1909_v7 = vcombine.high %v1908_v59, %v1908_v59  ;;  %v2796_v13 = vcombine.high %v2795_v62, %v2795_v62  ;;  %v906_v42 = vadd.s32 128, %v905_v39 }
  0xa8   : > { %v1924_v2 = vsel %vm1008_vm0, %v1908_v59, %v1920_v60  ;;  %v1921_v4 = vcombine.high %v1920_v60, %v1920_v60  ;;  %v2811_v5 = vsel %vm1008_vm0, %v2795_v62, %v2807_v63  ;;  %v1010_v11 = vsel %vm1008_vm0, %v993_v8, %v1005_v6 }
  0xa9   : > { %1928 = vrot.lane.b32.xlu1 %v1924_v2, %s4427_s25  ;;  %1023 = vrot.lane.b32.xlu0 %v1019_v0, %s4427_s25  ;;  %v2821_v9 = vmul.f32 %v2820_v1, %v2811_v5  ;;  %v2808_v12 = vcombine.high %v2807_v63, %v2807_v63  ;;  %v1020_v14 = vmul.f32 %v1018_v50, %v1010_v11  ;;  %v911_v45 = vand.u32 15, %v905_v39  ;;  %v4184_v0 = vld [vmem:[%s5204_s6 + $0x1c] sm:$0x3]  ;;  %v3673_v2 = vld [vmem:[%s5207_s9] sm:$0x3] }
  0xaa   : > { %v1925_v10 = vsel %vm1008_vm0, %v1909_v7, %v1921_v4  ;;  %v918_v46 = vand.u32 15, %v906_v42  ;;  %vm1798_vm3 = vcmask 769024   ;;  %vm1053_vm4 = vcmask 1039360  }
  0xab   : > { %v2812_v15 = vsel %vm1008_vm0, %v2796_v13, %v2808_v12  ;;  %vm4779_vm12 = vcmp.eq.s32.totalorder %v911_v45, 15  ;;  %vm4811_vm1 = vcmp.eq.s32.totalorder %v911_v45, 0  ;;  %vm1228_vm5 = vcmask 1031168  }
  0xac   : > { %v2822_v16 = vmul.f32 %v2820_v1, %v2812_v15  ;;  %vm4783_vm13 = vcmp.eq.s32.totalorder %v918_v46, 15  ;;  %vm4805_vm15 = vcmp.eq.s32.totalorder %v918_v46, 0  ;;  %vm1325_vm6 = vcmask 916480  }
  0xad   : > { %1930 = vrot.lane.b32.xlu1 %v1925_v10, %s4427_s25  ;;  %2825 = vrot.lane.b32.xlu0 %v2821_v9, %s4427_s25  ;;  %v4188_v9 = vld [vmem:[%s5204_s6 + $0x1e] sm:$0x3] }
  0xb1   : > { %1025 = vrot.lane.b32.xlu1 %v1020_v14, %s4427_s25 }
  0xb5   : > { %2827 = vrot.lane.b32.xlu1 %v2822_v16, %s4427_s25 }
 0x11b   : > { %v1929_v17 = vpop.permute.xlu1 %1928  ;;  %v1024_v23 = vpop.permute.xlu0 %1023 }
 0x11c   : > { %v4623_v18 = vsel %vm1027_vm7, 0.0, %v1929_v17  ;;  %v4646_v24 = vsel %vm1027_vm7, 0.0, %v1024_v23 }
 0x11d   : > { %2310 = vrot.lane.b32.xlu0 %v4623_v18, %s4428_s17  ;;  %2398 = vrot.lane.b32.xlu1 %v4623_v18, %s4429_s18 }
 0x11f   : > { %v1931_v19 = vpop.permute.xlu1 %1930  ;;  %v2826_v25 = vpop.permute.xlu0 %2825 }
 0x120   : > { %v4630_v20 = vsel %vm1027_vm7, %v1929_v17, %v1931_v19  ;;  %v4639_v22 = vsel %vm1027_vm7, %v1931_v19, 0.0  ;;  %v4677_v26 = vsel %vm1027_vm7, 0.0, %v2826_v25  ;;  %v4192_v19 = vld [vmem:[%s5204_s6 + $0x20] sm:$0x3] }
 0x121   : > { %2312 = vrot.lane.b32.xlu0 %v4630_v20, %s4428_s17  ;;  %2494 = vrot.lane.b32.xlu1 %v4623_v18, %s4430_s14 }
 0x123   : > { %v1026_v27 = vpop.permute.xlu1 %1025 }
 0x124   : > { %v4684_v28 = vsel %vm1027_vm7, %v1024_v23, %v1026_v27  ;;  %v1033_v29 = vsel %vm1027_vm7, %v1026_v27, 0.0 }
 0x125   : > { %2402 = vrot.lane.b32.xlu0 %v4639_v22, %s4429_s18  ;;  %2592 = vrot.lane.b32.xlu1 %v4623_v18, %s4432_s16 }
 0x127   : > { %v2828_v30 = vpop.permute.xlu1 %2827 }
 0x128   : > { %v4719_v31 = vsel %vm1027_vm7, %v2826_v25, %v2828_v30  ;;  %v2834_v32 = vsel %vm1027_vm7, %v2828_v30, 0.0  ;;  %v4129_v30 = vld [vmem:[%s5204_s6 + $0x2] sm:$0x3]  ;;  %vm3698_vm7 = vcmask 1024  }
 0x129   : > { %1047 = vrot.lane.b32.xlu0 %v4646_v24, %s4433_s20  ;;  %2680 = vrot.lane.b32.xlu1 %v4623_v18, %s4434_s28 }
 0x12d   : > { %2498 = vrot.lane.b32.xlu0 %v4639_v22, %s4430_s14  ;;  %2314 = vrot.lane.b32.xlu1 %v4639_v22, %s4428_s17 }
 0x131   : > { %1222 = vrot.lane.b32.xlu0 %v4646_v24, %s4435_s26  ;;  %2400 = vrot.lane.b32.xlu1 %v4630_v20, %s4429_s18 }
 0x135   : > { %2596 = vrot.lane.b32.xlu0 %v4639_v22, %s4432_s16  ;;  %2496 = vrot.lane.b32.xlu1 %v4630_v20, %s4430_s14 }
 0x139   : > { %2682 = vrot.lane.b32.xlu0 %v4630_v20, %s4434_s28  ;;  %2594 = vrot.lane.b32.xlu1 %v4630_v20, %s4432_s16 }
 0x13d   : > { %1319 = vrot.lane.b32.xlu0 %v4646_v24, %s4436_s27  ;;  %2684 = vrot.lane.b32.xlu1 %v4639_v22, %s4434_s28 }
 0x141   : > { %1418 = vrot.lane.b32.xlu0 %v4646_v24, %s4428_s17  ;;  %1507 = vrot.lane.b32.xlu1 %v4646_v24, %s4429_s18 }
 0x145   : > { %2925 = vrot.lane.b32.xlu0 %v4677_v26, %s4433_s20  ;;  %1604 = vrot.lane.b32.xlu1 %v4646_v24, %s4430_s14 }
 0x149   : > { %1051 = vrot.lane.b32.xlu0 %v1033_v29, %s4433_s20  ;;  %1049 = vrot.lane.b32.xlu1 %v4684_v28, %s4433_s20 }
 0x14d   : > { %3013 = vrot.lane.b32.xlu0 %v4677_v26, %s4435_s26  ;;  %3109 = vrot.lane.b32.xlu1 %v4677_v26, %s4436_s27 }
 0x151   : > { %1703 = vrot.lane.b32.xlu0 %v4646_v24, %s4432_s16  ;;  %1792 = vrot.lane.b32.xlu1 %v4646_v24, %s4434_s28 }
 0x155   : > { %1224 = vrot.lane.b32.xlu0 %v4684_v28, %s4435_s26  ;;  %1226 = vrot.lane.b32.xlu1 %v1033_v29, %s4435_s26 }
 0x159   : > { %3207 = vrot.lane.b32.xlu0 %v4677_v26, %s4428_s17  ;;  %3295 = vrot.lane.b32.xlu1 %v4677_v26, %s4429_s18 }
 0x15d   : > { %1321 = vrot.lane.b32.xlu0 %v4684_v28, %s4436_s27  ;;  %1323 = vrot.lane.b32.xlu1 %v1033_v29, %s4436_s27 }
 0x161   : > { %2030 = vrot.lane.b32.xlu0 %v4630_v20, %s4433_s20  ;;  %2032 = vrot.lane.b32.xlu1 %v4639_v22, %s4433_s20 }
 0x165   : > { %1420 = vrot.lane.b32.xlu0 %v4684_v28, %s4428_s17  ;;  %1422 = vrot.lane.b32.xlu1 %v1033_v29, %s4428_s17 }
 0x169   : > { %1511 = vrot.lane.b32.xlu0 %v1033_v29, %s4429_s18  ;;  %1509 = vrot.lane.b32.xlu1 %v4684_v28, %s4429_s18 }
 0x16d   : > { %2929 = vrot.lane.b32.xlu1 %v2834_v32, %s4433_s20  ;;  %2927 = vrot.lane.b32.xlu0 %v4719_v31, %s4433_s20 }
 0x171   : > { %1606 = vrot.lane.b32.xlu1 %v4684_v28, %s4430_s14  ;;  %1608 = vrot.lane.b32.xlu0 %v1033_v29, %s4430_s14 }
 0x175   : > { %3015 = vrot.lane.b32.xlu1 %v4719_v31, %s4435_s26  ;;  %3017 = vrot.lane.b32.xlu0 %v2834_v32, %s4435_s26 }
 0x179   : > { %2028 = vrot.lane.b32.xlu1 %v4623_v18, %s4433_s20  ;;  %3391 = vrot.lane.b32.xlu0 %v4677_v26, %s4430_s14  ;;  %s5236_s20 = sld [smem:[#allocation10_spill]] }
 0x17d   : > { %3111 = vrot.lane.b32.xlu1 %v4719_v31, %s4436_s27  ;;  %3113 = vrot.lane.b32.xlu0 %v2834_v32, %s4436_s27 }
 0x181   : > { %1705 = vrot.lane.b32.xlu1 %v4684_v28, %s4432_s16  ;;  %1707 = vrot.lane.b32.xlu0 %v1033_v29, %s4432_s16 }
 0x185   : > { %1794 = vrot.lane.b32.xlu1 %v4684_v28, %s4434_s28  ;;  %1796 = vrot.lane.b32.xlu0 %v1033_v29, %s4434_s28 }
 0x189   : > { %3211 = vrot.lane.b32.xlu1 %v2834_v32, %s4428_s17  ;;  %3209 = vrot.lane.b32.xlu0 %v4719_v31, %s4428_s17 }
 0x18d   : > { %3297 = vrot.lane.b32.xlu1 %v4719_v31, %s4429_s18  ;;  %3299 = vrot.lane.b32.xlu0 %v2834_v32, %s4429_s18  ;;  %s895_s18 = scalar_lea.vmem %s5209_s11, %s4125_s24 }
 0x18f   : > { %v2311_v33 = vpop.permute.xlu0 %2310  ;;  %v2399_v34 = vpop.permute.xlu1 %2398 }
 0x191   : > { %2120 = vrot.lane.b32.xlu1 %v4639_v22, %s4435_s26  ;;  %2118 = vrot.lane.b32.xlu0 %v4630_v20, %s4435_s26 }
 0x193   : > { %v2313_v35 = vpop.permute.xlu0 %2312  ;;  %v2495_v36 = vpop.permute.xlu1 %2494 }
 0x194   : > { %v2316_v50 = vsel %vm1424_vm9, %v2311_v33, %v2313_v35  ;;  %v1041_v33 = vsel %vm4805_vm15, 0.0, %v4684_v28  ;;  %v4196_v28 = vld [vmem:[%s5204_s6 + $0x22] sm:$0x3] }
 0x195   : > { %3395 = vrot.lane.b32.xlu1 %v2834_v32, %s4430_s14  ;;  %3393 = vrot.lane.b32.xlu0 %v4719_v31, %s4430_s14 }
 0x197   : > { %v2403_v37 = vpop.permute.xlu0 %2402  ;;  %v4757_v38 = vpop.permute.xlu1 %2592 }
 0x199   : > { %3489 = vrot.lane.b32.xlu1 %v4677_v26, %s4432_s16  ;;  %2116 = vrot.lane.b32.xlu0 %v4623_v18, %s4435_s26 }
 0x19b   : > { %v4764_v40 = vpop.permute.xlu0 %1047  ;;  %v4766_v41 = vpop.permute.xlu1 %2680 }
 0x19d   : > { %2216 = vrot.lane.b32.xlu1 %v4639_v22, %s4436_s27  ;;  %2214 = vrot.lane.b32.xlu0 %v4630_v20, %s4436_s27 }
 0x19f   : > { %v2499_v43 = vpop.permute.xlu0 %2498  ;;  %v2315_v44 = vpop.permute.xlu1 %2314 }
 0x1a0   : > { %v2317_v47 = vsel %vm1424_vm9, %v2313_v35, %v2315_v44  ;;  %v4201_v44 = vld [vmem:[%s5204_s6 + $0x24] sm:$0x3] }
 0x1a1   : > { %3491 = vrot.lane.b32.xlu1 %v4719_v31, %s4432_s16  ;;  %3493 = vrot.lane.b32.xlu0 %v2834_v32, %s4432_s16 }
 0x1a2   : > { %4181 = vmatprep.subr.msk.mxu0 %vm1060_vm8, %v2317_v47  ;;  %v4136_v47 = vld [vmem:[%s5204_s6 + $0x4] sm:$0x3] }
 0x1a3   : > { %4182 = vmatpush1.msk.msra.mxu0 %vm1060_vm8, %v2316_v50  ;;  %v4790_v51 = vpop.permute.xlu0 %1222  ;;  %v2401_v52 = vpop.permute.xlu1 %2400 }
 0x1a4   : > { %4183 = vmatmul.mubr.msk.f32.vlgmr.msra.gmra.mrb[0].mxu0 %vm1056_vm10, %v4180_v3  ;;  %v2404_v53 = vsel %vm1513_vm11, %v2399_v34, %v2401_v52  ;;  %v2405_v54 = vsel %vm1513_vm11, %v2401_v52, %v2403_v37 }
 0x1a5   : > { %v2408_v55 = vsel %vm4779_vm12, 0.0, %v2404_v53  ;;  %v2409_v56 = vsel %vm4783_vm13, 0.0, %v2405_v54  ;;  %3581 = vrot.lane.b32.xlu1 %v2834_v32, %s4434_s28  ;;  %3579 = vrot.lane.b32.xlu0 %v4719_v31, %s4434_s28  ;;  %v2836_v32 = vsel %vm4805_vm15, 0.0, %v4719_v31  ;;  %v1040_v31 = vsel %vm4811_vm1, 0.0, %v4646_v24 }
 0x1a6   : > { %4185 = vmatprep.subr.msk.mxu0 %vm1060_vm8, %v2409_v56  ;;  %2485 = vmatprep.mubr.f32.mxu0 %v4431_v21  ;;  %v2835_v24 = vsel %vm4811_vm1, 0.0, %v4677_v26 }
 0x1a7   : > { %v2597_v57 = vpop.permute.xlu0 %2596  ;;  %4186 = vmatpush1.msk.msra.mxu0 %vm1060_vm8, %v2408_v55  ;;  %v2497_v58 = vpop.permute.xlu1 %2496 }
 0x1a8   : > { %v2500_v60 = vsel %vm1610_vm14, %v2495_v36, %v2497_v58  ;;  %v2501_v61 = vsel %vm1610_vm14, %v2497_v58, %v2499_v43 }
 0x1a9   : > { %v2505_v63 = vsel %vm4805_vm15, 0.0, %v2501_v61  ;;  %3577 = vrot.lane.b32.xlu1 %v4677_v26, %s4434_s28  ;;  %2212 = vrot.lane.b32.xlu0 %v4623_v18, %s4436_s27  ;;  %v2504_v1 = vsel %vm4811_vm1, 0.0, %v2500_v60  ;;  %s903_s28 = scalar_lea.vmem %s5236_s20, %s4125_s24 }
 0x1aa   : > { %4189 = vmatprep.subr.msk.mxu0 %vm1060_vm8, %v2505_v63 }
 0x1ab   : > { %v2683_v4 = vpop.permute.xlu0 %2682  ;;  %v2595_v5 = vpop.permute.xlu1 %2594 }
 0x1ac   : > { %4187 = vmatmul.mubr.msk.f32.vlgmr.msra.gmra.mrb[0].mxu0 %vm1056_vm10, %v4184_v0  ;;  %v2599_v6 = vsel %vm1709_vm2, %v2595_v5, %v2597_v57  ;;  %v2598_v13 = vsel %vm1709_vm2, %v4757_v38, %v2595_v5  ;;  %v2686_v17 = vsel %vm1798_vm3, %v4766_v41, %v2683_v4  ;;  %v1042_v38 = vld [vmem:[%s5204_s6] sm:$0x3]  ;;  %v4140_v57 = vld [vmem:[%s5204_s6 + $0x6] sm:$0x3]  ;;  %v4144_v5 = vld [vmem:[%s5204_s6 + $0x8] sm:$0x3] }
 0x1ad   : > { %4190 = vmatpush1.msk.msra.mxu0 %vm1060_vm8, %v2504_v1  ;;  %3676 = vperm.xlu0 %4382, %v3673_v2   ;;  %v2690_v25 = vsel %vm4779_vm12, 0.0, %v2686_v17 }
 0x1ae   : > { %4193 = vmatprep.subr.msk.mxu0 %vm1060_vm8, %v2599_v6  ;;  %2581 = vmatprep.mubr.f32.mxu0 %v4431_v21 }
 0x1af   : > { %v4835_v7 = vpop.permute.xlu0 %1319  ;;  %v2685_v8 = vpop.permute.xlu1 %2684 }
 0x1b0   : > { %v2687_v10 = vsel %vm1798_vm3, %v2683_v4, %v2685_v8 }
 0x1b1   : > { %v2691_v14 = vsel %vm4783_vm13, 0.0, %v2687_v10 }
 0x1b3   : > { %v4841_v11 = vpop.permute.xlu0 %1418  ;;  %v4843_v12 = vpop.permute.xlu1 %1507 }
 0x1b4   : > { %4191 = vmatmul.mubr.msk.f32.vlgmr.msra.gmra.mrb[0].mxu0 %vm1056_vm10, %v4188_v9 }
 0x1b5   : > { %4194 = vmatpush1.msk.msra.mxu0 %vm1060_vm8, %v2598_v13  ;;  %2671 = vmatprep.mubr.f32.mxu0 %v4431_v21 }
 0x1b6   : > { %4197 = vmatprep.subr.msk.mxu0 %vm1060_vm8, %v2691_v14 }
 0x1b7   : > { %v4853_v15 = vpop.permute.xlu0 %2925  ;;  %v4855_v16 = vpop.permute.xlu1 %1604 }
 0x1bb   : > { %v1052_v22 = vpop.permute.xlu0 %1051  ;;  %v1050_v23 = vpop.permute.xlu1 %1049 }
 0x1bc   : > { %4195 = vmatmul.mubr.msk.f32.vlgmr.msra.gmra.mrb[0].mxu0 %vm1056_vm10, %v4192_v19  ;;  %v1055_v27 = vsel %vm1053_vm4, %v1050_v23, %v1052_v22  ;;  %v1054_v29 = vsel %vm1053_vm4, %v4764_v40, %v1050_v23  ;;  %v4148_v19 = vld [vmem:[%s5204_s6 + $0xa] sm:$0x3] }
 0x1bd   : > { %4198 = vmatpush1.msk.msra.mxu0 %vm1060_vm8, %v2690_v25  ;;  %4130 = vmatprep.subr.msk.mxu1 %vm1060_vm8, %v1055_v27 }
 0x1be   : > { %4202 = vmatprep.subr.msk.mxu0 %vm1060_vm8, %v2836_v32  ;;  %4131 = vmatpush1.msk.msra.mxu1 %vm1060_vm8, %v1054_v29 }
 0x1bf   : > { %v4881_v34 = vpop.permute.xlu0 %3013  ;;  %4132 = vmatmul.mubr.msk.f32.vlgmr.msra.gmra.mrb[0].mxu1 %vm1056_vm10, %v4129_v30  ;;  %4133 = vmatprep.subr.msk.mxu1 %vm1060_vm8, %v1041_v33  ;;  %v4885_v35 = vpop.permute.xlu1 %3109  ;;  %v4209_v33 = vld [vmem:[%s5204_s6 + $0x28] sm:$0x3] }
 0x1c0   : > { %4134 = vmatpush1.msk.msra.mxu1 %vm1060_vm8, %v1040_v31  ;;  %2767 = vmatprep.mubr.f32.mxu0 %v4431_v21 }
 0x1c1   : > { %1209 = vmatprep.mubr.f32.mxu1 %v4431_v21 }
 0x1c3   : > { %v4896_v36 = vpop.permute.xlu0 %1703  ;;  %v4898_v37 = vpop.permute.xlu1 %1792 }
 0x1c4   : > { %4199 = vmatmul.mubr.msk.f32.vlgmr.msra.gmra.mrb[0].mxu0 %vm1056_vm10, %v4196_v28  ;;  %v4152_v28 = vld [vmem:[%s5204_s6 + $0xc] sm:$0x3] }
 0x1c5   : > { %4203 = vmatpush1.msk.msra.mxu0 %vm1060_vm8, %v2835_v24  ;;  %2912 = vmatprep.mubr.f32.mxu0 %v4431_v21 }
 0x1c7   : > { %v1225_v39 = vpop.permute.xlu0 %1224  ;;  %4135 = vmatmul.mubr.msk.f32.vlgmr.msra.gmra.mrb[0].mxu1 %vm1056_vm10, %v1042_v38  ;;  %v1227_v40 = vpop.permute.xlu1 %1226 }
 0x1c8   : > { %v1229_v41 = vsel %vm1228_vm5, %v4790_v51, %v1225_v39  ;;  %v1230_v42 = vsel %vm1228_vm5, %v1225_v39, %v1227_v40  ;;  %1310 = vmatprep.mubr.f32.mxu1 %v4431_v21 }
 0x1c9   : > { %v1233_v26 = vsel %vm4779_vm12, 0.0, %v1229_v41  ;;  %v1234_v43 = vsel %vm4783_vm13, 0.0, %v1230_v42 }
 0x1ca   : > { %4137 = vmatprep.subr.msk.mxu1 %vm1060_vm8, %v1234_v43 }
 0x1cb   : > { %v4922_v45 = vpop.permute.xlu0 %3207  ;;  %4138 = vmatpush1.msk.msra.mxu1 %vm1060_vm8, %v1233_v26  ;;  %v4925_v46 = vpop.permute.xlu1 %3295  ;;  %v4213_v26 = vld [vmem:[%s5204_s6 + $0x2a] sm:$0x3] }
 0x1cc   : > { %4204 = vmatmul.mubr.msk.f32.vlgmr.msra.gmra.mrb[0].mxu0 %vm1056_vm10, %v4201_v44 }
 0x1cd   : > { %3004 = vmatprep.mubr.f32.mxu0 %v4431_v21 }
 0x1cf   : > { %v1322_v3 = vpop.permute.xlu0 %1321  ;;  %4139 = vmatmul.mubr.msk.f32.vlgmr.msra.gmra.mrb[0].mxu1 %vm1056_vm10, %v4136_v47  ;;  %v1324_v50 = vpop.permute.xlu1 %1323 }
 0x1d0   : > { %v1326_v51 = vsel %vm1325_vm6, %v4835_v7, %v1322_v3  ;;  %v1327_v52 = vsel %vm1325_vm6, %v1322_v3, %v1324_v50  ;;  %1407 = vmatprep.mubr.f32.mxu1 %v4431_v21  ;;  %v4156_v3 = vld [vmem:[%s5204_s6 + $0xe] sm:$0x3] }
 0x1d1   : > { %v1330_v53 = vsel %vm4811_vm1, 0.0, %v1326_v51  ;;  %v1331_v54 = vsel %vm4805_vm15, 0.0, %v1327_v52 }
 0x1d2   : > { %4141 = vmatprep.subr.msk.mxu1 %vm1060_vm8, %v1331_v54 }
 0x1d3   : > { %v4942_v55 = vpop.permute.xlu0 %2030  ;;  %4142 = vmatpush1.msk.msra.mxu1 %vm1060_vm8, %v1330_v53  ;;  %v4945_v56 = vpop.permute.xlu1 %2032 }
 0x1d7   : > { %v1421_v58 = vpop.permute.xlu0 %1420  ;;  %4143 = vmatmul.mubr.msk.f32.vlgmr.msra.gmra.mrb[0].mxu1 %vm1056_vm10, %v4140_v57  ;;  %v1423_v60 = vpop.permute.xlu1 %1422 }
 0x1d8   : > { %v1425_v61 = vsel %vm1424_vm9, %v4841_v11, %v1421_v58  ;;  %v1426_v63 = vsel %vm1424_vm9, %v1421_v58, %v1423_v60  ;;  %1498 = vmatprep.mubr.f32.mxu1 %v4431_v21 }
 0x1d9   : > { %4145 = vmatprep.subr.msk.mxu1 %vm1060_vm8, %v1426_v63  ;;  %v4160_v63 = vld [vmem:[%s5204_s6 + $0x10] sm:$0x3] }
 0x1da   : > { %4146 = vmatpush1.msk.msra.mxu1 %vm1060_vm8, %v1425_v61 }
 0x1db   : > { %v1512_v0 = vpop.permute.xlu0 %1511  ;;  %v1510_v1 = vpop.permute.xlu1 %1509 }
 0x1dc   : > { %v1514_v2 = vsel %vm1513_vm11, %v4843_v12, %v1510_v1  ;;  %v1515_v4 = vsel %vm1513_vm11, %v1510_v1, %v1512_v0  ;;  %v4205_v12 = vld [vmem:[%s5204_s6 + $0x26] sm:$0x3]  ;;  %v4217_v0 = vld [vmem:[%s5204_s6 + $0x2c] sm:$0x3] }
 0x1dd   : > { %v1518_v6 = vsel %vm4779_vm12, 0.0, %v1514_v2  ;;  %v1519_v7 = vsel %vm4783_vm13, 0.0, %v1515_v4  ;;  %v2035_v2 = vsel %vm1053_vm4, %v4942_v55, %v4945_v56 }
 0x1de   : > { %4149 = vmatprep.subr.msk.mxu1 %vm1060_vm8, %v1519_v7  ;;  %v4164_v7 = vld [vmem:[%s5204_s6 + $0x12] sm:$0x3] }
 0x1df   : > { %v2928_v8 = vpop.permute.xlu0 %2927  ;;  %4147 = vmatmul.mubr.msk.f32.vlgmr.msra.gmra.mrb[0].mxu1 %vm1056_vm10, %v4144_v5  ;;  %v2930_v9 = vpop.permute.xlu1 %2929 }
 0x1e0   : > { %v2931_v10 = vsel %vm1053_vm4, %v4853_v15, %v2928_v8  ;;  %4150 = vmatpush1.msk.msra.mxu1 %vm1060_vm8, %v1518_v6  ;;  %v2932_v11 = vsel %vm1053_vm4, %v2928_v8, %v2930_v9  ;;  %1595 = vmatprep.mubr.f32.mxu1 %v4431_v21  ;;  %v4221_v8 = vld [vmem:[%s5204_s6 + $0x2e] sm:$0x3] }
 0x1e1   : > { %4206 = vmatprep.subr.msk.mxu0 %vm1060_vm8, %v2932_v11 }
 0x1e2   : > { %4207 = vmatpush1.msk.msra.mxu0 %vm1060_vm8, %v2931_v10 }
 0x1e3   : > { %v1609_v13 = vpop.permute.xlu0 %1608  ;;  %v1607_v14 = vpop.permute.xlu1 %1606  ;;  %4208 = vmatmul.mubr.msk.f32.vlgmr.msra.gmra.mrb[0].mxu0 %vm1056_vm10, %v4205_v12 }
 0x1e4   : > { %v1611_v15 = vsel %vm1610_vm14, %v4855_v16, %v1607_v14  ;;  %v1612_v17 = vsel %vm1610_vm14, %v1607_v14, %v1609_v13  ;;  %3100 = vmatprep.mubr.f32.mxu0 %v4431_v21 }
 0x1e5   : > { %v1615_v22 = vsel %vm4811_vm1, 0.0, %v1611_v15  ;;  %v1616_v23 = vsel %vm4805_vm15, 0.0, %v1612_v17 }
 0x1e6   : > { %4153 = vmatprep.subr.msk.mxu1 %vm1060_vm8, %v1616_v23 }
 0x1e7   : > { %v3018_v25 = vpop.permute.xlu0 %3017  ;;  %4151 = vmatmul.mubr.msk.f32.vlgmr.msra.gmra.mrb[0].mxu1 %vm1056_vm10, %v4148_v19  ;;  %v3016_v16 = vpop.permute.xlu1 %3015 }
 0x1e8   : > { %4154 = vmatpush1.msk.msra.mxu1 %vm1060_vm8, %v1615_v22  ;;  %v3019_v27 = vsel %vm1228_vm5, %v4881_v34, %v3016_v16  ;;  %v3020_v29 = vsel %vm1228_vm5, %v3016_v16, %v3018_v25  ;;  %1692 = vmatprep.mubr.f32.mxu1 %v4431_v21  ;;  %v4168_v25 = vld [vmem:[%s5204_s6 + $0x14] sm:$0x3]  ;;  %v4225_v16 = vld [vmem:[%s5204_s6 + $0x30] sm:$0x3] }
 0x1e9   : > { %v3023_v30 = vsel %vm4779_vm12, 0.0, %v3019_v27  ;;  %v3024_v32 = vsel %vm4783_vm13, 0.0, %v3020_v29 }
 0x1ea   : > { %4210 = vmatprep.subr.msk.mxu0 %vm1060_vm8, %v3024_v32 }
 0x1eb   : > { %v5006_v31 = vpop.permute.xlu0 %3391  ;;  %4211 = vmatpush1.msk.msra.mxu0 %vm1060_vm8, %v3023_v30  ;;  %v5009_v34 = vpop.permute.xlu1 %2028 }
 0x1ec   : > { %4212 = vmatmul.mubr.msk.f32.vlgmr.msra.gmra.mrb[0].mxu0 %vm1056_vm10, %v4209_v33  ;;  %v2034_v10 = vsel %vm1053_vm4, %v5009_v34, %v4942_v55 }
 0x1ed   : > { %3196 = vmatprep.mubr.f32.mxu0 %v4431_v21 }
 0x1ef   : > { %v3114_v24 = vpop.permute.xlu0 %3113  ;;  %4155 = vmatmul.mubr.msk.f32.vlgmr.msra.gmra.mrb[0].mxu1 %vm1056_vm10, %v4152_v28  ;;  %v3112_v38 = vpop.permute.xlu1 %3111 }
 0x1f0   : > { %v3115_v39 = vsel %vm1325_vm6, %v4885_v35, %v3112_v38  ;;  %v3116_v40 = vsel %vm1325_vm6, %v3112_v38, %v3114_v24  ;;  %1783 = vmatprep.mubr.f32.mxu1 %v4431_v21  ;;  %v4172_v38 = vld [vmem:[%s5204_s6 + $0x16] sm:$0x3] }
 0x1f1   : > { %v3119_v41 = vsel %vm4811_vm1, 0.0, %v3115_v39  ;;  %v3120_v42 = vsel %vm4805_vm15, 0.0, %v3116_v40  ;;  %v4229_v39 = vld [vmem:[%s5204_s6 + $0x32] sm:$0x3] }
 0x1f2   : > { %4214 = vmatprep.subr.msk.mxu0 %vm1060_vm8, %v3120_v42 }
 0x1f3   : > { %v1708_v43 = vpop.permute.xlu0 %1707  ;;  %4215 = vmatpush1.msk.msra.mxu0 %vm1060_vm8, %v3119_v41  ;;  %v1706_v35 = vpop.permute.xlu1 %1705 }
 0x1f4   : > { %v1710_v44 = vsel %vm1709_vm2, %v4896_v36, %v1706_v35  ;;  %v1711_v47 = vsel %vm1709_vm2, %v1706_v35, %v1708_v43  ;;  %4216 = vmatmul.mubr.msk.f32.vlgmr.msra.gmra.mrb[0].mxu0 %vm1056_vm10, %v4213_v26 }
 0x1f5   : > { %4157 = vmatprep.subr.msk.mxu1 %vm1060_vm8, %v1711_v47  ;;  %3286 = vmatprep.mubr.f32.mxu0 %v4431_v21  ;;  %v4176_v47 = vld [vmem:[%s5204_s6 + $0x18] sm:$0x3] }
 0x1f6   : > { %4158 = vmatpush1.msk.msra.mxu1 %vm1060_vm8, %v1710_v44 }
 0x1f7   : > { %v1797_v50 = vpop.permute.xlu0 %1796  ;;  %4159 = vmatmul.mubr.msk.f32.vlgmr.msra.gmra.mrb[0].mxu1 %vm1056_vm10, %v4156_v3  ;;  %v1795_v51 = vpop.permute.xlu1 %1794 }
 0x1f8   : > { %v1799_v36 = vsel %vm1798_vm3, %v4898_v37, %v1795_v51  ;;  %v1800_v52 = vsel %vm1798_vm3, %v1795_v51, %v1797_v50  ;;  %1880 = vmatprep.mubr.f32.mxu1 %v4431_v21  ;;  %v1939_v37 = vsel %vm4805_vm15, 0.0, %v4630_v20 }
 0x1f9   : > { %v1803_v53 = vsel %vm4779_vm12, 0.0, %v1799_v36  ;;  %v1804_v54 = vsel %vm4783_vm13, 0.0, %v1800_v52 }
 0x1fa   : > { %4161 = vmatprep.subr.msk.mxu1 %vm1060_vm8, %v1804_v54 }
 0x1fb   : > { %v3210_v57 = vpop.permute.xlu0 %3209  ;;  %4162 = vmatpush1.msk.msra.mxu1 %vm1060_vm8, %v1803_v53  ;;  %v3212_v58 = vpop.permute.xlu1 %3211 }
 0x1fc   : > { %v3213_v60 = vsel %vm1424_vm9, %v4922_v45, %v3210_v57  ;;  %v3214_v61 = vsel %vm1424_vm9, %v3210_v57, %v3212_v58  ;;  %4165 = vmatprep.subr.msk.mxu1 %vm1060_vm8, %v1939_v37  ;;  %v1938_v45 = vsel %vm4811_vm1, 0.0, %v4623_v18 }
 0x1fd   : > { %4218 = vmatprep.subr.msk.mxu0 %vm1060_vm8, %v3214_v61 }
 0x1fe   : > { %4219 = vmatpush1.msk.msra.mxu0 %vm1060_vm8, %v3213_v60 }
 0x1ff   : > { %v3300_v20 = vpop.permute.xlu0 %3299  ;;  %4163 = vmatmul.mubr.msk.f32.vlgmr.msra.gmra.mrb[0].mxu1 %vm1056_vm10, %v4160_v63  ;;  %4220 = vmatmul.mubr.msk.f32.vlgmr.msra.gmra.mrb[0].mxu0 %vm1056_vm10, %v4217_v0  ;;  %v3298_v1 = vpop.permute.xlu1 %3297 }
 0x200   : > { %4166 = vmatpush1.msk.msra.mxu1 %vm1060_vm8, %v1938_v45  ;;  %v3301_v4 = vsel %vm1513_vm11, %v4925_v46, %v3298_v1  ;;  %v3302_v5 = vsel %vm1513_vm11, %v3298_v1, %v3300_v20  ;;  %2015 = vmatprep.mubr.f32.mxu1 %v4431_v21 }
 0x201   : > { %v3305_v6 = vsel %vm4779_vm12, 0.0, %v3301_v4  ;;  %v3306_v18 = vsel %vm4783_vm13, 0.0, %v3302_v5  ;;  %4169 = vmatprep.subr.msk.mxu1 %vm1060_vm8, %v2035_v2  ;;  %3382 = vmatprep.mubr.f32.mxu0 %v4431_v21 }
 0x202   : > { %4222 = vmatprep.subr.msk.mxu0 %vm1060_vm8, %v3306_v18 }
 0x203   : > { %v2119_v56 = vpop.permute.xlu0 %2118  ;;  %4223 = vmatpush1.msk.msra.mxu0 %vm1060_vm8, %v3305_v6  ;;  %v2121_v46 = vpop.permute.xlu1 %2120 }
 0x204   : > { %v2123_v9 = vsel %vm1228_vm5, %v2119_v56, %v2121_v46 }
 0x205   : > { %v2127_v13 = vsel %vm4783_vm13, 0.0, %v2123_v9 }
 0x207   : > { %v3394_v11 = vpop.permute.xlu0 %3393  ;;  %4167 = vmatmul.mubr.msk.f32.vlgmr.msra.gmra.mrb[0].mxu1 %vm1056_vm10, %v4164_v7  ;;  %4224 = vmatmul.mubr.msk.f32.vlgmr.msra.gmra.mrb[0].mxu0 %vm1056_vm10, %v4221_v8  ;;  %v3396_v12 = vpop.permute.xlu1 %3395 }
 0x208   : > { %v3397_v14 = vsel %vm1610_vm14, %v5006_v31, %v3394_v11  ;;  %4170 = vmatpush1.msk.msra.mxu1 %vm1060_vm8, %v2034_v10  ;;  %v3398_v15 = vsel %vm1610_vm14, %v3394_v11, %v3396_v12  ;;  %2107 = vmatprep.mubr.f32.mxu1 %v4431_v21 }
 0x209   : > { %v3401_v55 = vsel %vm4811_vm1, 0.0, %v3397_v14  ;;  %v3402_v17 = vsel %vm4805_vm15, 0.0, %v3398_v15  ;;  %4173 = vmatprep.subr.msk.mxu1 %vm1060_vm8, %v2127_v13  ;;  %3478 = vmatprep.mubr.f32.mxu0 %v4431_v21 }
 0x20a   : > { %4226 = vmatprep.subr.msk.mxu0 %vm1060_vm8, %v3402_v17 }
 0x20b   : > { %v2117_v19 = vpop.permute.xlu0 %2116  ;;  %4227 = vmatpush1.msk.msra.mxu0 %vm1060_vm8, %v3401_v55  ;;  %v3490_v22 = vpop.permute.xlu1 %3489 }
 0x20c   : > { %v2122_v23 = vsel %vm1228_vm5, %v2117_v19, %v2119_v56 }
 0x20d   : > { %v2126_v27 = vsel %vm4779_vm12, 0.0, %v2122_v23 }
 0x20f   : > { %v2215_v29 = vpop.permute.xlu0 %2214  ;;  %4171 = vmatmul.mubr.msk.f32.vlgmr.msra.gmra.mrb[0].mxu1 %vm1056_vm10, %v4168_v25  ;;  %4228 = vmatmul.mubr.msk.f32.vlgmr.msra.gmra.mrb[0].mxu0 %vm1056_vm10, %v4225_v16  ;;  %v2217_v30 = vpop.permute.xlu1 %2216 }
 0x210   : > { %4174 = vmatpush1.msk.msra.mxu1 %vm1060_vm8, %v2126_v27  ;;  %v2219_v32 = vsel %vm1325_vm6, %v2215_v29, %v2217_v30  ;;  %2203 = vmatprep.mubr.f32.mxu1 %v4431_v21 }
 0x211   : > { %v2223_v33 = vsel %vm4805_vm15, 0.0, %v2219_v32  ;;  %3568 = vmatprep.mubr.f32.mxu0 %v4431_v21 }
 0x212   : > { %4177 = vmatprep.subr.msk.mxu1 %vm1060_vm8, %v2223_v33 }
 0x213   : > { %v3494_v31 = vpop.permute.xlu0 %3493  ;;  %v3492_v34 = vpop.permute.xlu1 %3491 }
 0x214   : > { %v3495_v28 = vsel %vm1709_vm2, %v3490_v22, %v3492_v34  ;;  %v3496_v24 = vsel %vm1709_vm2, %v3492_v34, %v3494_v31 }
 0x215   : > { %4230 = vmatprep.subr.msk.mxu0 %vm1060_vm8, %v3496_v24 }
 0x216   : > { %4231 = vmatpush1.msk.msra.mxu0 %vm1060_vm8, %v3495_v28 }
 0x217   : > { %v3580_v59 = vpop.permute.xlu0 %3579  ;;  %4175 = vmatmul.mubr.msk.f32.vlgmr.msra.gmra.mrb[0].mxu1 %vm1056_vm10, %v4172_v38  ;;  %4232 = vmatmul.mubr.msk.f32.vlgmr.msra.gmra.mrb[0].mxu0 %vm1056_vm10, %v4229_v39  ;;  %v3582_v40 = vpop.permute.xlu1 %3581 }
 0x218   : > { %v3584_v41 = vsel %vm1798_vm3, %v3580_v59, %v3582_v40  ;;  %2299 = vmatprep.mubr.f32.mxu1 %v4431_v21  ;;  %3664 = vmatprep.mubr.f32.mxu0 %v4431_v21  ;;  %v4233_v21 = vld [vmem:[%s5204_s6 + $0x34] sm:$0x3] }
 0x219   : > { %v3588_v42 = vsel %vm4783_vm13, 0.0, %v3584_v41 }
 0x21a   : > { %4234 = vmatprep.subr.msk.mxu0 %vm1060_vm8, %v3588_v42 }
 0x21b   : > { %v2213_v26 = vpop.permute.xlu0 %2212  ;;  %v3578_v43 = vpop.permute.xlu1 %3577 }
 0x21c   : > { %v2218_v35 = vsel %vm1325_vm6, %v2213_v26, %v2215_v29  ;;  %v3583_v44 = vsel %vm1798_vm3, %v3578_v43, %v3580_v59 }
 0x21d   : > { %v2222_v49 = vsel %vm4811_vm1, 0.0, %v2218_v35  ;;  %v3587_v3 = vsel %vm4779_vm12, 0.0, %v3583_v44 }
 0x21e   : > { %4178 = vmatpush1.msk.msra.mxu1 %vm1060_vm8, %v2222_v49  ;;  %4235 = vmatpush1.msk.msra.mxu0 %vm1060_vm8, %v3587_v3 }
 0x21f   : > { %4179 = vmatmul.mubr.msk.f32.vlgmr.msra.gmra.mrb[0].mxu1 %vm1056_vm10, %v4176_v47  ;;  %4236 = vmatmul.mubr.msk.f32.vlgmr.msra.gmra.mrb[0].mxu0 %vm1056_vm10, %v4233_v21 }
 0x22c   : > { %v3677_v53 = vpop.permute.xlu0 %3676 }
 0x2f2   : > { %v2301_v50 = vpop.f32.mrb[0].mxu1  ;;  %v3666_v51 = vpop.f32.mrb[0].mxu0 }
 0x2f3   : > { %v4276_v36 = vadd.f32 %v3666_v51, %v2301_v50  ;;  %v2303_v62 = vpop.f32.mrb[1].mxu1  ;;  %v3668_v52 = vpop.f32.mrb[1].mxu0 }
 0x2f4   : > { %v4277_v48 = vadd.f32 %v3668_v52, %v2303_v62 }
 0x2f5   : > { %v3679_v54 = vadd.f32 %v4276_v36, %v3677_v53 }
 0x2f6   : > { %v3680_v57 = vadd.f32 %v4277_v48, %v3677_v53 }
 0x2f7   : > { %v3693_v58 = vsel %vm1008_vm0, %v3679_v54, 0.0  ;;  %v3700_v37 = vmul.f32 %v3679_v54, %v3679_v54 }
 0x2f8   : > { %v3683_v60 = vcombine.low %v3679_v54, %v3680_v57  ;;  %v3694_v61 = vsel %vm1008_vm0, %v3680_v57, 0.0  ;;  %v3701_v63 = vmul.f32 %v3680_v57, %v3680_v57 }
 0x2f9   : > { %v3695_v0 = vadd.f32 %v3694_v61, %v3693_v58  ;;  %v3702_v20 = vsel %vm1008_vm0, %v3700_v37, 0.0 }
 0x2fa   : > { %4237 = vst.sshfl [vmem:[%s886_s12] sm:$0x33 pattern:$0x76325410] %v3683_v60  ;;  %v3703_v45 = vsel %vm1008_vm0, %v3701_v63, 0.0 }
 0x2fb   : > { %3696 = vadd.xlane.f32.xlu1 %v3695_v0  ;;  %v3704_v1 = vadd.f32 %v3703_v45, %v3702_v20 }
 0x2fd   : > { %3705 = vadd.xlane.f32.xlu0 %v3704_v1 }
 0x388   : > { %v3697_v2 = vpop.xlane.xlu1 %3696 }
 0x389   : > { %3699 = vst.msk [vmem:[%s895_s18] sm:$0x3] %vm3698_vm7, %v3697_v2 }
 0x38a   : > { %v3706_v4 = vpop.xlane.xlu0 %3705 }
 0x38b   : > { %3707 = vst.msk [vmem:[%s903_s28] sm:$0x3] %vm3698_vm7, %v3706_v4 }
 0x38c PF: > { %s5237_s26 = sld [smem:[#allocation4_spill]]  ;;  %s5238_s21 = sld [smem:[#allocation2_spill]] }
 0x38d   : > { %s5239_s22 = sld [smem:[#allocation3_spill]]  ;;  %s5240_s23 = sld [smem:[#allocation5_spill]] }
 0x38e   : > { %s5241_s24 = sld [smem:[#allocation6_spill]] }
 0x392   : > { %s23_s25 = sadd.s32 1, %s5237_s26  }
 0x393   : > { %p20_p8 = scmp.ge.s32.totalorder %s23_s25, 34  }
 0x395   :  { %22 = sbr.rel (!%p20_p8) target bundleno = 5 (0x5), region = 161 }

// kernel: out_conv_forward.9
= control target key start
LH: loop header
LB: loop body
LE: loop exit
PB: predicated region body
PF: predicated region fallthrough
CT: control target
= control target key end

     0   :  { %s1714_s18 = smov 0   ;;  %s1716_s19 = smov 0   ;;  %s2002_s0 = inlined_call_operand.vmem [shape: f32[2,2,4096], index: 0, kind: input, shape index: {}]   ;;  %s2003_s1 = inlined_call_operand.vmem [shape: f32[2,2,1], index: 1, kind: input, shape index: {}]   ;;  %s2004_s2 = inlined_call_operand.vmem [shape: f32[2,2,1], index: 2, kind: input, shape index: {}]   ;;  %s2005_s3 = inlined_call_operand.vmem [shape: f32[3,2], index: 3, kind: input, shape index: {}]   ;;  %s2006_s4 = inlined_call_operand.vmem [shape: f32[3,1], index: 4, kind: input, shape index: {}]   ;;  %s2007_s5 = inlined_call_operand.vmem [shape: f32[2,3,4096], index: 5, kind: output, shape index: {}]  }
   0x1   :  { %s1718_s20 = smov 0   ;;  %s1720_s21 = smov 0  }
   0x2   :  { %s1722_s22 = smov 0  }
   0x3 LB: > { %s24_s23 = sadd.s32 1, %s1670_s20  ;;  %s27_s24 = sadd.s32 1, %s1674_s21  ;;  %s1678_s22 = sphi %s1722_s22, %s15_s22   ;;  %s1674_s21 = sphi %s1720_s21, %s2011_s21   ;;  %s1670_s20 = sphi %s1718_s20, %s2010_s20   ;;  %s1666_s19 = sphi %s1716_s19, %s2009_s19   ;;  %s1662_s18 = sphi %s1714_s18, %s2008_s18  }
   0x4   : > { %p25_p0 = scmp.ge.s32.totalorder %s24_s23, 2  ;;  %p1495_p1 = scmp.ge.s32.totalorder %s1678_s22, 1 }
   0x5   : > { %p226_p2 = scmp.lt.s32.totalorder %s1678_s22, 5 }
   0x6   : > { %s2013_s23 = smov (%p25_p0, %s24_s23), 0  ;;  %s2015_s24 = smov (!%p25_p0, %s27_s24), %s1674_s21 }
   0x7   : > { %p227_p3 = pnand %p1495_p1, %p226_p2  ;;  %p29_p4 = scmp.ge.s32.totalorder %s2015_s24, 2 }
   0x8   : > { %p271_p5 = scmp.lt.s32.totalorder (!%p227_p3), %s1666_s19, 1  ;;  %v1680_v0 = vmov (!%p227_p3), 0   ;;  %v1681_v3 = vmov (!%p227_p3), 0.0   ;;  %v349_v4 = vld [vmem:[%s2006_s4] sm:$0x7] (!%p227_p3)  ;;  %s1496_s9 = sshll.u32 (!%p227_p3), %s1662_s18, 4  ;;  %v310_v7 = vlaneseq (!%p227_p3) }
   0x9   : > { %s2017_s24 = smov (%p29_p4, %s2015_s24), 0  ;;  %230 = sbr.rel (%p227_p3) target bundleno = 496 (0x1f0), region = 40 }
   0xa   : > { %1574 = vset.pattern.permute.xlu0 (!%p227_p3), %v1680_v0  ;;  %1575 = vset.pattern.permute.xlu1 (!%p227_p3), %v1680_v0  ;;  %p273_p6 = scmp.lt.s32.totalorder (!%p227_p3), %s1496_s9, 31  ;;  %v1682_v5 = vmov (!%p227_p3), 269488144   ;;  %v311_v9 = vshrl.u32 (!%p227_p3), %v310_v7, 7  ;;  %v1683_v11 = vmov (!%p227_p3), 1983009808  }
   0xb   : > { %528 = vmatprep.mubr.f32.mxu0 (!%p227_p3), %v1681_v3  ;;  %599 = vmatprep.mubr.f32.mxu1 (!%p227_p3), %v1681_v3  ;;  %v308_v6 = vunpack.c.l.s4 (!%p227_p3), %v1682_v5  ;;  %v361_v12 = vunpack.c.l.s4 (!%p227_p3), %v1683_v11  ;;  %vm431_vm4 = vcmask (!%p227_p3), 1041408   ;;  %v348_v46 = vld [vmem:[%s2005_s3] sm:$0x7] (!%p227_p3)  ;;  %vm427_vm5 = vcmask (!%p227_p3), 15360  }
   0xc   : > { %352 = vperm.xlu1 (!%p227_p3), %1575, %v349_v4   ;;  %vm1032_vm6 = vcmask (!%p227_p3), 1042432  }
   0xd   : > { %v309_v8 = vunpack.c.0.s8 (!%p227_p3), %v308_v6  ;;  %v362_v19 = vunpack.c.0.s8 (!%p227_p3), %v361_v12 }
   0xf   : > { %v312_v10 = vsub.s32 (!%p227_p3), %v309_v8, %v311_v9  ;;  %v365_v30 = vsub.s32 (!%p227_p3), %v362_v19, %v311_v9 }
  0x10   : > { %s2019_s19 = smov (!%p271_p5, %s1666_s19), 1  ;;  %s2021_s9 = smov (!%p273_p6, %s1496_s9), 31 }
  0x11   : > { %s1499_s25 = sshll.u32 %s2019_s19, 1  ;;  %s1497_s10 = sshll.u32 %s2019_s19, 5 }
  0x12   : > { %s283_s28 = scalar_lea.vmem %s2003_s1, %s1499_s25  ;;  %s287_s6 = scalar_lea.vmem %s2004_s2, %s1499_s25 }
  0x13   : > { %v302_v1 = vld [vmem:[%s283_s28] sm:$0x3]  ;;  %s1758_s11 = sadd.s32 %s1497_s10, %s2021_s9 }
  0x14   : > { %305 = vperm.xlu0 %1574, %v302_v1   ;;  %v319_v2 = vld [vmem:[%s287_s6] sm:$0x3]  ;;  %s1498_s12 = sshll.u32 %s1758_s11, 1  ;;  %s1503_s18 = sshll.u32 %s1758_s11, 2 }
  0x15   : > { %s278_s15 = scalar_lea.vmem %s2002_s0, %s1498_s12  ;;  %s1946_s26 = scalar_lea.vmem %s2007_s5, %s1503_s18 }
  0x16   : > { %v298_v14 = vld [vmem:[%s278_s15] sm:$0xff]  ;;  %v299_v16 = vld [vmem:[%s278_s15 + $0x8] sm:$0xff]  ;;  %v300_v17 = vld [vmem:[%s278_s15 + $0x10] sm:$0xff] }
  0x17   : > { %v301_v18 = vld [vmem:[%s278_s15 + $0x18] sm:$0xff] }
  0x18   : > { %322 = vperm.xlu0 %1574, %v319_v2  }
  0x8b   : > { %v1797_v60 = vpop.permute.xlu1 %352 }
  0x93   : > { %v306_v13 = vpop.permute.xlu0 %305 }
  0x94   : > { %v313_v15 = vrot.slane %v306_v13, %v312_v10 }
  0x96   : > { %v315_v20 = vmul.f32 %v313_v15, %v298_v14  ;;  %v316_v22 = vmul.f32 %v313_v15, %v299_v16  ;;  %v317_v23 = vmul.f32 %v313_v15, %v300_v17  ;;  %v318_v24 = vmul.f32 %v313_v15, %v301_v18 }
  0x97   : > { %v323_v21 = vpop.permute.xlu0 %322 }
  0x98   : > { %v330_v25 = vrot.slane %v323_v21, %v312_v10 }
  0x9a   : > { %v332_v26 = vadd.f32 %v330_v25, %v315_v20  ;;  %v333_v27 = vadd.f32 %v330_v25, %v316_v22  ;;  %v334_v28 = vadd.f32 %v330_v25, %v317_v23  ;;  %v335_v29 = vadd.f32 %v330_v25, %v318_v24 }
  0x9c   : > { %v341_v31 = vmul.f32 0.01, %v333_v27  ;;  %v342_v32 = vmul.f32 0.01, %v334_v28  ;;  %vm336_vm0 = vcmp.ge.f32.partialorder %v332_v26, 0.0  ;;  %vm337_vm1 = vcmp.ge.f32.partialorder %v333_v27, 0.0 }
  0x9d   : > { %v340_v33 = vmul.f32 0.01, %v332_v26  ;;  %vm338_vm2 = vcmp.ge.f32.partialorder %v334_v28, 0.0  ;;  %v343_v34 = vmul.f32 0.01, %v335_v29  ;;  %vm339_vm3 = vcmp.ge.f32.partialorder %v335_v29, 0.0 }
  0x9e   : > { %v345_v35 = vsel %vm337_vm1, %v333_v27, %v341_v31  ;;  %v346_v36 = vsel %vm338_vm2, %v334_v28, %v342_v32 }
  0x9f   : > { %v344_v37 = vsel %vm336_vm0, %v332_v26, %v340_v33  ;;  %v376_v38 = vcombine.high %v345_v35, %v345_v35  ;;  %v383_v41 = vrot.slane %v345_v35, %v365_v30  ;;  %v393_v42 = vcombine.high %v346_v36, %v346_v36 }
  0xa0   : > { %v366_v39 = vrot.slane %v344_v37, %v365_v30  ;;  %v359_v40 = vcombine.high %v344_v37, %v344_v37  ;;  %v347_v45 = vsel %vm339_vm3, %v335_v29, %v343_v34  ;;  %v400_v48 = vrot.slane %v346_v36, %v365_v30 }
  0xa1   : > { %v390_v47 = vrot.slane %v376_v38, %v365_v30  ;;  %v391_v50 = vcombine.high %v383_v41, %v383_v41  ;;  %v407_v51 = vrot.slane %v393_v42, %v365_v30  ;;  %v410_v52 = vcombine.high %v347_v45, %v347_v45 }
  0xa2   : > { %v374_v43 = vcombine.high %v366_v39, %v366_v39  ;;  %v373_v44 = vrot.slane %v359_v40, %v365_v30  ;;  %v408_v54 = vcombine.high %v400_v48, %v400_v48  ;;  %v417_v55 = vrot.slane %v347_v45, %v365_v30 }
  0xa3   : > { %v392_v53 = vcombine.high %v390_v47, %v390_v47  ;;  %v409_v56 = vcombine.high %v407_v51, %v407_v51  ;;  %v424_v57 = vrot.slane %v410_v52, %v365_v30 }
  0xa4   : > { %1504 = vmatprep.subr.msk.mxu0 %vm431_vm4, %v374_v43  ;;  %v375_v49 = vcombine.high %v373_v44, %v373_v44  ;;  %v425_v58 = vcombine.high %v417_v55, %v417_v55 }
  0xa5   : > { %1505 = vmatpush1.msk.msra.mxu0 %vm431_vm4, %v366_v39  ;;  %v426_v59 = vcombine.high %v424_v57, %v424_v57 }
  0xa6   : > { %1506 = vmatmul.mubr.msk.f32.vlgmr.msra.gmra.mrb[0].mxu0 %vm427_vm5, %v348_v46  ;;  %1507 = vmatprep.subr.msk.mxu1 %vm431_vm4, %v375_v49 }
  0xa7   : > { %1510 = vmatprep.subr.msk.mxu0 %vm431_vm4, %v391_v50  ;;  %1508 = vmatpush1.msk.msra.mxu1 %vm431_vm4, %v373_v44 }
  0xa8   : > { %1511 = vmatpush1.msk.msra.mxu0 %vm431_vm4, %v383_v41  ;;  %1509 = vmatmul.mubr.msk.f32.vlgmr.msra.gmra.mrb[0].mxu1 %vm427_vm5, %v348_v46 }
  0xa9   : > { %1513 = vmatprep.subr.msk.mxu1 %vm431_vm4, %v392_v53  ;;  %1516 = vmatprep.subr.msk.mxu0 %vm431_vm4, %v408_v54 }
  0xaa   : > { %670 = vmatprep.mubr.f32.mxu0 %v1681_v3  ;;  %1514 = vmatpush1.msk.msra.mxu1 %vm431_vm4, %v390_v47 }
  0xab   : > { %1512 = vmatmul.mubr.msk.f32.vlgmr.msra.gmra.mrb[2].mxu0 %vm427_vm5, %v348_v46  ;;  %1519 = vmatprep.subr.msk.mxu1 %vm431_vm4, %v409_v56 }
  0xac   : > { %1517 = vmatpush1.msk.msra.mxu0 %vm431_vm4, %v400_v48  ;;  %741 = vmatprep.mubr.f32.mxu1 %v1681_v3 }
  0xad   : > { %1522 = vmatprep.subr.msk.mxu0 %vm431_vm4, %v425_v58  ;;  %1515 = vmatmul.mubr.msk.f32.vlgmr.msra.gmra.mrb[2].mxu1 %vm427_vm5, %v348_v46 }
  0xae   : > { %1520 = vmatpush1.msk.msra.mxu1 %vm431_vm4, %v407_v51  ;;  %812 = vmatprep.mubr.f32.mxu0 %v1681_v3 }
  0xaf   : > { %1525 = vmatprep.subr.msk.mxu1 %vm431_vm4, %v426_v59  ;;  %1518 = vmatmul.mubr.msk.f32.vlgmr.msra.gmra.mrb[4].mxu0 %vm427_vm5, %v348_v46 }
  0xb0   : > { %1523 = vmatpush1.msk.msra.mxu0 %vm431_vm4, %v417_v55  ;;  %883 = vmatprep.mubr.f32.mxu1 %v1681_v3 }
  0xb1   : > { %1521 = vmatmul.mubr.msk.f32.vlgmr.msra.gmra.mrb[4].mxu1 %vm427_vm5, %v348_v46  ;;  %954 = vmatprep.mubr.f32.mxu0 %v1681_v3 }
  0xb2   : > { %1526 = vmatpush1.msk.msra.mxu1 %vm431_vm4, %v424_v57  ;;  %1025 = vmatprep.mubr.f32.mxu1 %v1681_v3 }
  0xb3   : > { %1524 = vmatmul.mubr.msk.f32.vlgmr.msra.gmra.mrb[6].mxu0 %vm427_vm5, %v348_v46 }
  0xb5   : > { %1527 = vmatmul.mubr.msk.f32.vlgmr.msra.gmra.mrb[6].mxu1 %vm427_vm5, %v348_v46 }
 0x179   : > { %v530_v61 = vpop.f32.mrb[0].mxu0 }
 0x17a   : > { %v1800_v62 = vadd.f32 %v530_v61, %v1797_v60  ;;  %v532_v63 = vpop.f32.mrb[1].mxu0 }
 0x17b   : > { %v1803_v0 = vadd.f32 %v532_v63, %v1797_v60  ;;  %v601_v1 = vpop.f32.mrb[0].mxu1 }
 0x17c   : > { %v1033_v2 = vsel %vm1032_vm6, %v1800_v62, -inf  ;;  %v1808_v3 = vadd.f32 %v601_v1, %v1797_v60  ;;  %v603_v4 = vpop.f32.mrb[1].mxu1 }
 0x17d   : > { %v1034_v5 = vrot.slane %v1033_v2, 4  ;;  %v1040_v6 = vsel %vm1032_vm6, %v1803_v0, -inf  ;;  %v1813_v7 = vadd.f32 %v603_v4, %v1797_v60 }
 0x17e   : > { %v1041_v8 = vrot.slane %v1040_v6, 4  ;;  %v1047_v9 = vsel %vm1032_vm6, %v1808_v3, -inf  ;;  %v672_v10 = vpop.f32.mrb[2].mxu0 }
 0x17f   : > { %v1035_v11 = vmax.f32 %v1033_v2, %v1034_v5  ;;  %v1048_v12 = vrot.slane %v1047_v9, 4  ;;  %v1054_v13 = vsel %vm1032_vm6, %v1813_v7, -inf  ;;  %v1820_v14 = vadd.f32 %v672_v10, %v1797_v60  ;;  %v674_v15 = vpop.f32.mrb[3].mxu0 }
 0x180   : > { %v1042_v16 = vmax.f32 %v1040_v6, %v1041_v8  ;;  %v1055_v17 = vrot.slane %v1054_v13, 4  ;;  %v1823_v18 = vadd.f32 %v674_v15, %v1797_v60  ;;  %v743_v19 = vpop.f32.mrb[2].mxu1 }
 0x181   : > { %v1036_v20 = vrot.slane %v1035_v11, 2  ;;  %v1049_v21 = vmax.f32 %v1047_v9, %v1048_v12  ;;  %v1061_v22 = vsel %vm1032_vm6, %v1820_v14, -inf  ;;  %v1828_v23 = vadd.f32 %v743_v19, %v1797_v60  ;;  %v745_v24 = vpop.f32.mrb[3].mxu1 }
 0x182   : > { %v1043_v25 = vrot.slane %v1042_v16, 2  ;;  %v1056_v26 = vmax.f32 %v1054_v13, %v1055_v17  ;;  %v1062_v27 = vrot.slane %v1061_v22, 4  ;;  %v1068_v28 = vsel %vm1032_vm6, %v1823_v18, -inf  ;;  %v814_v29 = vpop.f32.mrb[4].mxu0 }
 0x183   : > { %v1037_v30 = vmax.f32 %v1035_v11, %v1036_v20  ;;  %v1050_v31 = vrot.slane %v1049_v21, 2  ;;  %v1069_v32 = vrot.slane %v1068_v28, 4  ;;  %v1075_v33 = vsel %vm1032_vm6, %v1828_v23, -inf  ;;  %v816_v34 = vpop.f32.mrb[5].mxu0 }
 0x184   : > { %v1044_v35 = vmax.f32 %v1042_v16, %v1043_v25  ;;  %v1057_v36 = vrot.slane %v1056_v26, 2  ;;  %v1063_v37 = vmax.f32 %v1061_v22, %v1062_v27  ;;  %v1076_v38 = vrot.slane %v1075_v33, 4  ;;  %v885_v39 = vpop.f32.mrb[4].mxu1 }
 0x185   : > { %v1038_v40 = vrot.slane %v1037_v30, 1  ;;  %v1051_v41 = vmax.f32 %v1049_v21, %v1050_v31  ;;  %v1070_v42 = vmax.f32 %v1068_v28, %v1069_v32  ;;  %v1835_v43 = vadd.f32 %v745_v24, %v1797_v60  ;;  %v1837_v44 = vpop.f32.mrb[5].mxu1 }
 0x186   : > { %v1045_v45 = vrot.slane %v1044_v35, 1  ;;  %v1058_v46 = vmax.f32 %v1056_v26, %v1057_v36  ;;  %v1064_v47 = vrot.slane %v1063_v37, 2  ;;  %v1077_v48 = vmax.f32 %v1075_v33, %v1076_v38  ;;  %v956_v49 = vpop.f32.mrb[6].mxu0 }
 0x187   : > { %v1039_v50 = vmax.f32 %v1037_v30, %v1038_v40  ;;  %v1052_v51 = vrot.slane %v1051_v41, 1  ;;  %v1071_v52 = vrot.slane %v1070_v42, 2  ;;  %v1082_v53 = vsel %vm1032_vm6, %v1835_v43, -inf  ;;  %v958_v54 = vpop.f32.mrb[7].mxu0 }
 0x188   : > { %v1046_v55 = vmax.f32 %v1044_v35, %v1045_v45  ;;  %v1059_v56 = vrot.slane %v1058_v46, 1  ;;  %v1065_v57 = vmax.f32 %v1063_v37, %v1064_v47  ;;  %v1078_v58 = vrot.slane %v1077_v48, 2  ;;  %v1027_v59 = vpop.f32.mrb[6].mxu1 }
 0x189   : > { %v1145_v61 = vsub.f32 %v1800_v62, %v1039_v50  ;;  %v1053_v63 = vmax.f32 %v1051_v41, %v1052_v51  ;;  %v1072_v1 = vmax.f32 %v1070_v42, %v1071_v52  ;;  %v1083_v2 = vrot.slane %v1082_v53, 4  ;;  %v1842_v4 = vpop.f32.mrb[7].mxu1 }
 0x18a   : > { %v1146_v5 = vsub.f32 %v1803_v0, %v1046_v55  ;;  %v1060_v6 = vmax.f32 %v1058_v46, %v1059_v56  ;;  %v1066_v8 = vrot.slane %v1065_v57, 1  ;;  %v1079_v9 = vmax.f32 %v1077_v48, %v1078_v58 }
 0x18b   : > { %v1161_v10 = vmul.f32 1.442695, %v1145_v61  ;;  %v1147_v11 = vsub.f32 %v1808_v3, %v1053_v63  ;;  %v1073_v12 = vrot.slane %v1072_v1, 1  ;;  %v1084_v13 = vmax.f32 %v1082_v53, %v1083_v2 }
 0x18c   : > { %v1163_v15 = vmul.f32 1.442695, %v1146_v5  ;;  %v1148_v16 = vsub.f32 %v1813_v7, %v1060_v6  ;;  %v1067_v17 = vmax.f32 %v1065_v57, %v1066_v8  ;;  %v1080_v62 = vrot.slane %v1079_v9, 1 }
 0x18d   : > { %1576 = vpow2.f32 %v1161_v10  ;;  %v1165_v19 = vmul.f32 1.442695, %v1147_v11  ;;  %v1074_v20 = vmax.f32 %v1072_v1, %v1073_v12  ;;  %v1085_v21 = vrot.slane %v1084_v13, 2 }
 0x18e   : > { %1578 = vpow2.f32 %v1163_v15  ;;  %v1167_v22 = vmul.f32 1.442695, %v1148_v16  ;;  %v1149_v0 = vsub.f32 %v1820_v14, %v1067_v17  ;;  %v1081_v24 = vmax.f32 %v1079_v9, %v1080_v62 }
 0x18f   : > { %1580 = vpow2.f32 %v1165_v19  ;;  %v1150_v25 = vsub.f32 %v1823_v18, %v1074_v20  ;;  %v1086_v3 = vmax.f32 %v1084_v13, %v1085_v21  ;;  %v1850_v26 = vadd.f32 %v814_v29, %v1797_v60 }
 0x190   : > { %1582 = vpow2.f32 %v1167_v22  ;;  %v1169_v7 = vmul.f32 1.442695, %v1149_v0  ;;  %v1151_v27 = vsub.f32 %v1828_v23, %v1081_v24  ;;  %v1854_v28 = vadd.f32 %v816_v34, %v1797_v60 }
 0x191   : > { %v1171_v30 = vmul.f32 1.442695, %v1150_v25  ;;  %v1087_v31 = vrot.slane %v1086_v3, 1  ;;  %v1089_v14 = vsel %vm1032_vm6, %v1850_v26, -inf  ;;  %v1859_v32 = vadd.f32 %v885_v39, %v1797_v60 }
 0x192   : > { %1584 = vpow2.f32 %v1169_v7  ;;  %v1173_v18 = vmul.f32 1.442695, %v1151_v27  ;;  %v1090_v33 = vrot.slane %v1089_v14, 4  ;;  %v1096_v29 = vsel %vm1032_vm6, %v1854_v28, -inf }
 0x193   : > { %1586 = vpow2.f32 %v1171_v30  ;;  %v1088_v35 = vmax.f32 %v1086_v3, %v1087_v31  ;;  %v1097_v23 = vrot.slane %v1096_v29, 4  ;;  %v1103_v34 = vsel %vm1032_vm6, %v1859_v32, -inf }
 0x194   : > { %1588 = vpow2.f32 %v1173_v18  ;;  %v1091_v36 = vmax.f32 %v1089_v14, %v1090_v33  ;;  %v1104_v37 = vrot.slane %v1103_v34, 4  ;;  %v1867_v38 = vadd.f32 %v1837_v44, %v1797_v60 }
 0x195   : > { %v1152_v39 = vsub.f32 %v1835_v43, %v1088_v35  ;;  %v1098_v40 = vmax.f32 %v1096_v29, %v1097_v23  ;;  %v1871_v41 = vadd.f32 %v956_v49, %v1797_v60  ;;  %v1874_v42 = vadd.f32 %v958_v54, %v1797_v60 }
 0x196   : > { %v1092_v45 = vrot.slane %v1091_v36, 2  ;;  %v1105_v46 = vmax.f32 %v1103_v34, %v1104_v37  ;;  %v1878_v47 = vsel %vm1032_vm6, %v1867_v38, -inf  ;;  %v1881_v48 = vadd.f32 %v1027_v59, %v1797_v60 }
 0x197   : > { %v1883_v44 = vpop.eup %1576  ;;  %v1175_v50 = vmul.f32 1.442695, %v1152_v39  ;;  %v1099_v43 = vrot.slane %v1098_v40, 2  ;;  %v1111_v51 = vrot.slane %v1878_v47, 4  ;;  %v1888_v49 = vsel %vm1032_vm6, %v1871_v41, -inf }
 0x198   : > { %v1890_v52 = vpop.eup %1578  ;;  %v1193_v53 = vsel %vm1032_vm6, %v1883_v44, 0.0  ;;  %v1093_v54 = vmax.f32 %v1091_v36, %v1092_v45  ;;  %v1106_v55 = vrot.slane %v1105_v46, 2  ;;  %v1118_v56 = vrot.slane %v1888_v49, 4 }
 0x199   : > { %v1895_v57 = vpop.eup %1580  ;;  %v1194_v58 = vrot.slane %v1193_v53, 4  ;;  %v1200_v59 = vsel %vm1032_vm6, %v1890_v52, 0.0  ;;  %1590 = vpow2.f32 %v1175_v50  ;;  %v1100_v61 = vmax.f32 %v1098_v40, %v1099_v43 }
 0x19a   : > { %v1899_v63 = vpop.eup %1582  ;;  %v1201_v1 = vrot.slane %v1200_v59, 4  ;;  %v1207_v2 = vsel %vm1032_vm6, %v1895_v57, 0.0  ;;  %v1094_v5 = vrot.slane %v1093_v54, 1  ;;  %v1107_v6 = vmax.f32 %v1105_v46, %v1106_v55 }
 0x19b   : > { %v1195_v8 = vadd.f32 %v1194_v58, %v1193_v53  ;;  %v1208_v9 = vrot.slane %v1207_v2, 4  ;;  %v1214_v10 = vsel %vm1032_vm6, %v1899_v63, 0.0  ;;  %v1101_v11 = vrot.slane %v1100_v61, 1 }
 0x19c   : > { %v1905_v12 = vpop.eup %1584  ;;  %v1202_v13 = vadd.f32 %v1201_v1, %v1200_v59  ;;  %v1215_v15 = vrot.slane %v1214_v10, 4  ;;  %v1095_v16 = vmax.f32 %v1093_v54, %v1094_v5  ;;  %v1108_v17 = vrot.slane %v1107_v6, 1 }
 0x19d   : > { %v1907_v62 = vpop.eup %1586  ;;  %v1196_v19 = vrot.slane %v1195_v8, 2  ;;  %v1209_v20 = vadd.f32 %v1208_v9, %v1207_v2  ;;  %v1221_v21 = vsel %vm1032_vm6, %v1905_v12, 0.0  ;;  %v1102_v22 = vmax.f32 %v1100_v61, %v1101_v11 }
 0x19e   : > { %v1911_v0 = vpop.eup %1588  ;;  %v1203_v24 = vrot.slane %v1202_v13, 2  ;;  %v1216_v25 = vadd.f32 %v1215_v15, %v1214_v10  ;;  %v1222_v3 = vrot.slane %v1221_v21, 4  ;;  %v1228_v7 = vsel %vm1032_vm6, %v1907_v62, 0.0 }
 0x19f   : > { %v1197_v27 = vadd.f32 %v1196_v19, %v1195_v8  ;;  %v1210_v30 = vrot.slane %v1209_v20, 2  ;;  %v1229_v31 = vrot.slane %v1228_v7, 4  ;;  %v1235_v14 = vsel %vm1032_vm6, %v1911_v0, 0.0 }
 0x1a0   : > { %v1204_v18 = vadd.f32 %v1203_v24, %v1202_v13  ;;  %v1217_v33 = vrot.slane %v1216_v25, 2  ;;  %v1223_v29 = vadd.f32 %v1222_v3, %v1221_v21  ;;  %v1236_v35 = vrot.slane %v1235_v14, 4 }
 0x1a1   : > { %v1198_v23 = vrot.slane %v1197_v27, 1  ;;  %v1211_v34 = vadd.f32 %v1210_v30, %v1209_v20  ;;  %v1230_v36 = vadd.f32 %v1229_v31, %v1228_v7  ;;  %v1153_v37 = vsub.f32 %v1850_v26, %v1095_v16 }
 0x1a2   : > { %v1205_v39 = vrot.slane %v1204_v18, 1  ;;  %v1218_v40 = vadd.f32 %v1217_v33, %v1216_v25  ;;  %v1224_v45 = vrot.slane %v1223_v29, 2  ;;  %v1237_v46 = vadd.f32 %v1236_v35, %v1235_v14 }
 0x1a3   : > { %v1918_v50 = vpop.eup %1590  ;;  %v1199_v43 = vadd.f32 %v1198_v23, %v1197_v27  ;;  %v1212_v53 = vrot.slane %v1211_v34, 1  ;;  %v1231_v54 = vrot.slane %v1230_v36, 2  ;;  %v1177_v55 = vmul.f32 1.442695, %v1153_v37 }
 0x1a4   : > { %v1206_v58 = vadd.f32 %v1205_v39, %v1204_v18  ;;  %v1219_v59 = vrot.slane %v1218_v40, 1  ;;  %v1225_v61 = vadd.f32 %v1224_v45, %v1223_v29  ;;  %v1238_v1 = vrot.slane %v1237_v46, 2 }
 0x1a5   : > { %1592 = vrcp.f32 %v1199_v43  ;;  %v1213_v2 = vadd.f32 %v1212_v53, %v1211_v34  ;;  %v1232_v5 = vadd.f32 %v1231_v54, %v1230_v36  ;;  %v1242_v26 = vsel %vm1032_vm6, %v1918_v50, 0.0 }
 0x1a6   : > { %1594 = vrcp.f32 %v1206_v58  ;;  %v1220_v8 = vadd.f32 %v1219_v59, %v1218_v40  ;;  %v1226_v9 = vrot.slane %v1225_v61, 1  ;;  %v1239_v10 = vadd.f32 %v1238_v1, %v1237_v46 }
 0x1a7   : > { %1596 = vrcp.f32 %v1213_v2  ;;  %v1233_v11 = vrot.slane %v1232_v5, 1  ;;  %v1243_v13 = vrot.slane %v1242_v26, 4  ;;  %v1154_v15 = vsub.f32 %v1854_v28, %v1102_v22 }
 0x1a8   : > { %1598 = vrcp.f32 %v1220_v8  ;;  %v1227_v16 = vadd.f32 %v1226_v9, %v1225_v61  ;;  %v1240_v19 = vrot.slane %v1239_v10, 1  ;;  %v1109_v20 = vmax.f32 %v1107_v6, %v1108_v17 }
 0x1a9   : > { %v1234_v21 = vadd.f32 %v1233_v11, %v1232_v5  ;;  %v1244_v24 = vadd.f32 %v1243_v13, %v1242_v26  ;;  %1600 = vpow2.f32 %v1177_v55  ;;  %v1179_v25 = vmul.f32 1.442695, %v1154_v15 }
 0x1aa   : > { %1602 = vrcp.f32 %v1227_v16  ;;  %v1241_v3 = vadd.f32 %v1240_v19, %v1239_v10  ;;  %v1155_v7 = vsub.f32 %v1859_v32, %v1109_v20  ;;  %v1112_v27 = vmax.f32 %v1878_v47, %v1111_v51 }
 0x1ab   : > { %1604 = vrcp.f32 %v1234_v21  ;;  %v1245_v30 = vrot.slane %v1244_v24, 2  ;;  %v1119_v28 = vmax.f32 %v1888_v49, %v1118_v56  ;;  %v1124_v6 = vsel %vm1032_vm6, %v1874_v42, -inf }
 0x1ac   : > { %1606 = vrcp.f32 %v1241_v3  ;;  %v1181_v17 = vmul.f32 1.442695, %v1155_v7  ;;  %v1113_v22 = vrot.slane %v1112_v27, 2  ;;  %v1125_v31 = vrot.slane %v1124_v6, 4 }
 0x1ad   : > { %v1246_v14 = vadd.f32 %v1245_v30, %v1244_v24  ;;  %1608 = vpow2.f32 %v1179_v25  ;;  %v1120_v32 = vrot.slane %v1119_v28, 2  ;;  %v1131_v47 = vsel %vm1032_vm6, %v1881_v48, -inf }
 0x1ae   : > { %1610 = vpow2.f32 %v1181_v17  ;;  %v1114_v51 = vmax.f32 %v1112_v27, %v1113_v22  ;;  %v1126_v18 = vmax.f32 %v1124_v6, %v1125_v31  ;;  %v1132_v33 = vrot.slane %v1131_v47, 4 }
 0x1af   : > { %v1593_v29 = vpop.eup %1592  ;;  %v1247_v49 = vrot.slane %v1246_v14, 1  ;;  %v1121_v56 = vmax.f32 %v1119_v28, %v1120_v32  ;;  %v1937_v35 = vadd.f32 %v1842_v4, %v1797_v60 }
 0x1b0   : > { %v1595_v23 = vpop.eup %1594  ;;  %v1306_v34 = vmul.f32 %v1593_v29, %v1883_v44  ;;  %v1115_v36 = vrot.slane %v1114_v51, 1  ;;  %v1127_v37 = vrot.slane %v1126_v18, 2  ;;  %v1133_v39 = vmax.f32 %v1131_v47, %v1132_v33 }
 0x1b1   : > { %v1597_v40 = vpop.eup %1596  ;;  %v1308_v45 = vmul.f32 %v1595_v23, %v1890_v52  ;;  %v1248_v46 = vadd.f32 %v1247_v49, %v1246_v14  ;;  %v1122_v43 = vrot.slane %v1121_v56, 1  ;;  %v1138_v53 = vsel %vm1032_vm6, %v1937_v35, -inf }
 0x1b2   : > { %v1599_v54 = vpop.eup %1598  ;;  %v1310_v60 = vmul.f32 %v1597_v40, %v1895_v57  ;;  %v1116_v4 = vmax.f32 %v1114_v51, %v1115_v36  ;;  %v1128_v44 = vmax.f32 %v1126_v18, %v1127_v37  ;;  %v1134_v55 = vrot.slane %v1133_v39, 2 }
 0x1b3   : > { %v1949_v58 = vpop.eup %1600  ;;  %v1353_v52 = vcombine.low %v1306_v34, %v1308_v45  ;;  %v1312_v59 = vmul.f32 %v1599_v54, %v1899_v63  ;;  %1612 = vrcp.f32 %v1248_v46  ;;  %v1123_v61 = vmax.f32 %v1121_v56, %v1122_v43 }
 0x1b4   : > { %v1603_v1 = vpop.eup %1602  ;;  %v1249_v2 = vsel %vm1032_vm6, %v1949_v58, 0.0  ;;  %v1156_v5 = vsub.f32 %v1867_v38, %v1116_v4  ;;  %v1129_v26 = vrot.slane %v1128_v44, 1  ;;  %v1135_v8 = vmax.f32 %v1133_v39, %v1134_v55 }
 0x1b5   : > { %v1605_v57 = vpop.eup %1604  ;;  %1369 = vst [vmem:[%s1946_s26] sm:$0x77] %v1353_v52  ;;  %v1354_v9 = vcombine.low %v1310_v60, %v1312_v59  ;;  %v1314_v10 = vmul.f32 %v1603_v1, %v1905_v12  ;;  %v1250_v11 = vrot.slane %v1249_v2, 4  ;;  %v1157_v13 = vsub.f32 %v1871_v41, %v1123_v61 }
 0x1b6   : > { %v1607_v63 = vpop.eup %1606  ;;  %v1316_v15 = vmul.f32 %v1605_v57, %v1907_v62  ;;  %v1183_v16 = vmul.f32 1.442695, %v1156_v5  ;;  %v1130_v19 = vmax.f32 %v1128_v44, %v1129_v26  ;;  %v1136_v20 = vrot.slane %v1135_v8, 1 }
 0x1b7   : > { %v1959_v21 = vpop.eup %1608  ;;  %1370 = vst [vmem:[%s1946_s26 + $0x8] sm:$0x77] %v1354_v9  ;;  %v1251_v38 = vadd.f32 %v1250_v11, %v1249_v2  ;;  %v1185_v24 = vmul.f32 1.442695, %v1157_v13  ;;  %v1139_v25 = vrot.slane %v1138_v53, 4  ;;  %v1318_v31 = vmul.f32 %v1607_v63, %v1911_v0 }
 0x1b8   : > { %v1962_v3 = vpop.eup %1610  ;;  %v1355_v7 = vcombine.low %v1314_v10, %v1316_v15  ;;  %v1256_v12 = vsel %vm1032_vm6, %v1959_v21, 0.0  ;;  %1614 = vpow2.f32 %v1183_v16  ;;  %v1158_v41 = vsub.f32 %v1874_v42, %v1130_v19 }
 0x1b9   : > { %v1252_v62 = vrot.slane %v1251_v38, 2  ;;  %v1257_v27 = vrot.slane %v1256_v12, 4  ;;  %v1263_v30 = vsel %vm1032_vm6, %v1962_v3, 0.0  ;;  %1616 = vpow2.f32 %v1185_v24 }
 0x1ba   : > { %1371 = vst [vmem:[%s1946_s26 + $0x10] sm:$0x77] %v1355_v7  ;;  %v1264_v28 = vrot.slane %v1263_v30, 4  ;;  %v1187_v6 = vmul.f32 1.442695, %v1158_v41  ;;  %v1137_v17 = vmax.f32 %v1135_v8, %v1136_v20  ;;  %v1140_v22 = vmax.f32 %v1138_v53, %v1139_v25 }
 0x1bb   : > { %v1253_v14 = vadd.f32 %v1252_v62, %v1251_v38  ;;  %v1258_v32 = vadd.f32 %v1257_v27, %v1256_v12 }
 0x1bc   : > { %v1265_v47 = vadd.f32 %v1264_v28, %v1263_v30  ;;  %1618 = vpow2.f32 %v1187_v6  ;;  %v1159_v51 = vsub.f32 %v1881_v48, %v1137_v17  ;;  %v1141_v42 = vrot.slane %v1140_v22, 2 }
 0x1bd   : > { %v1613_v18 = vpop.eup %1612  ;;  %v1254_v33 = vrot.slane %v1253_v14, 1  ;;  %v1259_v29 = vrot.slane %v1258_v32, 2 }
 0x1be   : > { %v1320_v49 = vmul.f32 %v1613_v18, %v1918_v50  ;;  %v1266_v56 = vrot.slane %v1265_v47, 2  ;;  %v1189_v23 = vmul.f32 1.442695, %v1159_v51  ;;  %v1142_v34 = vmax.f32 %v1140_v22, %v1141_v42 }
 0x1bf   : > { %v1255_v36 = vadd.f32 %v1254_v33, %v1253_v14  ;;  %v1260_v37 = vadd.f32 %v1259_v29, %v1258_v32 }
 0x1c0   : > { %v1356_v39 = vcombine.low %v1318_v31, %v1320_v49  ;;  %v1267_v0 = vadd.f32 %v1266_v56, %v1265_v47  ;;  %1620 = vpow2.f32 %v1189_v23  ;;  %v1143_v40 = vrot.slane %v1142_v34, 1 }
 0x1c1   : > { %1622 = vrcp.f32 %v1255_v36  ;;  %v1261_v45 = vrot.slane %v1260_v37, 1 }
 0x1c2   : > { %v1615_v46 = vpop.eup %1614  ;;  %1372 = vst [vmem:[%s1946_s26 + $0x18] sm:$0x77] %v1356_v39  ;;  %v1144_v48 = vmax.f32 %v1142_v34, %v1143_v40  ;;  %v1268_v60 = vrot.slane %v1267_v0, 1 }
 0x1c3   : > { %v1617_v43 = vpop.eup %1616  ;;  %v1262_v53 = vadd.f32 %v1261_v45, %v1260_v37  ;;  %v1270_v54 = vsel %vm1032_vm6, %v1615_v46, 0.0 }
 0x1c4   : > { %v1271_v50 = vrot.slane %v1270_v54, 4  ;;  %v1277_v4 = vsel %vm1032_vm6, %v1617_v43, 0.0  ;;  %v1160_v44 = vsub.f32 %v1937_v35, %v1144_v48  ;;  %v1269_v5 = vadd.f32 %v1268_v60, %v1267_v0 }
 0x1c5   : > { %1624 = vrcp.f32 %v1262_v53  ;;  %v1278_v55 = vrot.slane %v1277_v4, 4 }
 0x1c6   : > { %v1619_v52 = vpop.eup %1618  ;;  %v1272_v59 = vadd.f32 %v1271_v50, %v1270_v54  ;;  %v1191_v61 = vmul.f32 1.442695, %v1160_v44 }
 0x1c7   : > { %v1279_v1 = vadd.f32 %v1278_v55, %v1277_v4  ;;  %v1284_v2 = vsel %vm1032_vm6, %v1619_v52, 0.0 }
 0x1c8   : > { %v1273_v26 = vrot.slane %v1272_v59, 2  ;;  %v1285_v8 = vrot.slane %v1284_v2, 4  ;;  %1626 = vpow2.f32 %v1191_v61 }
 0x1c9   : > { %v1280_v57 = vrot.slane %v1279_v1, 2  ;;  %1628 = vrcp.f32 %v1269_v5 }
 0x1ca   : > { %v1621_v9 = vpop.eup %1620  ;;  %v1274_v10 = vadd.f32 %v1273_v26, %v1272_v59  ;;  %v1286_v11 = vadd.f32 %v1285_v8, %v1284_v2 }
 0x1cb   : > { %v1623_v13 = vpop.eup %1622  ;;  %v1281_v63 = vadd.f32 %v1280_v57, %v1279_v1  ;;  %v1291_v35 = vsel %vm1032_vm6, %v1621_v9, 0.0 }
 0x1cc   : > { %v1275_v15 = vrot.slane %v1274_v10, 1  ;;  %v1287_v16 = vrot.slane %v1286_v11, 2  ;;  %v1292_v19 = vrot.slane %v1291_v35, 4  ;;  %v1322_v38 = vmul.f32 %v1623_v13, %v1949_v58 }
 0x1cd   : > { %v1282_v20 = vrot.slane %v1281_v63, 1 }
 0x1ce   : > { %v1276_v24 = vadd.f32 %v1275_v15, %v1274_v10  ;;  %v1288_v25 = vadd.f32 %v1287_v16, %v1286_v11  ;;  %v1293_v7 = vadd.f32 %v1292_v19, %v1291_v35 }
 0x1cf   : > { %v1625_v12 = vpop.eup %1624  ;;  %v1283_v41 = vadd.f32 %v1282_v20, %v1281_v63 }
 0x1d0   : > { %v1324_v62 = vmul.f32 %v1625_v12, %v1959_v21  ;;  %1630 = vrcp.f32 %v1276_v24  ;;  %v1289_v27 = vrot.slane %v1288_v25, 1  ;;  %v1294_v30 = vrot.slane %v1293_v7, 2 }
 0x1d1   : > { %1632 = vrcp.f32 %v1283_v41 }
 0x1d2   : > { %v1627_v28 = vpop.eup %1626  ;;  %v1357_v6 = vcombine.low %v1322_v38, %v1324_v62  ;;  %v1290_v17 = vadd.f32 %v1289_v27, %v1288_v25  ;;  %v1295_v22 = vadd.f32 %v1294_v30, %v1293_v7 }
 0x1d3   : > { %v1298_v31 = vsel %vm1032_vm6, %v1627_v28, 0.0  ;;  %v1629_v32 = vpop.eup %1628 }
 0x1d4   : > { %1373 = vst [vmem:[%s1946_s26 + $0x20] sm:$0x77] %v1357_v6  ;;  %1634 = vrcp.f32 %v1290_v17  ;;  %v1296_v58 = vrot.slane %v1295_v22, 1  ;;  %v1299_v14 = vrot.slane %v1298_v31, 4  ;;  %v1326_v21 = vmul.f32 %v1629_v32, %v1962_v3 }
 0x1d6   : > { %v1300_v47 = vadd.f32 %v1299_v14, %v1298_v31  ;;  %v1297_v51 = vadd.f32 %v1296_v58, %v1295_v22 }
 0x1d8   : > { %v1301_v42 = vrot.slane %v1300_v47, 2  ;;  %1636 = vrcp.f32 %v1297_v51 }
 0x1da   : > { %v1631_v18 = vpop.eup %1630  ;;  %v1302_v33 = vadd.f32 %v1301_v42, %v1300_v47 }
 0x1db   : > { %v1633_v29 = vpop.eup %1632  ;;  %v1328_v49 = vmul.f32 %v1631_v18, %v1615_v46 }
 0x1dc   : > { %v1303_v56 = vrot.slane %v1302_v33, 1  ;;  %v1330_v34 = vmul.f32 %v1633_v29, %v1617_v43 }
 0x1dd   : > { %v1358_v23 = vcombine.low %v1326_v21, %v1328_v49 }
 0x1de   : > { %v1635_v36 = vpop.eup %1634  ;;  %v1304_v37 = vadd.f32 %v1303_v56, %v1302_v33 }
 0x1df   : > { %1374 = vst [vmem:[%s1946_s26 + $0x28] sm:$0x77] %v1358_v23  ;;  %v1332_v39 = vmul.f32 %v1635_v36, %v1619_v52 }
 0x1e0   : > { %1638 = vrcp.f32 %v1304_v37 }
 0x1e1   : > { %v1359_v0 = vcombine.low %v1330_v34, %v1332_v39 }
 0x1e2   : > { %v1637_v40 = vpop.eup %1636 }
 0x1e3   : > { %1375 = vst [vmem:[%s1946_s26 + $0x30] sm:$0x77] %v1359_v0  ;;  %v1334_v45 = vmul.f32 %v1637_v40, %v1621_v9 }
 0x1ea   : > { %v1639_v48 = vpop.eup %1638 }
 0x1eb   : > { %v1336_v3 = vmul.f32 %v1639_v48, %v1627_v28 }
 0x1ed   : > { %v1360_v53 = vcombine.low %v1334_v45, %v1336_v3 }
 0x1ef   : > { %1376 = vst [vmem:[%s1946_s26 + $0x38] sm:$0x77] %v1360_v53 }
 0x1f0 PF: > { %s15_s22 = sadd.s32 1, %s1678_s22   ;;  %s2008_s18 = smov %s1670_s20 }
 0x1f1   : > { %p12_p7 = scmp.ge.s32.totalorder %s15_s22, 6   ;;  %s2009_s19 = smov %s1674_s21 }
 0x1f2   : > { %s2010_s20 = smov %s2013_s23  ;;  %s2011_s21 = smov %s2017_s24 }
 0x1f3   :  { %14 = sbr.rel (!%p12_p7) target bundleno = 3 (0x3), region = 76 }

// kernel: out_conv_forward.7
= control target key start
LH: loop header
LB: loop body
LE: loop exit
PB: predicated region body
PF: predicated region fallthrough
CT: control target
= control target key end

     0   :  { %s3981_s30 = smov 0   ;;  %s3983_s10 = smov 0   ;;  %s4648_s0 = inlined_call_operand.vmem [shape: f32[2,2,4096], index: 0, kind: input, shape index: {}, may-alias: {0,1,2}]   ;;  %s4649_s1 = inlined_call_operand.vmem [shape: f32[2,2,4096], index: 1, kind: input, shape index: {}, may-alias: {0,1,2}]   ;;  %s4650_s2 = inlined_call_operand.vmem [shape: f32[2,2,4096], index: 2, kind: input, shape index: {}, may-alias: {0,1,2}]   ;;  %s4651_s3 = inlined_call_operand.vmem [shape: f32[27,2,2], index: 3, kind: input, shape index: {}]   ;;  %s4652_s4 = inlined_call_operand.vmem [shape: f32[2,2,1], index: 4, kind: input, shape index: {}]   ;;  %s4653_s5 = inlined_call_operand.vmem [shape: f32[2,2,1], index: 5, kind: input, shape index: {}]   ;;  %s4654_s6 = inlined_call_operand.vmem [shape: f32[2,1], index: 6, kind: input, shape index: {}]   ;;  %s4655_s7 = inlined_call_operand.vmem [shape: f32[2,2,4096], index: 7, kind: output, shape index: {0}]   ;;  %s4656_s8 = inlined_call_operand.vmem [shape: f32[2,16,2,1], index: 8, kind: output, shape index: {1}]   ;;  %s4657_s9 = inlined_call_operand.vmem [shape: f32[2,16,2,1], index: 9, kind: output, shape index: {2}]  }
   0x1   :  { %4658 = sst [smem:[#allocation3_spill]] %s4652_s4  ;;  %s3985_s11 = smov 0  }
   0x2   :  { %4659 = sst [smem:[#allocation4_spill]] %s4653_s5  ;;  %s3987_s12 = smov 0  }
   0x3   :  { %s3989_s13 = smov 0  }
   0x4 LB: > { %s29_s14 = sadd.s32 1, %s3908_s11  ;;  %s32_s15 = sadd.s32 1, %s3912_s12  ;;  %s3916_s13 = sphi %s3989_s13, %s20_s13   ;;  %s3912_s12 = sphi %s3987_s12, %s4677_s12   ;;  %s3908_s11 = sphi %s3985_s11, %s4676_s11   ;;  %s3904_s10 = sphi %s3983_s10, %s4675_s10   ;;  %s3900_s30 = sphi %s3981_s30, %s4674_s30  }
   0x5   : > { %p30_p0 = scmp.ge.s32.totalorder %s29_s14, 16  ;;  %p3608_p1 = scmp.ge.s32.totalorder %s3916_s13, 1 }
   0x6   : > { %p425_p2 = scmp.lt.s32.totalorder %s3916_s13, 33 }
   0x7   : > { %s4679_s14 = smov (%p30_p0, %s29_s14), 0  ;;  %s4681_s15 = smov (!%p30_p0, %s32_s15), %s3912_s12 }
   0x8   : > { %p426_p3 = pnand %p3608_p1, %p425_p2  ;;  %p34_p4 = scmp.ge.s32.totalorder %s4681_s15, 2 }
   0x9   : > { %p531_p5 = scmp.lt.s32.totalorder (!%p426_p3), %s3904_s10, 1  ;;  %v3918_v0 = vmov (!%p426_p3), 0   ;;  %s4661_s4 = sld [smem:[#allocation3_spill]] (!%p426_p3)  ;;  %v617_v3 = vlaneseq (!%p426_p3)  ;;  %v3919_v4 = vmov (!%p426_p3), 269488144   ;;  %vm698_vm3 = vcmask (!%p426_p3), 138240  }
   0xa   : > { %s4683_s15 = smov (%p34_p4, %s4681_s15), 0  ;;  %429 = sbr.rel (%p426_p3) target bundleno = 902 (0x386), region = 48 }
   0xb   : > { %4660 = sst [smem:[#allocation2_spill]] %s4683_s15  ;;  %3877 = vset.pattern.permute.xlu0 (!%p426_p3), %v3918_v0  ;;  %s4662_s5 = sld [smem:[#allocation4_spill]] (!%p426_p3)  ;;  %v652_v5 = vunpack.c.l.s4 (!%p426_p3), %v3919_v4  ;;  %v655_v7 = vshrl.u32 (!%p426_p3), %v617_v3, 7  ;;  %v3920_v10 = vmov (!%p426_p3), 1983009808   ;;  %v3925_v46 = vmov (!%p426_p3), 0.0  }
   0xc   : > { %s4023_s23 = sadd.s32 (!%p426_p3), 1, %s3900_s30  ;;  %p545_p6 = scmp.lt.s32.totalorder (!%p426_p3), %s3900_s30, 15  ;;  %v687_v11 = vunpack.c.l.s4 (!%p426_p3), %v3920_v10  ;;  %2036 = vmatprep.mubr.f32.mxu0 (!%p426_p3), %v3925_v46  ;;  %800 = vmatprep.mubr.f32.mxu1 (!%p426_p3), %v3925_v46  ;;  %v618_v0 = vand.u32 (!%p426_p3), 127, %v617_v3  ;;  %vm731_vm4 = vcmask (!%p426_p3), 1041408   ;;  %vm1095_vm5 = vcmask (!%p426_p3), 908288  }
   0xd   : > { %p564_p7 = scmp.lt.s32.totalorder (!%p426_p3), %s4023_s23, 15  ;;  %s4028_s24 = sadd.s32 (!%p426_p3), 4294967295, %s3900_s30  ;;  %v653_v6 = vunpack.c.0.s8 (!%p426_p3), %v652_v5  ;;  %vm727_vm6 = vcmask (!%p426_p3), 15360   ;;  %v3694_v3 = vld [vmem:[%s4651_s3 + $0x1a] sm:$0x3] (!%p426_p3)  ;;  %vm1184_vm7 = vcmask (!%p426_p3), 900096  }
   0xe   : > { %p3617_p8 = scmp.gt.s32.totalorder (!%p426_p3), %s3900_s30, 0  ;;  %p526_p9 = scmp.lt.s32.totalorder (!%p426_p3), %s4028_s24, 15  ;;  %v688_v17 = vunpack.c.0.s8 (!%p426_p3), %v687_v11  ;;  %v619_v4 = vadd.s32 (!%p426_p3), 128, %v618_v0  ;;  %vm1281_vm10 = vcmask (!%p426_p3), 785408   ;;  %vm1380_vm13 = vcmask (!%p426_p3), 777216  }
   0xf   : > { %p3625_p10 = scmp.gt.s32.totalorder (!%p426_p3), %s4023_s23, 0  ;;  %p3609_p11 = scmp.gt.s32.totalorder (!%p426_p3), %s4028_s24, 0  ;;  %v656_v8 = vsub.s32 (!%p426_p3), %v653_v6, %v655_v7  ;;  %vm1469_vm14 = vcmask (!%p426_p3), 769024   ;;  %vm724_vm15 = vcmask (!%p426_p3), 1039360  }
  0x10   : > { %p677_p1 = scmp.ge.s32.totalorder (!%p426_p3), %s4028_s24, 0  ;;  %p678_p2 = scmp.lt.s32.totalorder (!%p426_p3), %s4028_s24, 16  ;;  %v691_v25 = vsub.s32 (!%p426_p3), %v688_v17, %v655_v7  ;;  %v624_v7 = vand.u32 (!%p426_p3), 15, %v618_v0 }
  0x11   : > { %s4685_s10 = smov (!%p531_p5, %s3904_s10), 1  ;;  %p2430_p3 = scmp.ge.s32.totalorder %s4023_s23, 0 }
  0x12   : > { %s3633_s16 = sshll.u32 %s4685_s10, 1  ;;  %s4041_s18 = sshll.u32 %s4685_s10, 5  ;;  %vm4229_vm8 = vcmp.eq.s32.totalorder %v624_v7, 15  ;;  %vm4261_vm12 = vcmp.eq.s32.totalorder %v624_v7, 0 }
  0x13   : > { %s586_s19 = scalar_lea.vmem %s4661_s4, %s3633_s16  ;;  %s590_s22 = scalar_lea.vmem %s4662_s5, %s3633_s16 }
  0x14   : > { %v644_v1 = vld [vmem:[%s586_s19] sm:$0x3]  ;;  %s4031_s25 = scalar_select %p545_p6, %s3900_s30, 15 }
  0x15   : > { %649 = vperm.xlu0 %3877, %v644_v1   ;;  %v645_v2 = vld [vmem:[%s590_s22] sm:$0x3]  ;;  %s565_s26 = scalar_select %p564_p7, %s4023_s23, 15 }
  0x16   : > { %s527_s27 = scalar_select %p526_p9, %s4028_s24, 15 }
  0x17   : > { %s3769_s28 = scalar_select %p3617_p8, %s4031_s25, 0 }
  0x18   : > { %s4687_s26 = smov (!%p3625_p10, %s565_s26), 0  ;;  %s4689_s27 = smov (!%p3609_p11, %s527_s27), 0 }
  0x19   : > { %662 = vperm.xlu0 %3877, %v645_v2   ;;  %s3622_s29 = sshll.u32 %s3769_s28, 1  ;;  %s3630_s16 = sshll.u32 %s4687_s26, 1 }
  0x1a   : > { %p552_p12 = scmp.lt.s32.totalorder %s3622_s29, 31  ;;  %s3614_s17 = sshll.u32 %s4689_s27, 1 }
  0x1b   : > { %p571_p13 = scmp.lt.s32.totalorder %s3630_s16, 31  ;;  %p533_p0 = scmp.lt.s32.totalorder %s3614_s17, 31 }
  0x1c   : > { %s4691_s29 = smov (!%p552_p12, %s3622_s29), 31  ;;  %p2431_p4 = scmp.lt.s32.totalorder %s4023_s23, 16 }
  0x1d   : > { %s4693_s16 = smov (!%p571_p13, %s3630_s16), 31  ;;  %s4695_s17 = smov (!%p533_p0, %s3614_s17), 31 }
  0x1e   : > { %s555_s19 = sadd.s32 %s4041_s18, %s4691_s29  ;;  %s574_s20 = sadd.s32 %s4041_s18, %s4693_s16 }
  0x1f   : > { %s536_s21 = sadd.s32 %s4041_s18, %s4695_s17  ;;  %s3624_s22 = sshll.u32 %s555_s19, 1 }
  0x20   : > { %s3632_s26 = sshll.u32 %s574_s20, 1  ;;  %s3616_s27 = sshll.u32 %s536_s21, 1 }
  0x21   : > { %p4051_p5 = pnand %p678_p2, %p677_p1  ;;  %s557_s16 = scalar_lea.vmem %s4649_s1, %s3624_s22 }
  0x22   : > { %s576_s15 = scalar_lea.vmem %s4650_s2, %s3632_s26  ;;  %s538_s20 = scalar_lea.vmem %s4648_s0, %s3616_s27  ;;  %v1560_v14 = vld [vmem:[%s557_s16] sm:$0xf] }
  0x23   : > { %p4064_p6 = pnand %p2431_p4, %p2430_p3  ;;  %v646_v13 = vld [vmem:[%s538_s20] sm:$0xf]  ;;  %s3922_s26 = smov 111  }
  0x24   : > { %s3642_s21 = scalar_select %p4051_p5, 0, 1  ;;  %v2423_v15 = vld [vmem:[%s576_s15] sm:$0xf] }
  0x25   : > { %s3714_s4 = scalar_select %p4064_p6, 0, 1 }
  0x26   : > { %s682_s5 = scvt.s32.f32 %s3642_s21  ;;  %s3921_s15 = smov 17  }
  0x27   : > { %s2435_s22 = scvt.s32.f32 %s3714_s4  ;;  %s3923_s27 = smov 110  }
  0x28   : > { %v683_v26 = vstv %s682_s5  ;;  %s3924_s28 = smov 96   ;;  %s3926_s29 = smov 95  }
  0x29   : > { %v2436_v32 = vstv %s2435_s22  ;;  %s3927_s16 = smov 127   ;;  %s3928_s24 = smov 94  }
  0x2a   : > { %s3929_s17 = smov 126   ;;  %s3930_s19 = smov 112  }
  0x94   : > { %v650_v9 = vpop.permute.xlu0 %649 }
  0x95   : > { %v657_v12 = vrot.slane %v650_v9, %v656_v8 }
  0x97   : > { %v659_v18 = vmul.f32 %v657_v12, %v646_v13  ;;  %v1561_v19 = vmul.f32 %v1560_v14, %v657_v12  ;;  %v2424_v20 = vmul.f32 %v2423_v15, %v657_v12 }
  0x98   : > { %v663_v16 = vpop.permute.xlu0 %662 }
  0x99   : > { %v670_v21 = vrot.slane %v663_v16, %v656_v8  ;;  %v631_v8 = vand.u32 15, %v619_v4 }
  0x9b   : > { %v672_v22 = vadd.f32 %v670_v21, %v659_v18  ;;  %v1562_v23 = vadd.f32 %v1561_v19, %v670_v21  ;;  %v2425_v24 = vadd.f32 %v2424_v20, %v670_v21  ;;  %vm4233_vm9 = vcmp.eq.s32.totalorder %v631_v8, 15 }
  0x9c   : > { %vm4255_vm11 = vcmp.eq.s32.totalorder %v631_v8, 0 }
  0x9d   : > { %v674_v27 = vmul.f32 0.01, %v672_v22  ;;  %v2427_v28 = vmul.f32 0.01, %v2425_v24  ;;  %vm1563_vm0 = vcmp.ge.f32.partialorder %v1562_v23, 0.0  ;;  %vm673_vm1 = vcmp.ge.f32.partialorder %v672_v22, 0.0 }
  0x9e   : > { %v1564_v29 = vmul.f32 0.01, %v1562_v23  ;;  %vm2426_vm2 = vcmp.ge.f32.partialorder %v2425_v24, 0.0 }
  0x9f   : > { %v675_v30 = vsel %vm673_vm1, %v672_v22, %v674_v27  ;;  %v2428_v31 = vsel %vm2426_vm2, %v2425_v24, %v2427_v28  ;;  %v3295_v28 = vld [vmem:[%s4654_s6] sm:$0x3]  ;;  %vm996_vm1 = vcmask 916480   ;;  %vm3320_vm2 = vcmask 1024  }
  0xa0   : > { %v1565_v33 = vsel %vm1563_vm0, %v1562_v23, %v1564_v29  ;;  %v684_v34 = vmul.f32 %v683_v26, %v675_v30  ;;  %v2437_v37 = vmul.f32 %v2436_v32, %v2428_v31  ;;  %v3698_v26 = vld [vmem:[%s4651_s3 + $0x1c] sm:$0x3]  ;;  %vm899_vm0 = vcmask 1031168  }
  0xa1   : > { %v1573_v35 = vrot.slane %v1565_v33, %v691_v25 }
  0xa2   : > { %v692_v36 = vrot.slane %v684_v34, %v691_v25  ;;  %v2445_v39 = vrot.slane %v2437_v37, %v691_v25  ;;  %v3702_v34 = vld [vmem:[%s4651_s3 + $0x1e] sm:$0x3] }
  0xa3   : > { %1575 = vrot.lane.b32.xlu1 %v1573_v35, %s3921_s15  ;;  %v1574_v38 = vcombine.high %v1573_v35, %v1573_v35 }
  0xa4   : > { %694 = vrot.lane.b32.xlu0 %v692_v36, %s3921_s15  ;;  %v693_v40 = vcombine.high %v692_v36, %v692_v36  ;;  %v2446_v41 = vcombine.high %v2445_v39, %v2445_v39 }
  0xa7   : > { %1577 = vrot.lane.b32.xlu1 %v1574_v38, %s3921_s15 }
  0xa8   : > { %2447 = vrot.lane.b32.xlu0 %v2445_v39, %s3921_s15 }
  0xab   : > { %696 = vrot.lane.b32.xlu1 %v693_v40, %s3921_s15 }
  0xaf   : > { %2449 = vrot.lane.b32.xlu1 %v2446_v41, %s3921_s15 }
 0x115   : > { %v1576_v42 = vpop.permute.xlu1 %1575 }
 0x116   : > { %v4073_v43 = vsel %vm698_vm3, 0.0, %v1576_v42  ;;  %v695_v48 = vpop.permute.xlu0 %694 }
 0x117   : > { %1957 = vrot.lane.b32.xlu0 %v4073_v43, %s3922_s26  ;;  %2045 = vrot.lane.b32.xlu1 %v4073_v43, %s3923_s27  ;;  %v4096_v49 = vsel %vm698_vm3, 0.0, %v695_v48 }
 0x119   : > { %v1578_v44 = vpop.permute.xlu1 %1577 }
 0x11a   : > { %v4080_v45 = vsel %vm698_vm3, %v1576_v42, %v1578_v44  ;;  %v4089_v47 = vsel %vm698_vm3, %v1578_v44, 0.0  ;;  %v2448_v50 = vpop.permute.xlu0 %2447  ;;  %v3706_v44 = vld [vmem:[%s4651_s3 + $0x20] sm:$0x3] }
 0x11b   : > { %1959 = vrot.lane.b32.xlu0 %v4080_v45, %s3922_s26  ;;  %2141 = vrot.lane.b32.xlu1 %v4073_v43, %s3924_s28  ;;  %v4127_v51 = vsel %vm698_vm3, 0.0, %v2448_v50 }
 0x11d   : > { %v697_v52 = vpop.permute.xlu1 %696 }
 0x11e   : > { %v4134_v53 = vsel %vm698_vm3, %v695_v48, %v697_v52  ;;  %v704_v54 = vsel %vm698_vm3, %v697_v52, 0.0 }
 0x11f   : > { %2049 = vrot.lane.b32.xlu0 %v4089_v47, %s3923_s27  ;;  %2239 = vrot.lane.b32.xlu1 %v4073_v43, %s3926_s29 }
 0x121   : > { %v2450_v55 = vpop.permute.xlu1 %2449 }
 0x122   : > { %v4169_v56 = vsel %vm698_vm3, %v2448_v50, %v2450_v55  ;;  %v2456_v57 = vsel %vm698_vm3, %v2450_v55, 0.0  ;;  %v3643_v55 = vld [vmem:[%s4651_s3 + $0x2] sm:$0x3] }
 0x123   : > { %718 = vrot.lane.b32.xlu0 %v4096_v49, %s3927_s16  ;;  %2327 = vrot.lane.b32.xlu1 %v4073_v43, %s3928_s24 }
 0x127   : > { %2145 = vrot.lane.b32.xlu0 %v4089_v47, %s3924_s28  ;;  %1961 = vrot.lane.b32.xlu1 %v4089_v47, %s3922_s26 }
 0x12b   : > { %893 = vrot.lane.b32.xlu0 %v4096_v49, %s3929_s17  ;;  %2047 = vrot.lane.b32.xlu1 %v4080_v45, %s3923_s27 }
 0x12f   : > { %2243 = vrot.lane.b32.xlu0 %v4089_v47, %s3926_s29  ;;  %2143 = vrot.lane.b32.xlu1 %v4080_v45, %s3924_s28 }
 0x133   : > { %2329 = vrot.lane.b32.xlu0 %v4080_v45, %s3928_s24  ;;  %2241 = vrot.lane.b32.xlu1 %v4080_v45, %s3926_s29 }
 0x137   : > { %990 = vrot.lane.b32.xlu0 %v4096_v49, %s3930_s19  ;;  %2331 = vrot.lane.b32.xlu1 %v4089_v47, %s3928_s24 }
 0x13b   : > { %1089 = vrot.lane.b32.xlu0 %v4096_v49, %s3922_s26  ;;  %1178 = vrot.lane.b32.xlu1 %v4096_v49, %s3923_s27 }
 0x13f   : > { %2547 = vrot.lane.b32.xlu0 %v4127_v51, %s3927_s16  ;;  %1275 = vrot.lane.b32.xlu1 %v4096_v49, %s3924_s28 }
 0x143   : > { %722 = vrot.lane.b32.xlu0 %v704_v54, %s3927_s16  ;;  %720 = vrot.lane.b32.xlu1 %v4134_v53, %s3927_s16 }
 0x147   : > { %2635 = vrot.lane.b32.xlu0 %v4127_v51, %s3929_s17  ;;  %2731 = vrot.lane.b32.xlu1 %v4127_v51, %s3930_s19 }
 0x14b   : > { %1374 = vrot.lane.b32.xlu0 %v4096_v49, %s3926_s29  ;;  %1463 = vrot.lane.b32.xlu1 %v4096_v49, %s3928_s24 }
 0x14f   : > { %895 = vrot.lane.b32.xlu0 %v4134_v53, %s3929_s17  ;;  %897 = vrot.lane.b32.xlu1 %v704_v54, %s3929_s17 }
 0x153   : > { %2829 = vrot.lane.b32.xlu0 %v4127_v51, %s3922_s26  ;;  %2917 = vrot.lane.b32.xlu1 %v4127_v51, %s3923_s27 }
 0x157   : > { %992 = vrot.lane.b32.xlu0 %v4134_v53, %s3930_s19  ;;  %994 = vrot.lane.b32.xlu1 %v704_v54, %s3930_s19 }
 0x15b   : > { %1677 = vrot.lane.b32.xlu0 %v4080_v45, %s3927_s16  ;;  %1679 = vrot.lane.b32.xlu1 %v4089_v47, %s3927_s16 }
 0x15f   : > { %1091 = vrot.lane.b32.xlu0 %v4134_v53, %s3922_s26  ;;  %1093 = vrot.lane.b32.xlu1 %v704_v54, %s3922_s26 }
 0x163   : > { %1182 = vrot.lane.b32.xlu0 %v704_v54, %s3923_s27  ;;  %1180 = vrot.lane.b32.xlu1 %v4134_v53, %s3923_s27 }
 0x167   : > { %2551 = vrot.lane.b32.xlu1 %v2456_v57, %s3927_s16  ;;  %2549 = vrot.lane.b32.xlu0 %v4169_v56, %s3927_s16 }
 0x16b   : > { %1277 = vrot.lane.b32.xlu1 %v4134_v53, %s3924_s28  ;;  %1279 = vrot.lane.b32.xlu0 %v704_v54, %s3924_s28 }
 0x16f   : > { %2637 = vrot.lane.b32.xlu1 %v4169_v56, %s3929_s17  ;;  %2639 = vrot.lane.b32.xlu0 %v2456_v57, %s3929_s17 }
 0x173   : > { %1675 = vrot.lane.b32.xlu1 %v4073_v43, %s3927_s16  ;;  %3013 = vrot.lane.b32.xlu0 %v4127_v51, %s3924_s28  ;;  %s3635_s16 = sshll.u32 %s3900_s30, 1  ;;  %s3638_s30 = sshll.u32 %s4685_s10, 4 }
 0x174   : > { %p594_p7 = scmp.lt.s32.totalorder %s3635_s16, 31 }
 0x176   : > { %s4697_s16 = smov (!%p594_p7, %s3635_s16), 31 }
 0x177   : > { %2733 = vrot.lane.b32.xlu1 %v4169_v56, %s3930_s19  ;;  %2735 = vrot.lane.b32.xlu0 %v2456_v57, %s3930_s19 }
 0x17b   : > { %1376 = vrot.lane.b32.xlu1 %v4134_v53, %s3926_s29  ;;  %1378 = vrot.lane.b32.xlu0 %v704_v54, %s3926_s29 }
 0x17f   : > { %1465 = vrot.lane.b32.xlu1 %v4134_v53, %s3928_s24  ;;  %1467 = vrot.lane.b32.xlu0 %v704_v54, %s3928_s24 }
 0x183   : > { %2833 = vrot.lane.b32.xlu1 %v2456_v57, %s3922_s26  ;;  %2831 = vrot.lane.b32.xlu0 %v4169_v56, %s3922_s26 }
 0x187   : > { %2919 = vrot.lane.b32.xlu1 %v4169_v56, %s3923_s27  ;;  %2921 = vrot.lane.b32.xlu0 %v2456_v57, %s3923_s27 }
 0x189   : > { %v1958_v58 = vpop.permute.xlu0 %1957  ;;  %v2046_v59 = vpop.permute.xlu1 %2045 }
 0x18b   : > { %1767 = vrot.lane.b32.xlu1 %v4089_v47, %s3929_s17  ;;  %1765 = vrot.lane.b32.xlu0 %v4080_v45, %s3929_s17 }
 0x18d   : > { %v1960_v60 = vpop.permute.xlu0 %1959  ;;  %v2142_v61 = vpop.permute.xlu1 %2141 }
 0x18e   : > { %v1963_v12 = vsel %vm1095_vm5, %v1958_v58, %v1960_v60  ;;  %v712_v58 = vsel %vm4255_vm11, 0.0, %v4134_v53  ;;  %v3710_v53 = vld [vmem:[%s4651_s3 + $0x22] sm:$0x3] }
 0x18f   : > { %3017 = vrot.lane.b32.xlu1 %v2456_v57, %s3924_s28  ;;  %3015 = vrot.lane.b32.xlu0 %v4169_v56, %s3924_s28 }
 0x191   : > { %v2050_v62 = vpop.permute.xlu0 %2049  ;;  %v4207_v63 = vpop.permute.xlu1 %2239 }
 0x193   : > { %3111 = vrot.lane.b32.xlu1 %v4127_v51, %s3926_s29  ;;  %1763 = vrot.lane.b32.xlu0 %v4073_v43, %s3929_s17 }
 0x195   : > { %v4214_v1 = vpop.permute.xlu0 %718  ;;  %v4216_v2 = vpop.permute.xlu1 %2327 }
 0x197   : > { %1863 = vrot.lane.b32.xlu1 %v4089_v47, %s3930_s19  ;;  %1861 = vrot.lane.b32.xlu0 %v4080_v45, %s3930_s19 }
 0x199   : > { %v2146_v5 = vpop.permute.xlu0 %2145  ;;  %v1962_v6 = vpop.permute.xlu1 %1961 }
 0x19a   : > { %v1964_v9 = vsel %vm1095_vm5, %v1960_v60, %v1962_v6  ;;  %v3715_v6 = vld [vmem:[%s4651_s3 + $0x24] sm:$0x3] }
 0x19b   : > { %3113 = vrot.lane.b32.xlu1 %v4169_v56, %s3926_s29  ;;  %3115 = vrot.lane.b32.xlu0 %v2456_v57, %s3926_s29 }
 0x19c   : > { %3695 = vmatprep.subr.msk.mxu0 %vm731_vm4, %v1964_v9  ;;  %v3650_v9 = vld [vmem:[%s4651_s3 + $0x4] sm:$0x3] }
 0x19d   : > { %3696 = vmatpush1.msk.msra.mxu0 %vm731_vm4, %v1963_v12  ;;  %v4240_v13 = vpop.permute.xlu0 %893  ;;  %v2048_v14 = vpop.permute.xlu1 %2047 }
 0x19e   : > { %3697 = vmatmul.mubr.msk.f32.vlgmr.msra.gmra.mrb[0].mxu0 %vm727_vm6, %v3694_v3  ;;  %v2051_v15 = vsel %vm1184_vm7, %v2046_v59, %v2048_v14  ;;  %v2052_v16 = vsel %vm1184_vm7, %v2048_v14, %v2050_v62 }
 0x19f   : > { %v2055_v17 = vsel %vm4229_vm8, 0.0, %v2051_v15  ;;  %v2056_v18 = vsel %vm4233_vm9, 0.0, %v2052_v16  ;;  %3203 = vrot.lane.b32.xlu1 %v2456_v57, %s3928_s24  ;;  %3201 = vrot.lane.b32.xlu0 %v4169_v56, %s3928_s24  ;;  %v2458_v57 = vsel %vm4255_vm11, 0.0, %v4169_v56  ;;  %v711_v56 = vsel %vm4261_vm12, 0.0, %v4096_v49 }
 0x1a0   : > { %3699 = vmatprep.subr.msk.mxu0 %vm731_vm4, %v2056_v18  ;;  %2132 = vmatprep.mubr.f32.mxu0 %v3925_v46  ;;  %v2457_v49 = vsel %vm4261_vm12, 0.0, %v4127_v51 }
 0x1a1   : > { %v2244_v19 = vpop.permute.xlu0 %2243  ;;  %3700 = vmatpush1.msk.msra.mxu0 %vm731_vm4, %v2055_v17  ;;  %v2144_v20 = vpop.permute.xlu1 %2143 }
 0x1a2   : > { %v2147_v22 = vsel %vm1281_vm10, %v2142_v61, %v2144_v20  ;;  %v2148_v23 = vsel %vm1281_vm10, %v2144_v20, %v2146_v5 }
 0x1a3   : > { %v2152_v25 = vsel %vm4255_vm11, 0.0, %v2148_v23  ;;  %3199 = vrot.lane.b32.xlu1 %v4127_v51, %s3928_s24  ;;  %1859 = vrot.lane.b32.xlu0 %v4073_v43, %s3930_s19  ;;  %v2151_v27 = vsel %vm4261_vm12, 0.0, %v2147_v22  ;;  %s597_s24 = sadd.s32 %s4041_s18, %s4697_s16  ;;  %s606_s18 = sadd.s32 %s3638_s30, %s4031_s25 }
 0x1a4   : > { %3703 = vmatprep.subr.msk.mxu0 %vm731_vm4, %v2152_v25  ;;  %s3637_s17 = sshll.u32 %s597_s24, 1  ;;  %s3639_s21 = sshll.u32 %s606_s18, 1 }
 0x1a5   : > { %v2330_v29 = vpop.permute.xlu0 %2329  ;;  %v2242_v30 = vpop.permute.xlu1 %2241  ;;  %s599_s23 = scalar_lea.vmem %s4655_s7, %s3637_s17  ;;  %s608_s22 = scalar_lea.vmem %s4656_s8, %s3639_s21 }
 0x1a6   : > { %3701 = vmatmul.mubr.msk.f32.vlgmr.msra.gmra.mrb[0].mxu0 %vm727_vm6, %v3698_v26  ;;  %v2246_v31 = vsel %vm1380_vm13, %v2242_v30, %v2244_v19  ;;  %v2245_v38 = vsel %vm1380_vm13, %v4207_v63, %v2242_v30  ;;  %v2333_v42 = vsel %vm1469_vm14, %v4216_v2, %v2330_v29  ;;  %v713_v63 = vld [vmem:[%s4651_s3] sm:$0x3]  ;;  %v3654_v19 = vld [vmem:[%s4651_s3 + $0x6] sm:$0x3]  ;;  %v3658_v30 = vld [vmem:[%s4651_s3 + $0x8] sm:$0x3]  ;;  %s616_s27 = scalar_lea.vmem %s4657_s9, %s3639_s21 }
 0x1a7   : > { %3704 = vmatpush1.msk.msra.mxu0 %vm731_vm4, %v2151_v27  ;;  %3298 = vperm.xlu0 %3877, %v3295_v28   ;;  %v2337_v50 = vsel %vm4229_vm8, 0.0, %v2333_v42 }
 0x1a8   : > { %3707 = vmatprep.subr.msk.mxu0 %vm731_vm4, %v2246_v31  ;;  %2228 = vmatprep.mubr.f32.mxu0 %v3925_v46 }
 0x1a9   : > { %v4285_v32 = vpop.permute.xlu0 %990  ;;  %v2332_v33 = vpop.permute.xlu1 %2331 }
 0x1aa   : > { %v2334_v35 = vsel %vm1469_vm14, %v2330_v29, %v2332_v33 }
 0x1ab   : > { %v2338_v39 = vsel %vm4233_vm9, 0.0, %v2334_v35 }
 0x1ad   : > { %v4291_v36 = vpop.permute.xlu0 %1089  ;;  %v4293_v37 = vpop.permute.xlu1 %1178 }
 0x1ae   : > { %3705 = vmatmul.mubr.msk.f32.vlgmr.msra.gmra.mrb[0].mxu0 %vm727_vm6, %v3702_v34 }
 0x1af   : > { %3708 = vmatpush1.msk.msra.mxu0 %vm731_vm4, %v2245_v38  ;;  %2318 = vmatprep.mubr.f32.mxu0 %v3925_v46 }
 0x1b0   : > { %3711 = vmatprep.subr.msk.mxu0 %vm731_vm4, %v2338_v39 }
 0x1b1   : > { %v4303_v40 = vpop.permute.xlu0 %2547  ;;  %v4305_v41 = vpop.permute.xlu1 %1275 }
 0x1b5   : > { %v723_v47 = vpop.permute.xlu0 %722  ;;  %v721_v48 = vpop.permute.xlu1 %720 }
 0x1b6   : > { %3709 = vmatmul.mubr.msk.f32.vlgmr.msra.gmra.mrb[0].mxu0 %vm727_vm6, %v3706_v44  ;;  %v726_v52 = vsel %vm724_vm15, %v721_v48, %v723_v47  ;;  %v725_v54 = vsel %vm724_vm15, %v4214_v1, %v721_v48  ;;  %v3662_v44 = vld [vmem:[%s4651_s3 + $0xa] sm:$0x3] }
 0x1b7   : > { %3712 = vmatpush1.msk.msra.mxu0 %vm731_vm4, %v2337_v50  ;;  %3644 = vmatprep.subr.msk.mxu1 %vm731_vm4, %v726_v52 }
 0x1b8   : > { %3716 = vmatprep.subr.msk.mxu0 %vm731_vm4, %v2458_v57  ;;  %3645 = vmatpush1.msk.msra.mxu1 %vm731_vm4, %v725_v54 }
 0x1b9   : > { %v4331_v59 = vpop.permute.xlu0 %2635  ;;  %3646 = vmatmul.mubr.msk.f32.vlgmr.msra.gmra.mrb[0].mxu1 %vm727_vm6, %v3643_v55  ;;  %3647 = vmatprep.subr.msk.mxu1 %vm731_vm4, %v712_v58  ;;  %v4335_v60 = vpop.permute.xlu1 %2731  ;;  %v3723_v58 = vld [vmem:[%s4651_s3 + $0x28] sm:$0x3] }
 0x1ba   : > { %3648 = vmatpush1.msk.msra.mxu1 %vm731_vm4, %v711_v56  ;;  %2414 = vmatprep.mubr.f32.mxu0 %v3925_v46 }
 0x1bb   : > { %880 = vmatprep.mubr.f32.mxu1 %v3925_v46 }
 0x1bd   : > { %v4346_v61 = vpop.permute.xlu0 %1374  ;;  %v4348_v62 = vpop.permute.xlu1 %1463 }
 0x1be   : > { %3713 = vmatmul.mubr.msk.f32.vlgmr.msra.gmra.mrb[0].mxu0 %vm727_vm6, %v3710_v53  ;;  %v3666_v53 = vld [vmem:[%s4651_s3 + $0xc] sm:$0x3] }
 0x1bf   : > { %3717 = vmatpush1.msk.msra.mxu0 %vm731_vm4, %v2457_v49  ;;  %2534 = vmatprep.mubr.f32.mxu0 %v3925_v46 }
 0x1c1   : > { %v896_v0 = vpop.permute.xlu0 %895  ;;  %3649 = vmatmul.mubr.msk.f32.vlgmr.msra.gmra.mrb[0].mxu1 %vm727_vm6, %v713_v63  ;;  %v898_v1 = vpop.permute.xlu1 %897 }
 0x1c2   : > { %v900_v2 = vsel %vm899_vm0, %v4240_v13, %v896_v0  ;;  %v901_v4 = vsel %vm899_vm0, %v896_v0, %v898_v1  ;;  %981 = vmatprep.mubr.f32.mxu1 %v3925_v46 }
 0x1c3   : > { %v904_v51 = vsel %vm4229_vm8, 0.0, %v900_v2  ;;  %v905_v5 = vsel %vm4233_vm9, 0.0, %v901_v4 }
 0x1c4   : > { %3651 = vmatprep.subr.msk.mxu1 %vm731_vm4, %v905_v5 }
 0x1c5   : > { %v4372_v7 = vpop.permute.xlu0 %2829  ;;  %3652 = vmatpush1.msk.msra.mxu1 %vm731_vm4, %v904_v51  ;;  %v4375_v8 = vpop.permute.xlu1 %2917  ;;  %v3727_v51 = vld [vmem:[%s4651_s3 + $0x2a] sm:$0x3] }
 0x1c6   : > { %3718 = vmatmul.mubr.msk.f32.vlgmr.msra.gmra.mrb[0].mxu0 %vm727_vm6, %v3715_v6 }
 0x1c7   : > { %2626 = vmatprep.mubr.f32.mxu0 %v3925_v46 }
 0x1c9   : > { %v993_v3 = vpop.permute.xlu0 %992  ;;  %3653 = vmatmul.mubr.msk.f32.vlgmr.msra.gmra.mrb[0].mxu1 %vm727_vm6, %v3650_v9  ;;  %v995_v12 = vpop.permute.xlu1 %994 }
 0x1ca   : > { %v997_v13 = vsel %vm996_vm1, %v4285_v32, %v993_v3  ;;  %v998_v14 = vsel %vm996_vm1, %v993_v3, %v995_v12  ;;  %1078 = vmatprep.mubr.f32.mxu1 %v3925_v46  ;;  %v3670_v3 = vld [vmem:[%s4651_s3 + $0xe] sm:$0x3] }
 0x1cb   : > { %v1001_v15 = vsel %vm4261_vm12, 0.0, %v997_v13  ;;  %v1002_v16 = vsel %vm4255_vm11, 0.0, %v998_v14 }
 0x1cc   : > { %3655 = vmatprep.subr.msk.mxu1 %vm731_vm4, %v1002_v16 }
 0x1cd   : > { %v4392_v17 = vpop.permute.xlu0 %1677  ;;  %3656 = vmatpush1.msk.msra.mxu1 %vm731_vm4, %v1001_v15  ;;  %v4395_v18 = vpop.permute.xlu1 %1679 }
 0x1d1   : > { %v1092_v20 = vpop.permute.xlu0 %1091  ;;  %3657 = vmatmul.mubr.msk.f32.vlgmr.msra.gmra.mrb[0].mxu1 %vm727_vm6, %v3654_v19  ;;  %v1094_v22 = vpop.permute.xlu1 %1093 }
 0x1d2   : > { %v1096_v23 = vsel %vm1095_vm5, %v4291_v36, %v1092_v20  ;;  %v1097_v25 = vsel %vm1095_vm5, %v1092_v20, %v1094_v22  ;;  %1169 = vmatprep.mubr.f32.mxu1 %v3925_v46 }
 0x1d3   : > { %3659 = vmatprep.subr.msk.mxu1 %vm731_vm4, %v1097_v25  ;;  %v3674_v25 = vld [vmem:[%s4651_s3 + $0x10] sm:$0x3] }
 0x1d4   : > { %3660 = vmatpush1.msk.msra.mxu1 %vm731_vm4, %v1096_v23 }
 0x1d5   : > { %v1183_v26 = vpop.permute.xlu0 %1182  ;;  %v1181_v27 = vpop.permute.xlu1 %1180 }
 0x1d6   : > { %v1185_v28 = vsel %vm1184_vm7, %v4293_v37, %v1181_v27  ;;  %v1186_v29 = vsel %vm1184_vm7, %v1181_v27, %v1183_v26  ;;  %v3719_v37 = vld [vmem:[%s4651_s3 + $0x26] sm:$0x3]  ;;  %v3731_v26 = vld [vmem:[%s4651_s3 + $0x2c] sm:$0x3] }
 0x1d7   : > { %v1189_v31 = vsel %vm4229_vm8, 0.0, %v1185_v28  ;;  %v1190_v32 = vsel %vm4233_vm9, 0.0, %v1186_v29  ;;  %v1682_v28 = vsel %vm724_vm15, %v4392_v17, %v4395_v18 }
 0x1d8   : > { %3663 = vmatprep.subr.msk.mxu1 %vm731_vm4, %v1190_v32  ;;  %v3678_v32 = vld [vmem:[%s4651_s3 + $0x12] sm:$0x3] }
 0x1d9   : > { %v2550_v33 = vpop.permute.xlu0 %2549  ;;  %3661 = vmatmul.mubr.msk.f32.vlgmr.msra.gmra.mrb[0].mxu1 %vm727_vm6, %v3658_v30  ;;  %v2552_v34 = vpop.permute.xlu1 %2551 }
 0x1da   : > { %v2553_v35 = vsel %vm724_vm15, %v4303_v40, %v2550_v33  ;;  %3664 = vmatpush1.msk.msra.mxu1 %vm731_vm4, %v1189_v31  ;;  %v2554_v36 = vsel %vm724_vm15, %v2550_v33, %v2552_v34  ;;  %1266 = vmatprep.mubr.f32.mxu1 %v3925_v46  ;;  %v3735_v33 = vld [vmem:[%s4651_s3 + $0x2e] sm:$0x3] }
 0x1db   : > { %3720 = vmatprep.subr.msk.mxu0 %vm731_vm4, %v2554_v36 }
 0x1dc   : > { %3721 = vmatpush1.msk.msra.mxu0 %vm731_vm4, %v2553_v35 }
 0x1dd   : > { %v1280_v38 = vpop.permute.xlu0 %1279  ;;  %v1278_v39 = vpop.permute.xlu1 %1277  ;;  %3722 = vmatmul.mubr.msk.f32.vlgmr.msra.gmra.mrb[0].mxu0 %vm727_vm6, %v3719_v37 }
 0x1de   : > { %v1282_v40 = vsel %vm1281_vm10, %v4305_v41, %v1278_v39  ;;  %v1283_v42 = vsel %vm1281_vm10, %v1278_v39, %v1280_v38  ;;  %2722 = vmatprep.mubr.f32.mxu0 %v3925_v46 }
 0x1df   : > { %v1286_v47 = vsel %vm4261_vm12, 0.0, %v1282_v40  ;;  %v1287_v48 = vsel %vm4255_vm11, 0.0, %v1283_v42 }
 0x1e0   : > { %3667 = vmatprep.subr.msk.mxu1 %vm731_vm4, %v1287_v48 }
 0x1e1   : > { %v2640_v50 = vpop.permute.xlu0 %2639  ;;  %3665 = vmatmul.mubr.msk.f32.vlgmr.msra.gmra.mrb[0].mxu1 %vm727_vm6, %v3662_v44  ;;  %v2638_v41 = vpop.permute.xlu1 %2637 }
 0x1e2   : > { %3668 = vmatpush1.msk.msra.mxu1 %vm731_vm4, %v1286_v47  ;;  %v2641_v52 = vsel %vm899_vm0, %v4331_v59, %v2638_v41  ;;  %v2642_v54 = vsel %vm899_vm0, %v2638_v41, %v2640_v50  ;;  %1363 = vmatprep.mubr.f32.mxu1 %v3925_v46  ;;  %v3682_v50 = vld [vmem:[%s4651_s3 + $0x14] sm:$0x3]  ;;  %v3739_v41 = vld [vmem:[%s4651_s3 + $0x30] sm:$0x3] }
 0x1e3   : > { %v2645_v55 = vsel %vm4229_vm8, 0.0, %v2641_v52  ;;  %v2646_v57 = vsel %vm4233_vm9, 0.0, %v2642_v54 }
 0x1e4   : > { %3724 = vmatprep.subr.msk.mxu0 %vm731_vm4, %v2646_v57 }
 0x1e5   : > { %v4456_v56 = vpop.permute.xlu0 %3013  ;;  %3725 = vmatpush1.msk.msra.mxu0 %vm731_vm4, %v2645_v55  ;;  %v4459_v59 = vpop.permute.xlu1 %1675 }
 0x1e6   : > { %3726 = vmatmul.mubr.msk.f32.vlgmr.msra.gmra.mrb[0].mxu0 %vm727_vm6, %v3723_v58  ;;  %v1681_v35 = vsel %vm724_vm15, %v4459_v59, %v4392_v17 }
 0x1e7   : > { %2818 = vmatprep.mubr.f32.mxu0 %v3925_v46 }
 0x1e9   : > { %v2736_v49 = vpop.permute.xlu0 %2735  ;;  %3669 = vmatmul.mubr.msk.f32.vlgmr.msra.gmra.mrb[0].mxu1 %vm727_vm6, %v3666_v53  ;;  %v2734_v63 = vpop.permute.xlu1 %2733 }
 0x1ea   : > { %v2737_v0 = vsel %vm996_vm1, %v4335_v60, %v2734_v63  ;;  %v2738_v1 = vsel %vm996_vm1, %v2734_v63, %v2736_v49  ;;  %1454 = vmatprep.mubr.f32.mxu1 %v3925_v46  ;;  %v3686_v63 = vld [vmem:[%s4651_s3 + $0x16] sm:$0x3] }
 0x1eb   : > { %v2741_v2 = vsel %vm4261_vm12, 0.0, %v2737_v0  ;;  %v2742_v4 = vsel %vm4255_vm11, 0.0, %v2738_v1  ;;  %v3743_v0 = vld [vmem:[%s4651_s3 + $0x32] sm:$0x3] }
 0x1ec   : > { %3728 = vmatprep.subr.msk.mxu0 %vm731_vm4, %v2742_v4 }
 0x1ed   : > { %v1379_v5 = vpop.permute.xlu0 %1378  ;;  %3729 = vmatpush1.msk.msra.mxu0 %vm731_vm4, %v2741_v2  ;;  %v1377_v60 = vpop.permute.xlu1 %1376 }
 0x1ee   : > { %v1381_v6 = vsel %vm1380_vm13, %v4346_v61, %v1377_v60  ;;  %v1382_v9 = vsel %vm1380_vm13, %v1377_v60, %v1379_v5  ;;  %3730 = vmatmul.mubr.msk.f32.vlgmr.msra.gmra.mrb[0].mxu0 %vm727_vm6, %v3727_v51 }
 0x1ef   : > { %3671 = vmatprep.subr.msk.mxu1 %vm731_vm4, %v1382_v9  ;;  %2908 = vmatprep.mubr.f32.mxu0 %v3925_v46  ;;  %v3690_v9 = vld [vmem:[%s4651_s3 + $0x18] sm:$0x3] }
 0x1f0   : > { %3672 = vmatpush1.msk.msra.mxu1 %vm731_vm4, %v1381_v6 }
 0x1f1   : > { %v1468_v12 = vpop.permute.xlu0 %1467  ;;  %3673 = vmatmul.mubr.msk.f32.vlgmr.msra.gmra.mrb[0].mxu1 %vm727_vm6, %v3670_v3  ;;  %v1466_v13 = vpop.permute.xlu1 %1465 }
 0x1f2   : > { %v1470_v61 = vsel %vm1469_vm14, %v4348_v62, %v1466_v13  ;;  %v1471_v14 = vsel %vm1469_vm14, %v1466_v13, %v1468_v12  ;;  %1551 = vmatprep.mubr.f32.mxu1 %v3925_v46  ;;  %v1586_v62 = vsel %vm4255_vm11, 0.0, %v4080_v45 }
 0x1f3   : > { %v1474_v15 = vsel %vm4229_vm8, 0.0, %v1470_v61  ;;  %v1475_v16 = vsel %vm4233_vm9, 0.0, %v1471_v14 }
 0x1f4   : > { %3675 = vmatprep.subr.msk.mxu1 %vm731_vm4, %v1475_v16 }
 0x1f5   : > { %v2832_v19 = vpop.permute.xlu0 %2831  ;;  %3676 = vmatpush1.msk.msra.mxu1 %vm731_vm4, %v1474_v15  ;;  %v2834_v20 = vpop.permute.xlu1 %2833 }
 0x1f6   : > { %v2835_v22 = vsel %vm1095_vm5, %v4372_v7, %v2832_v19  ;;  %v2836_v23 = vsel %vm1095_vm5, %v2832_v19, %v2834_v20  ;;  %3679 = vmatprep.subr.msk.mxu1 %vm731_vm4, %v1586_v62  ;;  %v1585_v7 = vsel %vm4261_vm12, 0.0, %v4073_v43 }
 0x1f7   : > { %3732 = vmatprep.subr.msk.mxu0 %vm731_vm4, %v2836_v23 }
 0x1f8   : > { %3733 = vmatpush1.msk.msra.mxu0 %vm731_vm4, %v2835_v22 }
 0x1f9   : > { %v2922_v45 = vpop.permute.xlu0 %2921  ;;  %3677 = vmatmul.mubr.msk.f32.vlgmr.msra.gmra.mrb[0].mxu1 %vm727_vm6, %v3674_v25  ;;  %3734 = vmatmul.mubr.msk.f32.vlgmr.msra.gmra.mrb[0].mxu0 %vm727_vm6, %v3731_v26  ;;  %v2920_v27 = vpop.permute.xlu1 %2919 }
 0x1fa   : > { %3680 = vmatpush1.msk.msra.mxu1 %vm731_vm4, %v1585_v7  ;;  %v2923_v29 = vsel %vm1184_vm7, %v4375_v8, %v2920_v27  ;;  %v2924_v30 = vsel %vm1184_vm7, %v2920_v27, %v2922_v45  ;;  %1662 = vmatprep.mubr.f32.mxu1 %v3925_v46 }
 0x1fb   : > { %v2927_v31 = vsel %vm4229_vm8, 0.0, %v2923_v29  ;;  %v2928_v43 = vsel %vm4233_vm9, 0.0, %v2924_v30  ;;  %3683 = vmatprep.subr.msk.mxu1 %vm731_vm4, %v1682_v28  ;;  %3004 = vmatprep.mubr.f32.mxu0 %v3925_v46 }
 0x1fc   : > { %3736 = vmatprep.subr.msk.mxu0 %vm731_vm4, %v2928_v43 }
 0x1fd   : > { %v1766_v18 = vpop.permute.xlu0 %1765  ;;  %3737 = vmatpush1.msk.msra.mxu0 %vm731_vm4, %v2927_v31  ;;  %v1768_v8 = vpop.permute.xlu1 %1767 }
 0x1fe   : > { %v1770_v34 = vsel %vm899_vm0, %v1766_v18, %v1768_v8 }
 0x1ff   : > { %v1774_v38 = vsel %vm4233_vm9, 0.0, %v1770_v34 }
 0x201   : > { %v3016_v36 = vpop.permute.xlu0 %3015  ;;  %3681 = vmatmul.mubr.msk.f32.vlgmr.msra.gmra.mrb[0].mxu1 %vm727_vm6, %v3678_v32  ;;  %3738 = vmatmul.mubr.msk.f32.vlgmr.msra.gmra.mrb[0].mxu0 %vm727_vm6, %v3735_v33  ;;  %v3018_v37 = vpop.permute.xlu1 %3017 }
 0x202   : > { %v3019_v39 = vsel %vm1281_vm10, %v4456_v56, %v3016_v36  ;;  %3684 = vmatpush1.msk.msra.mxu1 %vm731_vm4, %v1681_v35  ;;  %v3020_v40 = vsel %vm1281_vm10, %v3016_v36, %v3018_v37  ;;  %1754 = vmatprep.mubr.f32.mxu1 %v3925_v46 }
 0x203   : > { %v3023_v17 = vsel %vm4261_vm12, 0.0, %v3019_v39  ;;  %v3024_v42 = vsel %vm4255_vm11, 0.0, %v3020_v40  ;;  %3687 = vmatprep.subr.msk.mxu1 %vm731_vm4, %v1774_v38  ;;  %3100 = vmatprep.mubr.f32.mxu0 %v3925_v46 }
 0x204   : > { %3740 = vmatprep.subr.msk.mxu0 %vm731_vm4, %v3024_v42 }
 0x205   : > { %v1764_v44 = vpop.permute.xlu0 %1763  ;;  %3741 = vmatpush1.msk.msra.mxu0 %vm731_vm4, %v3023_v17  ;;  %v3112_v47 = vpop.permute.xlu1 %3111 }
 0x206   : > { %v1769_v48 = vsel %vm899_vm0, %v1764_v44, %v1766_v18 }
 0x207   : > { %v1773_v52 = vsel %vm4229_vm8, 0.0, %v1769_v48 }
 0x209   : > { %v1862_v54 = vpop.permute.xlu0 %1861  ;;  %3685 = vmatmul.mubr.msk.f32.vlgmr.msra.gmra.mrb[0].mxu1 %vm727_vm6, %v3682_v50  ;;  %3742 = vmatmul.mubr.msk.f32.vlgmr.msra.gmra.mrb[0].mxu0 %vm727_vm6, %v3739_v41  ;;  %v1864_v55 = vpop.permute.xlu1 %1863 }
 0x20a   : > { %3688 = vmatpush1.msk.msra.mxu1 %vm731_vm4, %v1773_v52  ;;  %v1866_v57 = vsel %vm996_vm1, %v1862_v54, %v1864_v55  ;;  %1850 = vmatprep.mubr.f32.mxu1 %v3925_v46 }
 0x20b   : > { %v1870_v58 = vsel %vm4255_vm11, 0.0, %v1866_v57  ;;  %3190 = vmatprep.mubr.f32.mxu0 %v3925_v46 }
 0x20c   : > { %3691 = vmatprep.subr.msk.mxu1 %vm731_vm4, %v1870_v58 }
 0x20d   : > { %v3116_v56 = vpop.permute.xlu0 %3115  ;;  %v3114_v59 = vpop.permute.xlu1 %3113 }
 0x20e   : > { %v3117_v53 = vsel %vm1380_vm13, %v3112_v47, %v3114_v59  ;;  %v3118_v49 = vsel %vm1380_vm13, %v3114_v59, %v3116_v56 }
 0x20f   : > { %3744 = vmatprep.subr.msk.mxu0 %vm731_vm4, %v3118_v49 }
 0x210   : > { %3745 = vmatpush1.msk.msra.mxu0 %vm731_vm4, %v3117_v53 }
 0x211   : > { %v3202_v21 = vpop.permute.xlu0 %3201  ;;  %3689 = vmatmul.mubr.msk.f32.vlgmr.msra.gmra.mrb[0].mxu1 %vm727_vm6, %v3686_v63  ;;  %3746 = vmatmul.mubr.msk.f32.vlgmr.msra.gmra.mrb[0].mxu0 %vm727_vm6, %v3743_v0  ;;  %v3204_v1 = vpop.permute.xlu1 %3203 }
 0x212   : > { %v3206_v2 = vsel %vm1469_vm14, %v3202_v21, %v3204_v1  ;;  %1946 = vmatprep.mubr.f32.mxu1 %v3925_v46  ;;  %3286 = vmatprep.mubr.f32.mxu0 %v3925_v46  ;;  %v3747_v46 = vld [vmem:[%s4651_s3 + $0x34] sm:$0x3] }
 0x213   : > { %v3210_v4 = vsel %vm4233_vm9, 0.0, %v3206_v2 }
 0x214   : > { %3748 = vmatprep.subr.msk.mxu0 %vm731_vm4, %v3210_v4 }
 0x215   : > { %v1860_v51 = vpop.permute.xlu0 %1859  ;;  %v3200_v5 = vpop.permute.xlu1 %3199 }
 0x216   : > { %v1865_v60 = vsel %vm996_vm1, %v1860_v51, %v1862_v54  ;;  %v3205_v6 = vsel %vm1469_vm14, %v3200_v5, %v3202_v21 }
 0x217   : > { %v1869_v11 = vsel %vm4261_vm12, 0.0, %v1865_v60  ;;  %v3209_v3 = vsel %vm4229_vm8, 0.0, %v3205_v6 }
 0x218   : > { %3692 = vmatpush1.msk.msra.mxu1 %vm731_vm4, %v1869_v11  ;;  %3749 = vmatpush1.msk.msra.mxu0 %vm731_vm4, %v3209_v3 }
 0x219   : > { %3693 = vmatmul.mubr.msk.f32.vlgmr.msra.gmra.mrb[0].mxu1 %vm727_vm6, %v3690_v9  ;;  %3750 = vmatmul.mubr.msk.f32.vlgmr.msra.gmra.mrb[0].mxu0 %vm727_vm6, %v3747_v46 }
 0x226   : > { %v3299_v15 = vpop.permute.xlu0 %3298 }
 0x2ec   : > { %v1948_v12 = vpop.f32.mrb[0].mxu1  ;;  %v3288_v13 = vpop.f32.mrb[0].mxu0 }
 0x2ed   : > { %v3772_v61 = vadd.f32 %v3288_v13, %v1948_v12  ;;  %v1950_v24 = vpop.f32.mrb[1].mxu1  ;;  %v3290_v14 = vpop.f32.mrb[1].mxu0 }
 0x2ee   : > { %v3773_v10 = vadd.f32 %v3290_v14, %v1950_v24 }
 0x2ef   : > { %v3301_v16 = vadd.f32 %v3772_v61, %v3299_v15 }
 0x2f0   : > { %v3302_v19 = vadd.f32 %v3773_v10, %v3299_v15 }
 0x2f1   : > { %v3315_v20 = vsel %vm731_vm4, %v3301_v16, 0.0  ;;  %v3322_v62 = vmul.f32 %v3301_v16, %v3301_v16 }
 0x2f2   : > { %v3305_v22 = vcombine.low %v3301_v16, %v3302_v19  ;;  %v3316_v23 = vsel %vm731_vm4, %v3302_v19, 0.0  ;;  %v3323_v25 = vmul.f32 %v3302_v19, %v3302_v19 }
 0x2f3   : > { %v3317_v26 = vadd.f32 %v3316_v23, %v3315_v20  ;;  %v3324_v45 = vsel %vm731_vm4, %v3322_v62, 0.0 }
 0x2f4   : > { %3751 = vst.sshfl [vmem:[%s599_s23] sm:$0x33 pattern:$0x76325410] %v3305_v22  ;;  %v3325_v7 = vsel %vm731_vm4, %v3323_v25, 0.0 }
 0x2f5   : > { %3318 = vadd.xlane.f32.xlu1 %v3317_v26  ;;  %v3326_v27 = vadd.f32 %v3325_v7, %v3324_v45 }
 0x2f7   : > { %3327 = vadd.xlane.f32.xlu0 %v3326_v27 }
 0x382   : > { %v3319_v28 = vpop.xlane.xlu1 %3318 }
 0x383   : > { %3321 = vst.msk [vmem:[%s608_s22] sm:$0x3] %vm3320_vm2, %v3319_v28 }
 0x384   : > { %v3328_v29 = vpop.xlane.xlu0 %3327 }
 0x385   : > { %3329 = vst.msk [vmem:[%s616_s27] sm:$0x3] %vm3320_vm2, %v3328_v29 }
 0x386 PF: > { %s20_s13 = sadd.s32 1, %s3916_s13   ;;  %s4673_s25 = sld [smem:[#allocation2_spill]] }
 0x387   : > { %p17_p8 = scmp.ge.s32.totalorder %s20_s13, 34   ;;  %s4674_s30 = smov %s3908_s11 }
 0x388   : > { %s4675_s10 = smov %s3912_s12  ;;  %s4676_s11 = smov %s4679_s14 }
 0x389   :  { %19 = sbr.rel (!%p17_p8) target bundleno = 4 (0x4), region = 140 }
 0x38c   : > { %s4677_s12 = smov %s4673_s25 }

// kernel: out_conv_forward.8
= control target key start
LH: loop header
LB: loop body
LE: loop exit
PB: predicated region body
PF: predicated region fallthrough
CT: control target
= control target key end

     0   :  { %s4085_s13 = smov 0   ;;  %s4087_s14 = smov 0   ;;  %s4755_s0 = inlined_call_operand.vmem [shape: f32[2,2,4096], index: 0, kind: input, shape index: {}, may-alias: {0,1,2}]   ;;  %s4756_s1 = inlined_call_operand.vmem [shape: f32[2,2,4096], index: 1, kind: input, shape index: {}, may-alias: {0,1,2}]   ;;  %s4757_s2 = inlined_call_operand.vmem [shape: f32[2,2,4096], index: 2, kind: input, shape index: {}, may-alias: {0,1,2}]   ;;  %s4758_s3 = inlined_call_operand.vmem [shape: f32[27,2,2], index: 3, kind: input, shape index: {}]   ;;  %s4759_s4 = inlined_call_operand.vmem [shape: f32[2,2,1], index: 4, kind: input, shape index: {}]   ;;  %s4760_s5 = inlined_call_operand.vmem [shape: f32[2,2,1], index: 5, kind: input, shape index: {}]   ;;  %s4761_s6 = inlined_call_operand.vmem [shape: f32[2,1], index: 6, kind: input, shape index: {}]   ;;  %s4762_s7 = inlined_call_operand.vmem [shape: f32[2,2,4096], index: 7, kind: input, shape index: {}]   ;;  %s4763_s8 = inlined_call_operand.vmem [shape: f32[2,2,4096], index: 8, kind: output, shape index: {0}]   ;;  %s4764_s9 = inlined_call_operand.vmem [shape: f32[2,16,2,1], index: 9, kind: output, shape index: {1}]   ;;  %s4765_s10 = inlined_call_operand.vmem [shape: f32[2,16,2,1], index: 10, kind: output, shape index: {2}]  }
   0x1   :  { %4766 = sst [smem:[#allocation4_spill]] %s4759_s4  ;;  %s4089_s15 = smov 0  }
   0x2   :  { %4767 = sst [smem:[#allocation5_spill]] %s4760_s5  ;;  %s4091_s16 = smov 0  }
   0x3   :  { %s4093_s17 = smov 0  }
   0x4 LB: > { %s30_s18 = sadd.s32 1, %s4007_s15  ;;  %s33_s19 = sadd.s32 1, %s4011_s16  ;;  %s4015_s17 = sphi %s4093_s17, %s21_s17   ;;  %s4011_s16 = sphi %s4091_s16, %s4787_s16   ;;  %s4007_s15 = sphi %s4089_s15, %s4786_s15   ;;  %s4003_s14 = sphi %s4087_s14, %s4785_s14   ;;  %s3999_s13 = sphi %s4085_s13, %s4784_s13  }
   0x5   : > { %p31_p0 = scmp.ge.s32.totalorder %s30_s18, 16  ;;  %p3703_p1 = scmp.ge.s32.totalorder %s4015_s17, 1 }
   0x6   : > { %p467_p2 = scmp.lt.s32.totalorder %s4015_s17, 33 }
   0x7   : > { %s4789_s18 = smov (%p31_p0, %s30_s18), 0  ;;  %s4791_s19 = smov (!%p31_p0, %s33_s19), %s4011_s16 }
   0x8   : > { %4768 = sst [smem:[#allocation2_spill]] %s4789_s18  ;;  %p468_p3 = pnand %p3703_p1, %p467_p2 }
   0x9   : > { %p35_p4 = scmp.ge.s32.totalorder %s4791_s19, 2  ;;  %p584_p5 = scmp.lt.s32.totalorder (!%p468_p3), %s4003_s14, 1  ;;  %v4017_v0 = vmov (!%p468_p3), 0   ;;  %v680_v3 = vlaneseq (!%p468_p3)  ;;  %v4018_v4 = vmov (!%p468_p3), 269488144   ;;  %vm761_vm3 = vcmask (!%p468_p3), 138240  }
   0xa   : > { %471 = sbr.rel (%p468_p3) target bundleno = 904 (0x388), region = 52  ;;  %3976 = vset.pattern.permute.xlu0 (!%p468_p3), %v4017_v0  ;;  %s4770_s4 = sld [smem:[#allocation4_spill]] (!%p468_p3)  ;;  %v715_v5 = vunpack.c.l.s4 (!%p468_p3), %v4018_v4  ;;  %v4019_v10 = vmov (!%p468_p3), 1983009808   ;;  %v4024_v46 = vmov (!%p468_p3), 0.0   ;;  %vm794_vm4 = vcmask (!%p468_p3), 1041408  }
   0xb   : > { %s4793_s19 = smov (%p35_p4, %s4791_s19), 0  ;;  %s4771_s5 = sld [smem:[#allocation5_spill]] (!%p468_p3)  ;;  %v718_v7 = vshrl.u32 (!%p468_p3), %v680_v3, 7  ;;  %v750_v11 = vunpack.c.l.s4 (!%p468_p3), %v4019_v10  ;;  %2099 = vmatprep.mubr.f32.mxu0 (!%p468_p3), %v4024_v46  ;;  %863 = vmatprep.mubr.f32.mxu1 (!%p468_p3), %v4024_v46  ;;  %v681_v0 = vand.u32 (!%p468_p3), 127, %v680_v3  ;;  %vm1158_vm5 = vcmask (!%p468_p3), 908288  }
   0xc   : > { %4769 = sst [smem:[#allocation3_spill]] %s4793_s19  ;;  %s4127_s27 = sadd.s32 (!%p468_p3), 1, %s3999_s13  ;;  %v716_v6 = vunpack.c.0.s8 (!%p468_p3), %v715_v5  ;;  %vm790_vm6 = vcmask (!%p468_p3), 15360   ;;  %v3792_v3 = vld [vmem:[%s4758_s3 + $0x1a] sm:$0x3] (!%p468_p3)  ;;  %vm1247_vm7 = vcmask (!%p468_p3), 900096  }
   0xd   : > { %p598_p6 = scmp.lt.s32.totalorder (!%p468_p3), %s3999_s13, 15  ;;  %p617_p7 = scmp.lt.s32.totalorder (!%p468_p3), %s4127_s27, 15  ;;  %v751_v17 = vunpack.c.0.s8 (!%p468_p3), %v750_v11  ;;  %v682_v4 = vadd.s32 (!%p468_p3), 128, %v681_v0  ;;  %vm1344_vm10 = vcmask (!%p468_p3), 785408   ;;  %vm1443_vm13 = vcmask (!%p468_p3), 777216  }
   0xe   : > { %s4132_s28 = sadd.s32 (!%p468_p3), 4294967295, %s3999_s13  ;;  %p3712_p8 = scmp.gt.s32.totalorder (!%p468_p3), %s3999_s13, 0  ;;  %v719_v8 = vsub.s32 (!%p468_p3), %v716_v6, %v718_v7  ;;  %vm1532_vm14 = vcmask (!%p468_p3), 769024   ;;  %vm787_vm15 = vcmask (!%p468_p3), 1039360  }
   0xf   : > { %p579_p9 = scmp.lt.s32.totalorder (!%p468_p3), %s4132_s28, 15  ;;  %p3720_p10 = scmp.gt.s32.totalorder (!%p468_p3), %s4127_s27, 0  ;;  %v754_v25 = vsub.s32 (!%p468_p3), %v751_v17, %v718_v7  ;;  %v687_v7 = vand.u32 (!%p468_p3), 15, %v681_v0 }
  0x10   : > { %p3704_p11 = scmp.gt.s32.totalorder (!%p468_p3), %s4132_s28, 0  ;;  %p740_p1 = scmp.ge.s32.totalorder (!%p468_p3), %s4132_s28, 0 }
  0x11   : > { %s4795_s14 = smov (!%p584_p5, %s4003_s14), 1  ;;  %p741_p2 = scmp.lt.s32.totalorder %s4132_s28, 16  ;;  %vm4333_vm8 = vcmp.eq.s32.totalorder %v687_v7, 15  ;;  %vm4365_vm12 = vcmp.eq.s32.totalorder %v687_v7, 0 }
  0x12   : > { %s3728_s20 = sshll.u32 %s4795_s14, 1  ;;  %p2493_p3 = scmp.ge.s32.totalorder %s4127_s27, 0 }
  0x13   : > { %s639_s23 = scalar_lea.vmem %s4770_s4, %s3728_s20  ;;  %s643_s26 = scalar_lea.vmem %s4771_s5, %s3728_s20 }
  0x14   : > { %v707_v1 = vld [vmem:[%s639_s23] sm:$0x3]  ;;  %s4135_s29 = scalar_select %p598_p6, %s3999_s13, 15 }
  0x15   : > { %712 = vperm.xlu0 %3976, %v707_v1   ;;  %v708_v2 = vld [vmem:[%s643_s26] sm:$0x3]  ;;  %s618_s30 = scalar_select %p617_p7, %s4127_s27, 15 }
  0x16   : > { %s580_s11 = scalar_select %p579_p9, %s4132_s28, 15 }
  0x17   : > { %s3868_s12 = scalar_select %p3712_p8, %s4135_s29, 0 }
  0x18   : > { %s4797_s30 = smov (!%p3720_p10, %s618_s30), 0  ;;  %s4799_s11 = smov (!%p3704_p11, %s580_s11), 0 }
  0x19   : > { %725 = vperm.xlu0 %3976, %v708_v2   ;;  %s3717_s20 = sshll.u32 %s3868_s12, 1  ;;  %s3725_s21 = sshll.u32 %s4797_s30, 1 }
  0x1a   : > { %p605_p12 = scmp.lt.s32.totalorder %s3717_s20, 31  ;;  %s3709_s22 = sshll.u32 %s4799_s11, 1 }
  0x1b   : > { %p624_p13 = scmp.lt.s32.totalorder %s3725_s21, 31  ;;  %p586_p0 = scmp.lt.s32.totalorder %s3709_s22, 31 }
  0x1c   : > { %s4801_s20 = smov (!%p605_p12, %s3717_s20), 31  ;;  %s4145_s23 = sshll.u32 %s4795_s14, 5 }
  0x1d   : > { %s4803_s21 = smov (!%p624_p13, %s3725_s21), 31  ;;  %s4805_s22 = smov (!%p586_p0, %s3709_s22), 31 }
  0x1e   : > { %s608_s24 = sadd.s32 %s4145_s23, %s4801_s20  ;;  %s627_s25 = sadd.s32 %s4145_s23, %s4803_s21 }
  0x1f   : > { %s589_s26 = sadd.s32 %s4145_s23, %s4805_s22  ;;  %s3719_s30 = sshll.u32 %s608_s24, 1 }
  0x20   : > { %s3727_s11 = sshll.u32 %s627_s25, 1  ;;  %p2494_p4 = scmp.lt.s32.totalorder %s4127_s27, 16 }
  0x21   : > { %s3711_s12 = sshll.u32 %s589_s26, 1  ;;  %p4155_p5 = pnand %p741_p2, %p740_p1 }
  0x22   : > { %s610_s21 = scalar_lea.vmem %s4756_s1, %s3719_s30  ;;  %s629_s18 = scalar_lea.vmem %s4757_s2, %s3727_s11 }
  0x23   : > { %s591_s25 = scalar_lea.vmem %s4755_s0, %s3711_s12  ;;  %p4168_p6 = pnand %p2494_p4, %p2493_p3  ;;  %v1623_v14 = vld [vmem:[%s610_s21] sm:$0xf] }
  0x24   : > { %s3740_s26 = scalar_select %p4155_p5, 0, 1  ;;  %v709_v13 = vld [vmem:[%s591_s25] sm:$0xf] }
  0x25   : > { %v2486_v15 = vld [vmem:[%s629_s18] sm:$0xf]  ;;  %s3812_s5 = scalar_select %p4168_p6, 0, 1 }
  0x26   : > { %s745_s19 = scvt.s32.f32 %s3740_s26  ;;  %s4020_s4 = smov 17  }
  0x27   : > { %s2498_s30 = scvt.s32.f32 %s3812_s5  ;;  %s4021_s18 = smov 111  }
  0x28   : > { %v746_v26 = vstv %s745_s19  ;;  %s4022_s11 = smov 110   ;;  %s4023_s12 = smov 96  }
  0x29   : > { %v2499_v32 = vstv %s2498_s30  ;;  %s4025_s20 = smov 95   ;;  %s4026_s21 = smov 127  }
  0x2a   : > { %s4027_s28 = smov 94   ;;  %s4028_s22 = smov 126  }
  0x2b   : > { %s4029_s24 = smov 112   ;;  %s3736_s5 = sshll.u32 %s4795_s14, 4 }
  0x2c   : > { %s669_s19 = sadd.s32 %s3736_s5, %s4135_s29 }
  0x2d   : > { %s3737_s30 = sshll.u32 %s669_s19, 1 }
  0x94   : > { %v713_v9 = vpop.permute.xlu0 %712 }
  0x95   : > { %v720_v12 = vrot.slane %v713_v9, %v719_v8 }
  0x97   : > { %v722_v18 = vmul.f32 %v720_v12, %v709_v13  ;;  %v1624_v19 = vmul.f32 %v1623_v14, %v720_v12  ;;  %v2487_v20 = vmul.f32 %v2486_v15, %v720_v12 }
  0x98   : > { %v726_v16 = vpop.permute.xlu0 %725 }
  0x99   : > { %v733_v21 = vrot.slane %v726_v16, %v719_v8  ;;  %v694_v8 = vand.u32 15, %v682_v4 }
  0x9b   : > { %v735_v22 = vadd.f32 %v733_v21, %v722_v18  ;;  %v1625_v23 = vadd.f32 %v1624_v19, %v733_v21  ;;  %v2488_v24 = vadd.f32 %v2487_v20, %v733_v21  ;;  %vm4337_vm9 = vcmp.eq.s32.totalorder %v694_v8, 15 }
  0x9c   : > { %vm4359_vm11 = vcmp.eq.s32.totalorder %v694_v8, 0 }
  0x9d   : > { %v737_v27 = vmul.f32 0.01, %v735_v22  ;;  %v2490_v28 = vmul.f32 0.01, %v2488_v24  ;;  %vm1626_vm0 = vcmp.ge.f32.partialorder %v1625_v23, 0.0  ;;  %vm736_vm1 = vcmp.ge.f32.partialorder %v735_v22, 0.0 }
  0x9e   : > { %v1627_v29 = vmul.f32 0.01, %v1625_v23  ;;  %vm2489_vm2 = vcmp.ge.f32.partialorder %v2488_v24, 0.0 }
  0x9f   : > { %v738_v30 = vsel %vm736_vm1, %v735_v22, %v737_v27  ;;  %v2491_v31 = vsel %vm2489_vm2, %v2488_v24, %v2490_v28  ;;  %v3358_v28 = vld [vmem:[%s4761_s6] sm:$0x3]  ;;  %vm1059_vm1 = vcmask 916480   ;;  %vm3397_vm2 = vcmask 1024  }
  0xa0   : > { %v1628_v33 = vsel %vm1626_vm0, %v1625_v23, %v1627_v29  ;;  %v747_v34 = vmul.f32 %v746_v26, %v738_v30  ;;  %v2500_v37 = vmul.f32 %v2499_v32, %v2491_v31  ;;  %v3796_v26 = vld [vmem:[%s4758_s3 + $0x1c] sm:$0x3]  ;;  %vm962_vm0 = vcmask 1031168  }
  0xa1   : > { %v1636_v35 = vrot.slane %v1628_v33, %v754_v25 }
  0xa2   : > { %v755_v36 = vrot.slane %v747_v34, %v754_v25  ;;  %v2508_v39 = vrot.slane %v2500_v37, %v754_v25  ;;  %v3800_v34 = vld [vmem:[%s4758_s3 + $0x1e] sm:$0x3] }
  0xa3   : > { %1638 = vrot.lane.b32.xlu1 %v1636_v35, %s4020_s4  ;;  %v1637_v38 = vcombine.high %v1636_v35, %v1636_v35 }
  0xa4   : > { %757 = vrot.lane.b32.xlu0 %v755_v36, %s4020_s4  ;;  %v756_v40 = vcombine.high %v755_v36, %v755_v36  ;;  %v2509_v41 = vcombine.high %v2508_v39, %v2508_v39 }
  0xa7   : > { %1640 = vrot.lane.b32.xlu1 %v1637_v38, %s4020_s4 }
  0xa8   : > { %2510 = vrot.lane.b32.xlu0 %v2508_v39, %s4020_s4 }
  0xab   : > { %759 = vrot.lane.b32.xlu1 %v756_v40, %s4020_s4 }
  0xaf   : > { %2512 = vrot.lane.b32.xlu1 %v2509_v41, %s4020_s4 }
 0x115   : > { %v1639_v42 = vpop.permute.xlu1 %1638 }
 0x116   : > { %v4177_v43 = vsel %vm761_vm3, 0.0, %v1639_v42  ;;  %v758_v48 = vpop.permute.xlu0 %757 }
 0x117   : > { %2020 = vrot.lane.b32.xlu0 %v4177_v43, %s4021_s18  ;;  %2108 = vrot.lane.b32.xlu1 %v4177_v43, %s4022_s11  ;;  %v4200_v49 = vsel %vm761_vm3, 0.0, %v758_v48 }
 0x119   : > { %v1641_v44 = vpop.permute.xlu1 %1640 }
 0x11a   : > { %v4184_v45 = vsel %vm761_vm3, %v1639_v42, %v1641_v44  ;;  %v4193_v47 = vsel %vm761_vm3, %v1641_v44, 0.0  ;;  %v2511_v50 = vpop.permute.xlu0 %2510  ;;  %v3804_v44 = vld [vmem:[%s4758_s3 + $0x20] sm:$0x3] }
 0x11b   : > { %2022 = vrot.lane.b32.xlu0 %v4184_v45, %s4021_s18  ;;  %2204 = vrot.lane.b32.xlu1 %v4177_v43, %s4023_s12  ;;  %v4231_v51 = vsel %vm761_vm3, 0.0, %v2511_v50 }
 0x11d   : > { %v760_v52 = vpop.permute.xlu1 %759 }
 0x11e   : > { %v4238_v53 = vsel %vm761_vm3, %v758_v48, %v760_v52  ;;  %v767_v54 = vsel %vm761_vm3, %v760_v52, 0.0 }
 0x11f   : > { %2112 = vrot.lane.b32.xlu0 %v4193_v47, %s4022_s11  ;;  %2302 = vrot.lane.b32.xlu1 %v4177_v43, %s4025_s20 }
 0x121   : > { %v2513_v55 = vpop.permute.xlu1 %2512 }
 0x122   : > { %v4273_v56 = vsel %vm761_vm3, %v2511_v50, %v2513_v55  ;;  %v2519_v57 = vsel %vm761_vm3, %v2513_v55, 0.0  ;;  %v3741_v55 = vld [vmem:[%s4758_s3 + $0x2] sm:$0x3] }
 0x123   : > { %781 = vrot.lane.b32.xlu0 %v4200_v49, %s4026_s21  ;;  %2390 = vrot.lane.b32.xlu1 %v4177_v43, %s4027_s28 }
 0x127   : > { %2208 = vrot.lane.b32.xlu0 %v4193_v47, %s4023_s12  ;;  %2024 = vrot.lane.b32.xlu1 %v4193_v47, %s4021_s18 }
 0x12b   : > { %956 = vrot.lane.b32.xlu0 %v4200_v49, %s4028_s22  ;;  %2110 = vrot.lane.b32.xlu1 %v4184_v45, %s4022_s11 }
 0x12f   : > { %2306 = vrot.lane.b32.xlu0 %v4193_v47, %s4025_s20  ;;  %2206 = vrot.lane.b32.xlu1 %v4184_v45, %s4023_s12 }
 0x133   : > { %2392 = vrot.lane.b32.xlu0 %v4184_v45, %s4027_s28  ;;  %2304 = vrot.lane.b32.xlu1 %v4184_v45, %s4025_s20 }
 0x137   : > { %1053 = vrot.lane.b32.xlu0 %v4200_v49, %s4029_s24  ;;  %2394 = vrot.lane.b32.xlu1 %v4193_v47, %s4027_s28 }
 0x13b   : > { %1152 = vrot.lane.b32.xlu0 %v4200_v49, %s4021_s18  ;;  %1241 = vrot.lane.b32.xlu1 %v4200_v49, %s4022_s11 }
 0x13f   : > { %2610 = vrot.lane.b32.xlu0 %v4231_v51, %s4026_s21  ;;  %1338 = vrot.lane.b32.xlu1 %v4200_v49, %s4023_s12 }
 0x143   : > { %785 = vrot.lane.b32.xlu0 %v767_v54, %s4026_s21  ;;  %783 = vrot.lane.b32.xlu1 %v4238_v53, %s4026_s21 }
 0x147   : > { %2698 = vrot.lane.b32.xlu0 %v4231_v51, %s4028_s22  ;;  %2794 = vrot.lane.b32.xlu1 %v4231_v51, %s4029_s24 }
 0x14b   : > { %1437 = vrot.lane.b32.xlu0 %v4200_v49, %s4025_s20  ;;  %1526 = vrot.lane.b32.xlu1 %v4200_v49, %s4027_s28 }
 0x14f   : > { %958 = vrot.lane.b32.xlu0 %v4238_v53, %s4028_s22  ;;  %960 = vrot.lane.b32.xlu1 %v767_v54, %s4028_s22 }
 0x153   : > { %2892 = vrot.lane.b32.xlu0 %v4231_v51, %s4021_s18  ;;  %2980 = vrot.lane.b32.xlu1 %v4231_v51, %s4022_s11 }
 0x157   : > { %1055 = vrot.lane.b32.xlu0 %v4238_v53, %s4029_s24  ;;  %1057 = vrot.lane.b32.xlu1 %v767_v54, %s4029_s24 }
 0x15b   : > { %1740 = vrot.lane.b32.xlu0 %v4184_v45, %s4026_s21  ;;  %1742 = vrot.lane.b32.xlu1 %v4193_v47, %s4026_s21 }
 0x15f   : > { %1154 = vrot.lane.b32.xlu0 %v4238_v53, %s4021_s18  ;;  %1156 = vrot.lane.b32.xlu1 %v767_v54, %s4021_s18 }
 0x163   : > { %1245 = vrot.lane.b32.xlu0 %v767_v54, %s4022_s11  ;;  %1243 = vrot.lane.b32.xlu1 %v4238_v53, %s4022_s11 }
 0x167   : > { %2614 = vrot.lane.b32.xlu1 %v2519_v57, %s4026_s21  ;;  %2612 = vrot.lane.b32.xlu0 %v4273_v56, %s4026_s21 }
 0x16b   : > { %1340 = vrot.lane.b32.xlu1 %v4238_v53, %s4023_s12  ;;  %1342 = vrot.lane.b32.xlu0 %v767_v54, %s4023_s12 }
 0x16f   : > { %2700 = vrot.lane.b32.xlu1 %v4273_v56, %s4028_s22  ;;  %2702 = vrot.lane.b32.xlu0 %v2519_v57, %s4028_s22 }
 0x173   : > { %1738 = vrot.lane.b32.xlu1 %v4177_v43, %s4026_s21  ;;  %3076 = vrot.lane.b32.xlu0 %v4231_v51, %s4023_s12  ;;  %s3730_s21 = sshll.u32 %s3999_s13, 1 }
 0x174   : > { %p647_p7 = scmp.lt.s32.totalorder %s3730_s21, 31 }
 0x176   : > { %s4807_s21 = smov (!%p647_p7, %s3730_s21), 31 }
 0x177   : > { %2796 = vrot.lane.b32.xlu1 %v4273_v56, %s4029_s24  ;;  %2798 = vrot.lane.b32.xlu0 %v2519_v57, %s4029_s24 }
 0x17b   : > { %1439 = vrot.lane.b32.xlu1 %v4238_v53, %s4025_s20  ;;  %1441 = vrot.lane.b32.xlu0 %v767_v54, %s4025_s20 }
 0x17f   : > { %1528 = vrot.lane.b32.xlu1 %v4238_v53, %s4027_s28  ;;  %1530 = vrot.lane.b32.xlu0 %v767_v54, %s4027_s28 }
 0x183   : > { %2896 = vrot.lane.b32.xlu1 %v2519_v57, %s4021_s18  ;;  %2894 = vrot.lane.b32.xlu0 %v4273_v56, %s4021_s18 }
 0x187   : > { %2982 = vrot.lane.b32.xlu1 %v4273_v56, %s4022_s11  ;;  %2984 = vrot.lane.b32.xlu0 %v2519_v57, %s4022_s11  ;;  %s671_s11 = scalar_lea.vmem %s4764_s9, %s3737_s30 }
 0x189   : > { %v2021_v58 = vpop.permute.xlu0 %2020  ;;  %v2109_v59 = vpop.permute.xlu1 %2108 }
 0x18b   : > { %1830 = vrot.lane.b32.xlu1 %v4193_v47, %s4028_s22  ;;  %1828 = vrot.lane.b32.xlu0 %v4184_v45, %s4028_s22 }
 0x18d   : > { %v2023_v60 = vpop.permute.xlu0 %2022  ;;  %v2205_v61 = vpop.permute.xlu1 %2204 }
 0x18e   : > { %v2026_v12 = vsel %vm1158_vm5, %v2021_v58, %v2023_v60  ;;  %v775_v58 = vsel %vm4359_vm11, 0.0, %v4238_v53  ;;  %v3808_v53 = vld [vmem:[%s4758_s3 + $0x22] sm:$0x3] }
 0x18f   : > { %3080 = vrot.lane.b32.xlu1 %v2519_v57, %s4023_s12  ;;  %3078 = vrot.lane.b32.xlu0 %v4273_v56, %s4023_s12 }
 0x191   : > { %v2113_v62 = vpop.permute.xlu0 %2112  ;;  %v4311_v63 = vpop.permute.xlu1 %2302 }
 0x193   : > { %3174 = vrot.lane.b32.xlu1 %v4231_v51, %s4025_s20  ;;  %1826 = vrot.lane.b32.xlu0 %v4177_v43, %s4028_s22 }
 0x195   : > { %v4318_v1 = vpop.permute.xlu0 %781  ;;  %v4320_v2 = vpop.permute.xlu1 %2390 }
 0x197   : > { %1926 = vrot.lane.b32.xlu1 %v4193_v47, %s4029_s24  ;;  %1924 = vrot.lane.b32.xlu0 %v4184_v45, %s4029_s24 }
 0x199   : > { %v2209_v5 = vpop.permute.xlu0 %2208  ;;  %v2025_v6 = vpop.permute.xlu1 %2024 }
 0x19a   : > { %v2027_v9 = vsel %vm1158_vm5, %v2023_v60, %v2025_v6  ;;  %v3813_v6 = vld [vmem:[%s4758_s3 + $0x24] sm:$0x3] }
 0x19b   : > { %3176 = vrot.lane.b32.xlu1 %v4273_v56, %s4025_s20  ;;  %3178 = vrot.lane.b32.xlu0 %v2519_v57, %s4025_s20 }
 0x19c   : > { %3793 = vmatprep.subr.msk.mxu0 %vm794_vm4, %v2027_v9  ;;  %v3748_v9 = vld [vmem:[%s4758_s3 + $0x4] sm:$0x3] }
 0x19d   : > { %3794 = vmatpush1.msk.msra.mxu0 %vm794_vm4, %v2026_v12  ;;  %v4344_v13 = vpop.permute.xlu0 %956  ;;  %v2111_v14 = vpop.permute.xlu1 %2110 }
 0x19e   : > { %3795 = vmatmul.mubr.msk.f32.vlgmr.msra.gmra.mrb[0].mxu0 %vm790_vm6, %v3792_v3  ;;  %v2114_v15 = vsel %vm1247_vm7, %v2109_v59, %v2111_v14  ;;  %v2115_v16 = vsel %vm1247_vm7, %v2111_v14, %v2113_v62 }
 0x19f   : > { %v2118_v17 = vsel %vm4333_vm8, 0.0, %v2114_v15  ;;  %v2119_v18 = vsel %vm4337_vm9, 0.0, %v2115_v16  ;;  %3266 = vrot.lane.b32.xlu1 %v2519_v57, %s4027_s28  ;;  %3264 = vrot.lane.b32.xlu0 %v4273_v56, %s4027_s28  ;;  %v2521_v57 = vsel %vm4359_vm11, 0.0, %v4273_v56  ;;  %v774_v56 = vsel %vm4365_vm12, 0.0, %v4200_v49 }
 0x1a0   : > { %3797 = vmatprep.subr.msk.mxu0 %vm794_vm4, %v2119_v18  ;;  %2195 = vmatprep.mubr.f32.mxu0 %v4024_v46  ;;  %v2520_v49 = vsel %vm4365_vm12, 0.0, %v4231_v51 }
 0x1a1   : > { %v2307_v19 = vpop.permute.xlu0 %2306  ;;  %3798 = vmatpush1.msk.msra.mxu0 %vm794_vm4, %v2118_v17  ;;  %v2207_v20 = vpop.permute.xlu1 %2206 }
 0x1a2   : > { %v2210_v22 = vsel %vm1344_vm10, %v2205_v61, %v2207_v20  ;;  %v2211_v23 = vsel %vm1344_vm10, %v2207_v20, %v2209_v5 }
 0x1a3   : > { %v2215_v25 = vsel %vm4359_vm11, 0.0, %v2211_v23  ;;  %3262 = vrot.lane.b32.xlu1 %v4231_v51, %s4027_s28  ;;  %1922 = vrot.lane.b32.xlu0 %v4177_v43, %s4029_s24  ;;  %v2214_v27 = vsel %vm4365_vm12, 0.0, %v2210_v22  ;;  %s650_s28 = sadd.s32 %s4145_s23, %s4807_s21  ;;  %s679_s21 = scalar_lea.vmem %s4765_s10, %s3737_s30 }
 0x1a4   : > { %3801 = vmatprep.subr.msk.mxu0 %vm794_vm4, %v2215_v25  ;;  %s3732_s22 = sshll.u32 %s650_s28, 1 }
 0x1a5   : > { %v2393_v29 = vpop.permute.xlu0 %2392  ;;  %v2305_v30 = vpop.permute.xlu1 %2304  ;;  %s652_s27 = scalar_lea.vmem %s4762_s7, %s3732_s22  ;;  %s662_s26 = scalar_lea.vmem %s4763_s8, %s3732_s22 }
 0x1a6   : > { %3799 = vmatmul.mubr.msk.f32.vlgmr.msra.gmra.mrb[0].mxu0 %vm790_vm6, %v3796_v26  ;;  %v2309_v31 = vsel %vm1443_vm13, %v2305_v30, %v2307_v19  ;;  %v2308_v38 = vsel %vm1443_vm13, %v4311_v63, %v2305_v30  ;;  %v2396_v42 = vsel %vm1532_vm14, %v4320_v2, %v2393_v29  ;;  %v776_v63 = vld [vmem:[%s4758_s3] sm:$0x3]  ;;  %v3752_v19 = vld [vmem:[%s4758_s3 + $0x6] sm:$0x3]  ;;  %v3756_v30 = vld [vmem:[%s4758_s3 + $0x8] sm:$0x3] }
 0x1a7   : > { %3802 = vmatpush1.msk.msra.mxu0 %vm794_vm4, %v2214_v27  ;;  %3361 = vperm.xlu0 %3976, %v3358_v28   ;;  %v2400_v50 = vsel %vm4333_vm8, 0.0, %v2396_v42  ;;  %v3849_v24 = vld.sshfl [vmem:[%s652_s27] sm:$0x33 pattern:$0x76325410] }
 0x1a8   : > { %3805 = vmatprep.subr.msk.mxu0 %vm794_vm4, %v2309_v31  ;;  %2291 = vmatprep.mubr.f32.mxu0 %v4024_v46 }
 0x1a9   : > { %v4389_v32 = vpop.permute.xlu0 %1053  ;;  %v2395_v33 = vpop.permute.xlu1 %2394 }
 0x1aa   : > { %v2397_v35 = vsel %vm1532_vm14, %v2393_v29, %v2395_v33 }
 0x1ab   : > { %v2401_v39 = vsel %vm4337_vm9, 0.0, %v2397_v35 }
 0x1ad   : > { %v4395_v36 = vpop.permute.xlu0 %1152  ;;  %v4397_v37 = vpop.permute.xlu1 %1241 }
 0x1ae   : > { %3803 = vmatmul.mubr.msk.f32.vlgmr.msra.gmra.mrb[0].mxu0 %vm790_vm6, %v3800_v34 }
 0x1af   : > { %3806 = vmatpush1.msk.msra.mxu0 %vm794_vm4, %v2308_v38  ;;  %2381 = vmatprep.mubr.f32.mxu0 %v4024_v46 }
 0x1b0   : > { %3809 = vmatprep.subr.msk.mxu0 %vm794_vm4, %v2401_v39 }
 0x1b1   : > { %v4407_v40 = vpop.permute.xlu0 %2610  ;;  %v4409_v41 = vpop.permute.xlu1 %1338 }
 0x1b5   : > { %v786_v47 = vpop.permute.xlu0 %785  ;;  %v784_v48 = vpop.permute.xlu1 %783 }
 0x1b6   : > { %3807 = vmatmul.mubr.msk.f32.vlgmr.msra.gmra.mrb[0].mxu0 %vm790_vm6, %v3804_v44  ;;  %v789_v52 = vsel %vm787_vm15, %v784_v48, %v786_v47  ;;  %v788_v54 = vsel %vm787_vm15, %v4318_v1, %v784_v48  ;;  %v3760_v44 = vld [vmem:[%s4758_s3 + $0xa] sm:$0x3] }
 0x1b7   : > { %3810 = vmatpush1.msk.msra.mxu0 %vm794_vm4, %v2400_v50  ;;  %3742 = vmatprep.subr.msk.mxu1 %vm794_vm4, %v789_v52 }
 0x1b8   : > { %3814 = vmatprep.subr.msk.mxu0 %vm794_vm4, %v2521_v57  ;;  %3743 = vmatpush1.msk.msra.mxu1 %vm794_vm4, %v788_v54 }
 0x1b9   : > { %v4435_v59 = vpop.permute.xlu0 %2698  ;;  %3744 = vmatmul.mubr.msk.f32.vlgmr.msra.gmra.mrb[0].mxu1 %vm790_vm6, %v3741_v55  ;;  %3745 = vmatprep.subr.msk.mxu1 %vm794_vm4, %v775_v58  ;;  %v4439_v60 = vpop.permute.xlu1 %2794  ;;  %v3821_v58 = vld [vmem:[%s4758_s3 + $0x28] sm:$0x3] }
 0x1ba   : > { %3746 = vmatpush1.msk.msra.mxu1 %vm794_vm4, %v774_v56  ;;  %2477 = vmatprep.mubr.f32.mxu0 %v4024_v46 }
 0x1bb   : > { %943 = vmatprep.mubr.f32.mxu1 %v4024_v46 }
 0x1bd   : > { %v4450_v61 = vpop.permute.xlu0 %1437  ;;  %v4452_v62 = vpop.permute.xlu1 %1526 }
 0x1be   : > { %3811 = vmatmul.mubr.msk.f32.vlgmr.msra.gmra.mrb[0].mxu0 %vm790_vm6, %v3808_v53  ;;  %v3764_v53 = vld [vmem:[%s4758_s3 + $0xc] sm:$0x3] }
 0x1bf   : > { %3815 = vmatpush1.msk.msra.mxu0 %vm794_vm4, %v2520_v49  ;;  %2597 = vmatprep.mubr.f32.mxu0 %v4024_v46 }
 0x1c1   : > { %v959_v0 = vpop.permute.xlu0 %958  ;;  %3747 = vmatmul.mubr.msk.f32.vlgmr.msra.gmra.mrb[0].mxu1 %vm790_vm6, %v776_v63  ;;  %v961_v1 = vpop.permute.xlu1 %960 }
 0x1c2   : > { %v963_v2 = vsel %vm962_vm0, %v4344_v13, %v959_v0  ;;  %v964_v4 = vsel %vm962_vm0, %v959_v0, %v961_v1  ;;  %1044 = vmatprep.mubr.f32.mxu1 %v4024_v46 }
 0x1c3   : > { %v967_v51 = vsel %vm4333_vm8, 0.0, %v963_v2  ;;  %v968_v5 = vsel %vm4337_vm9, 0.0, %v964_v4 }
 0x1c4   : > { %3749 = vmatprep.subr.msk.mxu1 %vm794_vm4, %v968_v5 }
 0x1c5   : > { %v4476_v7 = vpop.permute.xlu0 %2892  ;;  %3750 = vmatpush1.msk.msra.mxu1 %vm794_vm4, %v967_v51  ;;  %v4479_v8 = vpop.permute.xlu1 %2980  ;;  %v3825_v51 = vld [vmem:[%s4758_s3 + $0x2a] sm:$0x3] }
 0x1c6   : > { %3816 = vmatmul.mubr.msk.f32.vlgmr.msra.gmra.mrb[0].mxu0 %vm790_vm6, %v3813_v6 }
 0x1c7   : > { %2689 = vmatprep.mubr.f32.mxu0 %v4024_v46 }
 0x1c9   : > { %v1056_v3 = vpop.permute.xlu0 %1055  ;;  %3751 = vmatmul.mubr.msk.f32.vlgmr.msra.gmra.mrb[0].mxu1 %vm790_vm6, %v3748_v9  ;;  %v1058_v12 = vpop.permute.xlu1 %1057 }
 0x1ca   : > { %v1060_v13 = vsel %vm1059_vm1, %v4389_v32, %v1056_v3  ;;  %v1061_v14 = vsel %vm1059_vm1, %v1056_v3, %v1058_v12  ;;  %1141 = vmatprep.mubr.f32.mxu1 %v4024_v46  ;;  %v3768_v3 = vld [vmem:[%s4758_s3 + $0xe] sm:$0x3] }
 0x1cb   : > { %v1064_v15 = vsel %vm4365_vm12, 0.0, %v1060_v13  ;;  %v1065_v16 = vsel %vm4359_vm11, 0.0, %v1061_v14 }
 0x1cc   : > { %3753 = vmatprep.subr.msk.mxu1 %vm794_vm4, %v1065_v16 }
 0x1cd   : > { %v4496_v17 = vpop.permute.xlu0 %1740  ;;  %3754 = vmatpush1.msk.msra.mxu1 %vm794_vm4, %v1064_v15  ;;  %v4499_v18 = vpop.permute.xlu1 %1742 }
 0x1d1   : > { %v1155_v20 = vpop.permute.xlu0 %1154  ;;  %3755 = vmatmul.mubr.msk.f32.vlgmr.msra.gmra.mrb[0].mxu1 %vm790_vm6, %v3752_v19  ;;  %v1157_v22 = vpop.permute.xlu1 %1156 }
 0x1d2   : > { %v1159_v23 = vsel %vm1158_vm5, %v4395_v36, %v1155_v20  ;;  %v1160_v25 = vsel %vm1158_vm5, %v1155_v20, %v1157_v22  ;;  %1232 = vmatprep.mubr.f32.mxu1 %v4024_v46 }
 0x1d3   : > { %3757 = vmatprep.subr.msk.mxu1 %vm794_vm4, %v1160_v25  ;;  %v3772_v25 = vld [vmem:[%s4758_s3 + $0x10] sm:$0x3] }
 0x1d4   : > { %3758 = vmatpush1.msk.msra.mxu1 %vm794_vm4, %v1159_v23 }
 0x1d5   : > { %v1246_v26 = vpop.permute.xlu0 %1245  ;;  %v1244_v27 = vpop.permute.xlu1 %1243 }
 0x1d6   : > { %v1248_v28 = vsel %vm1247_vm7, %v4397_v37, %v1244_v27  ;;  %v1249_v29 = vsel %vm1247_vm7, %v1244_v27, %v1246_v26  ;;  %v3817_v37 = vld [vmem:[%s4758_s3 + $0x26] sm:$0x3]  ;;  %v3829_v26 = vld [vmem:[%s4758_s3 + $0x2c] sm:$0x3] }
 0x1d7   : > { %v1252_v31 = vsel %vm4333_vm8, 0.0, %v1248_v28  ;;  %v1253_v32 = vsel %vm4337_vm9, 0.0, %v1249_v29  ;;  %v1745_v28 = vsel %vm787_vm15, %v4496_v17, %v4499_v18 }
 0x1d8   : > { %3761 = vmatprep.subr.msk.mxu1 %vm794_vm4, %v1253_v32  ;;  %v3776_v32 = vld [vmem:[%s4758_s3 + $0x12] sm:$0x3] }
 0x1d9   : > { %v2613_v33 = vpop.permute.xlu0 %2612  ;;  %3759 = vmatmul.mubr.msk.f32.vlgmr.msra.gmra.mrb[0].mxu1 %vm790_vm6, %v3756_v30  ;;  %v2615_v34 = vpop.permute.xlu1 %2614 }
 0x1da   : > { %v2616_v35 = vsel %vm787_vm15, %v4407_v40, %v2613_v33  ;;  %3762 = vmatpush1.msk.msra.mxu1 %vm794_vm4, %v1252_v31  ;;  %v2617_v36 = vsel %vm787_vm15, %v2613_v33, %v2615_v34  ;;  %1329 = vmatprep.mubr.f32.mxu1 %v4024_v46  ;;  %v3833_v33 = vld [vmem:[%s4758_s3 + $0x2e] sm:$0x3] }
 0x1db   : > { %3818 = vmatprep.subr.msk.mxu0 %vm794_vm4, %v2617_v36 }
 0x1dc   : > { %3819 = vmatpush1.msk.msra.mxu0 %vm794_vm4, %v2616_v35 }
 0x1dd   : > { %v1343_v38 = vpop.permute.xlu0 %1342  ;;  %v1341_v39 = vpop.permute.xlu1 %1340  ;;  %3820 = vmatmul.mubr.msk.f32.vlgmr.msra.gmra.mrb[0].mxu0 %vm790_vm6, %v3817_v37 }
 0x1de   : > { %v1345_v40 = vsel %vm1344_vm10, %v4409_v41, %v1341_v39  ;;  %v1346_v42 = vsel %vm1344_vm10, %v1341_v39, %v1343_v38  ;;  %2785 = vmatprep.mubr.f32.mxu0 %v4024_v46 }
 0x1df   : > { %v1349_v47 = vsel %vm4365_vm12, 0.0, %v1345_v40  ;;  %v1350_v48 = vsel %vm4359_vm11, 0.0, %v1346_v42 }
 0x1e0   : > { %3765 = vmatprep.subr.msk.mxu1 %vm794_vm4, %v1350_v48 }
 0x1e1   : > { %v2703_v50 = vpop.permute.xlu0 %2702  ;;  %3763 = vmatmul.mubr.msk.f32.vlgmr.msra.gmra.mrb[0].mxu1 %vm790_vm6, %v3760_v44  ;;  %v2701_v41 = vpop.permute.xlu1 %2700 }
 0x1e2   : > { %3766 = vmatpush1.msk.msra.mxu1 %vm794_vm4, %v1349_v47  ;;  %v2704_v52 = vsel %vm962_vm0, %v4435_v59, %v2701_v41  ;;  %v2705_v54 = vsel %vm962_vm0, %v2701_v41, %v2703_v50  ;;  %1426 = vmatprep.mubr.f32.mxu1 %v4024_v46  ;;  %v3780_v50 = vld [vmem:[%s4758_s3 + $0x14] sm:$0x3]  ;;  %v3837_v41 = vld [vmem:[%s4758_s3 + $0x30] sm:$0x3] }
 0x1e3   : > { %v2708_v55 = vsel %vm4333_vm8, 0.0, %v2704_v52  ;;  %v2709_v57 = vsel %vm4337_vm9, 0.0, %v2705_v54 }
 0x1e4   : > { %3822 = vmatprep.subr.msk.mxu0 %vm794_vm4, %v2709_v57 }
 0x1e5   : > { %v4560_v56 = vpop.permute.xlu0 %3076  ;;  %3823 = vmatpush1.msk.msra.mxu0 %vm794_vm4, %v2708_v55  ;;  %v4563_v59 = vpop.permute.xlu1 %1738 }
 0x1e6   : > { %3824 = vmatmul.mubr.msk.f32.vlgmr.msra.gmra.mrb[0].mxu0 %vm790_vm6, %v3821_v58  ;;  %v1744_v35 = vsel %vm787_vm15, %v4563_v59, %v4496_v17 }
 0x1e7   : > { %2881 = vmatprep.mubr.f32.mxu0 %v4024_v46 }
 0x1e9   : > { %v2799_v49 = vpop.permute.xlu0 %2798  ;;  %3767 = vmatmul.mubr.msk.f32.vlgmr.msra.gmra.mrb[0].mxu1 %vm790_vm6, %v3764_v53  ;;  %v2797_v63 = vpop.permute.xlu1 %2796 }
 0x1ea   : > { %v2800_v0 = vsel %vm1059_vm1, %v4439_v60, %v2797_v63  ;;  %v2801_v1 = vsel %vm1059_vm1, %v2797_v63, %v2799_v49  ;;  %1517 = vmatprep.mubr.f32.mxu1 %v4024_v46  ;;  %v3784_v63 = vld [vmem:[%s4758_s3 + $0x16] sm:$0x3] }
 0x1eb   : > { %v2804_v2 = vsel %vm4365_vm12, 0.0, %v2800_v0  ;;  %v2805_v4 = vsel %vm4359_vm11, 0.0, %v2801_v1  ;;  %v3841_v0 = vld [vmem:[%s4758_s3 + $0x32] sm:$0x3] }
 0x1ec   : > { %3826 = vmatprep.subr.msk.mxu0 %vm794_vm4, %v2805_v4 }
 0x1ed   : > { %v1442_v5 = vpop.permute.xlu0 %1441  ;;  %3827 = vmatpush1.msk.msra.mxu0 %vm794_vm4, %v2804_v2  ;;  %v1440_v60 = vpop.permute.xlu1 %1439 }
 0x1ee   : > { %v1444_v6 = vsel %vm1443_vm13, %v4450_v61, %v1440_v60  ;;  %v1445_v9 = vsel %vm1443_vm13, %v1440_v60, %v1442_v5  ;;  %3828 = vmatmul.mubr.msk.f32.vlgmr.msra.gmra.mrb[0].mxu0 %vm790_vm6, %v3825_v51 }
 0x1ef   : > { %3769 = vmatprep.subr.msk.mxu1 %vm794_vm4, %v1445_v9  ;;  %2971 = vmatprep.mubr.f32.mxu0 %v4024_v46  ;;  %v3788_v9 = vld [vmem:[%s4758_s3 + $0x18] sm:$0x3] }
 0x1f0   : > { %3770 = vmatpush1.msk.msra.mxu1 %vm794_vm4, %v1444_v6 }
 0x1f1   : > { %v1531_v12 = vpop.permute.xlu0 %1530  ;;  %3771 = vmatmul.mubr.msk.f32.vlgmr.msra.gmra.mrb[0].mxu1 %vm790_vm6, %v3768_v3  ;;  %v1529_v13 = vpop.permute.xlu1 %1528 }
 0x1f2   : > { %v1533_v61 = vsel %vm1532_vm14, %v4452_v62, %v1529_v13  ;;  %v1534_v14 = vsel %vm1532_vm14, %v1529_v13, %v1531_v12  ;;  %1614 = vmatprep.mubr.f32.mxu1 %v4024_v46  ;;  %v1649_v62 = vsel %vm4359_vm11, 0.0, %v4184_v45 }
 0x1f3   : > { %v1537_v15 = vsel %vm4333_vm8, 0.0, %v1533_v61  ;;  %v1538_v16 = vsel %vm4337_vm9, 0.0, %v1534_v14 }
 0x1f4   : > { %3773 = vmatprep.subr.msk.mxu1 %vm794_vm4, %v1538_v16 }
 0x1f5   : > { %v2895_v19 = vpop.permute.xlu0 %2894  ;;  %3774 = vmatpush1.msk.msra.mxu1 %vm794_vm4, %v1537_v15  ;;  %v2897_v20 = vpop.permute.xlu1 %2896 }
 0x1f6   : > { %v2898_v22 = vsel %vm1158_vm5, %v4476_v7, %v2895_v19  ;;  %v2899_v23 = vsel %vm1158_vm5, %v2895_v19, %v2897_v20  ;;  %3777 = vmatprep.subr.msk.mxu1 %vm794_vm4, %v1649_v62  ;;  %v1648_v7 = vsel %vm4365_vm12, 0.0, %v4177_v43  ;;  %v3375_v19 = vcombine.high %v3849_v24, %v3849_v24 }
 0x1f7   : > { %3830 = vmatprep.subr.msk.mxu0 %vm794_vm4, %v2899_v23 }
 0x1f8   : > { %3831 = vmatpush1.msk.msra.mxu0 %vm794_vm4, %v2898_v22 }
 0x1f9   : > { %v2985_v45 = vpop.permute.xlu0 %2984  ;;  %3775 = vmatmul.mubr.msk.f32.vlgmr.msra.gmra.mrb[0].mxu1 %vm790_vm6, %v3772_v25  ;;  %3832 = vmatmul.mubr.msk.f32.vlgmr.msra.gmra.mrb[0].mxu0 %vm790_vm6, %v3829_v26  ;;  %v2983_v27 = vpop.permute.xlu1 %2982 }
 0x1fa   : > { %3778 = vmatpush1.msk.msra.mxu1 %vm794_vm4, %v1648_v7  ;;  %v2986_v29 = vsel %vm1247_vm7, %v4479_v8, %v2983_v27  ;;  %v2987_v30 = vsel %vm1247_vm7, %v2983_v27, %v2985_v45  ;;  %1725 = vmatprep.mubr.f32.mxu1 %v4024_v46 }
 0x1fb   : > { %v2990_v31 = vsel %vm4333_vm8, 0.0, %v2986_v29  ;;  %v2991_v43 = vsel %vm4337_vm9, 0.0, %v2987_v30  ;;  %3781 = vmatprep.subr.msk.mxu1 %vm794_vm4, %v1745_v28  ;;  %3067 = vmatprep.mubr.f32.mxu0 %v4024_v46 }
 0x1fc   : > { %3834 = vmatprep.subr.msk.mxu0 %vm794_vm4, %v2991_v43 }
 0x1fd   : > { %v1829_v18 = vpop.permute.xlu0 %1828  ;;  %3835 = vmatpush1.msk.msra.mxu0 %vm794_vm4, %v2990_v31  ;;  %v1831_v8 = vpop.permute.xlu1 %1830 }
 0x1fe   : > { %v1833_v34 = vsel %vm962_vm0, %v1829_v18, %v1831_v8 }
 0x1ff   : > { %v1837_v38 = vsel %vm4337_vm9, 0.0, %v1833_v34 }
 0x201   : > { %v3079_v36 = vpop.permute.xlu0 %3078  ;;  %3779 = vmatmul.mubr.msk.f32.vlgmr.msra.gmra.mrb[0].mxu1 %vm790_vm6, %v3776_v32  ;;  %3836 = vmatmul.mubr.msk.f32.vlgmr.msra.gmra.mrb[0].mxu0 %vm790_vm6, %v3833_v33  ;;  %v3081_v37 = vpop.permute.xlu1 %3080 }
 0x202   : > { %v3082_v39 = vsel %vm1344_vm10, %v4560_v56, %v3079_v36  ;;  %3782 = vmatpush1.msk.msra.mxu1 %vm794_vm4, %v1744_v35  ;;  %v3083_v40 = vsel %vm1344_vm10, %v3079_v36, %v3081_v37  ;;  %1817 = vmatprep.mubr.f32.mxu1 %v4024_v46 }
 0x203   : > { %v3086_v17 = vsel %vm4365_vm12, 0.0, %v3082_v39  ;;  %v3087_v42 = vsel %vm4359_vm11, 0.0, %v3083_v40  ;;  %3785 = vmatprep.subr.msk.mxu1 %vm794_vm4, %v1837_v38  ;;  %3163 = vmatprep.mubr.f32.mxu0 %v4024_v46 }
 0x204   : > { %3838 = vmatprep.subr.msk.mxu0 %vm794_vm4, %v3087_v42 }
 0x205   : > { %v1827_v44 = vpop.permute.xlu0 %1826  ;;  %3839 = vmatpush1.msk.msra.mxu0 %vm794_vm4, %v3086_v17  ;;  %v3175_v47 = vpop.permute.xlu1 %3174 }
 0x206   : > { %v1832_v48 = vsel %vm962_vm0, %v1827_v44, %v1829_v18 }
 0x207   : > { %v1836_v52 = vsel %vm4333_vm8, 0.0, %v1832_v48 }
 0x209   : > { %v1925_v54 = vpop.permute.xlu0 %1924  ;;  %3783 = vmatmul.mubr.msk.f32.vlgmr.msra.gmra.mrb[0].mxu1 %vm790_vm6, %v3780_v50  ;;  %3840 = vmatmul.mubr.msk.f32.vlgmr.msra.gmra.mrb[0].mxu0 %vm790_vm6, %v3837_v41  ;;  %v1927_v55 = vpop.permute.xlu1 %1926 }
 0x20a   : > { %3786 = vmatpush1.msk.msra.mxu1 %vm794_vm4, %v1836_v52  ;;  %v1929_v57 = vsel %vm1059_vm1, %v1925_v54, %v1927_v55  ;;  %1913 = vmatprep.mubr.f32.mxu1 %v4024_v46 }
 0x20b   : > { %v1933_v58 = vsel %vm4359_vm11, 0.0, %v1929_v57  ;;  %3253 = vmatprep.mubr.f32.mxu0 %v4024_v46 }
 0x20c   : > { %3789 = vmatprep.subr.msk.mxu1 %vm794_vm4, %v1933_v58 }
 0x20d   : > { %v3179_v56 = vpop.permute.xlu0 %3178  ;;  %v3177_v59 = vpop.permute.xlu1 %3176 }
 0x20e   : > { %v3180_v53 = vsel %vm1443_vm13, %v3175_v47, %v3177_v59  ;;  %v3181_v49 = vsel %vm1443_vm13, %v3177_v59, %v3179_v56 }
 0x20f   : > { %3842 = vmatprep.subr.msk.mxu0 %vm794_vm4, %v3181_v49 }
 0x210   : > { %3843 = vmatpush1.msk.msra.mxu0 %vm794_vm4, %v3180_v53 }
 0x211   : > { %v3265_v21 = vpop.permute.xlu0 %3264  ;;  %3787 = vmatmul.mubr.msk.f32.vlgmr.msra.gmra.mrb[0].mxu1 %vm790_vm6, %v3784_v63  ;;  %3844 = vmatmul.mubr.msk.f32.vlgmr.msra.gmra.mrb[0].mxu0 %vm790_vm6, %v3841_v0  ;;  %v3267_v1 = vpop.permute.xlu1 %3266 }
 0x212   : > { %v3269_v2 = vsel %vm1532_vm14, %v3265_v21, %v3267_v1  ;;  %2009 = vmatprep.mubr.f32.mxu1 %v4024_v46  ;;  %3349 = vmatprep.mubr.f32.mxu0 %v4024_v46  ;;  %v3845_v46 = vld [vmem:[%s4758_s3 + $0x34] sm:$0x3] }
 0x213   : > { %v3273_v4 = vsel %vm4337_vm9, 0.0, %v3269_v2 }
 0x214   : > { %3846 = vmatprep.subr.msk.mxu0 %vm794_vm4, %v3273_v4 }
 0x215   : > { %v1923_v51 = vpop.permute.xlu0 %1922  ;;  %v3263_v5 = vpop.permute.xlu1 %3262 }
 0x216   : > { %v1928_v60 = vsel %vm1059_vm1, %v1923_v51, %v1925_v54  ;;  %v3268_v6 = vsel %vm1532_vm14, %v3263_v5, %v3265_v21 }
 0x217   : > { %v1932_v11 = vsel %vm4365_vm12, 0.0, %v1928_v60  ;;  %v3272_v3 = vsel %vm4333_vm8, 0.0, %v3268_v6 }
 0x218   : > { %3790 = vmatpush1.msk.msra.mxu1 %vm794_vm4, %v1932_v11  ;;  %3847 = vmatpush1.msk.msra.mxu0 %vm794_vm4, %v3272_v3 }
 0x219   : > { %3791 = vmatmul.mubr.msk.f32.vlgmr.msra.gmra.mrb[0].mxu1 %vm790_vm6, %v3788_v9  ;;  %3848 = vmatmul.mubr.msk.f32.vlgmr.msra.gmra.mrb[0].mxu0 %vm790_vm6, %v3845_v46 }
 0x226   : > { %v3362_v15 = vpop.permute.xlu0 %3361 }
 0x2ec   : > { %v2011_v10 = vpop.f32.mrb[0].mxu1  ;;  %v3351_v12 = vpop.f32.mrb[0].mxu0 }
 0x2ed   : > { %v3871_v13 = vadd.f32 %v3351_v12, %v2011_v10  ;;  %v2013_v61 = vpop.f32.mrb[1].mxu1  ;;  %v3353_v14 = vpop.f32.mrb[1].mxu0 }
 0x2ee   : > { %v3872_v16 = vadd.f32 %v3353_v14, %v2013_v61 }
 0x2ef   : > { %v3364_v20 = vadd.f32 %v3871_v13, %v3362_v15 }
 0x2f0   : > { %v3365_v62 = vadd.f32 %v3872_v16, %v3362_v15 }
 0x2f1   : > { %v3378_v22 = vadd.f32 %v3849_v24, %v3364_v20 }
 0x2f2   : > { %v3379_v23 = vadd.f32 %v3375_v19, %v3365_v62 }
 0x2f3   : > { %v3392_v25 = vsel %vm794_vm4, %v3378_v22, 0.0  ;;  %v3399_v26 = vmul.f32 %v3378_v22, %v3378_v22 }
 0x2f4   : > { %v3382_v45 = vcombine.low %v3378_v22, %v3379_v23  ;;  %v3393_v7 = vsel %vm794_vm4, %v3379_v23, 0.0  ;;  %v3400_v27 = vmul.f32 %v3379_v23, %v3379_v23 }
 0x2f5   : > { %v3394_v28 = vadd.f32 %v3393_v7, %v3392_v25  ;;  %v3401_v29 = vsel %vm794_vm4, %v3399_v26, 0.0 }
 0x2f6   : > { %3850 = vst.sshfl [vmem:[%s662_s26] sm:$0x33 pattern:$0x76325410] %v3382_v45  ;;  %v3402_v30 = vsel %vm794_vm4, %v3400_v27, 0.0 }
 0x2f7   : > { %3395 = vadd.xlane.f32.xlu1 %v3394_v28  ;;  %v3403_v31 = vadd.f32 %v3402_v30, %v3401_v29 }
 0x2f9   : > { %3404 = vadd.xlane.f32.xlu0 %v3403_v31 }
 0x384   : > { %v3396_v43 = vpop.xlane.xlu1 %3395 }
 0x385   : > { %3398 = vst.msk [vmem:[%s671_s11] sm:$0x3] %vm3397_vm2, %v3396_v43 }
 0x386   : > { %v3405_v18 = vpop.xlane.xlu0 %3404 }
 0x387   : > { %3406 = vst.msk [vmem:[%s679_s21] sm:$0x3] %vm3397_vm2, %v3405_v18 }
 0x388 PF: > { %s21_s17 = sadd.s32 1, %s4015_s17   ;;  %s4782_s29 = sld [smem:[#allocation2_spill]] }
 0x389   : > { %p18_p8 = scmp.ge.s32.totalorder %s21_s17, 34   ;;  %s4783_s28 = sld [smem:[#allocation3_spill]] }
 0x38a   : > { %s4784_s13 = smov %s4007_s15  ;;  %s4785_s14 = smov %s4011_s16 }
 0x38b   :  { %20 = sbr.rel (!%p18_p8) target bundleno = 4 (0x4), region = 147 }
 0x38e   : > { %s4786_s15 = smov %s4782_s29 }
 0x38f   : > { %s4787_s16 = smov %s4783_s28 }

</bundles_post_ra>
